<compile_context>
chip_gen: v7x
topology: tpu7x:2x2x1
jax: 0.10.0
libtpu: 0.0.40
codegen_flags: <defaults>
</compile_context>

<pallas_src>
import functools

import jax
import jax.numpy as jnp
from jax.experimental import pallas as pl
from jax.experimental.pallas import tpu as pltpu

EPS = 1e-5
SLOPE = 0.01                     # nn.LeakyReLU default negative_slope
VMEM_LIMIT = 32 * 1024 * 1024    # explicit scoped-VMEM budget (safe on v5e/v6e/v7x)


def _leaky(x):
    return jnp.where(x > 0, x, SLOPE * x)


def _round_up(x, m):
    return (x + m - 1) // m * m


def _row_plan(rows):
    """Pick a large row tile (>=512 when possible) and the padded row count."""
    if rows <= 1024:
        tr = _round_up(rows, 8)
        return tr, tr
    tr = 512
    return _round_up(rows, tr), tr


def _bn_scale_shift(stats, count, gamma, beta):
    """(sum, sumsq) -> per-channel affine (scale, shift) for training-mode BN."""
    mean = stats[0:1] / count
    var = jnp.maximum(stats[1:2] / count - mean * mean, 0.0)    # biased variance
    scale = gamma * jax.lax.rsqrt(var + EPS)
    shift = beta - mean * scale
    return scale, shift


# ---------------------------------------------------------------------------
# K1: 1x1 conv (+ bias) + per-channel sum/sumsq accumulation for the next BN
# ---------------------------------------------------------------------------
def _conv1x1_stats_kernel(x_ref, w_ref, b_ref, o_ref, stats_ref, *,
                          tr, valid_rows, need_mask):
    i = pl.program_id(0)
    acc = jnp.dot(x_ref[...], w_ref[...], preferred_element_type=jnp.float32)
    h = acc + b_ref[...]                         # true conv output (f32)
    o_ref[...] = h.astype(o_ref.dtype)

    if need_mask:                                # exclude zero-padded rows from stats
        rid = jax.lax.broadcasted_iota(jnp.int32, h.shape, 0) + i * tr
        hm = jnp.where(rid < valid_rows, h, 0.0)
    else:
        hm = h
    st = jnp.concatenate([jnp.sum(hm, axis=0, keepdims=True),
                          jnp.sum(hm * hm, axis=0, keepdims=True)], axis=0)

    @pl.when(i == 0)
    def _():
        stats_ref[...] = jnp.zeros_like(stats_ref)

    stats_ref[...] += st


def conv1x1_with_stats(x2d, w, b, *, tr, valid_rows):
    rows_p, cin = x2d.shape
    cout = w.shape[1]
    return pl.pallas_call(
        functools.partial(_conv1x1_stats_kernel, tr=tr, valid_rows=valid_rows,
                          need_mask=rows_p != valid_rows),
        out_shape=(jax.ShapeDtypeStruct((rows_p, cout), jnp.bfloat16),
                   jax.ShapeDtypeStruct((2, cout), jnp.float32)),
        grid=(rows_p // tr,),
        in_specs=[pl.BlockSpec((tr, cin), lambda i: (i, 0)),
                  pl.BlockSpec((cin, cout), lambda i: (0, 0)),
                  pl.BlockSpec((1, cout), lambda i: (0, 0))],
        out_specs=(pl.BlockSpec((tr, cout), lambda i: (i, 0)),
                   pl.BlockSpec((2, cout), lambda i: (0, 0))),
        compiler_params=pltpu.CompilerParams(
            dimension_semantics=("arbitrary",),   # stats accumulator is grid-carried
            vmem_limit_bytes=VMEM_LIMIT),
    )(x2d, w, b)


# ---------------------------------------------------------------------------
# K2: BN1 + LeakyReLU prologue -> 3x3 conv as one K=9*width matmul per image tile
#     (+ per-channel sum/sumsq accumulation for BN2)
# ---------------------------------------------------------------------------
def _conv3x3_fused_kernel(h1p_ref, s1_ref, t1_ref, w2_ref, b2_ref,
                          o_ref, stats_ref, *, H, W, Ho, Wo, stride, cw):
    n = pl.program_id(0)
    x = h1p_ref[...].astype(jnp.float32)          # (H+2, W+2, cw) raw conv1 output
    x = x * s1_ref[...] + t1_ref[...]             # BN1 (scale/shift)
    x = _leaky(x)
    # conv2 zero-pads the *post-activation* feature map -> re-zero the 1-px halo
    hi = jax.lax.broadcasted_iota(jnp.int32, x.shape, 0)
    wi = jax.lax.broadcasted_iota(jnp.int32, x.shape, 1)
    interior = (hi >= 1) & (hi <= H) & (wi >= 1) & (wi <= W)
    x = jnp.where(interior, x, 0.0).astype(jnp.bfloat16)

    # in-VMEM im2col: 9 shifted taps concatenated on the lane axis -> one K=288 dot
    taps = []
    for kh in range(3):
        for kw in range(3):
            if stride == 1:
                sl = x[kh:kh + Ho, kw:kw + Wo, :]
            else:
                # TODO(synk): strided in-kernel slice; validated for stride=1 only.
                sl = x[kh:kh + (Ho - 1) * stride + 1:stride,
                       kw:kw + (Wo - 1) * stride + 1:stride, :]
            taps.append(sl.reshape(Ho * Wo, cw))
    pmat = jnp.concatenate(taps, axis=1)          # (Ho*Wo, 9*cw)
    h = jnp.dot(pmat, w2_ref[...], preferred_element_type=jnp.float32) + b2_ref[...]
    o_ref[...] = h.astype(o_ref.dtype)

    st = jnp.concatenate([jnp.sum(h, axis=0, keepdims=True),
                          jnp.sum(h * h, axis=0, keepdims=True)], axis=0)

    @pl.when(n == 0)
    def _():
        stats_ref[...] = jnp.zeros_like(stats_ref)

    stats_ref[...] += st


def conv3x3_fused(h1p, s1, t1, w2, b2, *, N, H, W, Ho, Wo, stride, cw):
    return pl.pallas_call(
        functools.partial(_conv3x3_fused_kernel, H=H, W=W, Ho=Ho, Wo=Wo,
                          stride=stride, cw=cw),
        out_shape=(jax.ShapeDtypeStruct((N * Ho * Wo, cw), jnp.bfloat16),
                   jax.ShapeDtypeStruct((2, cw), jnp.float32)),
        grid=(N,),
        in_specs=[pl.BlockSpec((None, H + 2, W + 2, cw), lambda n: (n, 0, 0, 0)),
                  pl.BlockSpec((1, cw), lambda n: (0, 0)),
                  pl.BlockSpec((1, cw), lambda n: (0, 0)),
                  pl.BlockSpec((9 * cw, cw), lambda n: (0, 0)),
                  pl.BlockSpec((1, cw), lambda n: (0, 0))],
        out_specs=(pl.BlockSpec((Ho * Wo, cw), lambda n: (n, 0)),
                   pl.BlockSpec((2, cw), lambda n: (0, 0))),
        compiler_params=pltpu.CompilerParams(
            dimension_semantics=("arbitrary",),
            vmem_limit_bytes=VMEM_LIMIT),
    )(h1p, s1, t1, w2, b2)


# ---------------------------------------------------------------------------
# K3: BN2 + LeakyReLU prologue -> conv3 (1x1) & downsample (1x1) fused into one
#     lane-dense (rows, 2*cout) output (+ sum/sumsq for BN3 and BNd)
# ---------------------------------------------------------------------------
def _conv3_ds_kernel(h2_ref, s2_ref, t2_ref, xd_ref, w3_ref, b3_ref, wd_ref,
                     o_ref, stats_ref, *, tr, valid_rows, need_mask):
    i = pl.program_id(0)
    a = h2_ref[...].astype(jnp.float32) * s2_ref[...] + t2_ref[...]   # BN2
    a = _leaky(a).astype(jnp.bfloat16)
    h3 = jnp.dot(a, w3_ref[...], preferred_element_type=jnp.float32) + b3_ref[...]
    idn = jnp.dot(xd_ref[...], wd_ref[...], preferred_element_type=jnp.float32)
    cat = jnp.concatenate([h3, idn], axis=1)      # (tr, 2*cout) -> unmasked 128-lane stores
    o_ref[...] = cat.astype(o_ref.dtype)

    if need_mask:
        rid = jax.lax.broadcasted_iota(jnp.int32, cat.shape, 0) + i * tr
        cm = jnp.where(rid < valid_rows, cat, 0.0)
    else:
        cm = cat
    st = jnp.concatenate([jnp.sum(cm, axis=0, keepdims=True),
                          jnp.sum(cm * cm, axis=0, keepdims=True)], axis=0)

    @pl.when(i == 0)
    def _():
        stats_ref[...] = jnp.zeros_like(stats_ref)

    stats_ref[...] += st


def conv3_ds_fused(h2, s2, t2, xd, w3, b3, wd, *, tr, valid_rows):
    rows_p, cw = h2.shape
    cin = xd.shape[1]
    cout = w3.shape[1]
    return pl.pallas_call(
        functools.partial(_conv3_ds_kernel, tr=tr, valid_rows=valid_rows,
                          need_mask=rows_p != valid_rows),
        out_shape=(jax.ShapeDtypeStruct((rows_p, 2 * cout), jnp.bfloat16),
                   jax.ShapeDtypeStruct((2, 2 * cout), jnp.float32)),
        grid=(rows_p // tr,),
        in_specs=[pl.BlockSpec((tr, cw), lambda i: (i, 0)),
                  pl.BlockSpec((1, cw), lambda i: (0, 0)),
                  pl.BlockSpec((1, cw), lambda i: (0, 0)),
                  pl.BlockSpec((tr, cin), lambda i: (i, 0)),
                  pl.BlockSpec((cw, cout), lambda i: (0, 0)),
                  pl.BlockSpec((1, cout), lambda i: (0, 0)),
                  pl.BlockSpec((cin, cout), lambda i: (0, 0))],
        out_specs=(pl.BlockSpec((tr, 2 * cout), lambda i: (i, 0)),
                   pl.BlockSpec((2, 2 * cout), lambda i: (0, 0))),
        compiler_params=pltpu.CompilerParams(
            dimension_semantics=("arbitrary",),
            vmem_limit_bytes=VMEM_LIMIT),
    )(h2, s2, t2, xd, w3, b3, wd)


# ---------------------------------------------------------------------------
# K4: BN3(h3) + BNd(identity) + residual add + LeakyReLU (row-tiled, parallel)
# ---------------------------------------------------------------------------
def _tail_kernel(cat_ref, sc_ref, sh_ref, o_ref, *, cout):
    y = cat_ref[...].astype(jnp.float32) * sc_ref[...] + sh_ref[...]   # [BN3 | BNd]
    z = y[:, :cout] + y[:, cout:]                                      # residual add
    o_ref[...] = _leaky(z)


def residual_tail(cat, sc, sh, *, cout, tr):
    rows_p = cat.shape[0]
    return pl.pallas_call(
        functools.partial(_tail_kernel, cout=cout),
        out_shape=jax.ShapeDtypeStruct((rows_p, cout), jnp.float32),
        grid=(rows_p // tr,),
        in_specs=[pl.BlockSpec((tr, 2 * cout), lambda i: (i, 0)),
                  pl.BlockSpec((1, 2 * cout), lambda i: (0, 0)),
                  pl.BlockSpec((1, 2 * cout), lambda i: (0, 0))],
        out_specs=pl.BlockSpec((tr, cout), lambda i: (i, 0)),
        compiler_params=pltpu.CompilerParams(
            dimension_semantics=("parallel",),   # no carried state -> megacore-friendly
            vmem_limit_bytes=VMEM_LIMIT),
    )(cat, sc, sh)


# ---------------------------------------------------------------------------
# Parameter init (deterministic, mimics the module's __init__/_init_weight)
# ---------------------------------------------------------------------------
def init_params(key, in_channels, out_channels, channel_scale=4):
    width = max(out_channels // channel_scale, 32)
    gain = (2.0 / (1.0 + SLOPE ** 2)) ** 0.5     # kaiming_normal, leaky_relu, fan_out

    def kaiming(k, shape, fan_out):
        return (gain / fan_out ** 0.5) * jax.random.normal(k, shape, jnp.float32)

    ks = jax.random.split(key, 7)
    p = {
        # conv1: 1x1, in -> width                       (stored (Cin, Cout), bf16)
        "w1": kaiming(ks[0], (in_channels, width), width).astype(jnp.bfloat16),
        "b1": 0.01 * jax.random.normal(ks[1], (1, width), jnp.float32),
        "g1": jnp.ones((1, width), jnp.float32),
        "be1": jnp.zeros((1, width), jnp.float32),
        # conv2: 3x3, width -> width    (stored (9*Cin, Cout), tap-major = kh*3+kw)
        "w2": kaiming(ks[2], (9 * width, width), width * 9).astype(jnp.bfloat16),
        "b2": 0.01 * jax.random.normal(ks[3], (1, width), jnp.float32),
        "g2": jnp.ones((1, width), jnp.float32),
        "be2": jnp.zeros((1, width), jnp.float32),
        # conv3: 1x1, width -> out
        "w3": kaiming(ks[4], (width, out_channels), out_channels).astype(jnp.bfloat16),
        "b3": 0.01 * jax.random.normal(ks[5], (1, out_channels), jnp.float32),
        "g3": jnp.ones((1, out_channels), jnp.float32),
        "be3": jnp.zeros((1, out_channels), jnp.float32),
        # downsample: 1x1 stride conv, no bias, + BN
        "wd": kaiming(ks[6], (in_channels, out_channels), out_channels).astype(jnp.bfloat16),
        "gd": jnp.ones((1, out_channels), jnp.float32),
        "bed": jnp.zeros((1, out_channels), jnp.float32),
    }
    return p, width


# ---------------------------------------------------------------------------
# Forward pass
# ---------------------------------------------------------------------------
def residual_conv_block_forward(x_nchw, params, width, stride=1):
    N, Cin, H, W = x_nchw.shape
    cout = params["w3"].shape[1]
    Ho = (H - 1) // stride + 1
    Wo = (W - 1) // stride + 1

    # NCHW -> NHWC (layout glue)
    x = jnp.transpose(x_nchw, (0, 2, 3, 1))

    # --- K1: conv1 (1x1) + BN1 stats ---
    rows1 = N * H * W
    rows1_p, tr1 = _row_plan(rows1)
    x2d = x.reshape(rows1, Cin).astype(jnp.bfloat16)
    if rows1_p != rows1:
        x2d = jnp.pad(x2d, ((0, rows1_p - rows1), (0, 0)))
    h1, st1 = conv1x1_with_stats(x2d, params["w1"], params["b1"],
                                 tr=tr1, valid_rows=rows1)
    s1, t1 = _bn_scale_shift(st1, rows1, params["g1"], params["be1"])

    # --- K2: BN1+act prologue -> conv2 (3x3, stride, pad=1) + BN2 stats ---
    # spatial zero-halo added here (tiny bf16 pad); kernel re-zeros it post-activation
    h1p = jnp.pad(h1[:rows1].reshape(N, H, W, width),
                  ((0, 0), (1, 1), (1, 1), (0, 0)))
    # TODO(synk): K2 holds one padded image per grid step; very large H*W would need
    # in-kernel halo row-blocking instead of per-image blocking.
    h2, st2 = conv3x3_fused(h1p, s1, t1, params["w2"], params["b2"],
                            N=N, H=H, W=W, Ho=Ho, Wo=Wo, stride=stride, cw=width)
    rows2 = N * Ho * Wo
    s2, t2 = _bn_scale_shift(st2, rows2, params["g2"], params["be2"])

    # --- K3: BN2+act prologue -> conv3 & downsample fused (lane-dense 2*cout) ---
    rows2_p, tr2 = _row_plan(rows2)
    xd = x[:, ::stride, ::stride, :].reshape(rows2, Cin).astype(jnp.bfloat16)
    if rows2_p != rows2:
        h2 = jnp.pad(h2, ((0, rows2_p - rows2), (0, 0)))
        xd = jnp.pad(xd, ((0, rows2_p - rows2), (0, 0)))
    cat, st3 = conv3_ds_fused(h2, s2, t2, xd, params["w3"], params["b3"],
                              params["wd"], tr=tr2, valid_rows=rows2)
    s3, t3 = _bn_scale_shift(st3[:, :cout], rows2, params["g3"], params["be3"])
    sd, td = _bn_scale_shift(st3[:, cout:], rows2, params["gd"], params["bed"])
    sc = jnp.concatenate([s3, sd], axis=1)
    sh = jnp.concatenate([t3, td], axis=1)

    # --- K4: BN3(h3) + BNd(ident) -> add -> LeakyReLU ---
    y = residual_tail(cat, sc, sh, cout=cout, tr=tr2)
    y = y[:rows2].reshape(N, Ho, Wo, cout)
    return jnp.transpose(y, (0, 3, 1, 2))   # back to NCHW


# ---------------------------------------------------------------------------
# Main
# ---------------------------------------------------------------------------
if __name__ == "__main__":
    key = jax.random.PRNGKey(0)
    k_x, k_p = jax.random.split(key)

    N, Cin, H, W = 2, 4, 16, 16
    out_channels = 64
    stride = 1

    x = jax.random.normal(k_x, (N, Cin, H, W), jnp.float32)
    params, width = init_params(k_p, Cin, out_channels)

    fwd = jax.jit(functools.partial(residual_conv_block_forward,
                                    width=width, stride=stride))
    out = jax.block_until_ready(fwd(x, params))

    Ho = (H - 1) // stride + 1
    Wo = (W - 1) // stride + 1
    assert out.shape == (N, out_channels, Ho, Wo), out.shape
    assert bool(jnp.all(jnp.isfinite(out)))
    print("KERNEL_OK")
</pallas_src>

<mosaic_0001>
module attributes {stable_mosaic.version = 11 : i64} {
  func.func @_conv1x1_stats_kernel(%arg0: i32, %arg1: memref<512x4xbf16, #tpu.memory_space<vmem>>, %arg2: memref<4x32xbf16, #tpu.memory_space<vmem>>, %arg3: memref<1x32xf32, #tpu.memory_space<vmem>>, %arg4: memref<512x32xbf16, #tpu.memory_space<vmem>>, %arg5: memref<2x32xf32, #tpu.memory_space<vmem>>) attributes {dimension_semantics = [#tpu.dimension_semantics<arbitrary>], iteration_bounds = array<i64: 1>, scalar_prefetch = 0 : i64, scratch_operands = 0 : i64, tpu.core_type = #tpu.core_type<tc>, window_params = [{transform_indices = @transform_0, window_bounds = array<i64: 512, 4>}, {pipeline_mode = #tpu.pipeline_mode<synchronous>, transform_indices = @transform_1, window_bounds = array<i64: 4, 32>}, {pipeline_mode = #tpu.pipeline_mode<synchronous>, transform_indices = @transform_2, window_bounds = array<i64: 1, 32>}, {transform_indices = @transform_3, window_bounds = array<i64: 512, 32>}, {pipeline_mode = #tpu.pipeline_mode<synchronous>, transform_indices = @transform_4, window_bounds = array<i64: 2, 32>}]} {
    %c0 = arith.constant 0 : index
    %c0_0 = arith.constant 0 : index
    %0 = vector.load %arg1[%c0, %c0_0] : memref<512x4xbf16, #tpu.memory_space<vmem>>, vector<512x4xbf16>
    %c0_1 = arith.constant 0 : index
    %c0_2 = arith.constant 0 : index
    %1 = vector.load %arg2[%c0_1, %c0_2] : memref<4x32xbf16, #tpu.memory_space<vmem>>, vector<4x32xbf16>
    %cst = arith.constant dense<0.000000e+00> : vector<512x32xf32>
    %2 = tpu.matmul %0, %1, %cst {dimension_numbers = #tpu.dot_dimension_numbers<[1], [0], [0], [1], [0, 0, 1, 1], [], []>} : vector<512x4xbf16>, vector<4x32xbf16>, vector<512x32xf32> -> vector<512x32xf32>
    %c0_3 = arith.constant 0 : index
    %c0_4 = arith.constant 0 : index
    %3 = vector.load %arg3[%c0_3, %c0_4] : memref<1x32xf32, #tpu.memory_space<vmem>>, vector<1x32xf32>
    %4 = vector.broadcast %3 : vector<1x32xf32> to vector<512x32xf32>
    %5 = arith.addf %2, %4 : vector<512x32xf32>
    %6 = arith.truncf %5 : vector<512x32xf32> to vector<512x32xbf16>
    %c0_5 = arith.constant 0 : index
    %c0_6 = arith.constant 0 : index
    %7 = vector.load %arg4[%c0_5, %c0_6] : memref<512x32xbf16, #tpu.memory_space<vmem>>, vector<512x32xbf16>
    tpu.vector_store %arg4[%c0_5, %c0_6], %6 {strides = array<i32>} : memref<512x32xbf16, #tpu.memory_space<vmem>>, vector<512x32xbf16>,
    %cst_7 = arith.constant dense<0.000000e+00> : vector<32xf32>
    %8 = vector.multi_reduction <add>, %5, %cst_7 [0] : vector<512x32xf32> to vector<32xf32>
    %9 = vector.shape_cast %8 : vector<32xf32> to vector<1x32xf32>
    %10 = arith.mulf %5, %5 : vector<512x32xf32>
    %cst_8 = arith.constant dense<0.000000e+00> : vector<32xf32>
    %11 = vector.multi_reduction <add>, %10, %cst_8 [0] : vector<512x32xf32> to vector<32xf32>
    %12 = vector.shape_cast %11 : vector<32xf32> to vector<1x32xf32>
    %13 = tpu.concatenate %9, %12 in 0 : vector<1x32xf32>, vector<1x32xf32> -> vector<2x32xf32>
    %c0_i32 = arith.constant 0 : i32
    %14 = arith.cmpi eq, %arg0, %c0_i32 : i32
    %15 = arith.extui %14 : i1 to i32
    %c0_i32_9 = arith.constant 0 : i32
    %16 = arith.cmpi ne, %15, %c0_i32_9 : i32
    scf.if %16 {
      %cst_14 = arith.constant 0.000000e+00 : f32
      %20 = vector.broadcast %cst_14 : f32 to vector<2x32xf32>
      %c0_15 = arith.constant 0 : index
      %c0_16 = arith.constant 0 : index
      %21 = vector.load %arg5[%c0_15, %c0_16] : memref<2x32xf32, #tpu.memory_space<vmem>>, vector<2x32xf32>
      tpu.vector_store %arg5[%c0_15, %c0_16], %20 {strides = array<i32>} : memref<2x32xf32, #tpu.memory_space<vmem>>, vector<2x32xf32>,
    } else {
    }
    %c0_10 = arith.constant 0 : index
    %c0_11 = arith.constant 0 : index
    %17 = vector.load %arg5[%c0_10, %c0_11] : memref<2x32xf32, #tpu.memory_space<vmem>>, vector<2x32xf32>
    %18 = arith.addf %17, %13 : vector<2x32xf32>
    %c0_12 = arith.constant 0 : index
    %c0_13 = arith.constant 0 : index
    %19 = vector.load %arg5[%c0_12, %c0_13] : memref<2x32xf32, #tpu.memory_space<vmem>>, vector<2x32xf32>
    tpu.vector_store %arg5[%c0_12, %c0_13], %18 {strides = array<i32>} : memref<2x32xf32, #tpu.memory_space<vmem>>, vector<2x32xf32>,
    return
  }
  func.func @transform_0(%arg0: i32) -> (i32, i32) {
    %c0_i32 = arith.constant 0 : i32
    %c0_i32_0 = arith.constant 0 : i32
    return %arg0, %c0_i32 : i32, i32
  }
  func.func @transform_1(%arg0: i32) -> (i32, i32) {
    %c0_i32 = arith.constant 0 : i32
    %c0_i32_0 = arith.constant 0 : i32
    %c0_i32_1 = arith.constant 0 : i32
    return %c0_i32, %c0_i32_0 : i32, i32
  }
  func.func @transform_2(%arg0: i32) -> (i32, i32) {
    %c0_i32 = arith.constant 0 : i32
    %c0_i32_0 = arith.constant 0 : i32
    %c0_i32_1 = arith.constant 0 : i32
    return %c0_i32, %c0_i32_0 : i32, i32
  }
  func.func @transform_3(%arg0: i32) -> (i32, i32) {
    %c0_i32 = arith.constant 0 : i32
    %c0_i32_0 = arith.constant 0 : i32
    return %arg0, %c0_i32 : i32, i32
  }
  func.func @transform_4(%arg0: i32) -> (i32, i32) {
    %c0_i32 = arith.constant 0 : i32
    %c0_i32_0 = arith.constant 0 : i32
    %c0_i32_1 = arith.constant 0 : i32
    return %c0_i32, %c0_i32_0 : i32, i32
  }
}

module attributes {stable_mosaic.version = 11 : i64} {
  func.func @_conv3x3_fused_kernel(%arg0: i32, %arg1: memref<1x18x18x32xbf16, #tpu.memory_space<vmem>>, %arg2: memref<1x32xf32, #tpu.memory_space<vmem>>, %arg3: memref<1x32xf32, #tpu.memory_space<vmem>>, %arg4: memref<288x32xbf16, #tpu.memory_space<vmem>>, %arg5: memref<1x32xf32, #tpu.memory_space<vmem>>, %arg6: memref<256x32xbf16, #tpu.memory_space<vmem>>, %arg7: memref<2x32xf32, #tpu.memory_space<vmem>>) attributes {dimension_semantics = [#tpu.dimension_semantics<arbitrary>], iteration_bounds = array<i64: 2>, scalar_prefetch = 0 : i64, scratch_operands = 0 : i64, tpu.core_type = #tpu.core_type<tc>, window_params = [{transform_indices = @transform_0, window_bounds = array<i64: 1, 18, 18, 32>}, {pipeline_mode = #tpu.pipeline_mode<synchronous>, transform_indices = @transform_1, window_bounds = array<i64: 1, 32>}, {pipeline_mode = #tpu.pipeline_mode<synchronous>, transform_indices = @transform_2, window_bounds = array<i64: 1, 32>}, {pipeline_mode = #tpu.pipeline_mode<synchronous>, transform_indices = @transform_3, window_bounds = array<i64: 288, 32>}, {pipeline_mode = #tpu.pipeline_mode<synchronous>, transform_indices = @transform_4, window_bounds = array<i64: 1, 32>}, {transform_indices = @transform_5, window_bounds = array<i64: 256, 32>}, {pipeline_mode = #tpu.pipeline_mode<synchronous>, transform_indices = @transform_6, window_bounds = array<i64: 2, 32>}]} {
    %c0 = arith.constant 0 : index
    %c0_0 = arith.constant 0 : index
    %c0_1 = arith.constant 0 : index
    %c0_2 = arith.constant 0 : index
    %0 = vector.load %arg1[%c0, %c0_0, %c0_1, %c0_2] : memref<1x18x18x32xbf16, #tpu.memory_space<vmem>>, vector<1x18x18x32xbf16>
    %1 = vector.shape_cast %0 : vector<1x18x18x32xbf16> to vector<18x18x32xbf16>
    %2 = arith.extf %1 : vector<18x18x32xbf16> to vector<18x18x32xf32>
    %c0_3 = arith.constant 0 : index
    %c0_4 = arith.constant 0 : index
    %3 = vector.load %arg2[%c0_3, %c0_4] : memref<1x32xf32, #tpu.memory_space<vmem>>, vector<1x32xf32>
    %4 = vector.shape_cast %3 : vector<1x32xf32> to vector<1x1x32xf32>
    %5 = vector.broadcast %4 : vector<1x1x32xf32> to vector<18x18x32xf32>
    %6 = arith.mulf %2, %5 : vector<18x18x32xf32>
    %c0_5 = arith.constant 0 : index
    %c0_6 = arith.constant 0 : index
    %7 = vector.load %arg3[%c0_5, %c0_6] : memref<1x32xf32, #tpu.memory_space<vmem>>, vector<1x32xf32>
    %8 = vector.shape_cast %7 : vector<1x32xf32> to vector<1x1x32xf32>
    %9 = vector.broadcast %8 : vector<1x1x32xf32> to vector<18x18x32xf32>
    %10 = arith.addf %6, %9 : vector<18x18x32xf32>
    %cst = arith.constant 0.000000e+00 : f32
    %11 = vector.broadcast %cst : f32 to vector<18x18x32xf32>
    %12 = arith.cmpf ogt, %10, %11 : vector<18x18x32xf32>
    %cst_7 = arith.constant 0.00999999977 : f32
    %13 = vector.broadcast %cst_7 : f32 to vector<18x18x32xf32>
    %14 = arith.mulf %13, %10 : vector<18x18x32xf32>
    %15 = arith.select %12, %10, %14 : vector<18x18x32xi1>, vector<18x18x32xf32>
    %16 = tpu.iota {dimensions = array<i32: 0>} : vector<18x18x32xi32>
    %17 = tpu.iota {dimensions = array<i32: 1>} : vector<18x18x32xi32>
    %c1_i32 = arith.constant 1 : i32
    %18 = vector.broadcast %c1_i32 : i32 to vector<18x18x32xi32>
    %19 = arith.cmpi sge, %16, %18 : vector<18x18x32xi32>
    %c16_i32 = arith.constant 16 : i32
    %20 = vector.broadcast %c16_i32 : i32 to vector<18x18x32xi32>
    %21 = arith.cmpi sle, %16, %20 : vector<18x18x32xi32>
    %22 = arith.andi %19, %21 : vector<18x18x32xi1>
    %c1_i32_8 = arith.constant 1 : i32
    %23 = vector.broadcast %c1_i32_8 : i32 to vector<18x18x32xi32>
    %24 = arith.cmpi sge, %17, %23 : vector<18x18x32xi32>
    %25 = arith.andi %22, %24 : vector<18x18x32xi1>
    %c16_i32_9 = arith.constant 16 : i32
    %26 = vector.broadcast %c16_i32_9 : i32 to vector<18x18x32xi32>
    %27 = arith.cmpi sle, %17, %26 : vector<18x18x32xi32>
    %28 = arith.andi %25, %27 : vector<18x18x32xi1>
    %cst_10 = arith.constant 0.000000e+00 : f32
    %29 = vector.broadcast %cst_10 : f32 to vector<18x18x32xf32>
    %30 = arith.select %28, %15, %29 : vector<18x18x32xi1>, vector<18x18x32xf32>
    %31 = arith.truncf %30 : vector<18x18x32xf32> to vector<18x18x32xbf16>
    %32 = vector.extract_strided_slice %31 {offsets = [0, 0, 0], sizes = [16, 16, 32], strides = [1, 1, 1]} : vector<18x18x32xbf16> to vector<16x16x32xbf16>
    %33 = vector.shape_cast %32 : vector<16x16x32xbf16> to vector<256x32xbf16>
    %34 = vector.extract_strided_slice %31 {offsets = [0, 1, 0], sizes = [16, 16, 32], strides = [1, 1, 1]} : vector<18x18x32xbf16> to vector<16x16x32xbf16>
    %35 = vector.shape_cast %34 : vector<16x16x32xbf16> to vector<256x32xbf16>
    %36 = vector.extract_strided_slice %31 {offsets = [0, 2, 0], sizes = [16, 16, 32], strides = [1, 1, 1]} : vector<18x18x32xbf16> to vector<16x16x32xbf16>
    %37 = vector.shape_cast %36 : vector<16x16x32xbf16> to vector<256x32xbf16>
    %38 = vector.extract_strided_slice %31 {offsets = [1, 0, 0], sizes = [16, 16, 32], strides = [1, 1, 1]} : vector<18x18x32xbf16> to vector<16x16x32xbf16>
    %39 = vector.shape_cast %38 : vector<16x16x32xbf16> to vector<256x32xbf16>
    %40 = vector.extract_strided_slice %31 {offsets = [1, 1, 0], sizes = [16, 16, 32], strides = [1, 1, 1]} : vector<18x18x32xbf16> to vector<16x16x32xbf16>
    %41 = vector.shape_cast %40 : vector<16x16x32xbf16> to vector<256x32xbf16>
    %42 = vector.extract_strided_slice %31 {offsets = [1, 2, 0], sizes = [16, 16, 32], strides = [1, 1, 1]} : vector<18x18x32xbf16> to vector<16x16x32xbf16>
    %43 = vector.shape_cast %42 : vector<16x16x32xbf16> to vector<256x32xbf16>
    %44 = vector.extract_strided_slice %31 {offsets = [2, 0, 0], sizes = [16, 16, 32], strides = [1, 1, 1]} : vector<18x18x32xbf16> to vector<16x16x32xbf16>
    %45 = vector.shape_cast %44 : vector<16x16x32xbf16> to vector<256x32xbf16>
    %46 = vector.extract_strided_slice %31 {offsets = [2, 1, 0], sizes = [16, 16, 32], strides = [1, 1, 1]} : vector<18x18x32xbf16> to vector<16x16x32xbf16>
    %47 = vector.shape_cast %46 : vector<16x16x32xbf16> to vector<256x32xbf16>
    %48 = vector.extract_strided_slice %31 {offsets = [2, 2, 0], sizes = [16, 16, 32], strides = [1, 1, 1]} : vector<18x18x32xbf16> to vector<16x16x32xbf16>
    %49 = vector.shape_cast %48 : vector<16x16x32xbf16> to vector<256x32xbf16>
    %50 = tpu.concatenate %33, %35, %37, %39, %41, %43, %45, %47, %49 in 1 : vector<256x32xbf16>, vector<256x32xbf16>, vector<256x32xbf16>, vector<256x32xbf16>, vector<256x32xbf16>, vector<256x32xbf16>, vector<256x32xbf16>, vector<256x32xbf16>, vector<256x32xbf16> -> vector<256x288xbf16>
    %c0_11 = arith.constant 0 : index
    %c0_12 = arith.constant 0 : index
    %51 = vector.load %arg4[%c0_11, %c0_12] : memref<288x32xbf16, #tpu.memory_space<vmem>>, vector<288x32xbf16>
    %cst_13 = arith.constant dense<0.000000e+00> : vector<256x32xf32>
    %52 = tpu.matmul %50, %51, %cst_13 {dimension_numbers = #tpu.dot_dimension_numbers<[1], [0], [0], [1], [0, 0, 1, 1], [], []>} : vector<256x288xbf16>, vector<288x32xbf16>, vector<256x32xf32> -> vector<256x32xf32>
    %c0_14 = arith.constant 0 : index
    %c0_15 = arith.constant 0 : index
    %53 = vector.load %arg5[%c0_14, %c0_15] : memref<1x32xf32, #tpu.memory_space<vmem>>, vector<1x32xf32>
    %54 = vector.broadcast %53 : vector<1x32xf32> to vector<256x32xf32>
    %55 = arith.addf %52, %54 : vector<256x32xf32>
    %56 = arith.truncf %55 : vector<256x32xf32> to vector<256x32xbf16>
    %c0_16 = arith.constant 0 : index
    %c0_17 = arith.constant 0 : index
    %57 = vector.load %arg6[%c0_16, %c0_17] : memref<256x32xbf16, #tpu.memory_space<vmem>>, vector<256x32xbf16>
    tpu.vector_store %arg6[%c0_16, %c0_17], %56 {strides = array<i32>} : memref<256x32xbf16, #tpu.memory_space<vmem>>, vector<256x32xbf16>,
    %cst_18 = arith.constant dense<0.000000e+00> : vector<32xf32>
    %58 = vector.multi_reduction <add>, %55, %cst_18 [0] : vector<256x32xf32> to vector<32xf32>
    %59 = vector.shape_cast %58 : vector<32xf32> to vector<1x32xf32>
    %60 = arith.mulf %55, %55 : vector<256x32xf32>
    %cst_19 = arith.constant dense<0.000000e+00> : vector<32xf32>
    %61 = vector.multi_reduction <add>, %60, %cst_19 [0] : vector<256x32xf32> to vector<32xf32>
    %62 = vector.shape_cast %61 : vector<32xf32> to vector<1x32xf32>
    %63 = tpu.concatenate %59, %62 in 0 : vector<1x32xf32>, vector<1x32xf32> -> vector<2x32xf32>
    %c0_i32 = arith.constant 0 : i32
    %64 = arith.cmpi eq, %arg0, %c0_i32 : i32
    %65 = arith.extui %64 : i1 to i32
    %c0_i32_20 = arith.constant 0 : i32
    %66 = arith.cmpi ne, %65, %c0_i32_20 : i32
    scf.if %66 {
      %cst_25 = arith.constant 0.000000e+00 : f32
      %70 = vector.broadcast %cst_25 : f32 to vector<2x32xf32>
      %c0_26 = arith.constant 0 : index
      %c0_27 = arith.constant 0 : index
      %71 = vector.load %arg7[%c0_26, %c0_27] : memref<2x32xf32, #tpu.memory_space<vmem>>, vector<2x32xf32>
      tpu.vector_store %arg7[%c0_26, %c0_27], %70 {strides = array<i32>} : memref<2x32xf32, #tpu.memory_space<vmem>>, vector<2x32xf32>,
    } else {
    }
    %c0_21 = arith.constant 0 : index
    %c0_22 = arith.constant 0 : index
    %67 = vector.load %arg7[%c0_21, %c0_22] : memref<2x32xf32, #tpu.memory_space<vmem>>, vector<2x32xf32>
    %68 = arith.addf %67, %63 : vector<2x32xf32>
    %c0_23 = arith.constant 0 : index
    %c0_24 = arith.constant 0 : index
    %69 = vector.load %arg7[%c0_23, %c0_24] : memref<2x32xf32, #tpu.memory_space<vmem>>, vector<2x32xf32>
    tpu.vector_store %arg7[%c0_23, %c0_24], %68 {strides = array<i32>} : memref<2x32xf32, #tpu.memory_space<vmem>>, vector<2x32xf32>,
    return
  }
  func.func @transform_0(%arg0: i32) -> (i32, i32, i32, i32) {
    %c0_i32 = arith.constant 0 : i32
    %c0_i32_0 = arith.constant 0 : i32
    %c0_i32_1 = arith.constant 0 : i32
    %c0_i32_2 = arith.constant 0 : i32
    return %arg0, %c0_i32, %c0_i32_0, %c0_i32_1 : i32, i32, i32, i32
  }
  func.func @transform_1(%arg0: i32) -> (i32, i32) {
    %c0_i32 = arith.constant 0 : i32
    %c0_i32_0 = arith.constant 0 : i32
    %c0_i32_1 = arith.constant 0 : i32
    return %c0_i32, %c0_i32_0 : i32, i32
  }
  func.func @transform_2(%arg0: i32) -> (i32, i32) {
    %c0_i32 = arith.constant 0 : i32
    %c0_i32_0 = arith.constant 0 : i32
    %c0_i32_1 = arith.constant 0 : i32
    return %c0_i32, %c0_i32_0 : i32, i32
  }
  func.func @transform_3(%arg0: i32) -> (i32, i32) {
    %c0_i32 = arith.constant 0 : i32
    %c0_i32_0 = arith.constant 0 : i32
    %c0_i32_1 = arith.constant 0 : i32
    return %c0_i32, %c0_i32_0 : i32, i32
  }
  func.func @transform_4(%arg0: i32) -> (i32, i32) {
    %c0_i32 = arith.constant 0 : i32
    %c0_i32_0 = arith.constant 0 : i32
    %c0_i32_1 = arith.constant 0 : i32
    return %c0_i32, %c0_i32_0 : i32, i32
  }
  func.func @transform_5(%arg0: i32) -> (i32, i32) {
    %c0_i32 = arith.constant 0 : i32
    %c0_i32_0 = arith.constant 0 : i32
    return %arg0, %c0_i32 : i32, i32
  }
  func.func @transform_6(%arg0: i32) -> (i32, i32) {
    %c0_i32 = arith.constant 0 : i32
    %c0_i32_0 = arith.constant 0 : i32
    %c0_i32_1 = arith.constant 0 : i32
    return %c0_i32, %c0_i32_0 : i32, i32
  }
}

module attributes {stable_mosaic.version = 11 : i64} {
  func.func @_conv3_ds_kernel(%arg0: i32, %arg1: memref<512x32xbf16, #tpu.memory_space<vmem>>, %arg2: memref<1x32xf32, #tpu.memory_space<vmem>>, %arg3: memref<1x32xf32, #tpu.memory_space<vmem>>, %arg4: memref<512x4xbf16, #tpu.memory_space<vmem>>, %arg5: memref<32x64xbf16, #tpu.memory_space<vmem>>, %arg6: memref<1x64xf32, #tpu.memory_space<vmem>>, %arg7: memref<4x64xbf16, #tpu.memory_space<vmem>>, %arg8: memref<512x128xbf16, #tpu.memory_space<vmem>>, %arg9: memref<2x128xf32, #tpu.memory_space<vmem>>) attributes {dimension_semantics = [#tpu.dimension_semantics<arbitrary>], iteration_bounds = array<i64: 1>, scalar_prefetch = 0 : i64, scratch_operands = 0 : i64, tpu.core_type = #tpu.core_type<tc>, window_params = [{transform_indices = @transform_0, window_bounds = array<i64: 512, 32>}, {pipeline_mode = #tpu.pipeline_mode<synchronous>, transform_indices = @transform_1, window_bounds = array<i64: 1, 32>}, {pipeline_mode = #tpu.pipeline_mode<synchronous>, transform_indices = @transform_2, window_bounds = array<i64: 1, 32>}, {transform_indices = @transform_3, window_bounds = array<i64: 512, 4>}, {pipeline_mode = #tpu.pipeline_mode<synchronous>, transform_indices = @transform_4, window_bounds = array<i64: 32, 64>}, {pipeline_mode = #tpu.pipeline_mode<synchronous>, transform_indices = @transform_5, window_bounds = array<i64: 1, 64>}, {pipeline_mode = #tpu.pipeline_mode<synchronous>, transform_indices = @transform_6, window_bounds = array<i64: 4, 64>}, {transform_indices = @transform_7, window_bounds = array<i64: 512, 128>}, {pipeline_mode = #tpu.pipeline_mode<synchronous>, transform_indices = @transform_8, window_bounds = array<i64: 2, 128>}]} {
    %c0 = arith.constant 0 : index
    %c0_0 = arith.constant 0 : index
    %0 = vector.load %arg1[%c0, %c0_0] : memref<512x32xbf16, #tpu.memory_space<vmem>>, vector<512x32xbf16>
    %1 = arith.extf %0 : vector<512x32xbf16> to vector<512x32xf32>
    %c0_1 = arith.constant 0 : index
    %c0_2 = arith.constant 0 : index
    %2 = vector.load %arg2[%c0_1, %c0_2] : memref<1x32xf32, #tpu.memory_space<vmem>>, vector<1x32xf32>
    %3 = vector.broadcast %2 : vector<1x32xf32> to vector<512x32xf32>
    %4 = arith.mulf %1, %3 : vector<512x32xf32>
    %c0_3 = arith.constant 0 : index
    %c0_4 = arith.constant 0 : index
    %5 = vector.load %arg3[%c0_3, %c0_4] : memref<1x32xf32, #tpu.memory_space<vmem>>, vector<1x32xf32>
    %6 = vector.broadcast %5 : vector<1x32xf32> to vector<512x32xf32>
    %7 = arith.addf %4, %6 : vector<512x32xf32>
    %cst = arith.constant 0.000000e+00 : f32
    %8 = vector.broadcast %cst : f32 to vector<512x32xf32>
    %9 = arith.cmpf ogt, %7, %8 : vector<512x32xf32>
    %cst_5 = arith.constant 0.00999999977 : f32
    %10 = vector.broadcast %cst_5 : f32 to vector<512x32xf32>
    %11 = arith.mulf %10, %7 : vector<512x32xf32>
    %12 = arith.select %9, %7, %11 : vector<512x32xi1>, vector<512x32xf32>
    %13 = arith.truncf %12 : vector<512x32xf32> to vector<512x32xbf16>
    %c0_6 = arith.constant 0 : index
    %c0_7 = arith.constant 0 : index
    %14 = vector.load %arg5[%c0_6, %c0_7] : memref<32x64xbf16, #tpu.memory_space<vmem>>, vector<32x64xbf16>
    %cst_8 = arith.constant dense<0.000000e+00> : vector<512x64xf32>
    %15 = tpu.matmul %13, %14, %cst_8 {dimension_numbers = #tpu.dot_dimension_numbers<[1], [0], [0], [1], [0, 0, 1, 1], [], []>} : vector<512x32xbf16>, vector<32x64xbf16>, vector<512x64xf32> -> vector<512x64xf32>
    %c0_9 = arith.constant 0 : index
    %c0_10 = arith.constant 0 : index
    %16 = vector.load %arg6[%c0_9, %c0_10] : memref<1x64xf32, #tpu.memory_space<vmem>>, vector<1x64xf32>
    %17 = vector.broadcast %16 : vector<1x64xf32> to vector<512x64xf32>
    %18 = arith.addf %15, %17 : vector<512x64xf32>
    %c0_11 = arith.constant 0 : index
    %c0_12 = arith.constant 0 : index
    %19 = vector.load %arg4[%c0_11, %c0_12] : memref<512x4xbf16, #tpu.memory_space<vmem>>, vector<512x4xbf16>
    %c0_13 = arith.constant 0 : index
    %c0_14 = arith.constant 0 : index
    %20 = vector.load %arg7[%c0_13, %c0_14] : memref<4x64xbf16, #tpu.memory_space<vmem>>, vector<4x64xbf16>
    %cst_15 = arith.constant dense<0.000000e+00> : vector<512x64xf32>
    %21 = tpu.matmul %19, %20, %cst_15 {dimension_numbers = #tpu.dot_dimension_numbers<[1], [0], [0], [1], [0, 0, 1, 1], [], []>} : vector<512x4xbf16>, vector<4x64xbf16>, vector<512x64xf32> -> vector<512x64xf32>
    %22 = tpu.concatenate %18, %21 in 1 : vector<512x64xf32>, vector<512x64xf32> -> vector<512x128xf32>
    %23 = arith.truncf %22 : vector<512x128xf32> to vector<512x128xbf16>
    %c0_16 = arith.constant 0 : index
    %c0_17 = arith.constant 0 : index
    %24 = vector.load %arg8[%c0_16, %c0_17] : memref<512x128xbf16, #tpu.memory_space<vmem>>, vector<512x128xbf16>
    tpu.vector_store %arg8[%c0_16, %c0_17], %23 {strides = array<i32>} : memref<512x128xbf16, #tpu.memory_space<vmem>>, vector<512x128xbf16>,
    %cst_18 = arith.constant dense<0.000000e+00> : vector<128xf32>
    %25 = vector.multi_reduction <add>, %22, %cst_18 [0] : vector<512x128xf32> to vector<128xf32>
    %26 = vector.shape_cast %25 : vector<128xf32> to vector<1x128xf32>
    %27 = arith.mulf %22, %22 : vector<512x128xf32>
    %cst_19 = arith.constant dense<0.000000e+00> : vector<128xf32>
    %28 = vector.multi_reduction <add>, %27, %cst_19 [0] : vector<512x128xf32> to vector<128xf32>
    %29 = vector.shape_cast %28 : vector<128xf32> to vector<1x128xf32>
    %30 = tpu.concatenate %26, %29 in 0 : vector<1x128xf32>, vector<1x128xf32> -> vector<2x128xf32>
    %c0_i32 = arith.constant 0 : i32
    %31 = arith.cmpi eq, %arg0, %c0_i32 : i32
    %32 = arith.extui %31 : i1 to i32
    %c0_i32_20 = arith.constant 0 : i32
    %33 = arith.cmpi ne, %32, %c0_i32_20 : i32
    scf.if %33 {
      %cst_25 = arith.constant 0.000000e+00 : f32
      %37 = vector.broadcast %cst_25 : f32 to vector<2x128xf32>
      %c0_26 = arith.constant 0 : index
      %c0_27 = arith.constant 0 : index
      %38 = vector.load %arg9[%c0_26, %c0_27] : memref<2x128xf32, #tpu.memory_space<vmem>>, vector<2x128xf32>
      tpu.vector_store %arg9[%c0_26, %c0_27], %37 {strides = array<i32>} : memref<2x128xf32, #tpu.memory_space<vmem>>, vector<2x128xf32>,
    } else {
    }
    %c0_21 = arith.constant 0 : index
    %c0_22 = arith.constant 0 : index
    %34 = vector.load %arg9[%c0_21, %c0_22] : memref<2x128xf32, #tpu.memory_space<vmem>>, vector<2x128xf32>
    %35 = arith.addf %34, %30 : vector<2x128xf32>
    %c0_23 = arith.constant 0 : index
    %c0_24 = arith.constant 0 : index
    %36 = vector.load %arg9[%c0_23, %c0_24] : memref<2x128xf32, #tpu.memory_space<vmem>>, vector<2x128xf32>
    tpu.vector_store %arg9[%c0_23, %c0_24], %35 {strides = array<i32>} : memref<2x128xf32, #tpu.memory_space<vmem>>, vector<2x128xf32>,
    return
  }
  func.func @transform_0(%arg0: i32) -> (i32, i32) {
    %c0_i32 = arith.constant 0 : i32
    %c0_i32_0 = arith.constant 0 : i32
    return %arg0, %c0_i32 : i32, i32
  }
  func.func @transform_1(%arg0: i32) -> (i32, i32) {
    %c0_i32 = arith.constant 0 : i32
    %c0_i32_0 = arith.constant 0 : i32
    %c0_i32_1 = arith.constant 0 : i32
    return %c0_i32, %c0_i32_0 : i32, i32
  }
  func.func @transform_2(%arg0: i32) -> (i32, i32) {
    %c0_i32 = arith.constant 0 : i32
    %c0_i32_0 = arith.constant 0 : i32
    %c0_i32_1 = arith.constant 0 : i32
    return %c0_i32, %c0_i32_0 : i32, i32
  }
  func.func @transform_3(%arg0: i32) -> (i32, i32) {
    %c0_i32 = arith.constant 0 : i32
    %c0_i32_0 = arith.constant 0 : i32
    return %arg0, %c0_i32 : i32, i32
  }
  func.func @transform_4(%arg0: i32) -> (i32, i32) {
    %c0_i32 = arith.constant 0 : i32
    %c0_i32_0 = arith.constant 0 : i32
    %c0_i32_1 = arith.constant 0 : i32
    return %c0_i32, %c0_i32_0 : i32, i32
  }
  func.func @transform_5(%arg0: i32) -> (i32, i32) {
    %c0_i32 = arith.constant 0 : i32
    %c0_i32_0 = arith.constant 0 : i32
    %c0_i32_1 = arith.constant 0 : i32
    return %c0_i32, %c0_i32_0 : i32, i32
  }
  func.func @transform_6(%arg0: i32) -> (i32, i32) {
    %c0_i32 = arith.constant 0 : i32
    %c0_i32_0 = arith.constant 0 : i32
    %c0_i32_1 = arith.constant 0 : i32
    return %c0_i32, %c0_i32_0 : i32, i32
  }
  func.func @transform_7(%arg0: i32) -> (i32, i32) {
    %c0_i32 = arith.constant 0 : i32
    %c0_i32_0 = arith.constant 0 : i32
    return %arg0, %c0_i32 : i32, i32
  }
  func.func @transform_8(%arg0: i32) -> (i32, i32) {
    %c0_i32 = arith.constant 0 : i32
    %c0_i32_0 = arith.constant 0 : i32
    %c0_i32_1 = arith.constant 0 : i32
    return %c0_i32, %c0_i32_0 : i32, i32
  }
}

module attributes {stable_mosaic.version = 11 : i64} {
  func.func @_tail_kernel(%arg0: i32, %arg1: memref<512x128xbf16, #tpu.memory_space<vmem>>, %arg2: memref<1x128xf32, #tpu.memory_space<vmem>>, %arg3: memref<1x128xf32, #tpu.memory_space<vmem>>, %arg4: memref<512x64xf32, #tpu.memory_space<vmem>>) attributes {dimension_semantics = [#tpu.dimension_semantics<parallel>], iteration_bounds = array<i64: 1>, scalar_prefetch = 0 : i64, scratch_operands = 0 : i64, tpu.core_type = #tpu.core_type<tc>, window_params = [{transform_indices = @transform_0, window_bounds = array<i64: 512, 128>}, {pipeline_mode = #tpu.pipeline_mode<synchronous>, transform_indices = @transform_1, window_bounds = array<i64: 1, 128>}, {pipeline_mode = #tpu.pipeline_mode<synchronous>, transform_indices = @transform_2, window_bounds = array<i64: 1, 128>}, {transform_indices = @transform_3, window_bounds = array<i64: 512, 64>}]} {
    %c0 = arith.constant 0 : index
    %c0_0 = arith.constant 0 : index
    %0 = vector.load %arg1[%c0, %c0_0] : memref<512x128xbf16, #tpu.memory_space<vmem>>, vector<512x128xbf16>
    %1 = arith.extf %0 : vector<512x128xbf16> to vector<512x128xf32>
    %c0_1 = arith.constant 0 : index
    %c0_2 = arith.constant 0 : index
    %2 = vector.load %arg2[%c0_1, %c0_2] : memref<1x128xf32, #tpu.memory_space<vmem>>, vector<1x128xf32>
    %3 = vector.broadcast %2 : vector<1x128xf32> to vector<512x128xf32>
    %4 = arith.mulf %1, %3 : vector<512x128xf32>
    %c0_3 = arith.constant 0 : index
    %c0_4 = arith.constant 0 : index
    %5 = vector.load %arg3[%c0_3, %c0_4] : memref<1x128xf32, #tpu.memory_space<vmem>>, vector<1x128xf32>
    %6 = vector.broadcast %5 : vector<1x128xf32> to vector<512x128xf32>
    %7 = arith.addf %4, %6 : vector<512x128xf32>
    %8 = vector.extract_strided_slice %7 {offsets = [0, 0], sizes = [512, 64], strides = [1, 1]} : vector<512x128xf32> to vector<512x64xf32>
    %9 = vector.extract_strided_slice %7 {offsets = [0, 64], sizes = [512, 64], strides = [1, 1]} : vector<512x128xf32> to vector<512x64xf32>
    %10 = arith.addf %8, %9 : vector<512x64xf32>
    %cst = arith.constant 0.000000e+00 : f32
    %11 = vector.broadcast %cst : f32 to vector<512x64xf32>
    %12 = arith.cmpf ogt, %10, %11 : vector<512x64xf32>
    %cst_5 = arith.constant 0.00999999977 : f32
    %13 = vector.broadcast %cst_5 : f32 to vector<512x64xf32>
    %14 = arith.mulf %13, %10 : vector<512x64xf32>
    %15 = arith.select %12, %10, %14 : vector<512x64xi1>, vector<512x64xf32>
    %c0_6 = arith.constant 0 : index
    %c0_7 = arith.constant 0 : index
    %16 = vector.load %arg4[%c0_6, %c0_7] : memref<512x64xf32, #tpu.memory_space<vmem>>, vector<512x64xf32>
    tpu.vector_store %arg4[%c0_6, %c0_7], %15 {strides = array<i32>} : memref<512x64xf32, #tpu.memory_space<vmem>>, vector<512x64xf32>,
    return
  }
  func.func @transform_0(%arg0: i32) -> (i32, i32) {
    %c0_i32 = arith.constant 0 : i32
    %c0_i32_0 = arith.constant 0 : i32
    return %arg0, %c0_i32 : i32, i32
  }
  func.func @transform_1(%arg0: i32) -> (i32, i32) {
    %c0_i32 = arith.constant 0 : i32
    %c0_i32_0 = arith.constant 0 : i32
    %c0_i32_1 = arith.constant 0 : i32
    return %c0_i32, %c0_i32_0 : i32, i32
  }
  func.func @transform_2(%arg0: i32) -> (i32, i32) {
    %c0_i32 = arith.constant 0 : i32
    %c0_i32_0 = arith.constant 0 : i32
    %c0_i32_1 = arith.constant 0 : i32
    return %c0_i32, %c0_i32_0 : i32, i32
  }
  func.func @transform_3(%arg0: i32) -> (i32, i32) {
    %c0_i32 = arith.constant 0 : i32
    %c0_i32_0 = arith.constant 0 : i32
    return %arg0, %c0_i32 : i32, i32
  }
}

</mosaic_0001>

<bundles_post_ra>
// kernel: residual_conv_block_forward.4
= control target key start
LH: loop header
LB: loop body
LE: loop exit
PB: predicated region body
PF: predicated region fallthrough
CT: control target
= control target key end

     0   :  { %vm346_vm0 = vcmask 1041408   ;;  %vm249_vm1 = vcmask 31744   ;;  %vm895_vm2 = vcmask 257024   ;;  %vm960_vm3 = vcmask 261120   ;;  %s2543_s1 = inlined_call_operand.vmem [shape: bf16[4,32], index: 1, kind: input, shape index: {}]   ;;  %s2544_s0 = inlined_call_operand.vmem [shape: bf16[512,4], index: 0, kind: input, shape index: {}]   ;;  %s2545_s2 = inlined_call_operand.vmem [shape: f32[1,32], index: 2, kind: input, shape index: {}]   ;;  %s2546_s3 = inlined_call_operand.vmem [shape: bf16[512,32], index: 3, kind: output, shape index: {0}]   ;;  %s2547_s4 = inlined_call_operand.vmem [shape: f32[2,32], index: 4, kind: output, shape index: {1}]  }
   0x1   :  { %v81_v0 = vld [vmem:[%s2543_s1] sm:$0x3]  ;;  %v1609_v3 = vld [vmem:[%s2544_s0 + $0x8] sm:$0xff]   ;;  %v1610_v4 = vld [vmem:[%s2544_s0 + $0x10] sm:$0xff]   ;;  %vm1297_vm4 = vcmask 254976   ;;  %vm1291_vm5 = vcmask 1040384  }
   0x2   :  { %1605 = vmatprep.subr.msk.bf16.mxu0 %vm346_vm0, %v81_v0  ;;  %v348_v1 = vsel %vm346_vm0, %v81_v0, 0  ;;  %v1608_v2 = vld [vmem:[%s2544_s0] sm:$0xff]   ;;  %1606 = vmatprep.subr.msk.bf16.mxu1 %vm346_vm0, %v81_v0  ;;  %v1611_v5 = vld [vmem:[%s2544_s0 + $0x18] sm:$0xff]   ;;  %v1613_v7 = vld [vmem:[%s2544_s0 + $0x28] sm:$0xff]  }
   0x3   :  { %1538 = vmatpush3.bf16.msra.mxu0 %v348_v1  ;;  %1604 = vmatpush3.bf16.msra.mxu1 %v348_v1  ;;  %v1612_v6 = vld [vmem:[%s2544_s0 + $0x20] sm:$0xff]   ;;  %v1614_v8 = vld [vmem:[%s2544_s0 + $0x30] sm:$0xff]   ;;  %v1625_v10 = vld [vmem:[%s2544_s0 + $0x88] sm:$0xff]  }
   0x4   :  { %1539 = vmatprep.mubr.msk.bf16.mxu0 %vm249_vm1, %v1608_v2  ;;  %v1624_v9 = vld [vmem:[%s2544_s0 + $0x80] sm:$0xff]   ;;  %v1626_v11 = vld [vmem:[%s2544_s0 + $0x90] sm:$0xff]   ;;  %v1615_v12 = vld [vmem:[%s2544_s0 + $0x38] sm:$0xff]  }
   0x5   :  { %1571 = vmatprep.mubr.msk.bf16.mxu1 %vm249_vm1, %v1624_v9  ;;  %v1627_v13 = vld [vmem:[%s2544_s0 + $0x98] sm:$0xff]   ;;  %v1628_v14 = vld [vmem:[%s2544_s0 + $0xa0] sm:$0xff]   ;;  %v1629_v16 = vld [vmem:[%s2544_s0 + $0xa8] sm:$0xff]  }
   0x6   :  { %1540 = vmatmul.mubr.msk.bf16.vlgmr.msra.gmra.mrb[0].mxu0 %vm249_vm1, %v1609_v3  ;;  %1572 = vmatmul.mubr.msk.bf16.vlgmr.msra.gmra.mrb[0].mxu1 %vm249_vm1, %v1625_v10  ;;  %v1616_v15 = vld [vmem:[%s2544_s0 + $0x40] sm:$0xff]   ;;  %v1617_v17 = vld [vmem:[%s2544_s0 + $0x48] sm:$0xff]   ;;  %v1630_v18 = vld [vmem:[%s2544_s0 + $0xb0] sm:$0xff]  }
   0x7   :  { %1543 = vmatprep.mubr.msk.bf16.mxu0 %vm249_vm1, %v1610_v4  ;;  %1575 = vmatprep.mubr.msk.bf16.mxu1 %vm249_vm1, %v1626_v11  ;;  %v1618_v19 = vld [vmem:[%s2544_s0 + $0x50] sm:$0xff]   ;;  %v1631_v20 = vld [vmem:[%s2544_s0 + $0xb8] sm:$0xff]   ;;  %v1632_v22 = vld [vmem:[%s2544_s0 + $0xc0] sm:$0xff]  }
   0x8   :  { %v1619_v21 = vld [vmem:[%s2544_s0 + $0x58] sm:$0xff]   ;;  %v1620_v23 = vld [vmem:[%s2544_s0 + $0x60] sm:$0xff]   ;;  %v1633_v24 = vld [vmem:[%s2544_s0 + $0xc8] sm:$0xff]  }
   0x9   :  { %v1621_v25 = vld [vmem:[%s2544_s0 + $0x68] sm:$0xff]   ;;  %v1634_v26 = vld [vmem:[%s2544_s0 + $0xd0] sm:$0xff]   ;;  %v1635_v28 = vld [vmem:[%s2544_s0 + $0xd8] sm:$0xff]  }
   0xa   :  { %v1622_v27 = vld [vmem:[%s2544_s0 + $0x70] sm:$0xff]   ;;  %v1623_v29 = vld [vmem:[%s2544_s0 + $0x78] sm:$0xff]   ;;  %v1636_v30 = vld [vmem:[%s2544_s0 + $0xe0] sm:$0xff]  }
   0xb   :  { %v1637_v31 = vld [vmem:[%s2544_s0 + $0xe8] sm:$0xff]   ;;  %v1638_v32 = vld [vmem:[%s2544_s0 + $0xf0] sm:$0xff]   ;;  %v1639_v33 = vld [vmem:[%s2544_s0 + $0xf8] sm:$0xff]  }
   0xc   :  { %v1801_v34 = vld [vmem:[%s2545_s2] ss:$0 sm:$0xff] }
   0xe   :  { %1544 = vmatmul.mubr.msk.bf16.gmra.mrb[4].mxu0 %vm249_vm1, %v1611_v5  ;;  %1576 = vmatmul.mubr.msk.bf16.gmra.mrb[4].mxu1 %vm249_vm1, %v1627_v13 }
   0xf   :  { %1547 = vmatprep.mubr.msk.bf16.mxu0 %vm249_vm1, %v1612_v6  ;;  %1579 = vmatprep.mubr.msk.bf16.mxu1 %vm249_vm1, %v1628_v14 }
  0x16   :  { %1548 = vmatmul.mubr.msk.bf16.gmra.mrb[8].mxu0 %vm249_vm1, %v1613_v7  ;;  %1580 = vmatmul.mubr.msk.bf16.gmra.mrb[8].mxu1 %vm249_vm1, %v1629_v16 }
  0x17   :  { %1551 = vmatprep.mubr.msk.bf16.mxu0 %vm249_vm1, %v1614_v8  ;;  %1583 = vmatprep.mubr.msk.bf16.mxu1 %vm249_vm1, %v1630_v18 }
  0x1e   :  { %1552 = vmatmul.mubr.msk.bf16.gmra.mrb[12].mxu0 %vm249_vm1, %v1615_v12  ;;  %1584 = vmatmul.mubr.msk.bf16.gmra.mrb[12].mxu1 %vm249_vm1, %v1631_v20 }
  0x1f   :  { %1555 = vmatprep.mubr.msk.bf16.mxu0 %vm249_vm1, %v1616_v15  ;;  %1587 = vmatprep.mubr.msk.bf16.mxu1 %vm249_vm1, %v1632_v22 }
  0x26   :  { %1556 = vmatmul.mubr.msk.bf16.gmra.mrb[16].mxu0 %vm249_vm1, %v1617_v17  ;;  %1588 = vmatmul.mubr.msk.bf16.gmra.mrb[16].mxu1 %vm249_vm1, %v1633_v24 }
  0x27   :  { %1559 = vmatprep.mubr.msk.bf16.mxu0 %vm249_vm1, %v1618_v19  ;;  %1591 = vmatprep.mubr.msk.bf16.mxu1 %vm249_vm1, %v1634_v26  ;;  %v1641_v19 = vmov 0.0  }
  0x28   :  { %1298 = vst.msk [vmem:[%s2547_s4] sm:$0x3] %vm1297_vm4, %v1641_v19 }
  0x2e   :  { %1560 = vmatmul.mubr.msk.bf16.gmra.mrb[20].mxu0 %vm249_vm1, %v1619_v21  ;;  %1592 = vmatmul.mubr.msk.bf16.gmra.mrb[20].mxu1 %vm249_vm1, %v1635_v28 }
  0x2f   :  { %1563 = vmatprep.mubr.msk.bf16.mxu0 %vm249_vm1, %v1620_v23  ;;  %1595 = vmatprep.mubr.msk.bf16.mxu1 %vm249_vm1, %v1636_v30 }
  0x36   :  { %1564 = vmatmul.mubr.msk.bf16.gmra.mrb[24].mxu0 %vm249_vm1, %v1621_v25  ;;  %1596 = vmatmul.mubr.msk.bf16.gmra.mrb[24].mxu1 %vm249_vm1, %v1637_v31 }
  0x37   :  { %1567 = vmatprep.mubr.msk.bf16.mxu0 %vm249_vm1, %v1622_v27  ;;  %1599 = vmatprep.mubr.msk.bf16.mxu1 %vm249_vm1, %v1638_v32 }
  0x3e   :  { %1568 = vmatmul.mubr.msk.bf16.gmra.mrb[28].mxu0 %vm249_vm1, %v1623_v29  ;;  %1600 = vmatmul.mubr.msk.bf16.gmra.mrb[28].mxu1 %vm249_vm1, %v1639_v33 }
  0xd9   :  { %v1541_v35 = vpop.f32.mrb[0].mxu0  ;;  %v1573_v18 = vpop.f32.mrb[0].mxu1 }
  0xda   :  { %v393_v36 = vadd.f32 %v1541_v35, %v1801_v34  ;;  %v384_v37 = vpop.f32.mrb[1].mxu0  ;;  %v1851_v24 = vadd.f32 %v1573_v18, %v1801_v34  ;;  %v512_v25 = vpop.f32.mrb[1].mxu1 }
  0xdb   :  { %v385_v38 = vadd.f32 %v1801_v34, %v384_v37  ;;  %v1542_v39 = vpop.f32.mrb[2].mxu0  ;;  %v1859_v31 = vpop.f32.mrb[2].mxu1  ;;  %v1870_v37 = vadd.f32 %v1801_v34, %v512_v25 }
  0xdc   :  { %v1442_v40 = vpack.c.bf16 %v393_v36, %v393_v36  ;;  %v396_v41 = vadd.f32 %v1542_v39, %v1801_v34  ;;  %v387_v42 = vpop.f32.mrb[3].mxu0  ;;  %v1096_v46 = vmul.f32 %v393_v36, %v393_v36  ;;  %v964_v54 = vsel %vm960_vm3, %v393_v36, 0.0 }
  0xdd   :  { %v1440_v43 = vpack.c.bf16 %v385_v38, %v385_v38  ;;  %v1094_v44 = vmul.f32 %v385_v38, %v385_v38  ;;  %v388_v45 = vadd.f32 %v1801_v34, %v387_v42  ;;  %v961_v48 = vsel %vm960_vm3, %v385_v38, 0.0  ;;  %v1872_v38 = vpop.f32.mrb[3].mxu1 }
  0xde   :  { %898 = vst.msk [vmem:[%s2546_s3 + $0x8] sm:$0xf] %vm895_vm2, %v1442_v40  ;;  %v1443_v47 = vpack.c.bf16 %v396_v41, %v396_v41  ;;  %v1097_v52 = vmul.f32 %v396_v41, %v396_v41  ;;  %v1161_v62 = vsel %vm960_vm3, %v1096_v46, 0.0  ;;  %v966_v1 = vsel %vm960_vm3, %v396_v41, 0.0 }
  0xdf   :  { %896 = vst.msk [vmem:[%s2546_s3] sm:$0xf] %vm895_vm2, %v1440_v43  ;;  %v1441_v49 = vpack.c.bf16 %v388_v45, %v388_v45  ;;  %v962_v50 = vsel %vm960_vm3, %v388_v45, 0.0  ;;  %v1095_v51 = vmul.f32 %v388_v45, %v388_v45  ;;  %v1158_v55 = vsel %vm960_vm3, %v1094_v44, 0.0 }
  0xe0   :  { %899 = vst.msk [vmem:[%s2546_s3 + $0xc] sm:$0xf] %vm895_vm2, %v1443_v47  ;;  %v963_v53 = vadd.f32 %v962_v50, %v961_v48  ;;  %v1163_v2 = vsel %vm960_vm3, %v1097_v52, 0.0  ;;  %v1474_v36 = vpack.c.bf16 %v1851_v24, %v1851_v24 }
  0xe1   :  { %897 = vst.msk [vmem:[%s2546_s3 + $0x4] sm:$0xf] %vm895_vm2, %v1441_v49  ;;  %v1159_v56 = vsel %vm960_vm3, %v1095_v51, 0.0  ;;  %v1545_v57 = vpop.f32.mrb[4].mxu0 }
  0xe2   :  { %v965_v58 = vadd.f32 %v964_v54, %v963_v53  ;;  %v1160_v59 = vadd.f32 %v1159_v56, %v1158_v55  ;;  %v409_v60 = vadd.f32 %v1545_v57, %v1801_v34  ;;  %v400_v61 = vpop.f32.mrb[5].mxu0  ;;  %930 = vst.msk [vmem:[%s2546_s3 + $0x88] sm:$0xf] %vm895_vm2, %v1474_v36  ;;  %v1472_v54 = vpack.c.bf16 %v1870_v37, %v1870_v37 }
  0xe3   :  { %v401_v63 = vadd.f32 %v1801_v34, %v400_v61  ;;  %v1546_v0 = vpop.f32.mrb[6].mxu0 }
  0xe4   :  { %v1162_v3 = vadd.f32 %v1161_v62, %v1160_v59  ;;  %v1446_v4 = vpack.c.bf16 %v409_v60, %v409_v60  ;;  %v403_v5 = vpop.f32.mrb[7].mxu0  ;;  %v967_v7 = vadd.f32 %v966_v1, %v965_v58  ;;  %v412_v11 = vadd.f32 %v1546_v0, %v1801_v34  ;;  %v1895_v59 = vpop.f32.mrb[4].mxu1  ;;  %928 = vst.msk [vmem:[%s2546_s3 + $0x80] sm:$0xf] %vm895_vm2, %v1472_v54 }
  0xe5   :  { %v1444_v6 = vpack.c.bf16 %v401_v63, %v401_v63  ;;  %v968_v8 = vsel %vm960_vm3, %v401_v63, 0.0  ;;  %v1098_v9 = vmul.f32 %v401_v63, %v401_v63  ;;  %v404_v12 = vadd.f32 %v1801_v34, %v403_v5  ;;  %v1902_v0 = vpop.f32.mrb[5].mxu1 }
  0xe6   :  { %902 = vst.msk [vmem:[%s2546_s3 + $0x18] sm:$0xf] %vm895_vm2, %v1446_v4  ;;  %v1164_v10 = vadd.f32 %v1163_v2, %v1162_v3  ;;  %v969_v13 = vadd.f32 %v968_v8, %v967_v7  ;;  %v1100_v15 = vmul.f32 %v409_v60, %v409_v60  ;;  %v1447_v17 = vpack.c.bf16 %v412_v11, %v412_v11  ;;  %v1909_v5 = vpop.f32.mrb[6].mxu1 }
  0xe7   :  { %900 = vst.msk [vmem:[%s2546_s3 + $0x10] sm:$0xf] %vm895_vm2, %v1444_v6  ;;  %v1165_v14 = vsel %vm960_vm3, %v1098_v9, 0.0  ;;  %v1445_v20 = vpack.c.bf16 %v404_v12, %v404_v12  ;;  %v970_v21 = vsel %vm960_vm3, %v404_v12, 0.0  ;;  %v1099_v22 = vmul.f32 %v404_v12, %v404_v12 }
  0xe8   :  { %v1166_v16 = vadd.f32 %v1165_v14, %v1164_v10  ;;  %v972_v26 = vsel %vm960_vm3, %v409_v60, 0.0  ;;  %903 = vst.msk [vmem:[%s2546_s3 + $0x1c] sm:$0xf] %vm895_vm2, %v1447_v17  ;;  %v1101_v27 = vmul.f32 %v412_v11, %v412_v11  ;;  %v971_v28 = vadd.f32 %v970_v21, %v969_v13 }
  0xe9   :  { %v1549_v23 = vpop.f32.mrb[8].mxu0  ;;  %901 = vst.msk [vmem:[%s2546_s3 + $0x14] sm:$0xf] %vm895_vm2, %v1445_v20  ;;  %v1167_v32 = vsel %vm960_vm3, %v1099_v22, 0.0  ;;  %v1169_v39 = vsel %vm960_vm3, %v1100_v15, 0.0  ;;  %v974_v44 = vsel %vm960_vm3, %v412_v11, 0.0 }
  0xea   :  { %v425_v29 = vadd.f32 %v1549_v23, %v1801_v34  ;;  %v416_v30 = vpop.f32.mrb[9].mxu0  ;;  %v973_v40 = vadd.f32 %v972_v26, %v971_v28  ;;  %v1168_v41 = vadd.f32 %v1167_v32, %v1166_v16  ;;  %v1171_v52 = vsel %vm960_vm3, %v1101_v27, 0.0  ;;  %v1918_v11 = vpop.f32.mrb[7].mxu1 }
  0xeb   :  { %v417_v33 = vadd.f32 %v1801_v34, %v416_v30  ;;  %v1550_v35 = vpop.f32.mrb[10].mxu0  ;;  %v1937_v28 = vadd.f32 %v1859_v31, %v1801_v34 }
  0xec   :  { %v1450_v42 = vpack.c.bf16 %v425_v29, %v425_v29  ;;  %v419_v43 = vpop.f32.mrb[11].mxu0  ;;  %v1170_v48 = vadd.f32 %v1169_v39, %v1168_v41  ;;  %v975_v49 = vadd.f32 %v974_v44, %v973_v40  ;;  %v428_v50 = vadd.f32 %v1550_v35, %v1801_v34  ;;  %v1939_v35 = vpop.f32.mrb[8].mxu1 }
  0xed   :  { %v1448_v45 = vpack.c.bf16 %v417_v33, %v417_v33  ;;  %v976_v46 = vsel %vm960_vm3, %v417_v33, 0.0  ;;  %v1102_v47 = vmul.f32 %v417_v33, %v417_v33  ;;  %v420_v51 = vadd.f32 %v1801_v34, %v419_v43 }
  0xee   :  { %906 = vst.msk [vmem:[%s2546_s3 + $0x28] sm:$0xf] %vm895_vm2, %v1450_v42  ;;  %v1104_v55 = vmul.f32 %v425_v29, %v425_v29  ;;  %v977_v56 = vadd.f32 %v976_v46, %v975_v49  ;;  %v1172_v57 = vadd.f32 %v1171_v52, %v1170_v48  ;;  %v1451_v58 = vpack.c.bf16 %v428_v50, %v428_v50  ;;  %v1942_v42 = vpop.f32.mrb[9].mxu1 }
  0xef   :  { %904 = vst.msk [vmem:[%s2546_s3 + $0x20] sm:$0xf] %vm895_vm2, %v1448_v45  ;;  %v1173_v53 = vsel %vm960_vm3, %v1102_v47, 0.0  ;;  %v1449_v60 = vpack.c.bf16 %v420_v51, %v420_v51  ;;  %v978_v61 = vsel %vm960_vm3, %v420_v51, 0.0  ;;  %v1103_v62 = vmul.f32 %v420_v51, %v420_v51  ;;  %v1950_v47 = vpop.f32.mrb[10].mxu1 }
  0xf0   :  { %v1174_v1 = vadd.f32 %v1173_v53, %v1172_v57  ;;  %907 = vst.msk [vmem:[%s2546_s3 + $0x2c] sm:$0xf] %vm895_vm2, %v1451_v58  ;;  %v979_v2 = vadd.f32 %v978_v61, %v977_v56  ;;  %v980_v6 = vsel %vm960_vm3, %v425_v29, 0.0  ;;  %v1105_v7 = vmul.f32 %v428_v50, %v428_v50  ;;  %v1960_v53 = vpop.f32.mrb[11].mxu1 }
  0xf1   :  { %v1553_v63 = vpop.f32.mrb[12].mxu0  ;;  %905 = vst.msk [vmem:[%s2546_s3 + $0x24] sm:$0xf] %vm895_vm2, %v1449_v60  ;;  %v1175_v8 = vsel %vm960_vm3, %v1103_v62, 0.0  ;;  %v1177_v12 = vsel %vm960_vm3, %v1104_v55, 0.0  ;;  %v982_v17 = vsel %vm960_vm3, %v428_v50, 0.0  ;;  %v1475_v52 = vpack.c.bf16 %v1937_v28, %v1937_v28 }
  0xf2   :  { %v441_v3 = vadd.f32 %v1553_v63, %v1801_v34  ;;  %v432_v4 = vpop.f32.mrb[13].mxu0  ;;  %v981_v13 = vadd.f32 %v980_v6, %v979_v2  ;;  %v1176_v14 = vadd.f32 %v1175_v8, %v1174_v1  ;;  %v1179_v26 = vsel %vm960_vm3, %v1105_v7, 0.0 }
  0xf3   :  { %v433_v9 = vadd.f32 %v1801_v34, %v432_v4  ;;  %v1554_v10 = vpop.f32.mrb[14].mxu0  ;;  %931 = vst.msk [vmem:[%s2546_s3 + $0x8c] sm:$0xf] %vm895_vm2, %v1475_v52 }
  0xf4   :  { %v1454_v15 = vpack.c.bf16 %v441_v3, %v441_v3  ;;  %v435_v16 = vpop.f32.mrb[15].mxu0  ;;  %v1178_v21 = vadd.f32 %v1177_v12, %v1176_v14  ;;  %v983_v22 = vadd.f32 %v982_v17, %v981_v13  ;;  %v444_v23 = vadd.f32 %v1554_v10, %v1801_v34  ;;  %v1981_v13 = vpop.f32.mrb[12].mxu1 }
  0xf5   :  { %v1452_v18 = vpack.c.bf16 %v433_v9, %v433_v9  ;;  %v984_v19 = vsel %vm960_vm3, %v433_v9, 0.0  ;;  %v1106_v20 = vmul.f32 %v433_v9, %v433_v9  ;;  %v436_v25 = vadd.f32 %v1801_v34, %v435_v16 }
  0xf6   :  { %910 = vst.msk [vmem:[%s2546_s3 + $0x38] sm:$0xf] %vm895_vm2, %v1454_v15  ;;  %v1108_v29 = vmul.f32 %v441_v3, %v441_v3  ;;  %v985_v30 = vadd.f32 %v984_v19, %v983_v22  ;;  %v1180_v32 = vadd.f32 %v1179_v26, %v1178_v21  ;;  %v1455_v33 = vpack.c.bf16 %v444_v23, %v444_v23 }
  0xf7   :  { %908 = vst.msk [vmem:[%s2546_s3 + $0x30] sm:$0xf] %vm895_vm2, %v1452_v18  ;;  %v1181_v27 = vsel %vm960_vm3, %v1106_v20, 0.0  ;;  %v1453_v36 = vpack.c.bf16 %v436_v25, %v436_v25  ;;  %v986_v39 = vsel %vm960_vm3, %v436_v25, 0.0  ;;  %v1107_v40 = vmul.f32 %v436_v25, %v436_v25  ;;  %v1984_v18 = vpop.f32.mrb[13].mxu1 }
  0xf8   :  { %v988_v43 = vsel %vm960_vm3, %v441_v3, 0.0  ;;  %v1182_v44 = vadd.f32 %v1181_v27, %v1180_v32  ;;  %911 = vst.msk [vmem:[%s2546_s3 + $0x3c] sm:$0xf] %vm895_vm2, %v1455_v33  ;;  %v987_v31 = vadd.f32 %v986_v39, %v985_v30  ;;  %v1109_v48 = vmul.f32 %v444_v23, %v444_v23  ;;  %v1992_v25 = vpop.f32.mrb[14].mxu1 }
  0xf9   :  { %v1557_v41 = vpop.f32.mrb[16].mxu0  ;;  %909 = vst.msk [vmem:[%s2546_s3 + $0x34] sm:$0xf] %vm895_vm2, %v1453_v36  ;;  %v1183_v49 = vsel %vm960_vm3, %v1107_v40, 0.0  ;;  %v1185_v54 = vsel %vm960_vm3, %v1108_v29, 0.0  ;;  %v990_v60 = vsel %vm960_vm3, %v444_v23, 0.0  ;;  %v2002_v32 = vadd.f32 %v1801_v34, %v1872_v38 }
  0xfa   :  { %v457_v45 = vadd.f32 %v1557_v41, %v1801_v34  ;;  %v448_v46 = vpop.f32.mrb[17].mxu0  ;;  %v989_v55 = vadd.f32 %v988_v43, %v987_v31  ;;  %v1184_v56 = vadd.f32 %v1183_v49, %v1182_v44  ;;  %v1187_v6 = vsel %vm960_vm3, %v1109_v48, 0.0  ;;  %v2004_v33 = vpop.f32.mrb[15].mxu1 }
  0xfb   :  { %v449_v50 = vadd.f32 %v1801_v34, %v448_v46  ;;  %v1558_v51 = vpop.f32.mrb[18].mxu0 }
  0xfc   :  { %v1458_v57 = vpack.c.bf16 %v457_v45, %v457_v45  ;;  %v451_v58 = vpop.f32.mrb[19].mxu0  ;;  %v1186_v1 = vadd.f32 %v1185_v54, %v1184_v56  ;;  %v991_v2 = vadd.f32 %v990_v60, %v989_v55  ;;  %v460_v3 = vadd.f32 %v1558_v51, %v1801_v34  ;;  %v2023_v60 = vpop.f32.mrb[16].mxu1 }
  0xfd   :  { %v1456_v61 = vpack.c.bf16 %v449_v50, %v449_v50  ;;  %v992_v62 = vsel %vm960_vm3, %v449_v50, 0.0  ;;  %v1110_v63 = vmul.f32 %v449_v50, %v449_v50  ;;  %v452_v4 = vadd.f32 %v1801_v34, %v451_v58 }
  0xfe   :  { %914 = vst.msk [vmem:[%s2546_s3 + $0x48] sm:$0xf] %vm895_vm2, %v1458_v57  ;;  %v1112_v8 = vmul.f32 %v457_v45, %v457_v45  ;;  %v993_v9 = vadd.f32 %v992_v62, %v991_v2  ;;  %v1188_v10 = vadd.f32 %v1187_v6, %v1186_v1  ;;  %v1459_v12 = vpack.c.bf16 %v460_v3, %v460_v3  ;;  %v2030_v2 = vpop.f32.mrb[17].mxu1 }
  0xff   :  { %912 = vst.msk [vmem:[%s2546_s3 + $0x40] sm:$0xf] %vm895_vm2, %v1456_v61  ;;  %v1189_v7 = vsel %vm960_vm3, %v1110_v63, 0.0  ;;  %v1457_v14 = vpack.c.bf16 %v452_v4, %v452_v4  ;;  %v994_v15 = vsel %vm960_vm3, %v452_v4, 0.0  ;;  %v1111_v16 = vmul.f32 %v452_v4, %v452_v4 }
 0x100   :  { %v996_v19 = vsel %vm960_vm3, %v457_v45, 0.0  ;;  %v1190_v20 = vadd.f32 %v1189_v7, %v1188_v10  ;;  %915 = vst.msk [vmem:[%s2546_s3 + $0x4c] sm:$0xf] %vm895_vm2, %v1459_v12  ;;  %v995_v21 = vadd.f32 %v994_v15, %v993_v9  ;;  %v1113_v26 = vmul.f32 %v460_v3, %v460_v3  ;;  %v2038_v9 = vpop.f32.mrb[18].mxu1 }
 0x101   :  { %v1561_v17 = vpop.f32.mrb[20].mxu0  ;;  %913 = vst.msk [vmem:[%s2546_s3 + $0x44] sm:$0xf] %vm895_vm2, %v1457_v14  ;;  %v1191_v27 = vsel %vm960_vm3, %v1111_v16, 0.0  ;;  %v1193_v36 = vsel %vm960_vm3, %v1112_v8, 0.0  ;;  %v998_v44 = vsel %vm960_vm3, %v460_v3, 0.0  ;;  %v1473_v54 = vpack.c.bf16 %v2002_v32, %v2002_v32 }
 0x102   :  { %v473_v22 = vadd.f32 %v1561_v17, %v1801_v34  ;;  %v464_v23 = vpop.f32.mrb[21].mxu0  ;;  %v997_v39 = vadd.f32 %v996_v19, %v995_v21  ;;  %v1192_v40 = vadd.f32 %v1191_v27, %v1190_v20  ;;  %v1195_v51 = vsel %vm960_vm3, %v1113_v26, 0.0  ;;  %v2050_v17 = vpop.f32.mrb[19].mxu1 }
 0x103   :  { %v465_v29 = vadd.f32 %v1801_v34, %v464_v23  ;;  %v1562_v30 = vpop.f32.mrb[22].mxu0  ;;  %929 = vst.msk [vmem:[%s2546_s3 + $0x84] sm:$0xf] %vm895_vm2, %v1473_v54  ;;  %v2048_v16 = vadd.f32 %v1895_v59, %v1801_v34 }
 0x104   :  { %v1462_v41 = vpack.c.bf16 %v473_v22, %v473_v22  ;;  %v467_v43 = vpop.f32.mrb[23].mxu0  ;;  %v1194_v48 = vadd.f32 %v1193_v36, %v1192_v40  ;;  %v999_v38 = vadd.f32 %v998_v44, %v997_v39  ;;  %v476_v49 = vadd.f32 %v1562_v30, %v1801_v34 }
 0x105   :  { %v1460_v31 = vpack.c.bf16 %v465_v29, %v465_v29  ;;  %v1000_v45 = vsel %vm960_vm3, %v465_v29, 0.0  ;;  %v1114_v46 = vmul.f32 %v465_v29, %v465_v29  ;;  %v468_v50 = vadd.f32 %v1801_v34, %v467_v43 }
 0x106   :  { %918 = vst.msk [vmem:[%s2546_s3 + $0x58] sm:$0xf] %vm895_vm2, %v1462_v41  ;;  %v1116_v55 = vmul.f32 %v473_v22, %v473_v22  ;;  %v1001_v56 = vadd.f32 %v1000_v45, %v999_v38  ;;  %v1196_v57 = vadd.f32 %v1195_v51, %v1194_v48  ;;  %v1463_v58 = vpack.c.bf16 %v476_v49, %v476_v49  ;;  %v2069_v38 = vpop.f32.mrb[20].mxu1 }
 0x107   :  { %916 = vst.msk [vmem:[%s2546_s3 + $0x50] sm:$0xf] %vm895_vm2, %v1460_v31  ;;  %v1197_v52 = vsel %vm960_vm3, %v1114_v46, 0.0  ;;  %v1461_v61 = vpack.c.bf16 %v468_v50, %v468_v50  ;;  %v1002_v62 = vsel %vm960_vm3, %v468_v50, 0.0  ;;  %v1115_v63 = vmul.f32 %v468_v50, %v468_v50  ;;  %v2076_v54 = vpop.f32.mrb[21].mxu1 }
 0x108   :  { %v1004_v3 = vsel %vm960_vm3, %v473_v22, 0.0  ;;  %v1198_v4 = vadd.f32 %v1197_v52, %v1196_v57  ;;  %919 = vst.msk [vmem:[%s2546_s3 + $0x5c] sm:$0xf] %vm895_vm2, %v1463_v58  ;;  %v1003_v6 = vadd.f32 %v1002_v62, %v1001_v56  ;;  %v1117_v10 = vmul.f32 %v476_v49, %v476_v49 }
 0x109   :  { %v1565_v1 = vpop.f32.mrb[24].mxu0  ;;  %917 = vst.msk [vmem:[%s2546_s3 + $0x54] sm:$0xf] %vm895_vm2, %v1461_v61  ;;  %v1199_v12 = vsel %vm960_vm3, %v1115_v63, 0.0  ;;  %v1201_v19 = vsel %vm960_vm3, %v1116_v55, 0.0  ;;  %v1006_v26 = vsel %vm960_vm3, %v476_v49, 0.0  ;;  %v1478_v44 = vpack.c.bf16 %v2048_v16, %v2048_v16 }
 0x10a   :  { %v489_v7 = vadd.f32 %v1565_v1, %v1801_v34  ;;  %v480_v8 = vpop.f32.mrb[25].mxu0  ;;  %v1005_v20 = vadd.f32 %v1004_v3, %v1003_v6  ;;  %v1200_v21 = vadd.f32 %v1199_v12, %v1198_v4  ;;  %v1203_v41 = vsel %vm960_vm3, %v1117_v10, 0.0  ;;  %v2083_v61 = vpop.f32.mrb[22].mxu1 }
 0x10b   :  { %v481_v14 = vadd.f32 %v1801_v34, %v480_v8  ;;  %v1566_v15 = vpop.f32.mrb[26].mxu0  ;;  %934 = vst.msk [vmem:[%s2546_s3 + $0x98] sm:$0xf] %vm895_vm2, %v1478_v44  ;;  %v2092_v6 = vpop.f32.mrb[23].mxu1 }
 0x10c   :  { %v1466_v22 = vpack.c.bf16 %v489_v7, %v489_v7  ;;  %v483_v23 = vpop.f32.mrb[27].mxu0  ;;  %v1202_v36 = vadd.f32 %v1201_v19, %v1200_v21  ;;  %v1007_v59 = vadd.f32 %v1006_v26, %v1005_v20  ;;  %v492_v39 = vadd.f32 %v1566_v15, %v1801_v34 }
 0x10d   :  { %v1464_v27 = vpack.c.bf16 %v481_v14, %v481_v14  ;;  %v1008_v29 = vsel %vm960_vm3, %v481_v14, 0.0  ;;  %v1118_v30 = vmul.f32 %v481_v14, %v481_v14  ;;  %v484_v40 = vadd.f32 %v1801_v34, %v483_v23 }
 0x10e   :  { %922 = vst.msk [vmem:[%s2546_s3 + $0x68] sm:$0xf] %vm895_vm2, %v1466_v22  ;;  %v1120_v31 = vmul.f32 %v489_v7, %v489_v7  ;;  %v1009_v45 = vadd.f32 %v1008_v29, %v1007_v59  ;;  %v1204_v46 = vadd.f32 %v1203_v41, %v1202_v36  ;;  %v1467_v48 = vpack.c.bf16 %v492_v39, %v492_v39  ;;  %v2113_v41 = vpop.f32.mrb[24].mxu1 }
 0x10f   :  { %920 = vst.msk [vmem:[%s2546_s3 + $0x60] sm:$0xf] %vm895_vm2, %v1464_v27  ;;  %v1205_v43 = vsel %vm960_vm3, %v1118_v30, 0.0  ;;  %v1465_v49 = vpack.c.bf16 %v484_v40, %v484_v40  ;;  %v1010_v50 = vsel %vm960_vm3, %v484_v40, 0.0  ;;  %v1119_v51 = vmul.f32 %v484_v40, %v484_v40 }
 0x110   :  { %v1206_v55 = vadd.f32 %v1205_v43, %v1204_v46  ;;  %923 = vst.msk [vmem:[%s2546_s3 + $0x6c] sm:$0xf] %vm895_vm2, %v1467_v48  ;;  %v1011_v56 = vadd.f32 %v1010_v50, %v1009_v45  ;;  %v1012_v62 = vsel %vm960_vm3, %v489_v7, 0.0  ;;  %v1121_v63 = vmul.f32 %v492_v39, %v492_v39  ;;  %v2116_v46 = vpop.f32.mrb[25].mxu1 }
 0x111   :  { %v1569_v52 = vpop.f32.mrb[28].mxu0  ;;  %921 = vst.msk [vmem:[%s2546_s3 + $0x64] sm:$0xf] %vm895_vm2, %v1465_v49  ;;  %v1207_v1 = vsel %vm960_vm3, %v1119_v51, 0.0  ;;  %v1209_v8 = vsel %vm960_vm3, %v1120_v31, 0.0  ;;  %v1014_v7 = vsel %vm960_vm3, %v492_v39, 0.0  ;;  %v2111_v36 = vadd.f32 %v1801_v34, %v1902_v0 }
 0x112   :  { %v505_v57 = vadd.f32 %v1569_v52, %v1801_v34  ;;  %v496_v58 = vpop.f32.mrb[29].mxu0  ;;  %v1013_v10 = vadd.f32 %v1012_v62, %v1011_v56  ;;  %v1208_v12 = vadd.f32 %v1207_v1, %v1206_v55  ;;  %v1211_v29 = vsel %vm960_vm3, %v1121_v63, 0.0  ;;  %v2126_v51 = vpop.f32.mrb[26].mxu1 }
 0x113   :  { %v497_v3 = vadd.f32 %v1801_v34, %v496_v58  ;;  %v1570_v4 = vpop.f32.mrb[30].mxu0  ;;  %v1126_v49 = vmul.f32 %v1870_v37, %v1870_v37  ;;  %v1476_v50 = vpack.c.bf16 %v2111_v36, %v2111_v36  ;;  %v2136_v58 = vadd.f32 %v1909_v5, %v1801_v34  ;;  %v2138_v62 = vpop.f32.mrb[27].mxu1 }
 0x114   :  { %v1470_v14 = vpack.c.bf16 %v505_v57, %v505_v57  ;;  %v499_v15 = vpop.f32.mrb[31].mxu0  ;;  %v1210_v22 = vadd.f32 %v1209_v8, %v1208_v12  ;;  %v1015_v23 = vadd.f32 %v1014_v7, %v1013_v10  ;;  %v508_v26 = vadd.f32 %v1570_v4, %v1801_v34 }
 0x115   :  { %v1468_v19 = vpack.c.bf16 %v497_v3, %v497_v3  ;;  %v1016_v20 = vsel %vm960_vm3, %v497_v3, 0.0  ;;  %v1122_v21 = vmul.f32 %v497_v3, %v497_v3  ;;  %v500_v27 = vadd.f32 %v1801_v34, %v499_v15  ;;  %932 = vst.msk [vmem:[%s2546_s3 + $0x90] sm:$0xf] %vm895_vm2, %v1476_v50 }
 0x116   :  { %926 = vst.msk [vmem:[%s2546_s3 + $0x78] sm:$0xf] %vm895_vm2, %v1470_v14  ;;  %v1017_v59 = vadd.f32 %v1016_v20, %v1015_v23  ;;  %v1212_v39 = vadd.f32 %v1211_v29, %v1210_v22  ;;  %v1471_v40 = vpack.c.bf16 %v508_v26, %v508_v26  ;;  %v1124_v43 = vmul.f32 %v505_v57, %v505_v57  ;;  %v2174_v23 = vpop.f32.mrb[28].mxu1 }
 0x117   :  { %924 = vst.msk [vmem:[%s2546_s3 + $0x70] sm:$0xf] %vm895_vm2, %v1468_v19  ;;  %v1213_v30 = vsel %vm960_vm3, %v1122_v21, 0.0  ;;  %v1469_v44 = vpack.c.bf16 %v500_v27, %v500_v27  ;;  %v1018_v31 = vsel %vm960_vm3, %v500_v27, 0.0  ;;  %v1123_v45 = vmul.f32 %v500_v27, %v500_v27 }
 0x118   :  { %v1214_v48 = vadd.f32 %v1213_v30, %v1212_v39  ;;  %927 = vst.msk [vmem:[%s2546_s3 + $0x7c] sm:$0xf] %vm895_vm2, %v1471_v40  ;;  %v1019_v0 = vadd.f32 %v1018_v31, %v1017_v59  ;;  %v1020_v52 = vsel %vm960_vm3, %v505_v57, 0.0  ;;  %v1125_v55 = vmul.f32 %v508_v26, %v508_v26  ;;  %v2194_v30 = vpop.f32.mrb[29].mxu1 }
 0x119   :  { %925 = vst.msk [vmem:[%s2546_s3 + $0x74] sm:$0xf] %vm895_vm2, %v1469_v44  ;;  %v1215_v56 = vsel %vm960_vm3, %v1123_v45, 0.0  ;;  %v532_v57 = vadd.f32 %v1801_v34, %v1918_v11  ;;  %v2148_v3 = vadd.f32 %v1939_v35, %v1801_v34  ;;  %v1217_v4 = vsel %vm960_vm3, %v1124_v43, 0.0  ;;  %v2198_v43 = vpop.f32.mrb[30].mxu1 }
 0x11a   :  { %v1021_v63 = vadd.f32 %v1020_v52, %v1019_v0  ;;  %v1216_v1 = vadd.f32 %v1215_v56, %v1214_v48  ;;  %v1022_v5 = vsel %vm960_vm3, %v508_v26, 0.0  ;;  %v1024_v8 = vsel %vm960_vm3, %v1870_v37, 0.0  ;;  %v2207_v31 = vpop.f32.mrb[31].mxu1 }
 0x11b   :  { %v1479_v10 = vpack.c.bf16 %v2136_v58, %v2136_v58  ;;  %v1477_v15 = vpack.c.bf16 %v532_v57, %v532_v57  ;;  %v1219_v7 = vsel %vm960_vm3, %v1125_v55, 0.0  ;;  %v1221_v11 = vsel %vm960_vm3, %v1126_v49, 0.0 }
 0x11c   :  { %v1218_v12 = vadd.f32 %v1217_v4, %v1216_v1  ;;  %v1023_v14 = vadd.f32 %v1022_v5, %v1021_v63  ;;  %v1127_v35 = vmul.f32 %v2002_v32, %v2002_v32  ;;  %v1482_v37 = vpack.c.bf16 %v2148_v3, %v2148_v3 }
 0x11d   :  { %935 = vst.msk [vmem:[%s2546_s3 + $0x9c] sm:$0xf] %vm895_vm2, %v1479_v10  ;;  %v1128_v19 = vmul.f32 %v1851_v24, %v1851_v24  ;;  %933 = vst.msk [vmem:[%s2546_s3 + $0x94] sm:$0xf] %vm895_vm2, %v1477_v15  ;;  %v545_v22 = vadd.f32 %v1801_v34, %v1942_v42  ;;  %v1026_v26 = vsel %vm960_vm3, %v2002_v32, 0.0  ;;  %v2184_v27 = vadd.f32 %v1950_v47, %v1801_v34 }
 0x11e   :  { %v1025_v20 = vadd.f32 %v1024_v8, %v1023_v14  ;;  %v1220_v21 = vadd.f32 %v1219_v7, %v1218_v12  ;;  %938 = vst.msk [vmem:[%s2546_s3 + $0xa8] sm:$0xf] %vm895_vm2, %v1482_v37  ;;  %v2188_v29 = vadd.f32 %v1801_v34, %v1960_v53  ;;  %v2192_v42 = vadd.f32 %v1981_v13, %v1801_v34 }
 0x11f   :  { %v1129_v59 = vmul.f32 %v1937_v28, %v1937_v28  ;;  %v1480_v40 = vpack.c.bf16 %v545_v22, %v545_v22  ;;  %v1028_v47 = vsel %vm960_vm3, %v1851_v24, 0.0  ;;  %v1223_v53 = vsel %vm960_vm3, %v1127_v35, 0.0 }
 0x120   :  { %v1222_v32 = vadd.f32 %v1221_v11, %v1220_v21  ;;  %v1027_v39 = vadd.f32 %v1026_v26, %v1025_v20  ;;  %v1130_v44 = vmul.f32 %v2111_v36, %v2111_v36  ;;  %v1483_v13 = vpack.c.bf16 %v2184_v27, %v2184_v27 }
 0x121   :  { %936 = vst.msk [vmem:[%s2546_s3 + $0xa0] sm:$0xf] %vm895_vm2, %v1480_v40  ;;  %v1481_v24 = vpack.c.bf16 %v2188_v29, %v2188_v29  ;;  %v1225_v0 = vsel %vm960_vm3, %v1128_v19, 0.0  ;;  %v1030_v49 = vsel %vm960_vm3, %v1937_v28, 0.0  ;;  %v1032_v50 = vsel %vm960_vm3, %v2111_v36, 0.0 }
 0x122   :  { %v1029_v45 = vadd.f32 %v1028_v47, %v1027_v39  ;;  %v1224_v48 = vadd.f32 %v1223_v53, %v1222_v32  ;;  %939 = vst.msk [vmem:[%s2546_s3 + $0xac] sm:$0xf] %vm895_vm2, %v1483_v13  ;;  %v1486_v52 = vpack.c.bf16 %v2192_v42, %v2192_v42  ;;  %v1227_v55 = vsel %vm960_vm3, %v1129_v59, 0.0 }
 0x123   :  { %937 = vst.msk [vmem:[%s2546_s3 + $0xa4] sm:$0xf] %vm895_vm2, %v1481_v24  ;;  %v1229_v28 = vsel %vm960_vm3, %v1130_v44, 0.0  ;;  %v1131_v36 = vmul.f32 %v532_v57, %v532_v57  ;;  %v561_v1 = vadd.f32 %v1801_v34, %v1984_v18  ;;  %v2240_v4 = vadd.f32 %v1992_v25, %v1801_v34 }
 0x124   :  { %v1226_v56 = vadd.f32 %v1225_v0, %v1224_v48  ;;  %v1031_v63 = vadd.f32 %v1030_v49, %v1029_v45  ;;  %942 = vst.msk [vmem:[%s2546_s3 + $0xb8] sm:$0xf] %vm895_vm2, %v1486_v52  ;;  %v2244_v10 = vadd.f32 %v1801_v34, %v2004_v33  ;;  %v2248_v12 = vadd.f32 %v2023_v60, %v1801_v34 }
 0x125   :  { %v1132_v14 = vmul.f32 %v2048_v16, %v2048_v16  ;;  %v1034_v15 = vsel %vm960_vm3, %v532_v57, 0.0  ;;  %v1484_v18 = vpack.c.bf16 %v561_v1, %v561_v1  ;;  %v1036_v25 = vsel %vm960_vm3, %v2048_v16, 0.0 }
 0x126   :  { %v1033_v5 = vadd.f32 %v1032_v50, %v1031_v63  ;;  %v1228_v8 = vadd.f32 %v1227_v55, %v1226_v56  ;;  %v1487_v35 = vpack.c.bf16 %v2240_v4, %v2240_v4  ;;  %v1133_v33 = vmul.f32 %v2136_v58, %v2136_v58 }
 0x127   :  { %v1231_v60 = vsel %vm960_vm3, %v1131_v36, 0.0  ;;  %v1134_v37 = vmul.f32 %v545_v22, %v545_v22  ;;  %940 = vst.msk [vmem:[%s2546_s3 + $0xb0] sm:$0xf] %vm895_vm2, %v1484_v18  ;;  %v1485_v57 = vpack.c.bf16 %v2244_v10, %v2244_v10  ;;  %v1490_v20 = vpack.c.bf16 %v2248_v12, %v2248_v12 }
 0x128   :  { %v1230_v7 = vadd.f32 %v1229_v28, %v1228_v8  ;;  %v1035_v11 = vadd.f32 %v1034_v15, %v1033_v5  ;;  %943 = vst.msk [vmem:[%s2546_s3 + $0xbc] sm:$0xf] %vm895_vm2, %v1487_v35  ;;  %v1233_v21 = vsel %vm960_vm3, %v1132_v14, 0.0  ;;  %v1038_v26 = vsel %vm960_vm3, %v2136_v58, 0.0 }
 0x129   :  { %v1040_v32 = vsel %vm960_vm3, %v545_v22, 0.0  ;;  %941 = vst.msk [vmem:[%s2546_s3 + $0xb4] sm:$0xf] %vm895_vm2, %v1485_v57  ;;  %v2282_v59 = vadd.f32 %v1801_v34, %v2030_v2  ;;  %946 = vst.msk [vmem:[%s2546_s3 + $0xc8] sm:$0xf] %vm895_vm2, %v1490_v20  ;;  %v2290_v58 = vadd.f32 %v2038_v9, %v1801_v34  ;;  %v1235_v22 = vsel %vm960_vm3, %v1133_v33, 0.0 }
 0x12a   :  { %v1037_v16 = vadd.f32 %v1036_v25, %v1035_v11  ;;  %v1232_v19 = vadd.f32 %v1231_v60, %v1230_v7  ;;  %v1237_v47 = vsel %vm960_vm3, %v1134_v37, 0.0  ;;  %v1135_v53 = vmul.f32 %v2188_v29, %v2188_v29 }
 0x12b   :  { %v1488_v2 = vpack.c.bf16 %v2282_v59, %v2282_v59  ;;  %v1044_v44 = vsel %vm960_vm3, %v2148_v3, 0.0  ;;  %v1491_v48 = vpack.c.bf16 %v2290_v58, %v2290_v58  ;;  %v1136_v9 = vmul.f32 %v2148_v3, %v2148_v3 }
 0x12c   :  { %v1234_v39 = vadd.f32 %v1233_v21, %v1232_v19  ;;  %v1039_v40 = vadd.f32 %v1038_v26, %v1037_v16  ;;  %v1042_v24 = vsel %vm960_vm3, %v2188_v29, 0.0  ;;  %v2312_v0 = vadd.f32 %v1801_v34, %v2050_v17 }
 0x12d   :  { %944 = vst.msk [vmem:[%s2546_s3 + $0xc0] sm:$0xf] %vm895_vm2, %v1488_v2  ;;  %v2316_v49 = vadd.f32 %v2069_v38, %v1801_v34  ;;  %947 = vst.msk [vmem:[%s2546_s3 + $0xcc] sm:$0xf] %vm895_vm2, %v1491_v48  ;;  %v2324_v3 = vadd.f32 %v1801_v34, %v2076_v54  ;;  %v2328_v29 = vadd.f32 %v2083_v61, %v1801_v34  ;;  %v1239_v38 = vsel %vm960_vm3, %v1135_v53, 0.0 }
 0x12e   :  { %v1041_v13 = vadd.f32 %v1040_v32, %v1039_v40  ;;  %v1236_v45 = vadd.f32 %v1235_v22, %v1234_v39  ;;  %v1137_v17 = vmul.f32 %v2184_v27, %v2184_v27  ;;  %v1138_v55 = vmul.f32 %v561_v1, %v561_v1 }
 0x12f   :  { %v1489_v56 = vpack.c.bf16 %v2312_v0, %v2312_v0  ;;  %v1494_v36 = vpack.c.bf16 %v2316_v49, %v2316_v49  ;;  %v1241_v54 = vsel %vm960_vm3, %v1136_v9, 0.0  ;;  %v1046_v61 = vsel %vm960_vm3, %v2184_v27, 0.0 }
 0x130   :  { %v1238_v50 = vadd.f32 %v1237_v47, %v1236_v45  ;;  %v1043_v52 = vadd.f32 %v1042_v24, %v1041_v13  ;;  %v1048_v5 = vsel %vm960_vm3, %v561_v1, 0.0  ;;  %v1492_v8 = vpack.c.bf16 %v2324_v3, %v2324_v3 }
 0x131   :  { %945 = vst.msk [vmem:[%s2546_s3 + $0xc4] sm:$0xf] %vm895_vm2, %v1489_v56  ;;  %950 = vst.msk [vmem:[%s2546_s3 + $0xd8] sm:$0xf] %vm895_vm2, %v1494_v36  ;;  %v1495_v27 = vpack.c.bf16 %v2328_v29, %v2328_v29  ;;  %v1243_v1 = vsel %vm960_vm3, %v1137_v17, 0.0  ;;  %v1245_v18 = vsel %vm960_vm3, %v1138_v55, 0.0  ;;  %v1139_v25 = vmul.f32 %v2244_v10, %v2244_v10 }
 0x132   :  { %v1045_v63 = vadd.f32 %v1044_v44, %v1043_v52  ;;  %v1240_v28 = vadd.f32 %v1239_v38, %v1238_v50  ;;  %948 = vst.msk [vmem:[%s2546_s3 + $0xd0] sm:$0xf] %vm895_vm2, %v1492_v8  ;;  %v2363_v7 = vadd.f32 %v1801_v34, %v2092_v6  ;;  %v2371_v33 = vadd.f32 %v2113_v41, %v1801_v34 }
 0x133   :  { %951 = vst.msk [vmem:[%s2546_s3 + $0xdc] sm:$0xf] %vm895_vm2, %v1495_v27  ;;  %v1052_v60 = vsel %vm960_vm3, %v2192_v42, 0.0  ;;  %v1140_v37 = vmul.f32 %v2192_v42, %v2192_v42  ;;  %v1050_v6 = vsel %vm960_vm3, %v2244_v10, 0.0  ;;  %v1141_v19 = vmul.f32 %v2240_v4, %v2240_v4 }
 0x134   :  { %v1242_v14 = vadd.f32 %v1241_v54, %v1240_v28  ;;  %v1047_v15 = vadd.f32 %v1046_v61, %v1045_v63  ;;  %v1493_v57 = vpack.c.bf16 %v2363_v7, %v2363_v7  ;;  %v1498_v41 = vpack.c.bf16 %v2371_v33, %v2371_v33 }
 0x135   :  { %v1247_v21 = vsel %vm960_vm3, %v1139_v25, 0.0  ;;  %v1142_v26 = vmul.f32 %v2282_v59, %v2282_v59  ;;  %v2394_v42 = vadd.f32 %v1801_v34, %v2116_v46  ;;  %v2398_v10 = vadd.f32 %v2126_v51, %v1801_v34 }
 0x136   :  { %v1049_v11 = vadd.f32 %v1048_v5, %v1047_v15  ;;  %v1244_v35 = vadd.f32 %v1243_v1, %v1242_v14  ;;  %949 = vst.msk [vmem:[%s2546_s3 + $0xd4] sm:$0xf] %vm895_vm2, %v1493_v57  ;;  %954 = vst.msk [vmem:[%s2546_s3 + $0xe8] sm:$0xf] %vm895_vm2, %v1498_v41  ;;  %v2406_v40 = vadd.f32 %v1801_v34, %v2138_v62  ;;  %v1249_v46 = vsel %vm960_vm3, %v1140_v37, 0.0 }
 0x137   :  { %v2410_v22 = vadd.f32 %v2174_v23, %v1801_v34  ;;  %v1054_v51 = vsel %vm960_vm3, %v2240_v4, 0.0  ;;  %v1056_v47 = vsel %vm960_vm3, %v2282_v59, 0.0  ;;  %v1496_v53 = vpack.c.bf16 %v2394_v42, %v2394_v42  ;;  %v1640_v5 = vld [vmem:[%s2545_s2] ss:$0 sm:$0xff] }
 0x138   :  { %v1246_v16 = vadd.f32 %v1245_v18, %v1244_v35  ;;  %v1051_v20 = vadd.f32 %v1050_v6, %v1049_v11  ;;  %v1499_v62 = vpack.c.bf16 %v2398_v10, %v2398_v10  ;;  %v1251_v13 = vsel %vm960_vm3, %v1141_v19, 0.0 }
 0x139   :  { %v1253_v23 = vsel %vm960_vm3, %v1142_v26, 0.0  ;;  %v1143_v45 = vmul.f32 %v2312_v0, %v2312_v0  ;;  %952 = vst.msk [vmem:[%s2546_s3 + $0xe0] sm:$0xf] %vm895_vm2, %v1496_v53  ;;  %v1497_v4 = vpack.c.bf16 %v2406_v40, %v2406_v40  ;;  %v1502_v9 = vpack.c.bf16 %v2410_v22, %v2410_v22 }
 0x13a   :  { %v1053_v32 = vadd.f32 %v1052_v60, %v1051_v20  ;;  %v1248_v39 = vadd.f32 %v1247_v21, %v1246_v16  ;;  %955 = vst.msk [vmem:[%s2546_s3 + $0xec] sm:$0xf] %vm895_vm2, %v1499_v62  ;;  %v1144_v24 = vmul.f32 %v2248_v12, %v2248_v12  ;;  %v1058_v50 = vsel %vm960_vm3, %v2312_v0, 0.0 }
 0x13b   :  { %953 = vst.msk [vmem:[%s2546_s3 + $0xe4] sm:$0xf] %vm895_vm2, %v1497_v4  ;;  %v625_v52 = vadd.f32 %v1801_v34, %v2194_v30  ;;  %v1060_v17 = vsel %vm960_vm3, %v2248_v12, 0.0  ;;  %958 = vst.msk [vmem:[%s2546_s3 + $0xf8] sm:$0xf] %vm895_vm2, %v1502_v9  ;;  %v2455_v0 = vadd.f32 %v2198_v43, %v1801_v34  ;;  %v1145_v56 = vmul.f32 %v2290_v58, %v2290_v58 }
 0x13c   :  { %v1250_v2 = vadd.f32 %v1249_v46, %v1248_v39  ;;  %v1055_v44 = vadd.f32 %v1054_v51, %v1053_v32  ;;  %v1255_v63 = vsel %vm960_vm3, %v1143_v45, 0.0  ;;  %v1146_v30 = vmul.f32 %v2324_v3, %v2324_v3 }
 0x13d   :  { %v1500_v12 = vpack.c.bf16 %v625_v52, %v625_v52  ;;  %v1503_v54 = vpack.c.bf16 %v2455_v0, %v2455_v0  ;;  %v1257_v61 = vsel %vm960_vm3, %v1144_v24, 0.0  ;;  %v1062_v34 = vsel %vm960_vm3, %v2290_v58, 0.0 }
 0x13e   :  { %v1057_v59 = vadd.f32 %v1056_v47, %v1055_v44  ;;  %v1252_v48 = vadd.f32 %v1251_v13, %v1250_v2  ;;  %v1064_v43 = vsel %vm960_vm3, %v2324_v3, 0.0  ;;  %v628_v8 = vadd.f32 %v1640_v5, %v2207_v31 }
 0x13f   :  { %956 = vst.msk [vmem:[%s2546_s3 + $0xf0] sm:$0xf] %vm895_vm2, %v1500_v12  ;;  %959 = vst.msk [vmem:[%s2546_s3 + $0xfc] sm:$0xf] %vm895_vm2, %v1503_v54  ;;  %v1259_v58 = vsel %vm960_vm3, %v1145_v56, 0.0  ;;  %v1261_v3 = vsel %vm960_vm3, %v1146_v30, 0.0  ;;  %v1147_v27 = vmul.f32 %v2363_v7, %v2363_v7  ;;  %v1148_v31 = vmul.f32 %v2316_v49, %v2316_v49 }
 0x140   :  { %v1254_v38 = vadd.f32 %v1253_v23, %v1252_v48  ;;  %v1059_v55 = vadd.f32 %v1058_v50, %v1057_v59  ;;  %v1501_v1 = vpack.c.bf16 %v628_v8, %v628_v8  ;;  %v1066_v11 = vsel %vm960_vm3, %v2363_v7, 0.0 }
 0x141   :  { %v1068_v37 = vsel %vm960_vm3, %v2316_v49, 0.0  ;;  %v1149_v6 = vmul.f32 %v2328_v29, %v2328_v29  ;;  %v1263_v57 = vsel %vm960_vm3, %v1147_v27, 0.0  ;;  %v1150_v16 = vmul.f32 %v2394_v42, %v2394_v42 }
 0x142   :  { %v1061_v28 = vadd.f32 %v1060_v17, %v1059_v55  ;;  %v1256_v36 = vadd.f32 %v1255_v63, %v1254_v38  ;;  %957 = vst.msk [vmem:[%s2546_s3 + $0xf4] sm:$0xf] %vm895_vm2, %v1501_v1  ;;  %v1265_v20 = vsel %vm960_vm3, %v1148_v31, 0.0  ;;  %v1070_v41 = vsel %vm960_vm3, %v2328_v29, 0.0 }
 0x143   :  { %v1072_v21 = vsel %vm960_vm3, %v2394_v42, 0.0  ;;  %v1267_v32 = vsel %vm960_vm3, %v1149_v6, 0.0  ;;  %v1269_v39 = vsel %vm960_vm3, %v1150_v16, 0.0  ;;  %v1151_v46 = vmul.f32 %v2406_v40, %v2406_v40 }
 0x144   :  { %v1258_v14 = vadd.f32 %v1257_v61, %v1256_v36  ;;  %v1063_v15 = vadd.f32 %v1062_v34, %v1061_v28  ;;  %v1152_v53 = vmul.f32 %v2371_v33, %v2371_v33  ;;  %v1074_v29 = vsel %vm960_vm3, %v2406_v40, 0.0 }
 0x145   :  { %v1076_v42 = vsel %vm960_vm3, %v2371_v33, 0.0  ;;  %v1153_v62 = vmul.f32 %v2398_v10, %v2398_v10  ;;  %v1271_v13 = vsel %vm960_vm3, %v1151_v46, 0.0  ;;  %v1154_v23 = vmul.f32 %v625_v52, %v625_v52 }
 0x146   :  { %v1065_v18 = vadd.f32 %v1064_v43, %v1063_v15  ;;  %v1260_v25 = vadd.f32 %v1259_v58, %v1258_v14  ;;  %v1273_v59 = vsel %vm960_vm3, %v1152_v53, 0.0  ;;  %v1078_v48 = vsel %vm960_vm3, %v2398_v10, 0.0 }
 0x147   :  { %v1080_v40 = vsel %vm960_vm3, %v625_v52, 0.0  ;;  %v1275_v50 = vsel %vm960_vm3, %v1153_v62, 0.0  ;;  %v1277_v33 = vsel %vm960_vm3, %v1154_v23, 0.0  ;;  %v1155_v17 = vmul.f32 %v628_v8, %v628_v8 }
 0x148   :  { %v1262_v35 = vadd.f32 %v1261_v3, %v1260_v25  ;;  %v1067_v60 = vadd.f32 %v1066_v11, %v1065_v18  ;;  %v1156_v56 = vmul.f32 %v2410_v22, %v2410_v22  ;;  %v1082_v63 = vsel %vm960_vm3, %v628_v8, 0.0 }
 0x149   :  { %v1084_v10 = vsel %vm960_vm3, %v2410_v22, 0.0  ;;  %v1157_v52 = vmul.f32 %v2455_v0, %v2455_v0  ;;  %v1279_v28 = vsel %vm960_vm3, %v1155_v17, 0.0  ;;  %v1086_v34 = vsel %vm960_vm3, %v2455_v0, 0.0  ;;  %v1299_v0 = vld [vmem:[%s2547_s4] sm:$0x3] }
 0x14a   :  { %v1069_v19 = vadd.f32 %v1068_v37, %v1067_v60  ;;  %v1264_v7 = vadd.f32 %v1263_v57, %v1262_v35  ;;  %v1281_v61 = vsel %vm960_vm3, %v1156_v56, 0.0 }
 0x14b   :  { %v1283_v8 = vsel %vm960_vm3, %v1157_v52, 0.0 }
 0x14c   :  { %v1266_v26 = vadd.f32 %v1265_v20, %v1264_v7  ;;  %v1071_v49 = vadd.f32 %v1070_v41, %v1069_v19 }
 0x14e   :  { %v1073_v51 = vadd.f32 %v1072_v21, %v1071_v49  ;;  %v1268_v47 = vadd.f32 %v1267_v32, %v1266_v26 }
 0x150   :  { %v1270_v2 = vadd.f32 %v1269_v39, %v1268_v47  ;;  %v1075_v44 = vadd.f32 %v1074_v29, %v1073_v51 }
 0x152   :  { %v1077_v45 = vadd.f32 %v1076_v42, %v1075_v44  ;;  %v1272_v4 = vadd.f32 %v1271_v13, %v1270_v2 }
 0x154   :  { %v1274_v9 = vadd.f32 %v1273_v59, %v1272_v4  ;;  %v1079_v24 = vadd.f32 %v1078_v48, %v1077_v45 }
 0x156   :  { %v1081_v38 = vadd.f32 %v1080_v40, %v1079_v24  ;;  %v1276_v55 = vadd.f32 %v1275_v50, %v1274_v9 }
 0x158   :  { %v1278_v30 = vadd.f32 %v1277_v33, %v1276_v55  ;;  %v1083_v12 = vadd.f32 %v1082_v63, %v1081_v38 }
 0x15a   :  { %v1085_v36 = vadd.f32 %v1084_v10, %v1083_v12  ;;  %v1280_v54 = vadd.f32 %v1279_v28, %v1278_v30 }
 0x15c   :  { %v1087_v43 = vadd.f32 %v1086_v34, %v1085_v36  ;;  %v1282_v5 = vadd.f32 %v1281_v61, %v1280_v54 }
 0x15e   :  { %v1088_v14 = vrot.slane %v1087_v43, 4  ;;  %v1284_v15 = vadd.f32 %v1283_v8, %v1282_v5 }
 0x160   :  { %v1089_v58 = vadd.f32 %v1088_v14, %v1087_v43  ;;  %v1285_v22 = vrot.slane %v1284_v15, 4 }
 0x162   :  { %v1090_v3 = vrot.slane %v1089_v58, 2  ;;  %v1286_v27 = vadd.f32 %v1285_v22, %v1284_v15 }
 0x164   :  { %v1091_v1 = vadd.f32 %v1090_v3, %v1089_v58  ;;  %v1287_v18 = vrot.slane %v1286_v27, 2 }
 0x166   :  { %v1092_v25 = vrot.slane %v1091_v1, 1  ;;  %v1288_v31 = vadd.f32 %v1287_v18, %v1286_v27 }
 0x168   :  { %v1289_v11 = vrot.slane %v1288_v31, 1  ;;  %v1093_v35 = vadd.f32 %v1092_v25, %v1091_v1 }
 0x16a   :  { %v1290_v60 = vadd.f32 %v1289_v11, %v1288_v31 }
 0x16c   :  { %v1292_v37 = vsel %vm1291_vm5, %v1093_v35, %v1290_v60 }
 0x16d   :  { %v1300_v6 = vadd.f32 %v1299_v0, %v1292_v37 }
 0x16f   :  { %1302 = vst.msk [vmem:[%s2547_s4] sm:$0x3] %vm1297_vm4, %v1300_v6 }

// kernel: residual_conv_block_forward.7
= control target key start
LH: loop header
LB: loop body
LE: loop exit
PB: predicated region body
PF: predicated region fallthrough
CT: control target
= control target key end

     0   :  { %s1067_s24 = smov 64   ;;  %s1735_s0 = inlined_call_operand.vmem [shape: bf16[512,128], index: 0, kind: input, shape index: {}]   ;;  %s1736_s1 = inlined_call_operand.vmem [shape: f32[1,128], index: 1, kind: input, shape index: {}]   ;;  %s1737_s2 = inlined_call_operand.vmem [shape: f32[1,128], index: 2, kind: input, shape index: {}]   ;;  %s1738_s3 = inlined_call_operand.hbm [shape: f32[512,64], index: 3, kind: output, shape index: {}]  }
   0x1   :  { %v1008_v0 = vld [vmem:[%s1735_s0 + $0x8] sm:$0xff]   ;;  %v1097_v1 = vld [vmem:[%s1736_s1] ss:$0 sm:$0xff]  ;;  %v1009_v5 = vld [vmem:[%s1735_s0 + $0x10] sm:$0xff]  }
   0x2   :  { %v886_v2 = vunpack.c.l.bf16 %v1008_v0  ;;  %v887_v3 = vunpack.c.h.bf16 %v1008_v0  ;;  %v881_v4 = vld [vmem:[%s1735_s0] sm:$0xff]   ;;  %v1010_v6 = vld [vmem:[%s1735_s0 + $0x18] sm:$0xff]   ;;  %v891_v12 = vunpack.c.h.bf16 %v1009_v5  ;;  %v890_v13 = vunpack.c.l.bf16 %v1009_v5  ;;  %v1012_v29 = vld [vmem:[%s1735_s0 + $0x28] sm:$0xff]  }
   0x3   :  { %v1111_v7 = vld [vmem:[%s1737_s2] ss:$0 sm:$0xff]  ;;  %v882_v8 = vunpack.c.l.bf16 %v881_v4  ;;  %v883_v9 = vunpack.c.h.bf16 %v881_v4  ;;  %v895_v16 = vunpack.c.h.bf16 %v1010_v6  ;;  %v894_v17 = vunpack.c.l.bf16 %v1010_v6  ;;  %v1013_v30 = vld [vmem:[%s1735_s0 + $0x30] sm:$0xff]   ;;  %v1014_v33 = vld [vmem:[%s1735_s0 + $0x38] sm:$0xff]  }
   0x4   :  { %v152_v10 = vmul.f32 %v886_v2, %v1097_v1  ;;  %v153_v11 = vmul.f32 %v887_v3, %v1097_v1  ;;  %v1011_v20 = vld [vmem:[%s1735_s0 + $0x20] sm:$0xff]   ;;  %v155_v22 = vmul.f32 %v891_v12, %v1097_v1  ;;  %v154_v23 = vmul.f32 %v890_v13, %v1097_v1 }
   0x5   :  { %v150_v14 = vmul.f32 %v882_v8, %v1097_v1  ;;  %v151_v15 = vmul.f32 %v883_v9, %v1097_v1  ;;  %v157_v25 = vmul.f32 %v895_v16, %v1097_v1  ;;  %v156_v26 = vmul.f32 %v894_v17, %v1097_v1  ;;  %v1015_v34 = vld [vmem:[%s1735_s0 + $0x40] sm:$0xff]  }
   0x6   :  { %v1118_v18 = vadd.f32 %v1111_v7, %v152_v10  ;;  %v1129_v21 = vadd.f32 %v1111_v7, %v153_v11  ;;  %v899_v27 = vunpack.c.h.bf16 %v1011_v20  ;;  %v898_v28 = vunpack.c.l.bf16 %v1011_v20 }
   0x7   :  { %v1121_v19 = vadd.f32 %v1111_v7, %v150_v14  ;;  %v1136_v24 = vadd.f32 %v1111_v7, %v151_v15  ;;  %v1149_v31 = vadd.f32 %v1111_v7, %v155_v22  ;;  %v1152_v32 = vadd.f32 %v1111_v7, %v154_v23 }
   0x8   :  { %353 = vrot.lane.b32.xlu1 %v1118_v18, %s1067_s24 }
   0x9   :  { %349 = vrot.lane.b32.xlu0 %v1121_v19, %s1067_s24 }
   0xc   :  { %355 = vrot.lane.b32.xlu1 %v1129_v21, %s1067_s24 }
   0xd   :  { %8 = vsyncpa [#allocation3], 0  ;;  %351 = vrot.lane.b32.xlu0 %v1136_v24, %s1067_s24  ;;  %v1163_v35 = vadd.f32 %v1111_v7, %v157_v25  ;;  %v1166_v36 = vadd.f32 %v1111_v7, %v156_v26  ;;  %v903_v37 = vunpack.c.h.bf16 %v1012_v29  ;;  %v902_v38 = vunpack.c.l.bf16 %v1012_v29  ;;  %v1016_v39 = vld [vmem:[%s1735_s0 + $0x48] sm:$0xff]   ;;  %v1017_v40 = vld [vmem:[%s1735_s0 + $0x50] sm:$0xff]  }
   0xe   :  { %v159_v41 = vmul.f32 %v899_v27, %v1097_v1  ;;  %v158_v42 = vmul.f32 %v898_v28, %v1097_v1  ;;  %v907_v43 = vunpack.c.h.bf16 %v1013_v30  ;;  %v906_v44 = vunpack.c.l.bf16 %v1013_v30  ;;  %v1018_v45 = vld [vmem:[%s1735_s0 + $0x58] sm:$0xff]   ;;  %v1019_v3 = vld [vmem:[%s1735_s0 + $0x60] sm:$0xff]   ;;  %v1225_v17 = vld [vmem:[%s1735_s0 + $0x68] sm:$0xff]  }
   0xf   :  { %v911_v46 = vunpack.c.h.bf16 %v1014_v33  ;;  %v910_v47 = vunpack.c.l.bf16 %v1014_v33  ;;  %v915_v48 = vunpack.c.h.bf16 %v1015_v34  ;;  %v914_v49 = vunpack.c.l.bf16 %v1015_v34  ;;  %v1023_v26 = vld [vmem:[%s1735_s0 + $0x80] sm:$0xff]   ;;  %v1024_v33 = vld [vmem:[%s1735_s0 + $0x88] sm:$0xff]   ;;  %v1025_v34 = vld [vmem:[%s1735_s0 + $0x90] sm:$0xff]  }
  0x10   :  { %359 = vrot.lane.b32.xlu1 %v1149_v31, %s1067_s24  ;;  %v919_v50 = vunpack.c.h.bf16 %v1016_v39  ;;  %v918_v51 = vunpack.c.l.bf16 %v1016_v39  ;;  %v923_v52 = vunpack.c.h.bf16 %v1017_v40  ;;  %v922_v53 = vunpack.c.l.bf16 %v1017_v40 }
  0x11   :  { %357 = vrot.lane.b32.xlu0 %v1152_v32, %s1067_s24  ;;  %v161_v54 = vmul.f32 %v903_v37, %v1097_v1  ;;  %v160_v55 = vmul.f32 %v902_v38, %v1097_v1  ;;  %v927_v56 = vunpack.c.h.bf16 %v1018_v45  ;;  %v926_v57 = vunpack.c.l.bf16 %v1018_v45 }
  0x12   :  { %v1186_v58 = vadd.f32 %v1111_v7, %v159_v41  ;;  %v1189_v59 = vadd.f32 %v1111_v7, %v158_v42  ;;  %v163_v60 = vmul.f32 %v907_v43, %v1097_v1  ;;  %v162_v61 = vmul.f32 %v906_v44, %v1097_v1  ;;  %v1026_v41 = vld [vmem:[%s1735_s0 + $0x98] sm:$0xff]  }
  0x13   :  { %v165_v62 = vmul.f32 %v911_v46, %v1097_v1  ;;  %v164_v63 = vmul.f32 %v910_v47, %v1097_v1  ;;  %v167_v0 = vmul.f32 %v915_v48, %v1097_v1  ;;  %v166_v2 = vmul.f32 %v914_v49, %v1097_v1 }
  0x14   :  { %363 = vrot.lane.b32.xlu1 %v1163_v35, %s1067_s24  ;;  %v169_v4 = vmul.f32 %v919_v50, %v1097_v1  ;;  %v168_v5 = vmul.f32 %v918_v51, %v1097_v1  ;;  %v171_v6 = vmul.f32 %v923_v52, %v1097_v1  ;;  %v170_v8 = vmul.f32 %v922_v53, %v1097_v1 }
  0x15   :  { %361 = vrot.lane.b32.xlu0 %v1166_v36, %s1067_s24  ;;  %v1209_v9 = vadd.f32 %v1111_v7, %v161_v54  ;;  %v1212_v10 = vadd.f32 %v1111_v7, %v160_v55  ;;  %v173_v11 = vmul.f32 %v927_v56, %v1097_v1  ;;  %v172_v12 = vmul.f32 %v926_v57, %v1097_v1 }
  0x16   :  { %v1217_v13 = vadd.f32 %v1111_v7, %v163_v60  ;;  %v1220_v14 = vadd.f32 %v1111_v7, %v162_v61  ;;  %v931_v15 = vunpack.c.h.bf16 %v1019_v3  ;;  %v930_v16 = vunpack.c.l.bf16 %v1019_v3  ;;  %v1027_v60 = vld [vmem:[%s1735_s0 + $0xa0] sm:$0xff]   ;;  %v1029_v3 = vld [vmem:[%s1735_s0 + $0xb0] sm:$0xff]  }
  0x17   :  { %v1228_v20 = vadd.f32 %v1111_v7, %v165_v62  ;;  %v1231_v22 = vadd.f32 %v1111_v7, %v164_v63  ;;  %v1234_v23 = vadd.f32 %v1111_v7, %v167_v0  ;;  %v1237_v25 = vadd.f32 %v1111_v7, %v166_v2  ;;  %v1028_v2 = vld [vmem:[%s1735_s0 + $0xa8] sm:$0xff]  }
  0x18   :  { %1749 = vst [vmem:[#allocation5_spill] sm:$0xff] %v1220_v14  ;;  %367 = vrot.lane.b32.xlu1 %v1186_v58, %s1067_s24  ;;  %v1245_v27 = vadd.f32 %v1111_v7, %v169_v4  ;;  %v1248_v28 = vadd.f32 %v1111_v7, %v168_v5  ;;  %v1251_v29 = vadd.f32 %v1111_v7, %v171_v6  ;;  %v947_v44 = vunpack.c.h.bf16 %v1023_v26 }
  0x19   :  { %1750 = vst [vmem:[#allocation6_spill] sm:$0xff] %v1228_v20  ;;  %1751 = vst [vmem:[#allocation7_spill] sm:$0xff] %v1231_v22  ;;  %v1254_v30 = vadd.f32 %v1111_v7, %v170_v8  ;;  %365 = vrot.lane.b32.xlu0 %v1189_v59, %s1067_s24  ;;  %v1265_v37 = vadd.f32 %v1111_v7, %v173_v11  ;;  %v1268_v38 = vadd.f32 %v1111_v7, %v172_v12  ;;  %v1030_v11 = vld [vmem:[%s1735_s0 + $0xb8] sm:$0xff]   ;;  %vm797_vm0 = vcmask 523264  }
  0x1a   :  { %1752 = vst [vmem:[#allocation8_spill] sm:$0xff] %v1234_v23  ;;  %1753 = vst [vmem:[#allocation9_spill] sm:$0xff] %v1237_v25  ;;  %v1276_v42 = vmul.f32 %v931_v15, %v1097_v1  ;;  %v1279_v43 = vmul.f32 %v930_v16, %v1097_v1  ;;  %v946_v45 = vunpack.c.l.bf16 %v1023_v26  ;;  %v951_v46 = vunpack.c.h.bf16 %v1024_v33 }
  0x1b   :  { %1754 = vst [vmem:[#allocation10_spill] sm:$0xff] %v1245_v27  ;;  %1755 = vst [vmem:[#allocation11_spill] sm:$0xff] %v1265_v37  ;;  %v950_v47 = vunpack.c.l.bf16 %v1024_v33  ;;  %v955_v48 = vunpack.c.h.bf16 %v1025_v34  ;;  %v954_v49 = vunpack.c.l.bf16 %v1025_v34  ;;  %v183_v50 = vmul.f32 %v947_v44, %v1097_v1 }
  0x1c   :  { %1756 = vst [vmem:[#allocation12_spill] sm:$0xff] %v1268_v38  ;;  %371 = vrot.lane.b32.xlu1 %v1209_v9, %s1067_s24  ;;  %v182_v51 = vmul.f32 %v946_v45, %v1097_v1  ;;  %v959_v52 = vunpack.c.h.bf16 %v1026_v41  ;;  %v958_v53 = vunpack.c.l.bf16 %v1026_v41  ;;  %v185_v54 = vmul.f32 %v951_v46, %v1097_v1 }
  0x1d   :  { %369 = vrot.lane.b32.xlu0 %v1212_v10, %s1067_s24  ;;  %v184_v55 = vmul.f32 %v950_v47, %v1097_v1  ;;  %v187_v56 = vmul.f32 %v955_v48, %v1097_v1  ;;  %v186_v57 = vmul.f32 %v954_v49, %v1097_v1  ;;  %v1295_v61 = vadd.f32 %v1111_v7, %v183_v50 }
  0x1e   :  { %v1298_v62 = vadd.f32 %v1111_v7, %v182_v51  ;;  %v189_v63 = vmul.f32 %v959_v52, %v1097_v1  ;;  %v188_v0 = vmul.f32 %v958_v53, %v1097_v1  ;;  %v1309_v4 = vadd.f32 %v1111_v7, %v185_v54  ;;  %v1031_v53 = vld [vmem:[%s1735_s0 + $0xc0] sm:$0xff]  }
  0x1f   :  { %v1312_v5 = vadd.f32 %v1111_v7, %v184_v55  ;;  %v1315_v6 = vadd.f32 %v1111_v7, %v187_v56  ;;  %v1318_v8 = vadd.f32 %v1111_v7, %v186_v57  ;;  %v963_v16 = vunpack.c.h.bf16 %v1027_v60 }
  0x20   :  { %375 = vrot.lane.b32.xlu1 %v1217_v13, %s1067_s24  ;;  %v1326_v12 = vadd.f32 %v1111_v7, %v189_v63  ;;  %v1329_v15 = vadd.f32 %v1111_v7, %v188_v0  ;;  %v962_v26 = vunpack.c.l.bf16 %v1027_v60  ;;  %v967_v33 = vunpack.c.h.bf16 %v1028_v2  ;;  %v1032_v60 = vld [vmem:[%s1735_s0 + $0xc8] sm:$0xff]   ;;  %v1033_v63 = vld [vmem:[%s1735_s0 + $0xd0] sm:$0xff]  }
  0x21   :  { %373 = vrot.lane.b32.xlu0 %v1220_v14, %s1067_s24  ;;  %v966_v34 = vunpack.c.l.bf16 %v1028_v2  ;;  %v971_v41 = vunpack.c.h.bf16 %v1029_v3  ;;  %v970_v44 = vunpack.c.l.bf16 %v1029_v3  ;;  %v191_v45 = vmul.f32 %v963_v16, %v1097_v1  ;;  %v1034_v16 = vld [vmem:[%s1735_s0 + $0xd8] sm:$0xff]  }
  0x22   :  { %v190_v46 = vmul.f32 %v962_v26, %v1097_v1  ;;  %v975_v47 = vunpack.c.h.bf16 %v1030_v11  ;;  %v974_v48 = vunpack.c.l.bf16 %v1030_v11  ;;  %v193_v49 = vmul.f32 %v967_v33, %v1097_v1 }
  0x23   :  { %v192_v50 = vmul.f32 %v966_v34, %v1097_v1  ;;  %v195_v51 = vmul.f32 %v971_v41, %v1097_v1  ;;  %v194_v52 = vmul.f32 %v970_v44, %v1097_v1  ;;  %v1345_v54 = vadd.f32 %v1111_v7, %v191_v45 }
  0x24   :  { %379 = vrot.lane.b32.xlu1 %v1228_v20, %s1067_s24  ;;  %v1348_v55 = vadd.f32 %v1111_v7, %v190_v46  ;;  %v197_v56 = vmul.f32 %v975_v47, %v1097_v1  ;;  %v196_v57 = vmul.f32 %v974_v48, %v1097_v1  ;;  %v1361_v0 = vadd.f32 %v1111_v7, %v193_v49 }
  0x25   :  { %377 = vrot.lane.b32.xlu0 %v1231_v22, %s1067_s24  ;;  %v1364_v2 = vadd.f32 %v1111_v7, %v192_v50  ;;  %v1367_v3 = vadd.f32 %v1111_v7, %v195_v51  ;;  %v1370_v11 = vadd.f32 %v1111_v7, %v194_v52  ;;  %v979_v34 = vunpack.c.h.bf16 %v1031_v53 }
  0x26   :  { %v1376_v26 = vadd.f32 %v1111_v7, %v197_v56  ;;  %v1379_v33 = vadd.f32 %v1111_v7, %v196_v57  ;;  %v978_v41 = vunpack.c.l.bf16 %v1031_v53  ;;  %v983_v44 = vunpack.c.h.bf16 %v1032_v60 }
  0x27   :  { %v982_v45 = vunpack.c.l.bf16 %v1032_v60  ;;  %v987_v46 = vunpack.c.h.bf16 %v1033_v63  ;;  %v986_v47 = vunpack.c.l.bf16 %v1033_v63  ;;  %v199_v48 = vmul.f32 %v979_v34, %v1097_v1  ;;  %v1035_v60 = vld [vmem:[%s1735_s0 + $0xe0] sm:$0xff]  }
  0x28   :  { %383 = vrot.lane.b32.xlu1 %v1234_v23, %s1067_s24  ;;  %v198_v49 = vmul.f32 %v978_v41, %v1097_v1  ;;  %v991_v50 = vunpack.c.h.bf16 %v1034_v16  ;;  %v990_v51 = vunpack.c.l.bf16 %v1034_v16  ;;  %v201_v52 = vmul.f32 %v983_v44, %v1097_v1  ;;  %v1036_v44 = vld [vmem:[%s1735_s0 + $0xe8] sm:$0xff]  }
  0x29   :  { %381 = vrot.lane.b32.xlu0 %v1237_v25, %s1067_s24  ;;  %v200_v53 = vmul.f32 %v982_v45, %v1097_v1  ;;  %v203_v56 = vmul.f32 %v987_v46, %v1097_v1  ;;  %v202_v57 = vmul.f32 %v986_v47, %v1097_v1  ;;  %v1395_v63 = vadd.f32 %v1111_v7, %v199_v48  ;;  %v1037_v45 = vld [vmem:[%s1735_s0 + $0xf0] sm:$0xff]  }
  0x2a   :  { %v1398_v16 = vadd.f32 %v1111_v7, %v198_v49  ;;  %v205_v34 = vmul.f32 %v991_v50, %v1097_v1  ;;  %v204_v41 = vmul.f32 %v990_v51, %v1097_v1  ;;  %v1409_v46 = vadd.f32 %v1111_v7, %v201_v52  ;;  %v1038_v50 = vld [vmem:[%s1735_s0 + $0xf8] sm:$0xff]  }
  0x2b   :  { %v1412_v47 = vadd.f32 %v1111_v7, %v200_v53  ;;  %v1415_v48 = vadd.f32 %v1111_v7, %v203_v56  ;;  %v1418_v49 = vadd.f32 %v1111_v7, %v202_v57  ;;  %v995_v53 = vunpack.c.h.bf16 %v1035_v60 }
  0x2c   :  { %387 = vrot.lane.b32.xlu1 %v1245_v27, %s1067_s24  ;;  %v1426_v51 = vadd.f32 %v1111_v7, %v205_v34  ;;  %v1429_v52 = vadd.f32 %v1111_v7, %v204_v41  ;;  %v994_v40 = vunpack.c.l.bf16 %v1035_v60  ;;  %v999_v56 = vunpack.c.h.bf16 %v1036_v44 }
  0x2d   :  { %385 = vrot.lane.b32.xlu0 %v1248_v28, %s1067_s24  ;;  %v998_v57 = vunpack.c.l.bf16 %v1036_v44  ;;  %v1003_v39 = vunpack.c.h.bf16 %v1037_v45  ;;  %v1002_v25 = vunpack.c.l.bf16 %v1037_v45  ;;  %v207_v23 = vmul.f32 %v995_v53, %v1097_v1 }
  0x2e   :  { %v206_v22 = vmul.f32 %v994_v40, %v1097_v1  ;;  %v1007_v27 = vunpack.c.h.bf16 %v1038_v50  ;;  %v1006_v20 = vunpack.c.l.bf16 %v1038_v50  ;;  %v209_v34 = vmul.f32 %v999_v56, %v1097_v1 }
  0x2f   :  { %v208_v41 = vmul.f32 %v998_v57, %v1097_v1  ;;  %v211_v14 = vmul.f32 %v1003_v39, %v1097_v1  ;;  %v210_v60 = vmul.f32 %v1002_v25, %v1097_v1  ;;  %v1442_v44 = vadd.f32 %v1111_v7, %v207_v23  ;;  %v1021_v25 = vld [vmem:[%s1735_s0 + $0x70] sm:$0xff]  }
  0x30   :  { %391 = vrot.lane.b32.xlu1 %v1251_v29, %s1067_s24  ;;  %v1445_v45 = vadd.f32 %v1111_v7, %v206_v22  ;;  %v213_v40 = vmul.f32 %v1007_v27, %v1097_v1  ;;  %v212_v50 = vmul.f32 %v1006_v20, %v1097_v1  ;;  %v1455_v39 = vadd.f32 %v1111_v7, %v209_v34 }
  0x31   :  { %1757 = vst [vmem:[#allocation13_spill] sm:$0xff] %v1442_v44  ;;  %389 = vrot.lane.b32.xlu0 %v1254_v30, %s1067_s24  ;;  %v1458_v23 = vadd.f32 %v1111_v7, %v208_v41  ;;  %v1461_v22 = vadd.f32 %v1111_v7, %v211_v14  ;;  %v1464_v27 = vadd.f32 %v1111_v7, %v210_v60  ;;  %v1759_v14 = vunpack.c.h.bf16 %v1225_v17 }
  0x32   :  { %1758 = vst [vmem:[#allocation14_spill] sm:$0xff] %v1445_v45  ;;  %v1467_v20 = vadd.f32 %v1111_v7, %v213_v40  ;;  %v1470_v53 = vadd.f32 %v1111_v7, %v212_v50  ;;  %v1476_v56 = vadd.f32 %v1111_v7, %v1276_v42  ;;  %v939_v34 = vunpack.c.h.bf16 %v1021_v25  ;;  %v1022_v42 = vld [vmem:[%s1735_s0 + $0x78] sm:$0xff]   ;;  %s1068_s0 = smov [#allocation2]  }
  0x33   :  { %v177_v57 = vmul.f32 %v1759_v14, %v1097_v1  ;;  %v1485_v41 = vadd.f32 %v1111_v7, %v1279_v43  ;;  %v1760_v60 = vunpack.c.l.bf16 %v1225_v17  ;;  %v938_v50 = vunpack.c.l.bf16 %v1021_v25 }
  0x34   :  { %395 = vrot.lane.b32.xlu1 %v1265_v37, %s1067_s24  ;;  %v943_v37 = vunpack.c.h.bf16 %v1022_v42  ;;  %v942_v25 = vunpack.c.l.bf16 %v1022_v42 }
  0x35   :  { %393 = vrot.lane.b32.xlu0 %v1268_v38, %s1067_s24  ;;  %v176_v40 = vmul.f32 %v1760_v60, %v1097_v1  ;;  %v1496_v14 = vadd.f32 %v1111_v7, %v177_v57  ;;  %v179_v38 = vmul.f32 %v939_v34, %v1097_v1  ;;  %v178_v43 = vmul.f32 %v938_v50, %v1097_v1 }
  0x36   :  { %v181_v57 = vmul.f32 %v943_v37, %v1097_v1 }
  0x37   :  { %v1502_v17 = vadd.f32 %v1111_v7, %v176_v40  ;;  %v1508_v60 = vadd.f32 %v1111_v7, %v179_v38  ;;  %v1514_v34 = vadd.f32 %v1111_v7, %v178_v43  ;;  %v180_v40 = vmul.f32 %v942_v25, %v1097_v1 }
  0x38   :  { %399 = vrot.lane.b32.xlu1 %v1476_v56, %s1067_s24  ;;  %v1520_v50 = vadd.f32 %v1111_v7, %v181_v57 }
  0x39   :  { %397 = vrot.lane.b32.xlu0 %v1485_v41, %s1067_s24  ;;  %v1525_v38 = vadd.f32 %v1111_v7, %v180_v40 }
  0x3c   :  { %403 = vrot.lane.b32.xlu1 %v1496_v14, %s1067_s24 }
  0x3d   :  { %401 = vrot.lane.b32.xlu0 %v1502_v17, %s1067_s24 }
  0x40   :  { %407 = vrot.lane.b32.xlu1 %v1508_v60, %s1067_s24 }
  0x41   :  { %405 = vrot.lane.b32.xlu0 %v1514_v34, %s1067_s24 }
  0x44   :  { %411 = vrot.lane.b32.xlu1 %v1520_v50, %s1067_s24 }
  0x45   :  { %409 = vrot.lane.b32.xlu0 %v1525_v38, %s1067_s24 }
  0x48   :  { %415 = vrot.lane.b32.xlu1 %v1295_v61, %s1067_s24 }
  0x49   :  { %413 = vrot.lane.b32.xlu0 %v1298_v62, %s1067_s24 }
  0x4c   :  { %419 = vrot.lane.b32.xlu1 %v1309_v4, %s1067_s24 }
  0x4d   :  { %417 = vrot.lane.b32.xlu0 %v1312_v5, %s1067_s24 }
  0x50   :  { %423 = vrot.lane.b32.xlu1 %v1315_v6, %s1067_s24 }
  0x51   :  { %421 = vrot.lane.b32.xlu0 %v1318_v8, %s1067_s24 }
  0x54   :  { %427 = vrot.lane.b32.xlu1 %v1326_v12, %s1067_s24 }
  0x55   :  { %425 = vrot.lane.b32.xlu0 %v1329_v15, %s1067_s24 }
  0x58   :  { %431 = vrot.lane.b32.xlu1 %v1345_v54, %s1067_s24 }
  0x59   :  { %429 = vrot.lane.b32.xlu0 %v1348_v55, %s1067_s24 }
  0x5c   :  { %435 = vrot.lane.b32.xlu1 %v1361_v0, %s1067_s24 }
  0x5d   :  { %433 = vrot.lane.b32.xlu0 %v1364_v2, %s1067_s24 }
  0x60   :  { %439 = vrot.lane.b32.xlu1 %v1367_v3, %s1067_s24 }
  0x61   :  { %437 = vrot.lane.b32.xlu0 %v1370_v11, %s1067_s24 }
  0x64   :  { %443 = vrot.lane.b32.xlu1 %v1376_v26, %s1067_s24 }
  0x65   :  { %441 = vrot.lane.b32.xlu0 %v1379_v33, %s1067_s24 }
  0x68   :  { %447 = vrot.lane.b32.xlu1 %v1395_v63, %s1067_s24 }
  0x69   :  { %445 = vrot.lane.b32.xlu0 %v1398_v16, %s1067_s24 }
  0x6c   :  { %451 = vrot.lane.b32.xlu1 %v1409_v46, %s1067_s24 }
  0x6d   :  { %449 = vrot.lane.b32.xlu0 %v1412_v47, %s1067_s24 }
  0x70   :  { %455 = vrot.lane.b32.xlu1 %v1415_v48, %s1067_s24 }
  0x71   :  { %453 = vrot.lane.b32.xlu0 %v1418_v49, %s1067_s24 }
  0x74   :  { %459 = vrot.lane.b32.xlu1 %v1426_v51, %s1067_s24 }
  0x75   :  { %457 = vrot.lane.b32.xlu0 %v1429_v52, %s1067_s24 }
  0x78   :  { %463 = vrot.lane.b32.xlu1 %v1442_v44, %s1067_s24 }
  0x79   :  { %461 = vrot.lane.b32.xlu0 %v1445_v45, %s1067_s24 }
  0x7a   :  { %v354_v1 = vpop.permute.xlu1 %353 }
  0x7b   :  { %v543_v7 = vadd.f32 %v354_v1, %v1118_v18  ;;  %v350_v37 = vpop.permute.xlu0 %349 }
  0x7c   :  { %v541_v42 = vadd.f32 %v350_v37, %v1121_v19  ;;  %467 = vrot.lane.b32.xlu1 %v1455_v39, %s1067_s24 }
  0x7d   :  { %vm607_vm1 = vcmp.gt.f32.partialorder %v543_v7, 0.0  ;;  %v671_v43 = vmul.f32 0.01, %v543_v7  ;;  %465 = vrot.lane.b32.xlu0 %v1458_v23, %s1067_s24 }
  0x7e   :  { %vm605_vm2 = vcmp.gt.f32.partialorder %v541_v42, 0.0  ;;  %v669_v25 = vmul.f32 0.01, %v541_v42  ;;  %v356_v57 = vpop.permute.xlu1 %355 }
  0x7f   :  { %v735_v40 = vsel %vm607_vm1, %v543_v7, %v671_v43  ;;  %v544_v45 = vadd.f32 %v356_v57, %v1129_v21  ;;  %v352_v44 = vpop.permute.xlu0 %351 }
  0x80   :  { %800 = vst.msk [vmem:[#allocation2 + $0x10] sm:$0xff] %vm797_vm0, %v735_v40  ;;  %v733_v18 = vsel %vm605_vm2, %v541_v42, %v669_v25  ;;  %v542_v19 = vadd.f32 %v352_v44, %v1136_v24  ;;  %471 = vrot.lane.b32.xlu1 %v1461_v22, %s1067_s24 }
  0x81   :  { %798 = vst.msk [vmem:[#allocation2] sm:$0xff] %vm797_vm0, %v733_v18  ;;  %vm608_vm3 = vcmp.gt.f32.partialorder %v544_v45, 0.0  ;;  %v672_v1 = vmul.f32 0.01, %v544_v45  ;;  %469 = vrot.lane.b32.xlu0 %v1464_v27, %s1067_s24 }
  0x82   :  { %vm606_vm4 = vcmp.gt.f32.partialorder %v542_v19, 0.0  ;;  %v670_v7 = vmul.f32 0.01, %v542_v19  ;;  %v360_v37 = vpop.permute.xlu1 %359 }
  0x83   :  { %v736_v21 = vsel %vm608_vm3, %v544_v45, %v672_v1  ;;  %v546_v43 = vadd.f32 %v360_v37, %v1149_v31  ;;  %v358_v57 = vpop.permute.xlu0 %357 }
  0x84   :  { %801 = vst.msk [vmem:[#allocation2 + $0x18] sm:$0xff] %vm797_vm0, %v736_v21  ;;  %v734_v24 = vsel %vm606_vm4, %v542_v19, %v670_v7  ;;  %v545_v44 = vadd.f32 %v358_v57, %v1152_v32  ;;  %475 = vrot.lane.b32.xlu1 %v1467_v20, %s1067_s24 }
  0x85   :  { %799 = vst.msk [vmem:[#allocation2 + $0x8] sm:$0xff] %vm797_vm0, %v734_v24  ;;  %vm610_vm5 = vcmp.gt.f32.partialorder %v546_v43, 0.0  ;;  %v674_v42 = vmul.f32 0.01, %v546_v43  ;;  %473 = vrot.lane.b32.xlu0 %v1470_v53, %s1067_s24  ;;  %s867_s24 = sshll.u32 %s1068_s0, 4  ;;  %s868_s24 = int_to_ptr.vmem [resolvable:$true] %s867_s24 }
  0x86   :  { %vm609_vm6 = vcmp.gt.f32.partialorder %v545_v44, 0.0  ;;  %v673_v45 = vmul.f32 0.01, %v545_v44  ;;  %v364_v25 = vpop.permute.xlu1 %363  ;;  %s1043_s1 = scalar_lea.vmem %s868_s24, 8192  ;;  %p1048_p1 = scmp.lt.s32.totalorder %s868_s24, %s868_s24 }
  0x87   :  { %v738_v31 = vsel %vm610_vm5, %v546_v43, %v674_v42  ;;  %v548_v40 = vadd.f32 %v364_v25, %v1163_v35  ;;  %v362_v18 = vpop.permute.xlu0 %361  ;;  %p1044_p0 = scmp.ne.s32.totalorder %s868_s24, %s1043_s1  ;;  %p1049_p2 = scmp.lt.s32.totalorder %s1043_s1, %s1043_s1 }
  0x88   :  { %803 = vst.msk [vmem:[#allocation2 + $0x28] sm:$0xff] %vm797_vm0, %v738_v31  ;;  %v737_v32 = vsel %vm609_vm6, %v545_v44, %v673_v45  ;;  %v547_v19 = vadd.f32 %v362_v18, %v1166_v36 }
  0x89   :  { %802 = vst.msk [vmem:[#allocation2 + $0x20] sm:$0xff] %vm797_vm0, %v737_v32  ;;  %vm612_vm7 = vcmp.gt.f32.partialorder %v548_v40, 0.0  ;;  %v676_v1 = vmul.f32 0.01, %v548_v40  ;;  %p1050_p3 = por %p1049_p2, %p1048_p1 }
  0x8a   :  { %vm611_vm8 = vcmp.gt.f32.partialorder %v547_v19, 0.0  ;;  %v675_v7 = vmul.f32 0.01, %v547_v19  ;;  %v368_v37 = vpop.permute.xlu1 %367 }
  0x8b   :  { %v740_v21 = vsel %vm612_vm7, %v548_v40, %v676_v1  ;;  %v550_v57 = vadd.f32 %v368_v37, %v1186_v58  ;;  %v366_v24 = vpop.permute.xlu0 %365  ;;  %v1761_v37 = vld [vmem:[#allocation5_spill] sm:$0xff]  ;;  %p1051_p4 = pnand %p1050_p3, %p1044_p0 }
  0x8c   :  { %805 = vst.msk [vmem:[#allocation2 + $0x38] sm:$0xff] %vm797_vm0, %v740_v21  ;;  %v739_v35 = vsel %vm611_vm8, %v547_v19, %v675_v7  ;;  %v549_v43 = vadd.f32 %v366_v24, %v1189_v59 }
  0x8d   :  { %804 = vst.msk [vmem:[#allocation2 + $0x30] sm:$0xff] %vm797_vm0, %v739_v35  ;;  %vm614_vm9 = vcmp.gt.f32.partialorder %v550_v57, 0.0  ;;  %v678_v36 = vmul.f32 0.01, %v550_v57 }
  0x8e   :  { %vm613_vm10 = vcmp.gt.f32.partialorder %v549_v43, 0.0  ;;  %v677_v44 = vmul.f32 0.01, %v549_v43  ;;  %v372_v42 = vpop.permute.xlu1 %371 }
  0x8f   :  { %v742_v45 = vsel %vm614_vm9, %v550_v57, %v678_v36  ;;  %v552_v25 = vadd.f32 %v372_v42, %v1209_v9  ;;  %v370_v31 = vpop.permute.xlu0 %369  ;;  %v1763_v42 = vld [vmem:[#allocation7_spill] sm:$0xff] }
  0x90   :  { %807 = vst.msk [vmem:[#allocation2 + $0x48] sm:$0xff] %vm797_vm0, %v742_v45  ;;  %v741_v58 = vsel %vm613_vm10, %v549_v43, %v677_v44  ;;  %v551_v40 = vadd.f32 %v370_v31, %v1212_v10  ;;  %v1762_v43 = vld [vmem:[#allocation6_spill] sm:$0xff] }
  0x91   :  { %806 = vst.msk [vmem:[#allocation2 + $0x40] sm:$0xff] %vm797_vm0, %v741_v58  ;;  %vm616_vm11 = vcmp.gt.f32.partialorder %v552_v25, 0.0  ;;  %v680_v59 = vmul.f32 0.01, %v552_v25 }
  0x92   :  { %vm615_vm12 = vcmp.gt.f32.partialorder %v551_v40, 0.0  ;;  %v679_v18 = vmul.f32 0.01, %v551_v40  ;;  %v376_v32 = vpop.permute.xlu1 %375 }
  0x93   :  { %v744_v19 = vsel %vm616_vm11, %v552_v25, %v680_v59  ;;  %v554_v1 = vadd.f32 %v376_v32, %v1217_v13  ;;  %v374_v7 = vpop.permute.xlu0 %373  ;;  %v1764_v59 = vld [vmem:[#allocation8_spill] sm:$0xff] }
  0x94   :  { %809 = vst.msk [vmem:[#allocation2 + $0x58] sm:$0xff] %vm797_vm0, %v744_v19  ;;  %v743_v9 = vsel %vm615_vm12, %v551_v40, %v679_v18  ;;  %v553_v21 = vadd.f32 %v374_v7, %v1761_v37 }
  0x95   :  { %808 = vst.msk [vmem:[#allocation2 + $0x50] sm:$0xff] %vm797_vm0, %v743_v9  ;;  %vm618_vm13 = vcmp.gt.f32.partialorder %v554_v1, 0.0  ;;  %v682_v10 = vmul.f32 0.01, %v554_v1 }
  0x96   :  { %vm617_vm14 = vcmp.gt.f32.partialorder %v553_v21, 0.0  ;;  %v681_v57 = vmul.f32 0.01, %v553_v21  ;;  %v380_v24 = vpop.permute.xlu1 %379 }
  0x97   :  { %v746_v35 = vsel %vm618_vm13, %v554_v1, %v682_v10  ;;  %v556_v36 = vadd.f32 %v380_v24, %v1762_v43  ;;  %v378_v44 = vpop.permute.xlu0 %377  ;;  %v1765_v1 = vld [vmem:[#allocation9_spill] sm:$0xff] }
  0x98   :  { %811 = vst.msk [vmem:[#allocation2 + $0x68] sm:$0xff] %vm797_vm0, %v746_v35  ;;  %v745_v13 = vsel %vm617_vm14, %v553_v21, %v681_v57  ;;  %v555_v45 = vadd.f32 %v378_v44, %v1763_v42  ;;  %v1766_v57 = vld [vmem:[#allocation10_spill] sm:$0xff] }
  0x99   :  { %810 = vst.msk [vmem:[#allocation2 + $0x60] sm:$0xff] %vm797_vm0, %v745_v13  ;;  %vm620_vm15 = vcmp.gt.f32.partialorder %v556_v36, 0.0  ;;  %v684_v25 = vmul.f32 0.01, %v556_v36 }
  0x9a   :  { %vm619_vm1 = vcmp.gt.f32.partialorder %v555_v45, 0.0  ;;  %v683_v31 = vmul.f32 0.01, %v555_v45  ;;  %v384_v58 = vpop.permute.xlu1 %383 }
  0x9b   :  { %v748_v40 = vsel %vm620_vm15, %v556_v36, %v684_v25  ;;  %v558_v18 = vadd.f32 %v384_v58, %v1764_v59  ;;  %v382_v32 = vpop.permute.xlu0 %381 }
  0x9c   :  { %813 = vst.msk [vmem:[#allocation2 + $0x78] sm:$0xff] %vm797_vm0, %v748_v40  ;;  %v747_v19 = vsel %vm619_vm1, %v555_v45, %v683_v31  ;;  %v557_v7 = vadd.f32 %v382_v32, %v1765_v1 }
  0x9d   :  { %812 = vst.msk [vmem:[#allocation2 + $0x70] sm:$0xff] %vm797_vm0, %v747_v19  ;;  %vm622_vm2 = vcmp.gt.f32.partialorder %v558_v18, 0.0  ;;  %v686_v9 = vmul.f32 0.01, %v558_v18  ;;  %v1767_v19 = vld [vmem:[#allocation11_spill] sm:$0xff] }
  0x9e   :  { %vm621_vm3 = vcmp.gt.f32.partialorder %v557_v7, 0.0  ;;  %v685_v37 = vmul.f32 0.01, %v557_v7  ;;  %v388_v21 = vpop.permute.xlu1 %387 }
  0x9f   :  { %v750_v10 = vsel %vm622_vm2, %v558_v18, %v686_v9  ;;  %v560_v24 = vadd.f32 %v388_v21, %v1766_v57  ;;  %v386_v35 = vpop.permute.xlu0 %385  ;;  %v1768_v9 = vld [vmem:[#allocation12_spill] sm:$0xff] }
  0xa0   :  { %815 = vst.msk [vmem:[#allocation2 + $0x88] sm:$0xff] %vm797_vm0, %v750_v10  ;;  %v749_v43 = vsel %vm621_vm3, %v557_v7, %v685_v37  ;;  %v559_v36 = vadd.f32 %v386_v35, %v1248_v28 }
  0xa1   :  { %814 = vst.msk [vmem:[#allocation2 + $0x80] sm:$0xff] %vm797_vm0, %v749_v43  ;;  %vm624_vm4 = vcmp.gt.f32.partialorder %v560_v24, 0.0  ;;  %v688_v44 = vmul.f32 0.01, %v560_v24 }
  0xa2   :  { %vm623_vm5 = vcmp.gt.f32.partialorder %v559_v36, 0.0  ;;  %v687_v13 = vmul.f32 0.01, %v559_v36  ;;  %v392_v42 = vpop.permute.xlu1 %391 }
  0xa3   :  { %v752_v45 = vsel %vm624_vm4, %v560_v24, %v688_v44  ;;  %v562_v25 = vadd.f32 %v392_v42, %v1251_v29  ;;  %v390_v31 = vpop.permute.xlu0 %389 }
  0xa4   :  { %817 = vst.msk [vmem:[#allocation2 + $0x98] sm:$0xff] %vm797_vm0, %v752_v45  ;;  %v751_v58 = vsel %vm623_vm5, %v559_v36, %v687_v13  ;;  %v561_v40 = vadd.f32 %v390_v31, %v1254_v30 }
  0xa5   :  { %816 = vst.msk [vmem:[#allocation2 + $0x90] sm:$0xff] %vm797_vm0, %v751_v58  ;;  %vm626_vm6 = vcmp.gt.f32.partialorder %v562_v25, 0.0  ;;  %v690_v28 = vmul.f32 0.01, %v562_v25 }
  0xa6   :  { %vm625_vm7 = vcmp.gt.f32.partialorder %v561_v40, 0.0  ;;  %v689_v59 = vmul.f32 0.01, %v561_v40  ;;  %v396_v18 = vpop.permute.xlu1 %395 }
  0xa7   :  { %v754_v32 = vsel %vm626_vm6, %v562_v25, %v690_v28  ;;  %v564_v1 = vadd.f32 %v396_v18, %v1767_v19  ;;  %v394_v7 = vpop.permute.xlu0 %393 }
  0xa8   :  { %819 = vst.msk [vmem:[#allocation2 + $0xa8] sm:$0xff] %vm797_vm0, %v754_v32  ;;  %v753_v29 = vsel %vm625_vm7, %v561_v40, %v689_v59  ;;  %v563_v37 = vadd.f32 %v394_v7, %v1768_v9 }
  0xa9   :  { %818 = vst.msk [vmem:[#allocation2 + $0xa0] sm:$0xff] %vm797_vm0, %v753_v29  ;;  %vm628_vm8 = vcmp.gt.f32.partialorder %v564_v1, 0.0  ;;  %v692_v30 = vmul.f32 0.01, %v564_v1 }
  0xaa   :  { %vm627_vm9 = vcmp.gt.f32.partialorder %v563_v37, 0.0  ;;  %v691_v21 = vmul.f32 0.01, %v563_v37  ;;  %v400_v10 = vpop.permute.xlu1 %399 }
  0xab   :  { %v756_v57 = vsel %vm628_vm8, %v564_v1, %v692_v30  ;;  %v566_v24 = vadd.f32 %v400_v10, %v1476_v56  ;;  %v398_v35 = vpop.permute.xlu0 %397 }
  0xac   :  { %821 = vst.msk [vmem:[#allocation2 + $0xb8] sm:$0xff] %vm797_vm0, %v756_v57  ;;  %v755_v43 = vsel %vm627_vm9, %v563_v37, %v691_v21  ;;  %v565_v36 = vadd.f32 %v398_v35, %v1485_v41 }
  0xad   :  { %820 = vst.msk [vmem:[#allocation2 + $0xb0] sm:$0xff] %vm797_vm0, %v755_v43  ;;  %vm630_vm10 = vcmp.gt.f32.partialorder %v566_v24, 0.0  ;;  %v694_v44 = vmul.f32 0.01, %v566_v24 }
  0xae   :  { %vm629_vm11 = vcmp.gt.f32.partialorder %v565_v36, 0.0  ;;  %v693_v13 = vmul.f32 0.01, %v565_v36  ;;  %v404_v42 = vpop.permute.xlu1 %403 }
  0xaf   :  { %v758_v45 = vsel %vm630_vm10, %v566_v24, %v694_v44  ;;  %v568_v25 = vadd.f32 %v404_v42, %v1496_v14  ;;  %v402_v31 = vpop.permute.xlu0 %401 }
  0xb0   :  { %823 = vst.msk [vmem:[#allocation2 + $0xc8] sm:$0xff] %vm797_vm0, %v758_v45  ;;  %v757_v56 = vsel %vm629_vm11, %v565_v36, %v693_v13  ;;  %v567_v58 = vadd.f32 %v402_v31, %v1502_v17 }
  0xb1   :  { %822 = vst.msk [vmem:[#allocation2 + $0xc0] sm:$0xff] %vm797_vm0, %v757_v56  ;;  %vm632_vm12 = vcmp.gt.f32.partialorder %v568_v25, 0.0  ;;  %v696_v41 = vmul.f32 0.01, %v568_v25 }
  0xb2   :  { %vm631_vm13 = vcmp.gt.f32.partialorder %v567_v58, 0.0  ;;  %v695_v40 = vmul.f32 0.01, %v567_v58  ;;  %v408_v28 = vpop.permute.xlu1 %407 }
  0xb3   :  { %v760_v59 = vsel %vm632_vm12, %v568_v25, %v696_v41  ;;  %v570_v18 = vadd.f32 %v408_v28, %v1508_v60  ;;  %v406_v32 = vpop.permute.xlu0 %405 }
  0xb4   :  { %825 = vst.msk [vmem:[#allocation2 + $0xd8] sm:$0xff] %vm797_vm0, %v760_v59  ;;  %v759_v14 = vsel %vm631_vm13, %v567_v58, %v695_v40  ;;  %v569_v19 = vadd.f32 %v406_v32, %v1514_v34 }
  0xb5   :  { %824 = vst.msk [vmem:[#allocation2 + $0xd0] sm:$0xff] %vm797_vm0, %v759_v14  ;;  %vm634_vm14 = vcmp.gt.f32.partialorder %v570_v18, 0.0  ;;  %v698_v17 = vmul.f32 0.01, %v570_v18 }
  0xb6   :  { %vm633_vm15 = vcmp.gt.f32.partialorder %v569_v19, 0.0  ;;  %v697_v1 = vmul.f32 0.01, %v569_v19  ;;  %v412_v7 = vpop.permute.xlu1 %411 }
  0xb7   :  { %v762_v29 = vsel %vm634_vm14, %v570_v18, %v698_v17  ;;  %v572_v9 = vadd.f32 %v412_v7, %v1520_v50  ;;  %v410_v37 = vpop.permute.xlu0 %409 }
  0xb8   :  { %827 = vst.msk [vmem:[#allocation2 + $0xe8] sm:$0xff] %vm797_vm0, %v762_v29  ;;  %v761_v60 = vsel %vm633_vm15, %v569_v19, %v697_v1  ;;  %v571_v30 = vadd.f32 %v410_v37, %v1525_v38 }
  0xb9   :  { %826 = vst.msk [vmem:[#allocation2 + $0xe0] sm:$0xff] %vm797_vm0, %v761_v60  ;;  %vm636_vm1 = vcmp.gt.f32.partialorder %v572_v9, 0.0  ;;  %v700_v34 = vmul.f32 0.01, %v572_v9 }
  0xba   :  { %vm635_vm2 = vcmp.gt.f32.partialorder %v571_v30, 0.0  ;;  %v699_v21 = vmul.f32 0.01, %v571_v30  ;;  %v416_v10 = vpop.permute.xlu1 %415 }
  0xbb   :  { %v764_v57 = vsel %vm636_vm1, %v572_v9, %v700_v34  ;;  %v574_v24 = vadd.f32 %v416_v10, %v1295_v61  ;;  %v414_v35 = vpop.permute.xlu0 %413 }
  0xbc   :  { %829 = vst.msk [vmem:[#allocation2 + $0xf8] sm:$0xff] %vm797_vm0, %v764_v57  ;;  %v763_v50 = vsel %vm635_vm2, %v571_v30, %v699_v21  ;;  %v573_v43 = vadd.f32 %v414_v35, %v1298_v62 }
  0xbd   :  { %828 = vst.msk [vmem:[#allocation2 + $0xf0] sm:$0xff] %vm797_vm0, %v763_v50  ;;  %vm638_vm3 = vcmp.gt.f32.partialorder %v574_v24, 0.0  ;;  %v702_v38 = vmul.f32 0.01, %v574_v24 }
  0xbe   :  { %vm637_vm4 = vcmp.gt.f32.partialorder %v573_v43, 0.0  ;;  %v701_v36 = vmul.f32 0.01, %v573_v43  ;;  %v420_v44 = vpop.permute.xlu1 %419 }
  0xbf   :  { %v766_v13 = vsel %vm638_vm3, %v574_v24, %v702_v38  ;;  %v576_v42 = vadd.f32 %v420_v44, %v1309_v4  ;;  %v418_v45 = vpop.permute.xlu0 %417 }
  0xc0   :  { %831 = vst.msk [vmem:[#allocation2 + $0x108] sm:$0xff] %vm797_vm0, %v766_v13  ;;  %v765_v61 = vsel %vm637_vm4, %v573_v43, %v701_v36  ;;  %v575_v25 = vadd.f32 %v418_v45, %v1312_v5 }
  0xc1   :  { %830 = vst.msk [vmem:[#allocation2 + $0x100] sm:$0xff] %vm797_vm0, %v765_v61  ;;  %vm640_vm5 = vcmp.gt.f32.partialorder %v576_v42, 0.0  ;;  %v704_v62 = vmul.f32 0.01, %v576_v42 }
  0xc2   :  { %vm639_vm6 = vcmp.gt.f32.partialorder %v575_v25, 0.0  ;;  %v703_v31 = vmul.f32 0.01, %v575_v25  ;;  %v424_v56 = vpop.permute.xlu1 %423 }
  0xc3   :  { %v768_v58 = vsel %vm640_vm5, %v576_v42, %v704_v62  ;;  %v578_v41 = vadd.f32 %v424_v56, %v1315_v6  ;;  %v422_v40 = vpop.permute.xlu0 %421 }
  0xc4   :  { %833 = vst.msk [vmem:[#allocation2 + $0x118] sm:$0xff] %vm797_vm0, %v768_v58  ;;  %v767_v4 = vsel %vm639_vm6, %v575_v25, %v703_v31  ;;  %v577_v28 = vadd.f32 %v422_v40, %v1318_v8 }
  0xc5   :  { %832 = vst.msk [vmem:[#allocation2 + $0x110] sm:$0xff] %vm797_vm0, %v767_v4  ;;  %vm642_vm7 = vcmp.gt.f32.partialorder %v578_v41, 0.0  ;;  %v706_v5 = vmul.f32 0.01, %v578_v41 }
  0xc6   :  { %vm641_vm8 = vcmp.gt.f32.partialorder %v577_v28, 0.0  ;;  %v705_v59 = vmul.f32 0.01, %v577_v28  ;;  %v428_v18 = vpop.permute.xlu1 %427 }
  0xc7   :  { %v770_v32 = vsel %vm642_vm7, %v578_v41, %v706_v5  ;;  %v580_v14 = vadd.f32 %v428_v18, %v1326_v12  ;;  %v426_v19 = vpop.permute.xlu0 %425 }
  0xc8   :  { %835 = vst.msk [vmem:[#allocation2 + $0x128] sm:$0xff] %vm797_vm0, %v770_v32  ;;  %v769_v6 = vsel %vm641_vm8, %v577_v28, %v705_v59  ;;  %v579_v17 = vadd.f32 %v426_v19, %v1329_v15 }
  0xc9   :  { %834 = vst.msk [vmem:[#allocation2 + $0x120] sm:$0xff] %vm797_vm0, %v769_v6  ;;  %vm644_vm9 = vcmp.gt.f32.partialorder %v580_v14, 0.0  ;;  %v708_v8 = vmul.f32 0.01, %v580_v14 }
  0xca   :  { %vm643_vm10 = vcmp.gt.f32.partialorder %v579_v17, 0.0  ;;  %v707_v1 = vmul.f32 0.01, %v579_v17  ;;  %v432_v7 = vpop.permute.xlu1 %431 }
  0xcb   :  { %v772_v29 = vsel %vm644_vm9, %v580_v14, %v708_v8  ;;  %v582_v9 = vadd.f32 %v432_v7, %v1345_v54  ;;  %v430_v37 = vpop.permute.xlu0 %429 }
  0xcc   :  { %837 = vst.msk [vmem:[#allocation2 + $0x138] sm:$0xff] %vm797_vm0, %v772_v29  ;;  %v771_v12 = vsel %vm643_vm10, %v579_v17, %v707_v1  ;;  %v581_v60 = vadd.f32 %v430_v37, %v1348_v55 }
  0xcd   :  { %836 = vst.msk [vmem:[#allocation2 + $0x130] sm:$0xff] %vm797_vm0, %v771_v12  ;;  %vm646_vm11 = vcmp.gt.f32.partialorder %v582_v9, 0.0  ;;  %v710_v15 = vmul.f32 0.01, %v582_v9 }
  0xce   :  { %vm645_vm12 = vcmp.gt.f32.partialorder %v581_v60, 0.0  ;;  %v709_v30 = vmul.f32 0.01, %v581_v60  ;;  %v436_v34 = vpop.permute.xlu1 %435 }
  0xcf   :  { %v774_v21 = vsel %vm646_vm11, %v582_v9, %v710_v15  ;;  %v584_v10 = vadd.f32 %v436_v34, %v1361_v0  ;;  %v434_v57 = vpop.permute.xlu0 %433 }
  0xd0   :  { %839 = vst.msk [vmem:[#allocation2 + $0x148] sm:$0xff] %vm797_vm0, %v774_v21  ;;  %v773_v54 = vsel %vm645_vm12, %v581_v60, %v709_v30  ;;  %v583_v24 = vadd.f32 %v434_v57, %v1364_v2 }
  0xd1   :  { %838 = vst.msk [vmem:[#allocation2 + $0x140] sm:$0xff] %vm797_vm0, %v773_v54  ;;  %vm648_vm13 = vcmp.gt.f32.partialorder %v584_v10, 0.0  ;;  %v712_v55 = vmul.f32 0.01, %v584_v10 }
  0xd2   :  { %vm647_vm14 = vcmp.gt.f32.partialorder %v583_v24, 0.0  ;;  %v711_v35 = vmul.f32 0.01, %v583_v24  ;;  %v440_v50 = vpop.permute.xlu1 %439 }
  0xd3   :  { %v776_v43 = vsel %vm648_vm13, %v584_v10, %v712_v55  ;;  %v586_v38 = vadd.f32 %v440_v50, %v1367_v3  ;;  %v438_v36 = vpop.permute.xlu0 %437  ;;  %v1769_v10 = vld [vmem:[#allocation13_spill] sm:$0xff] }
  0xd4   :  { %841 = vst.msk [vmem:[#allocation2 + $0x158] sm:$0xff] %vm797_vm0, %v776_v43  ;;  %v775_v0 = vsel %vm647_vm14, %v583_v24, %v711_v35  ;;  %v585_v44 = vadd.f32 %v438_v36, %v1370_v11  ;;  %v1770_v24 = vld [vmem:[#allocation14_spill] sm:$0xff] }
  0xd5   :  { %840 = vst.msk [vmem:[#allocation2 + $0x150] sm:$0xff] %vm797_vm0, %v775_v0  ;;  %vm650_vm15 = vcmp.gt.f32.partialorder %v586_v38, 0.0  ;;  %v714_v2 = vmul.f32 0.01, %v586_v38 }
  0xd6   :  { %vm649_vm1 = vcmp.gt.f32.partialorder %v585_v44, 0.0  ;;  %v713_v13 = vmul.f32 0.01, %v585_v44  ;;  %v444_v42 = vpop.permute.xlu1 %443 }
  0xd7   :  { %v778_v45 = vsel %vm650_vm15, %v586_v38, %v714_v2  ;;  %v588_v61 = vadd.f32 %v444_v42, %v1376_v26  ;;  %v442_v25 = vpop.permute.xlu0 %441 }
  0xd8   :  { %843 = vst.msk [vmem:[#allocation2 + $0x168] sm:$0xff] %vm797_vm0, %v778_v45  ;;  %v777_v3 = vsel %vm649_vm1, %v585_v44, %v713_v13  ;;  %v587_v62 = vadd.f32 %v442_v25, %v1379_v33 }
  0xd9   :  { %842 = vst.msk [vmem:[#allocation2 + $0x160] sm:$0xff] %vm797_vm0, %v777_v3  ;;  %vm652_vm2 = vcmp.gt.f32.partialorder %v588_v61, 0.0  ;;  %v716_v11 = vmul.f32 0.01, %v588_v61 }
  0xda   :  { %vm651_vm3 = vcmp.gt.f32.partialorder %v587_v62, 0.0  ;;  %v715_v31 = vmul.f32 0.01, %v587_v62  ;;  %v448_v56 = vpop.permute.xlu1 %447 }
  0xdb   :  { %v780_v58 = vsel %vm652_vm2, %v588_v61, %v716_v11  ;;  %v590_v41 = vadd.f32 %v448_v56, %v1395_v63  ;;  %v446_v40 = vpop.permute.xlu0 %445 }
  0xdc   :  { %845 = vst.msk [vmem:[#allocation2 + $0x178] sm:$0xff] %vm797_vm0, %v780_v58  ;;  %v779_v26 = vsel %vm651_vm3, %v587_v62, %v715_v31  ;;  %v589_v4 = vadd.f32 %v446_v40, %v1398_v16 }
  0xdd   :  { %844 = vst.msk [vmem:[#allocation2 + $0x170] sm:$0xff] %vm797_vm0, %v779_v26  ;;  %vm654_vm4 = vcmp.gt.f32.partialorder %v590_v41, 0.0  ;;  %v718_v33 = vmul.f32 0.01, %v590_v41 }
  0xde   :  { %vm653_vm5 = vcmp.gt.f32.partialorder %v589_v4, 0.0  ;;  %v717_v28 = vmul.f32 0.01, %v589_v4  ;;  %v452_v5 = vpop.permute.xlu1 %451 }
  0xdf   :  { %v782_v59 = vsel %vm654_vm4, %v590_v41, %v718_v33  ;;  %v592_v18 = vadd.f32 %v452_v5, %v1409_v46  ;;  %v450_v32 = vpop.permute.xlu0 %449 }
  0xe0   :  { %847 = vst.msk [vmem:[#allocation2 + $0x188] sm:$0xff] %vm797_vm0, %v782_v59  ;;  %v781_v63 = vsel %vm653_vm5, %v589_v4, %v717_v28  ;;  %v591_v14 = vadd.f32 %v450_v32, %v1412_v47 }
  0xe1   :  { %846 = vst.msk [vmem:[#allocation2 + $0x180] sm:$0xff] %vm797_vm0, %v781_v63  ;;  %vm656_vm6 = vcmp.gt.f32.partialorder %v592_v18, 0.0  ;;  %v720_v16 = vmul.f32 0.01, %v592_v18 }
  0xe2   :  { %vm655_vm7 = vcmp.gt.f32.partialorder %v591_v14, 0.0  ;;  %v719_v19 = vmul.f32 0.01, %v591_v14  ;;  %v456_v6 = vpop.permute.xlu1 %455 }
  0xe3   :  { %v784_v17 = vsel %vm656_vm6, %v592_v18, %v720_v16  ;;  %v594_v8 = vadd.f32 %v456_v6, %v1415_v48  ;;  %v454_v1 = vpop.permute.xlu0 %453 }
  0xe4   :  { %849 = vst.msk [vmem:[#allocation2 + $0x198] sm:$0xff] %vm797_vm0, %v784_v17  ;;  %v783_v46 = vsel %vm655_vm7, %v591_v14, %v719_v19  ;;  %v593_v7 = vadd.f32 %v454_v1, %v1418_v49 }
  0xe5   :  { %848 = vst.msk [vmem:[#allocation2 + $0x190] sm:$0xff] %vm797_vm0, %v783_v46  ;;  %vm658_vm8 = vcmp.gt.f32.partialorder %v594_v8, 0.0  ;;  %v722_v47 = vmul.f32 0.01, %v594_v8 }
  0xe6   :  { %vm657_vm9 = vcmp.gt.f32.partialorder %v593_v7, 0.0  ;;  %v721_v29 = vmul.f32 0.01, %v593_v7  ;;  %v460_v9 = vpop.permute.xlu1 %459 }
  0xe7   :  { %v786_v37 = vsel %vm658_vm8, %v594_v8, %v722_v47  ;;  %v596_v12 = vadd.f32 %v460_v9, %v1426_v51  ;;  %v458_v60 = vpop.permute.xlu0 %457 }
  0xe8   :  { %851 = vst.msk [vmem:[#allocation2 + $0x1a8] sm:$0xff] %vm797_vm0, %v786_v37  ;;  %v785_v48 = vsel %vm657_vm9, %v593_v7, %v721_v29  ;;  %v595_v15 = vadd.f32 %v458_v60, %v1429_v52 }
  0xe9   :  { %850 = vst.msk [vmem:[#allocation2 + $0x1a0] sm:$0xff] %vm797_vm0, %v785_v48  ;;  %vm660_vm10 = vcmp.gt.f32.partialorder %v596_v12, 0.0  ;;  %v724_v49 = vmul.f32 0.01, %v596_v12 }
  0xea   :  { %vm659_vm11 = vcmp.gt.f32.partialorder %v595_v15, 0.0  ;;  %v723_v30 = vmul.f32 0.01, %v595_v15  ;;  %v464_v34 = vpop.permute.xlu1 %463 }
  0xeb   :  { %v788_v21 = vsel %vm660_vm10, %v596_v12, %v724_v49  ;;  %v598_v57 = vadd.f32 %v464_v34, %v1769_v10  ;;  %v462_v54 = vpop.permute.xlu0 %461 }
  0xec   :  { %853 = vst.msk [vmem:[#allocation2 + $0x1b8] sm:$0xff] %vm797_vm0, %v788_v21  ;;  %v787_v51 = vsel %vm659_vm11, %v595_v15, %v723_v30  ;;  %v597_v55 = vadd.f32 %v462_v54, %v1770_v24 }
  0xed   :  { %852 = vst.msk [vmem:[#allocation2 + $0x1b0] sm:$0xff] %vm797_vm0, %v787_v51  ;;  %vm662_vm12 = vcmp.gt.f32.partialorder %v598_v57, 0.0  ;;  %v726_v52 = vmul.f32 0.01, %v598_v57 }
  0xee   :  { %vm661_vm13 = vcmp.gt.f32.partialorder %v597_v55, 0.0  ;;  %v725_v35 = vmul.f32 0.01, %v597_v55  ;;  %v468_v50 = vpop.permute.xlu1 %467 }
  0xef   :  { %v790_v43 = vsel %vm662_vm12, %v598_v57, %v726_v52  ;;  %v600_v38 = vadd.f32 %v468_v50, %v1455_v39  ;;  %v466_v36 = vpop.permute.xlu0 %465 }
  0xf0   :  { %855 = vst.msk [vmem:[#allocation2 + $0x1c8] sm:$0xff] %vm797_vm0, %v790_v43  ;;  %v789_v0 = vsel %vm661_vm13, %v597_v55, %v725_v35  ;;  %v599_v44 = vadd.f32 %v466_v36, %v1458_v23 }
  0xf1   :  { %854 = vst.msk [vmem:[#allocation2 + $0x1c0] sm:$0xff] %vm797_vm0, %v789_v0  ;;  %vm664_vm14 = vcmp.gt.f32.partialorder %v600_v38, 0.0  ;;  %v728_v2 = vmul.f32 0.01, %v600_v38 }
  0xf2   :  { %vm663_vm15 = vcmp.gt.f32.partialorder %v599_v44, 0.0  ;;  %v727_v13 = vmul.f32 0.01, %v599_v44  ;;  %v472_v42 = vpop.permute.xlu1 %471 }
  0xf3   :  { %v792_v45 = vsel %vm664_vm14, %v600_v38, %v728_v2  ;;  %v602_v61 = vadd.f32 %v472_v42, %v1461_v22  ;;  %v470_v25 = vpop.permute.xlu0 %469 }
  0xf4   :  { %857 = vst.msk [vmem:[#allocation2 + $0x1d8] sm:$0xff] %vm797_vm0, %v792_v45  ;;  %v791_v39 = vsel %vm663_vm15, %v599_v44, %v727_v13  ;;  %v601_v3 = vadd.f32 %v470_v25, %v1464_v27 }
  0xf5   :  { %856 = vst.msk [vmem:[#allocation2 + $0x1d0] sm:$0xff] %vm797_vm0, %v791_v39  ;;  %vm666_vm1 = vcmp.gt.f32.partialorder %v602_v61, 0.0  ;;  %v730_v23 = vmul.f32 0.01, %v602_v61 }
  0xf6   :  { %vm665_vm2 = vcmp.gt.f32.partialorder %v601_v3, 0.0  ;;  %v729_v62 = vmul.f32 0.01, %v601_v3  ;;  %v476_v11 = vpop.permute.xlu1 %475 }
  0xf7   :  { %v794_v31 = vsel %vm666_vm1, %v602_v61, %v730_v23  ;;  %v604_v56 = vadd.f32 %v476_v11, %v1467_v20  ;;  %v474_v58 = vpop.permute.xlu0 %473 }
  0xf8   :  { %859 = vst.msk [vmem:[#allocation2 + $0x1e8] sm:$0xff] %vm797_vm0, %v794_v31  ;;  %v793_v22 = vsel %vm665_vm2, %v601_v3, %v729_v62  ;;  %v603_v41 = vadd.f32 %v474_v58, %v1470_v53 }
  0xf9   :  { %858 = vst.msk [vmem:[#allocation2 + $0x1e0] sm:$0xff] %vm797_vm0, %v793_v22  ;;  %vm668_vm3 = vcmp.gt.f32.partialorder %v604_v56, 0.0  ;;  %v732_v27 = vmul.f32 0.01, %v604_v56 }
  0xfa   :  { %vm667_vm4 = vcmp.gt.f32.partialorder %v603_v41, 0.0  ;;  %v731_v40 = vmul.f32 0.01, %v603_v41 }
  0xfb   :  { %v796_v26 = vsel %vm668_vm3, %v604_v56, %v732_v27 }
  0xfc   :  { %861 = vst.msk [vmem:[#allocation2 + $0x1f8] sm:$0xff] %vm797_vm0, %v796_v26  ;;  %v795_v4 = vsel %vm667_vm4, %v603_v41, %v731_v40 }
  0xfd   :  { %860 = vst.msk [vmem:[#allocation2 + $0x1f0] sm:$0xff] %vm797_vm0, %v795_v4 }
  0xfe   :  { %1054 = shalt.err (!%p1051_p4)
}
  0xff   :  { %s1055_s26 = scalar_lea.hbm %s1738_s3, 8192 }
 0x100   :  { %p1056_p5 = scmp.ne.s32.totalorder %s1738_s3, %s1055_s26  ;;  %p1059_p6 = scmp.lt.u32.totalorder %s1055_s26, %s1738_s3 }
 0x102   :  { %p1061_p7 = pnand %p1059_p6, %p1056_p5 }
 0x104   :  { %1064 = shalt.err (!%p1061_p7)
}
 0x105   :  { %s1069_s4 = smov 128   ;;  %s1070_s5 = smov 8  }
 0x106   :  { %873 = dma.vmem_to_hbm [thread:$0]  %s868_s24, 8192, %s1738_s3, [#allocation3], %s1069_s4, %s1069_s4, %s1070_s5  }
 0x107   :  { %1065 = dma.done.wait [#allocation3], 8192  }
 0x108   :  { %1066 = vsyncadd [#allocation3], 4294959104 }
 0x109   :  { %877 = vsyncpa [#allocation3], 1 }

// kernel: residual_conv_block_forward.5
= control target key start
LH: loop header
LB: loop body
LE: loop exit
PB: predicated region body
PF: predicated region fallthrough
CT: control target
= control target key end

     0   :  { %s2843_s21 = smov 0   ;;  %s4041_s0 = inlined_call_operand.vmem [shape: bf16[2,18,18,32], index: 0, kind: input, shape index: {}]   ;;  %s4042_s1 = inlined_call_operand.vmem [shape: f32[1,32], index: 1, kind: input, shape index: {}]   ;;  %s4043_s2 = inlined_call_operand.vmem [shape: f32[1,32], index: 2, kind: input, shape index: {}]   ;;  %s4044_s3 = inlined_call_operand.vmem [shape: bf16[288,32], index: 3, kind: input, shape index: {}]   ;;  %s4045_s4 = inlined_call_operand.vmem [shape: f32[1,32], index: 4, kind: input, shape index: {}]   ;;  %s4046_s5 = inlined_call_operand.vmem [shape: bf16[512,32], index: 5, kind: output, shape index: {0}]   ;;  %s4047_s6 = inlined_call_operand.vmem [shape: f32[2,32], index: 6, kind: output, shape index: {1}]  }
   0x1 LB: > { %s2849_s22 = sadd.s32 4294967295, %s2800_s21   ;;  %p2429_p0 = scmp.ge.s32.totalorder %s2800_s21, 1  ;;  %s2800_s21 = sphi %s2843_s21, %s17_s21  }
   0x2   : > { %p210_p1 = scmp.lt.s32.totalorder %s2800_s21, 3 }
   0x4   : > { %p211_p2 = pnand %p2429_p0, %p210_p1 }
   0x6   : > { %214 = sbr.rel (%p211_p2) target bundleno = 607 (0x25f), region = 40 }
   0xd   : > { %v644_v0 = vlaneseq  ;;  %v2802_v1 = vmov 0.0|0.0   ;;  %v2803_v3 = vmov 0   ;;  %p240_p3 = scmp.lt.s32.totalorder %s2849_s22, 1  ;;  %s2804_s23 = smov 64   ;;  %v2869_v6 = vld [vmem:[%s4042_s1] ss:$0 sm:$0xff] }
   0xe   : > { %v2854_v2 = vrot.slane %v2802_v1, 1  ;;  %v2856_v4 = vrot.slane %v2803_v3, 1  ;;  %s2805_s24 = smov 32   ;;  %v2774_v7 = vld [vmem:[%s4044_s3 + $0x40] sm:$0xff]   ;;  %vm981_vm8 = vcmask 1046528   ;;  %v2776_v51 = vld [vmem:[%s4044_s3 + $0x48] sm:$0xff]  }
   0xf   : > { %s241_s25 = scalar_select %p240_p3, %s2849_s22, 1  ;;  %v2864_v5 = vshrl.u32 %v644_v0, 7  ;;  %2577 = vmatprep.subr.bf16.mxu0 %v2774_v7  ;;  %2743 = vmatprep.subr.bf16.mxu1 %v2774_v7  ;;  %v2891_v18 = vld [vmem:[%s4043_s2] ss:$0 sm:$0xff]  ;;  %v2777_v56 = vld [vmem:[%s4044_s3 + $0x8] sm:$0xff]   ;;  %v2778_v61 = vld [vmem:[%s4044_s3 + $0x50] sm:$0xff]  }
  0x10   : > { %4059 = vst [vmem:[#allocation2_spill] sm:$0xff] %v2854_v2  ;;  %1096 = vrot.lane.b32.xlu1 %v2854_v2, %s2804_s23  ;;  %1064 = vrot.lane.b32.xlu0 %v2856_v4, %s2805_s24  ;;  %v2775_v45 = vld [vmem:[%s4044_s3] sm:$0xff]   ;;  %vm756_vm11 = vsmask.f32 7424  ;;  %s2806_s28 = smov 96   ;;  %p2502_p5 = scmp.ne.s32.totalorder %s2849_s22, 0 }
  0x11   : > { %s2759_s26 = smul.u32 216, %s241_s25  ;;  %vm648_vm0 = vcmp.ge.s32.totalorder %v2864_v5, 1  ;;  %v2884_v11 = vadd.s32 16, %v2864_v5  ;;  %2578 = vmatpush3.bf16.msra.mxu0 %v2775_v45  ;;  %2751 = vmatpush3.bf16.msra.mxu1 %v2775_v45 }
  0x12   : > { %2579 = vmatprep.subr.bf16.mxu0 %v2776_v51  ;;  %2744 = vmatprep.subr.bf16.mxu1 %v2776_v51 }
  0x13   : > { %s2874_s7 = scalar_lea.vmem %s4041_s0, %s2759_s26  ;;  %vm659_vm1 = vcmp.le.s32.totalorder %v2884_v11, 16 }
  0x14   : > { %v261_v8 = vld [vmem:[%s2874_s7 + $0x24] sm:$0xff]   ;;  %v2569_v9 = vld [vmem:[%s2874_s7 + $0x18] sm:$0xff]   ;;  %v255_v10 = vld [vmem:[%s2874_s7 + $0xc] sm:$0xff]  }
  0x15   : > { %v315_v12 = vunpack.c.l.bf16 %v261_v8  ;;  %v316_v13 = vunpack.c.h.bf16 %v261_v8  ;;  %v2539_v14 = vunpack.c.l.bf16 %v2569_v9  ;;  %v2540_v15 = vunpack.c.h.bf16 %v2569_v9  ;;  %v257_v16 = vld [vmem:[%s2874_s7 + $0x14] sm:$0x1]  ;;  %v260_v17 = vld [vmem:[%s2874_s7 + $0x20] sm:$0x1]  ;;  %v263_v50 = vld [vmem:[%s2874_s7 + $0x2c] sm:$0x1]  ;;  %2580 = vmatpush3.bf16.msra.mxu0 %v2777_v56  ;;  %2752 = vmatpush3.bf16.msra.mxu1 %v2777_v56 }
  0x16   : > { %v309_v19 = vunpack.c.l.bf16 %v255_v10  ;;  %v310_v20 = vunpack.c.h.bf16 %v255_v10  ;;  %v311_v21 = vunpack.c.l.bf16 %v257_v16  ;;  %v314_v22 = vunpack.c.l.bf16 %v260_v17  ;;  %v291_v55 = vld [vmem:[%s2874_s7 + $0x9c] sm:$0xff]   ;;  %v293_v60 = vld [vmem:[%s2874_s7 + $0xa4] sm:$0x1]  ;;  %v2779_v16 = vld [vmem:[%s4044_s3 + $0x10] sm:$0xff]   ;;  %2581 = vmatprep.subr.bf16.mxu0 %v2778_v61  ;;  %2745 = vmatprep.subr.bf16.mxu1 %v2778_v61 }
  0x17   : > { %v376_v23 = vmul.f32 %v2869_v6, %v315_v12  ;;  %v377_v24 = vmul.f32 %v2869_v6, %v316_v13  ;;  %v373_v25 = vmul.f32 %v2539_v14, %v2869_v6  ;;  %v374_v26 = vmul.f32 %v2540_v15, %v2869_v6  ;;  %v2574_v56 = vld [vmem:[%s2874_s7 + $0x90] sm:$0xff]  }
  0x18   : > { %v370_v27 = vmul.f32 %v2869_v6, %v309_v19  ;;  %v371_v28 = vmul.f32 %v2869_v6, %v310_v20  ;;  %v372_v29 = vmul.f32 %v2869_v6, %v311_v21  ;;  %v375_v30 = vmul.f32 %v2869_v6, %v314_v22  ;;  %v2780_v22 = vld [vmem:[%s4044_s3 + $0x58] sm:$0xff]  }
  0x19   : > { %v437_v31 = vadd.f32 %v2891_v18, %v376_v23  ;;  %v438_v32 = vadd.f32 %v2891_v18, %v377_v24  ;;  %v434_v33 = vadd.f32 %v2891_v18, %v373_v25  ;;  %v435_v34 = vadd.f32 %v2891_v18, %v374_v26  ;;  %2582 = vmatpush3.bf16.msra.mxu0 %v2779_v16 }
  0x1a   : > { %v431_v35 = vadd.f32 %v2891_v18, %v370_v27  ;;  %v432_v36 = vadd.f32 %v2891_v18, %v371_v28  ;;  %v433_v37 = vadd.f32 %v2891_v18, %v372_v29  ;;  %v436_v38 = vadd.f32 %v2891_v18, %v375_v30  ;;  %2753 = vmatpush3.bf16.msra.mxu1 %v2779_v16  ;;  %v2785_v16 = vld [vmem:[%s4044_s3 + $0x28] sm:$0xff]  }
  0x1b   : > { %vm491_vm2 = vcmp.gt.f32.partialorder %v437_v31, 0.0  ;;  %vm492_vm3 = vcmp.gt.f32.partialorder %v438_v32, 0.0  ;;  %v545_v39 = vmul.f32 0.01, %v437_v31  ;;  %v546_v40 = vmul.f32 0.01, %v438_v32  ;;  %2583 = vmatprep.subr.bf16.mxu0 %v2780_v22  ;;  %2746 = vmatprep.subr.bf16.mxu1 %v2780_v22 }
  0x1c   : > { %vm488_vm4 = vcmp.gt.f32.partialorder %v434_v33, 0.0  ;;  %vm489_vm5 = vcmp.gt.f32.partialorder %v435_v34, 0.0  ;;  %v542_v41 = vmul.f32 0.01, %v434_v33  ;;  %v543_v42 = vmul.f32 0.01, %v435_v34 }
  0x1d   : > { %v599_v43 = vsel %vm491_vm2, %v437_v31, %v545_v39  ;;  %v600_v44 = vsel %vm492_vm3, %v438_v32, %v546_v40  ;;  %vm485_vm6 = vcmp.gt.f32.partialorder %v431_v35, 0.0  ;;  %vm486_vm7 = vcmp.gt.f32.partialorder %v432_v36, 0.0  ;;  %v2781_v31 = vld [vmem:[%s4044_s3 + $0x18] sm:$0xff]   ;;  %v2782_v39 = vld [vmem:[%s4044_s3 + $0x60] sm:$0xff]  }
  0x1e   : > { %v675_v46 = vsel %vm648_vm0, %v599_v43, 0.0  ;;  %v596_v47 = vsel %vm488_vm4, %v434_v33, %v542_v41  ;;  %v597_v48 = vsel %vm489_vm5, %v435_v34, %v543_v42  ;;  %v539_v49 = vmul.f32 0.01, %v431_v35  ;;  %2584 = vmatpush3.bf16.msra.mxu0 %v2781_v31  ;;  %2754 = vmatpush3.bf16.msra.mxu1 %v2781_v31  ;;  %v2575_v31 = vld [vmem:[%s2874_s7 + $0xa8] sm:$0xff]  }
  0x1f   : > { %v2919_v52 = vpack.c.bf16 %v600_v44, %v675_v46  ;;  %v672_v53 = vsel %vm648_vm0, %v596_v47, 0.0  ;;  %v540_v54 = vmul.f32 0.01, %v432_v36  ;;  %vm487_vm9 = vcmp.gt.f32.partialorder %v433_v37, 0.0  ;;  %v2783_v46 = vld [vmem:[%s4044_s3 + $0x20] sm:$0xff]   ;;  %2585 = vmatprep.subr.bf16.mxu0 %v2782_v39  ;;  %2747 = vmatprep.subr.bf16.mxu1 %v2782_v39 }
  0x20   : > { %v2927_v57 = vpack.c.bf16 %v597_v48, %v672_v53  ;;  %v593_v58 = vsel %vm485_vm6, %v431_v35, %v539_v49  ;;  %v541_v59 = vmul.f32 0.01, %v433_v37  ;;  %vm490_vm10 = vcmp.gt.f32.partialorder %v436_v38, 0.0 }
  0x21   : > { %1194 = vrot.lane.b32.xlu0 %v2919_v52, %s2804_s23  ;;  %v594_v62 = vsel %vm486_vm7, %v432_v36, %v540_v54  ;;  %v669_v63 = vsel %vm648_vm0, %v593_v58, 0.0  ;;  %v544_v0 = vmul.f32 0.01, %v436_v38  ;;  %v317_v3 = vunpack.c.l.bf16 %v263_v50  ;;  %v2784_v50 = vld [vmem:[%s4044_s3 + $0x68] sm:$0xff]  }
  0x22   : > { %1192 = vrot.lane.b32.xlu1 %v2927_v57, %s2804_s23  ;;  %v2941_v7 = vpack.c.bf16 %v594_v62, %v669_v63  ;;  %v595_v8 = vsel %vm487_vm9, %v433_v37, %v541_v59  ;;  %v988_v9 = vrot.slane %v2927_v57, 1  ;;  %v991_v10 = vrot.slane %v2919_v52, 1  ;;  %v290_v62 = vld [vmem:[%s2874_s7 + $0x98] sm:$0x1]  ;;  %2586 = vmatpush3.bf16.msra.mxu0 %v2783_v46 }
  0x23   : > { %v671_v12 = vsel %vm659_vm1, %v595_v8, 0.0  ;;  %v598_v13 = vsel %vm490_vm10, %v436_v38, %v544_v0  ;;  %v378_v14 = vmul.f32 %v2869_v6, %v317_v3  ;;  %v345_v15 = vunpack.c.l.bf16 %v291_v55  ;;  %2755 = vmatpush3.bf16.msra.mxu1 %v2783_v46  ;;  %2587 = vmatprep.subr.bf16.mxu0 %v2784_v50 }
  0x24   : > { %v2953_v17 = vpack.c.bf16 %v671_v12, %v671_v12  ;;  %v985_v19 = vrot.slane %v2941_v7, 1  ;;  %v674_v20 = vsel %vm659_vm1, %v598_v13, 0.0  ;;  %v346_v21 = vunpack.c.h.bf16 %v291_v55  ;;  %2748 = vmatprep.subr.bf16.mxu1 %v2784_v50  ;;  %v2789_v50 = vld [vmem:[%s4044_s3 + $0x38] sm:$0xff]  }
  0x25   : > { %v725_v23 = vpack.c.bf16 %v674_v20, %v674_v20  ;;  %v439_v24 = vadd.f32 %v2891_v18, %v378_v14  ;;  %v347_v25 = vunpack.c.l.bf16 %v293_v60  ;;  %v406_v26 = vmul.f32 %v2869_v6, %v345_v15 }
  0x26   : > { %1128 = vrot.lane.b32.xlu1 %v2941_v7, %s2806_s28  ;;  %v986_v27 = vrot.slane %v2953_v17, 1  ;;  %v407_v28 = vmul.f32 %v2869_v6, %v346_v21  ;;  %v782_v29 = vshrl.u32 %v2927_v57, 16  ;;  %v784_v30 = vshll.u32 %v2927_v57, 16  ;;  %2588 = vmatpush3.bf16.msra.mxu0 %v2785_v16 }
  0x27   : > { %v989_v32 = vrot.slane %v725_v23, 1  ;;  %vm493_vm12 = vcmp.gt.f32.partialorder %v439_v24, 0.0  ;;  %v547_v33 = vmul.f32 0.01, %v439_v24  ;;  %v408_v34 = vmul.f32 %v2869_v6, %v347_v25  ;;  %2756 = vmatpush3.bf16.msra.mxu1 %v2785_v16 }
  0x28   : > { %v987_v35 = vsel %vm981_vm8, %v985_v19, %v986_v27  ;;  %v467_v36 = vadd.f32 %v2891_v18, %v406_v26  ;;  %v468_v37 = vadd.f32 %v2891_v18, %v407_v28  ;;  %v786_v38 = vrot.slane %v784_v30, 1  ;;  %v2786_v19 = vld [vmem:[%s4044_s3 + $0x70] sm:$0xff]  }
  0x29   : > { %1160 = vrot.lane.b32.xlu0 %v987_v35, %s2805_s24  ;;  %v2981_v40 = vsel %vm981_vm8, %v988_v9, %v989_v32  ;;  %v601_v41 = vsel %vm493_vm12, %v439_v24, %v547_v33  ;;  %v469_v42 = vadd.f32 %v2891_v18, %v408_v34  ;;  %v789_v43 = vshll.u32 %v725_v23, 16  ;;  %v2570_v9 = vld [vmem:[%s2874_s7 + $0x30] sm:$0xff]   ;;  %2589 = vmatprep.subr.bf16.mxu0 %v2786_v19 }
  0x2a   : > { %4060 = vst [vmem:[#allocation3_spill] sm:$0xff] %v2981_v40  ;;  %1130 = vrot.lane.b32.xlu1 %v2927_v57, %s2806_s28  ;;  %v677_v44 = vsel %vm659_vm1, %v601_v41, 0.0  ;;  %vm521_vm13 = vcmp.gt.f32.partialorder %v467_v36, 0.0  ;;  %vm522_vm14 = vcmp.gt.f32.partialorder %v468_v37, 0.0  ;;  %v575_v45 = vmul.f32 0.01, %v467_v36  ;;  %2749 = vmatprep.subr.bf16.mxu1 %v2786_v19 }
  0x2b   : > { %v727_v47 = vpack.c.bf16 %v677_v44, %v677_v44  ;;  %vm523_vm15 = vcmp.gt.f32.partialorder %v469_v42, 0.0  ;;  %v576_v48 = vmul.f32 0.01, %v468_v37  ;;  %v577_v49 = vmul.f32 0.01, %v469_v42  ;;  %v2787_v32 = vld [vmem:[%s4044_s3 + $0x30] sm:$0xff]  }
  0x2c   : > { %v629_v51 = vsel %vm521_vm13, %v467_v36, %v575_v45  ;;  %v787_v53 = vor.u32 %v786_v38, %v782_v29  ;;  %v791_v54 = vrot.slane %v789_v43, 1  ;;  %v794_v55 = vshrl.u32 %v2919_v52, 16  ;;  %v2788_v41 = vld [vmem:[%s4044_s3 + $0x78] sm:$0xff]   ;;  %2590 = vmatpush3.bf16.msra.mxu0 %v2787_v32  ;;  %2757 = vmatpush3.bf16.msra.mxu1 %v2787_v32 }
  0x2d   : > { %1162 = vrot.lane.b32.xlu0 %v2981_v40, %s2805_s24  ;;  %v992_v58 = vrot.slane %v727_v47, 1  ;;  %v630_v59 = vsel %vm522_vm14, %v468_v37, %v576_v48  ;;  %v631_v60 = vsel %vm523_vm15, %v469_v42, %v577_v49  ;;  %v705_v61 = vsel %vm648_vm0, %v629_v51, 0.0  ;;  %2591 = vmatprep.subr.bf16.mxu0 %v2788_v41 }
  0x2e   : > { %1098 = vrot.lane.b32.xlu1 %v987_v35, %s2804_s23  ;;  %v707_v63 = vsel %vm659_vm1, %v631_v60, 0.0  ;;  %v3006_v0 = vpack.c.bf16 %v630_v59, %v705_v61  ;;  %v3009_v3 = vsel %vm756_vm11, %v787_v53, %v791_v54  ;;  %v796_v8 = vshll.u32 %v2919_v52, 16  ;;  %2750 = vmatprep.subr.bf16.mxu1 %v2788_v41 }
  0x2f   : > { %v3016_v12 = vsel %vm981_vm8, %v991_v10, %v992_v58  ;;  %v3018_v13 = vpack.c.bf16 %v707_v63, %v707_v63  ;;  %v801_v14 = vshll.u32 %v727_v47, 16  ;;  %v770_v15 = vshrl.u32 %v2941_v7, 16 }
  0x30   : > { %4061 = vst [vmem:[#allocation4_spill] sm:$0xff] %v3016_v12  ;;  %v1021_v20 = vrot.slane %v3006_v0, 1  ;;  %v798_v10 = vrot.slane %v796_v8, 1  ;;  %v772_v21 = vshll.u32 %v2941_v7, 16  ;;  %v777_v22 = vshll.u32 %v2953_v17, 16  ;;  %2592 = vmatpush3.bf16.msra.mxu0 %v2789_v50  ;;  %2758 = vmatpush3.bf16.msra.mxu1 %v2789_v50  ;;  %v267_v50 = vld [vmem:[%s2874_s7 + $0x3c] sm:$0xff]  }
  0x31   : > { %1164 = vrot.lane.b32.xlu0 %v3016_v12, %s2805_s24  ;;  %v1022_v23 = vrot.slane %v3018_v13, 1  ;;  %v803_v24 = vrot.slane %v801_v14, 1  ;;  %v2559_v25 = vunpack.c.l.bf16 %v2574_v56  ;;  %v2560_v26 = vunpack.c.h.bf16 %v2574_v56 }
  0x32   : > { %v799_v27 = vor.u32 %v798_v10, %v794_v55  ;;  %v774_v28 = vrot.slane %v772_v21, 1  ;;  %v779_v29 = vrot.slane %v777_v22, 1  ;;  %v344_v30 = vunpack.c.l.bf16 %v290_v62  ;;  %v266_v62 = vld [vmem:[%s2874_s7 + $0x38] sm:$0x1] }
  0x33   : > { %v3038_v17 = vsel %vm981_vm8, %v1021_v20, %v1022_v23  ;;  %v403_v33 = vmul.f32 %v2559_v25, %v2869_v6  ;;  %v404_v34 = vmul.f32 %v2560_v26, %v2869_v6  ;;  %v2543_v35 = vunpack.c.l.bf16 %v2570_v9 }
  0x34   : > { %4062 = vst [vmem:[#allocation5_spill] sm:$0xff] %v3038_v17  ;;  %1184 = vrot.lane.b32.xlu1 %v3038_v17, %s2805_s24  ;;  %v3045_v36 = vsel %vm756_vm11, %v799_v27, %v803_v24  ;;  %v775_v37 = vor.u32 %v774_v28, %v770_v15  ;;  %v405_v38 = vmul.f32 %v2869_v6, %v344_v30  ;;  %v2544_v39 = vunpack.c.h.bf16 %v2570_v9 }
  0x35   : > { %1224 = vrot.lane.b32.xlu0 %v3009_v3, %s2806_s28  ;;  %v464_v42 = vadd.f32 %v2891_v18, %v403_v33  ;;  %v465_v43 = vadd.f32 %v2891_v18, %v404_v34  ;;  %v379_v44 = vmul.f32 %v2543_v35, %v2869_v6  ;;  %v2563_v45 = vunpack.c.l.bf16 %v2575_v31  ;;  %v296_v34 = vld [vmem:[%s2874_s7 + $0xb0] sm:$0x1] }
  0x36   : > { %v3057_v46 = vsel %vm756_vm11, %v775_v37, %v779_v29  ;;  %v466_v47 = vadd.f32 %v2891_v18, %v405_v38  ;;  %v380_v48 = vmul.f32 %v2544_v39, %v2869_v6  ;;  %v2564_v49 = vunpack.c.h.bf16 %v2575_v31 }
  0x37   : > { %vm518_vm2 = vcmp.gt.f32.partialorder %v464_v42, 0.0  ;;  %vm519_vm3 = vcmp.gt.f32.partialorder %v465_v43, 0.0  ;;  %v572_v51 = vmul.f32 0.01, %v464_v42  ;;  %v573_v53 = vmul.f32 0.01, %v465_v43 }
  0x38   : > { %1066 = vrot.lane.b32.xlu1 %v3057_v46, %s2805_s24  ;;  %vm520_vm4 = vcmp.gt.f32.partialorder %v466_v47, 0.0  ;;  %v574_v54 = vmul.f32 0.01, %v466_v47  ;;  %v440_v55 = vadd.f32 %v2891_v18, %v379_v44  ;;  %v441_v56 = vadd.f32 %v2891_v18, %v380_v48 }
  0x39   : > { %1226 = vrot.lane.b32.xlu0 %v3045_v36, %s2806_s28  ;;  %v626_v58 = vsel %vm518_vm2, %v464_v42, %v572_v51  ;;  %v627_v59 = vsel %vm519_vm3, %v465_v43, %v573_v53  ;;  %v409_v60 = vmul.f32 %v2563_v45, %v2869_v6  ;;  %v410_v61 = vmul.f32 %v2564_v49, %v2869_v6 }
  0x3a   : > { %v628_v63 = vsel %vm520_vm4, %v466_v47, %v574_v54  ;;  %v702_v8 = vsel %vm648_vm0, %v626_v58, 0.0  ;;  %vm494_vm5 = vcmp.gt.f32.partialorder %v440_v55, 0.0  ;;  %vm495_vm6 = vcmp.gt.f32.partialorder %v441_v56, 0.0 }
  0x3b   : > { %v704_v9 = vsel %vm659_vm1, %v628_v63, 0.0  ;;  %v3077_v14 = vpack.c.bf16 %v627_v59, %v702_v8  ;;  %v548_v15 = vmul.f32 0.01, %v440_v55  ;;  %v549_v16 = vmul.f32 0.01, %v441_v56 }
  0x3c   : > { %v745_v19 = vpack.c.bf16 %v704_v9, %v704_v9  ;;  %v470_v20 = vadd.f32 %v2891_v18, %v409_v60  ;;  %v471_v10 = vadd.f32 %v2891_v18, %v410_v61  ;;  %v320_v21 = vunpack.c.l.bf16 %v266_v62 }
  0x3d   : > { %1068 = vrot.lane.b32.xlu0 %v3009_v3, %s2805_s24  ;;  %v902_v22 = vshrl.u32 %v3077_v14, 16  ;;  %v904_v23 = vshll.u32 %v3077_v14, 16  ;;  %v602_v24 = vsel %vm494_vm5, %v440_v55, %v548_v15  ;;  %v603_v25 = vsel %vm495_vm6, %v441_v56, %v549_v16  ;;  %v297_v16 = vld [vmem:[%s2874_s7 + $0xb4] sm:$0xff]  }
  0x3e   : > { %v909_v26 = vshll.u32 %v745_v19, 16  ;;  %v678_v27 = vsel %vm648_vm0, %v602_v24, 0.0  ;;  %vm524_vm7 = vcmp.gt.f32.partialorder %v470_v20, 0.0  ;;  %vm525_vm9 = vcmp.gt.f32.partialorder %v471_v10, 0.0 }
  0x3f   : > { %v906_v28 = vrot.slane %v904_v23, 1  ;;  %v3089_v29 = vpack.c.bf16 %v603_v25, %v678_v27  ;;  %v578_v30 = vmul.f32 0.01, %v470_v20  ;;  %v579_v31 = vmul.f32 0.01, %v471_v10 }
  0x40   : > { %v911_v32 = vrot.slane %v909_v26, 1  ;;  %v381_v33 = vmul.f32 %v2869_v6, %v320_v21  ;;  %v1018_v39 = vrot.slane %v3077_v14, 1  ;;  %v1019_v42 = vrot.slane %v745_v19, 1 }
  0x41   : > { %v907_v35 = vor.u32 %v906_v28, %v902_v22  ;;  %1196 = vrot.lane.b32.xlu0 %v3089_v29, %s2804_s23  ;;  %v632_v37 = vsel %vm524_vm7, %v470_v20, %v578_v30  ;;  %v633_v38 = vsel %vm525_vm9, %v471_v10, %v579_v31  ;;  %v808_v44 = vshll.u32 %v3089_v29, 16  ;;  %v269_v30 = vld [vmem:[%s2874_s7 + $0x44] sm:$0x1] }
  0x42   : > { %v708_v41 = vsel %vm648_vm0, %v632_v37, 0.0  ;;  %v442_v43 = vadd.f32 %v2891_v18, %v381_v33  ;;  %v350_v48 = vunpack.c.l.bf16 %v296_v34  ;;  %v3113_v54 = vsel %vm981_vm8, %v1018_v39, %v1019_v42 }
  0x43   : > { %v3101_v45 = vsel %vm756_vm11, %v907_v35, %v911_v32  ;;  %v3103_v47 = vpack.c.bf16 %v633_v38, %v708_v41  ;;  %v806_v56 = vshrl.u32 %v3089_v29, 16  ;;  %v810_v58 = vrot.slane %v808_v44, 1 }
  0x44   : > { %1088 = vrot.lane.b32.xlu1 %v3101_v45, %s2805_s24  ;;  %vm496_vm10 = vcmp.gt.f32.partialorder %v442_v43, 0.0  ;;  %v550_v49 = vmul.f32 0.01, %v442_v43  ;;  %v411_v51 = vmul.f32 %v2869_v6, %v350_v48  ;;  %v994_v61 = vrot.slane %v3089_v29, 1 }
  0x45   : > { %1100 = vrot.lane.b32.xlu0 %v2981_v40, %s2804_s23  ;;  %v928_v53 = vshll.u32 %v3103_v47, 16  ;;  %v321_v62 = vunpack.c.l.bf16 %v267_v50  ;;  %v926_v8 = vshrl.u32 %v3103_v47, 16  ;;  %v322_v15 = vunpack.c.h.bf16 %v267_v50 }
  0x46   : > { %v604_v55 = vsel %vm496_vm10, %v442_v43, %v550_v49  ;;  %v472_v60 = vadd.f32 %v2891_v18, %v411_v51  ;;  %v914_v20 = vshrl.u32 %v3006_v0, 16  ;;  %v811_v21 = vor.u32 %v810_v58, %v806_v56  ;;  %v299_v56 = vld [vmem:[%s2874_s7 + $0xbc] sm:$0x1] }
  0x47   : > { %v680_v59 = vsel %vm659_vm1, %v604_v55, 0.0  ;;  %v930_v9 = vrot.slane %v928_v53, 1  ;;  %v382_v10 = vmul.f32 %v2869_v6, %v321_v62  ;;  %v1024_v23 = vrot.slane %v3103_v47, 1 }
  0x48   : > { %1216 = vrot.lane.b32.xlu1 %v3103_v47, %s2804_s23  ;;  %v729_v63 = vpack.c.bf16 %v680_v59, %v680_v59  ;;  %vm526_vm12 = vcmp.gt.f32.partialorder %v472_v60, 0.0  ;;  %v580_v19 = vmul.f32 0.01, %v472_v60  ;;  %v383_v24 = vmul.f32 %v2869_v6, %v322_v15 }
  0x49   : > { %v443_v26 = vadd.f32 %v2891_v18, %v382_v10  ;;  %v351_v27 = vunpack.c.l.bf16 %v297_v16  ;;  %v352_v28 = vunpack.c.h.bf16 %v297_v16  ;;  %v931_v33 = vor.u32 %v930_v9, %v926_v8 }
  0x4a   : > { %v813_v22 = vshll.u32 %v729_v63, 16  ;;  %v634_v25 = vsel %vm526_vm12, %v472_v60, %v580_v19  ;;  %v916_v34 = vshll.u32 %v3006_v0, 16  ;;  %v444_v37 = vadd.f32 %v2891_v18, %v383_v24 }
  0x4b   : > { %v710_v32 = vsel %vm659_vm1, %v634_v25, 0.0  ;;  %vm497_vm13 = vcmp.gt.f32.partialorder %v443_v26, 0.0  ;;  %v551_v38 = vmul.f32 0.01, %v443_v26  ;;  %v412_v41 = vmul.f32 %v2869_v6, %v351_v27 }
  0x4c   : > { %1120 = vrot.lane.b32.xlu1 %v3113_v54, %s2804_s23  ;;  %v815_v31 = vrot.slane %v813_v22, 1  ;;  %v749_v35 = vpack.c.bf16 %v710_v32, %v710_v32  ;;  %v413_v42 = vmul.f32 %v2869_v6, %v352_v28  ;;  %v323_v43 = vunpack.c.l.bf16 %v269_v30 }
  0x4d   : > { %v995_v48 = vrot.slane %v729_v63, 1  ;;  %vm498_vm14 = vcmp.gt.f32.partialorder %v444_v37, 0.0  ;;  %v552_v49 = vmul.f32 0.01, %v444_v37  ;;  %v605_v50 = vsel %vm497_vm13, %v443_v26, %v551_v38 }
  0x4e   : > { %v3137_v39 = vsel %vm756_vm11, %v811_v21, %v815_v31  ;;  %v933_v44 = vshll.u32 %v749_v35, 16  ;;  %v473_v51 = vadd.f32 %v2891_v18, %v412_v41  ;;  %v474_v53 = vadd.f32 %v2891_v18, %v413_v42 }
  0x4f   : > { %1228 = vrot.lane.b32.xlu0 %v3137_v39, %s2806_s28  ;;  %v384_v55 = vmul.f32 %v2869_v6, %v323_v43  ;;  %v921_v59 = vshll.u32 %v3018_v13, 16  ;;  %v606_v60 = vsel %vm498_vm14, %v444_v37, %v552_v49  ;;  %v681_v62 = vsel %vm648_vm0, %v605_v50, 0.0  ;;  %v2571_v13 = vld [vmem:[%s2874_s7 + $0x48] sm:$0xff]   ;;  %v2576_v37 = vld [vmem:[%s2874_s7 + $0xc0] sm:$0xff]  }
  0x50   : > { %v935_v58 = vrot.slane %v933_v44, 1  ;;  %v3150_v8 = vpack.c.bf16 %v606_v60, %v681_v62  ;;  %vm527_vm15 = vcmp.gt.f32.partialorder %v473_v51, 0.0  ;;  %vm528_vm2 = vcmp.gt.f32.partialorder %v474_v53, 0.0 }
  0x51   : > { %v581_v63 = vmul.f32 0.01, %v473_v51  ;;  %v582_v15 = vmul.f32 0.01, %v474_v53  ;;  %v445_v16 = vadd.f32 %v2891_v18, %v384_v55  ;;  %v353_v19 = vunpack.c.l.bf16 %v299_v56 }
  0x52   : > { %v3153_v9 = vsel %vm756_vm11, %v931_v33, %v935_v58  ;;  %v3162_v10 = vsel %vm981_vm8, %v994_v61, %v995_v48  ;;  %v1025_v21 = vrot.slane %v749_v35, 1  ;;  %v918_v22 = vrot.slane %v916_v34, 1 }
  0x53   : > { %1132 = vrot.lane.b32.xlu0 %v2919_v52, %s2806_s28  ;;  %1248 = vrot.lane.b32.xlu1 %v3153_v9, %s2806_s28  ;;  %4063 = vst [vmem:[#allocation6_spill] sm:$0xff] %v3162_v10  ;;  %v635_v24 = vsel %vm527_vm15, %v473_v51, %v581_v63  ;;  %v636_v25 = vsel %vm528_vm2, %v474_v53, %v582_v15  ;;  %vm499_vm3 = vcmp.gt.f32.partialorder %v445_v16, 0.0  ;;  %v553_v27 = vmul.f32 0.01, %v445_v16 }
  0x54   : > { %v711_v26 = vsel %vm648_vm0, %v635_v24, 0.0  ;;  %v414_v28 = vmul.f32 %v2869_v6, %v353_v19  ;;  %v2547_v30 = vunpack.c.l.bf16 %v2571_v13  ;;  %v820_v61 = vshll.u32 %v3150_v8, 16  ;;  %v302_v24 = vld [vmem:[%s2874_s7 + $0xc8] sm:$0x1] }
  0x55   : > { %v607_v31 = vsel %vm499_vm3, %v445_v16, %v553_v27  ;;  %v3172_v32 = vpack.c.bf16 %v636_v25, %v711_v26  ;;  %v2548_v35 = vunpack.c.h.bf16 %v2571_v13  ;;  %v3181_v38 = vsel %vm981_vm8, %v1024_v23, %v1025_v21  ;;  %v272_v16 = vld [vmem:[%s2874_s7 + $0x50] sm:$0x1] }
  0x56   : > { %v683_v33 = vsel %vm659_vm1, %v607_v31, 0.0  ;;  %v475_v34 = vadd.f32 %v2891_v18, %v414_v28  ;;  %4065 = vst [vmem:[#allocation8_spill] sm:$0xff] %v3181_v38  ;;  %v919_v41 = vor.u32 %v918_v22, %v914_v20  ;;  %v923_v42 = vrot.slane %v921_v59, 1 }
  0x57   : > { %1166 = vrot.lane.b32.xlu0 %v3162_v10, %s2805_s24  ;;  %1152 = vrot.lane.b32.xlu1 %v3006_v0, %s2806_s28  ;;  %4064 = vst [vmem:[#allocation7_spill] sm:$0xff] %v3172_v32  ;;  %v3185_v43 = vpack.c.bf16 %v683_v33, %v683_v33  ;;  %v385_v48 = vmul.f32 %v2547_v30, %v2869_v6  ;;  %v818_v49 = vshrl.u32 %v3150_v8, 16  ;;  %v822_v50 = vrot.slane %v820_v61, 1 }
  0x58   : > { %vm529_vm4 = vcmp.gt.f32.partialorder %v475_v34, 0.0  ;;  %v583_v44 = vmul.f32 0.01, %v475_v34  ;;  %v2567_v51 = vunpack.c.l.bf16 %v2576_v37  ;;  %v940_v53 = vshll.u32 %v3172_v32, 16 }
  0x59   : > { %v825_v20 = vshll.u32 %v3185_v43, 16  ;;  %v386_v55 = vmul.f32 %v2548_v35, %v2869_v6  ;;  %v3197_v56 = vsel %vm756_vm11, %v919_v41, %v923_v42  ;;  %v446_v60 = vadd.f32 %v2891_v18, %v385_v48 }
  0x5a   : > { %v637_v23 = vsel %vm529_vm4, %v475_v34, %v583_v44  ;;  %v2568_v62 = vunpack.c.h.bf16 %v2576_v37  ;;  %v823_v63 = vor.u32 %v822_v50, %v818_v49  ;;  %v415_v15 = vmul.f32 %v2567_v51, %v2869_v6 }
  0x5b   : > { %1070 = vrot.lane.b32.xlu0 %v3045_v36, %s2805_s24  ;;  %1186 = vrot.lane.b32.xlu1 %v3181_v38, %s2805_s24  ;;  %v713_v58 = vsel %vm659_vm1, %v637_v23, 0.0  ;;  %v827_v19 = vrot.slane %v825_v20, 1  ;;  %v938_v13 = vshrl.u32 %v3172_v32, 16  ;;  %v942_v21 = vrot.slane %v940_v53, 1 }
  0x5c   : > { %v3201_v59 = vpack.c.bf16 %v713_v58, %v713_v58  ;;  %v447_v22 = vadd.f32 %v2891_v18, %v386_v55  ;;  %v554_v26 = vmul.f32 0.01, %v446_v60  ;;  %v416_v27 = vmul.f32 %v2568_v62, %v2869_v6 }
  0x5d   : > { %vm500_vm5 = vcmp.gt.f32.partialorder %v446_v60, 0.0  ;;  %v476_v28 = vadd.f32 %v2891_v18, %v415_v15  ;;  %v326_v30 = vunpack.c.l.bf16 %v272_v16  ;;  %v356_v31 = vunpack.c.l.bf16 %v302_v24 }
  0x5e   : > { %v945_v25 = vshll.u32 %v3201_v59, 16  ;;  %v3221_v61 = vsel %vm756_vm11, %v823_v63, %v827_v19  ;;  %v943_v33 = vor.u32 %v942_v21, %v938_v13  ;;  %v555_v34 = vmul.f32 0.01, %v447_v22 }
  0x5f   : > { %1198 = vrot.lane.b32.xlu0 %v3150_v8, %s2804_s23  ;;  %1090 = vrot.lane.b32.xlu1 %v3197_v56, %s2805_s24  ;;  %vm501_vm6 = vcmp.gt.f32.partialorder %v447_v22, 0.0  ;;  %v387_v37 = vmul.f32 %v2869_v6, %v326_v30  ;;  %v417_v41 = vmul.f32 %v2869_v6, %v356_v31  ;;  %v608_v42 = vsel %vm500_vm5, %v446_v60, %v554_v26 }
  0x60   : > { %v947_v35 = vrot.slane %v945_v25, 1  ;;  %v477_v44 = vadd.f32 %v2891_v18, %v416_v27  ;;  %v584_v48 = vmul.f32 0.01, %v476_v28  ;;  %v997_v51 = vrot.slane %v3150_v8, 1 }
  0x61   : > { %v448_v49 = vadd.f32 %v2891_v18, %v387_v37  ;;  %v478_v50 = vadd.f32 %v2891_v18, %v417_v41  ;;  %v998_v20 = vrot.slane %v3185_v43, 1  ;;  %v609_v23 = vsel %vm501_vm6, %v447_v22, %v555_v34  ;;  %v273_v43 = vld [vmem:[%s2874_s7 + $0x54] sm:$0xff]  }
  0x62   : > { %vm530_vm7 = vcmp.gt.f32.partialorder %v476_v28, 0.0  ;;  %v3235_v53 = vsel %vm756_vm11, %v943_v33, %v947_v35  ;;  %v684_v55 = vsel %vm648_vm0, %v608_v42, 0.0  ;;  %v585_v60 = vmul.f32 0.01, %v477_v44 }
  0x63   : > { %1102 = vrot.lane.b32.xlu0 %v3016_v12, %s2804_s23  ;;  %1218 = vrot.lane.b32.xlu1 %v3172_v32, %s2804_s23  ;;  %vm502_vm9 = vcmp.gt.f32.partialorder %v448_v49, 0.0  ;;  %v556_v58 = vmul.f32 0.01, %v448_v49  ;;  %vm531_vm10 = vcmp.gt.f32.partialorder %v477_v44, 0.0  ;;  %v638_v62 = vsel %vm530_vm7, %v476_v28, %v584_v48  ;;  %v275_v28 = vld [vmem:[%s2874_s7 + $0x5c] sm:$0x1] }
  0x64   : > { %v586_v15 = vmul.f32 0.01, %v478_v50  ;;  %v3245_v16 = vsel %vm981_vm8, %v997_v51, %v998_v20  ;;  %v3247_v19 = vpack.c.bf16 %v609_v23, %v684_v55  ;;  %vm532_vm12 = vcmp.gt.f32.partialorder %v478_v50, 0.0 }
  0x65   : > { %v610_v63 = vsel %vm502_vm9, %v448_v49, %v556_v58  ;;  %4066 = vst [vmem:[#allocation9_spill] sm:$0xff] %v3245_v16  ;;  %v1027_v13 = vrot.slane %v3172_v32, 1  ;;  %v1028_v21 = vrot.slane %v3201_v59, 1  ;;  %v639_v24 = vsel %vm531_vm10, %v477_v44, %v585_v60 }
  0x66   : > { %4067 = vst [vmem:[#allocation10_spill] sm:$0xff] %v3247_v19  ;;  %v686_v22 = vsel %vm659_vm1, %v610_v63, 0.0  ;;  %v714_v25 = vsel %vm648_vm0, %v638_v62, 0.0  ;;  %v327_v26 = vunpack.c.l.bf16 %v273_v43  ;;  %v640_v27 = vsel %vm532_vm12, %v478_v50, %v586_v15 }
  0x67   : > { %1230 = vrot.lane.b32.xlu0 %v3221_v61, %s2806_s28  ;;  %1122 = vrot.lane.b32.xlu1 %v3038_v17, %s2804_s23  ;;  %v733_v30 = vpack.c.bf16 %v686_v22, %v686_v22  ;;  %v832_v31 = vshll.u32 %v3247_v19, 16  ;;  %v3262_v59 = vsel %vm981_vm8, %v1027_v13, %v1028_v21  ;;  %v3264_v33 = vpack.c.bf16 %v639_v24, %v714_v25 }
  0x68   : > { %4068 = vst [vmem:[#allocation11_spill] sm:$0xff] %v3262_v59  ;;  %v328_v34 = vunpack.c.h.bf16 %v273_v43  ;;  %v716_v35 = vsel %vm659_vm1, %v640_v27, 0.0  ;;  %v388_v37 = vmul.f32 %v2869_v6, %v327_v26  ;;  %v329_v41 = vunpack.c.l.bf16 %v275_v28 }
  0x69   : > { %v830_v42 = vshrl.u32 %v3247_v19, 16  ;;  %v834_v44 = vrot.slane %v832_v31, 1  ;;  %v837_v48 = vshll.u32 %v733_v30, 16  ;;  %v753_v49 = vpack.c.bf16 %v716_v35, %v716_v35 }
  0x6a   : > { %v1033_v50 = vshll.u32 %v3264_v33, 16  ;;  %v389_v51 = vmul.f32 %v2869_v6, %v328_v34  ;;  %v449_v20 = vadd.f32 %v2891_v18, %v388_v37  ;;  %v390_v23 = vmul.f32 %v2869_v6, %v329_v41  ;;  %v2572_v6 = vld [vmem:[%s2874_s7 + $0x60] sm:$0xff]  }
  0x6b   : > { %1134 = vrot.lane.b32.xlu0 %v3089_v29, %s2806_s28  ;;  %1250 = vrot.lane.b32.xlu1 %v3235_v53, %s2806_s28  ;;  %v835_v55 = vor.u32 %v834_v44, %v830_v42  ;;  %v839_v58 = vrot.slane %v837_v48, 1  ;;  %v1031_v60 = vshrl.u32 %v3264_v33, 16  ;;  %v1038_v63 = vshll.u32 %v753_v49, 16  ;;  %v3307_v48 = vld [vmem:[%s4042_s1] ss:$0 sm:$0xff] }
  0x6c   : > { %v1035_v62 = vrot.slane %v1033_v50, 1  ;;  %v450_v15 = vadd.f32 %v2891_v18, %v389_v51  ;;  %v557_v43 = vmul.f32 0.01, %v449_v20  ;;  %v451_v13 = vadd.f32 %v2891_v18, %v390_v23  ;;  %v278_v18 = vld [vmem:[%s2874_s7 + $0x68] sm:$0x1] }
  0x6d   : > { %vm503_vm13 = vcmp.gt.f32.partialorder %v449_v20, 0.0  ;;  %v3291_v21 = vsel %vm756_vm11, %v835_v55, %v839_v58  ;;  %v1040_v24 = vrot.slane %v1038_v63, 1  ;;  %v2551_v28 = vunpack.c.l.bf16 %v2572_v6 }
  0x6e   : > { %v1036_v22 = vor.u32 %v1035_v62, %v1031_v60  ;;  %v558_v25 = vmul.f32 0.01, %v450_v15  ;;  %vm504_vm14 = vcmp.gt.f32.partialorder %v450_v15, 0.0  ;;  %v611_v26 = vsel %vm503_vm13, %v449_v20, %v557_v43  ;;  %v3326_v62 = vld [vmem:[%s4043_s2] ss:$0 sm:$0xff]  ;;  %v279_v43 = vld [vmem:[%s2874_s7 + $0x6c] sm:$0xff]  }
  0x6f   : > { %1168 = vrot.lane.b32.xlu0 %v3245_v16, %s2805_s24  ;;  %1154 = vrot.lane.b32.xlu1 %v3103_v47, %s2806_s28  ;;  %v559_v27 = vmul.f32 0.01, %v451_v13  ;;  %vm505_vm15 = vcmp.gt.f32.partialorder %v451_v13, 0.0  ;;  %v1000_v31 = vrot.slane %v3247_v19, 1  ;;  %v1001_v34 = vrot.slane %v733_v30, 1 }
  0x70   : > { %v3300_v35 = vsel %vm756_vm11, %v1036_v22, %v1040_v24  ;;  %v612_v37 = vsel %vm504_vm14, %v450_v15, %v558_v25  ;;  %v687_v41 = vsel %vm648_vm0, %v611_v26, 0.0  ;;  %v2552_v42 = vunpack.c.h.bf16 %v2572_v6 }
  0x71   : > { %v613_v44 = vsel %vm505_vm15, %v451_v13, %v559_v27  ;;  %v391_v50 = vmul.f32 %v3307_v48, %v2551_v28  ;;  %v332_v51 = vunpack.c.l.bf16 %v278_v18  ;;  %v3315_v30 = vsel %vm981_vm8, %v1000_v31, %v1001_v34  ;;  %v281_v27 = vld [vmem:[%s2874_s7 + $0x74] sm:$0x1] }
  0x72   : > { %v3317_v20 = vpack.c.bf16 %v612_v37, %v687_v41  ;;  %v1044_v23 = vrot.slane %v3264_v33, 1  ;;  %v1045_v55 = vrot.slane %v753_v49, 1  ;;  %v689_v58 = vsel %vm659_vm1, %v613_v44, 0.0 }
  0x73   : > { %1072 = vrot.lane.b32.xlu0 %v3137_v39, %s2805_s24  ;;  %1188 = vrot.lane.b32.xlu1 %v3262_v59, %s2805_s24  ;;  %v392_v60 = vmul.f32 %v3307_v48, %v2552_v42  ;;  %v452_v63 = vadd.f32 %v3326_v62, %v391_v50  ;;  %v393_v15 = vmul.f32 %v3307_v48, %v332_v51  ;;  %v333_v26 = vunpack.c.l.bf16 %v279_v43 }
  0x74   : > { %v3335_v49 = vpack.c.bf16 %v689_v58, %v689_v58  ;;  %v844_v13 = vshll.u32 %v3317_v20, 16  ;;  %v3339_v6 = vsel %vm981_vm8, %v1044_v23, %v1045_v55  ;;  %v842_v28 = vshrl.u32 %v3317_v20, 16 }
  0x75   : > { %4069 = vst [vmem:[#allocation12_spill] sm:$0xff] %v3339_v6  ;;  %v453_v22 = vadd.f32 %v3326_v62, %v392_v60  ;;  %v560_v24 = vmul.f32 0.01, %v452_v63  ;;  %v454_v25 = vadd.f32 %v3326_v62, %v393_v15  ;;  %vm506_vm2 = vcmp.gt.f32.partialorder %v452_v63, 0.0 }
  0x76   : > { %v846_v18 = vrot.slane %v844_v13, 1  ;;  %v849_v31 = vshll.u32 %v3335_v49, 16  ;;  %v334_v37 = vunpack.c.h.bf16 %v279_v43  ;;  %v394_v50 = vmul.f32 %v3307_v48, %v333_v26  ;;  %v2573_v26 = vld [vmem:[%s2874_s7 + $0x78] sm:$0xff]  }
  0x77   : > { %1200 = vrot.lane.b32.xlu0 %v3247_v19, %s2804_s23  ;;  %1092 = vrot.lane.b32.xlu1 %v3153_v9, %s2805_s24  ;;  %vm507_vm3 = vcmp.gt.f32.partialorder %v453_v22, 0.0  ;;  %v561_v34 = vmul.f32 0.01, %v453_v22  ;;  %v614_v42 = vsel %vm506_vm2, %v452_v63, %v560_v24  ;;  %v562_v44 = vmul.f32 0.01, %v454_v25 }
  0x78   : > { %v335_v51 = vunpack.c.l.bf16 %v281_v27  ;;  %vm508_vm4 = vcmp.gt.f32.partialorder %v454_v25, 0.0  ;;  %v847_v55 = vor.u32 %v846_v18, %v842_v28  ;;  %v851_v58 = vrot.slane %v849_v31, 1  ;;  %v3368_v27 = vld [vmem:[%s4044_s3 + $0x80] sm:$0xff]  }
  0x79   : > { %v615_v60 = vsel %vm507_vm3, %v453_v22, %v561_v34  ;;  %v690_v63 = vsel %vm648_vm0, %v614_v42, 0.0  ;;  %v395_v15 = vmul.f32 %v3307_v48, %v334_v37  ;;  %v616_v43 = vsel %vm508_vm4, %v454_v25, %v562_v44  ;;  %2707 = vmatprep.subr.bf16.mxu1 %v3368_v27  ;;  %v284_v44 = vld [vmem:[%s2874_s7 + $0x80] sm:$0x1] }
  0x7a   : > { %v455_v13 = vadd.f32 %v3326_v62, %v394_v50  ;;  %v396_v24 = vmul.f32 %v3307_v48, %v335_v51  ;;  %v3375_v22 = vsel %vm756_vm11, %v847_v55, %v851_v58  ;;  %v3379_v28 = vpack.c.bf16 %v615_v60, %v690_v63 }
  0x7b   : > { %1104 = vrot.lane.b32.xlu0 %v3162_v10, %s2804_s23  ;;  %1220 = vrot.lane.b32.xlu1 %v3264_v33, %s2804_s23  ;;  %v692_v31 = vsel %vm659_vm1, %v616_v43, 0.0  ;;  %v456_v34 = vadd.f32 %v3326_v62, %v395_v15  ;;  %v2555_v37 = vunpack.c.l.bf16 %v2573_v26  ;;  %v1003_v50 = vrot.slane %v3317_v20, 1 }
  0x7c   : > { %v563_v42 = vmul.f32 0.01, %v455_v13  ;;  %vm509_vm5 = vcmp.gt.f32.partialorder %v455_v13, 0.0  ;;  %v1004_v51 = vrot.slane %v3335_v49, 1  ;;  %v3397_v58 = vpack.c.bf16 %v692_v31, %v692_v31 }
  0x7d   : > { %v856_v60 = vshll.u32 %v3379_v28, 16  ;;  %v564_v63 = vmul.f32 0.01, %v456_v34  ;;  %v2556_v15 = vunpack.c.h.bf16 %v2573_v26  ;;  %v397_v43 = vmul.f32 %v3307_v48, %v2555_v37 }
  0x7e   : > { %vm510_vm6 = vcmp.gt.f32.partialorder %v456_v34, 0.0  ;;  %v3406_v49 = vsel %vm981_vm8, %v1003_v50, %v1004_v51  ;;  %v854_v26 = vshrl.u32 %v3379_v28, 16  ;;  %vm1256_vm9 = vcmask 261120   ;;  %v285_v51 = vld [vmem:[%s2874_s7 + $0x84] sm:$0xff]  }
  0x7f   : > { %1232 = vrot.lane.b32.xlu0 %v3291_v21, %s2806_s28  ;;  %1124 = vrot.lane.b32.xlu1 %v3181_v38, %s2804_s23  ;;  %v858_v37 = vrot.slane %v856_v60, 1  ;;  %v398_v38 = vmul.f32 %v3307_v48, %v2556_v15  ;;  %vm1289_vm10 = vcmask 523264   ;;  %vm1322_vm12 = vcmask 785408  }
  0x80   : > { %v340_v10 = vunpack.c.h.bf16 %v285_v51 }
  0x82   : > { %v3350_v41 = vpop.permute.xlu1 %1096  ;;  %v3355_v23 = vpop.permute.xlu0 %1064 }
  0x83   : > { %1136 = vrot.lane.b32.xlu0 %v3150_v8, %s2806_s28  ;;  %1252 = vrot.lane.b32.xlu1 %v3300_v35, %s2806_s28 }
  0x87   : > { %1170 = vrot.lane.b32.xlu0 %v3315_v30, %s2805_s24  ;;  %1156 = vrot.lane.b32.xlu1 %v3172_v32, %s2806_s28 }
  0x8b   : > { %1074 = vrot.lane.b32.xlu0 %v3221_v61, %s2805_s24  ;;  %1190 = vrot.lane.b32.xlu1 %v3339_v6, %s2805_s24  ;;  %v338_v6 = vunpack.c.l.bf16 %v284_v44 }
  0x8f   : > { %1202 = vrot.lane.b32.xlu0 %v3317_v20, %s2804_s23  ;;  %1094 = vrot.lane.b32.xlu1 %v3235_v53, %s2805_s24 }
  0x93   : > { %1106 = vrot.lane.b32.xlu0 %v3245_v16, %s2804_s23  ;;  %1222 = vrot.lane.b32.xlu1 %v2802_v1, %s2804_s23  ;;  %v3382_v18 = vpop.permute.xlu0 %1194  ;;  %v457_v1 = vadd.f32 %v3326_v62, %v396_v24  ;;  %v617_v24 = vsel %vm509_vm5, %v455_v13, %v563_v42  ;;  %v861_v13 = vshll.u32 %v3397_v58, 16  ;;  %v618_v42 = vsel %vm510_vm6, %v456_v34, %v564_v63 }
  0x94   : > { %v3377_v25 = vpop.permute.xlu1 %1192  ;;  %v693_v44 = vsel %vm648_vm0, %v617_v24, 0.0  ;;  %v458_v16 = vadd.f32 %v3326_v62, %v397_v43  ;;  %v859_v34 = vor.u32 %v858_v37, %v854_v26  ;;  %v1006_v37 = vrot.slane %v3379_v28, 1 }
  0x95   : > { %v565_v2 = vmul.f32 0.01, %v457_v1  ;;  %vm511_vm7 = vcmp.gt.f32.partialorder %v457_v1, 0.0  ;;  %v863_v60 = vrot.slane %v861_v13, 1  ;;  %v3424_v15 = vpack.c.bf16 %v618_v42, %v693_v44 }
  0x96   : > { %v566_v43 = vmul.f32 0.01, %v458_v16  ;;  %v1007_v13 = vrot.slane %v3397_v58, 1  ;;  %vm512_vm13 = vcmp.gt.f32.partialorder %v458_v16, 0.0 }
  0x97   : > { %1234 = vrot.lane.b32.xlu0 %v3375_v22, %s2806_s28  ;;  %1126 = vrot.lane.b32.xlu1 %v3262_v59, %s2804_s23  ;;  %v619_v17 = vsel %vm511_vm7, %v457_v1, %v565_v2  ;;  %v1258_v1 = vsel %vm1256_vm9, 0.0|0.0, %v3355_v23  ;;  %v3444_v23 = vsel %vm756_vm11, %v859_v34, %v863_v60  ;;  %v868_v44 = vshll.u32 %v3424_v15, 16 }
  0x98   : > { %v3395_v55 = vpop.permute.xlu1 %1128  ;;  %v695_v2 = vsel %vm659_vm1, %v619_v17, 0.0  ;;  %v287_v17 = vld [vmem:[%s2874_s7 + $0x8c] sm:$0x1]  ;;  %v620_v12 = vsel %vm512_vm13, %v458_v16, %v566_v43  ;;  %v866_v60 = vshrl.u32 %v3424_v15, 16 }
  0x99   : > { %v3446_v42 = vpack.c.bf16 %v695_v2, %v695_v2  ;;  %v870_v2 = vrot.slane %v868_v44, 1 }
  0x9b   : > { %1138 = vrot.lane.b32.xlu0 %v3247_v19, %s2806_s28  ;;  %v1161_v59 = vpop.permute.xlu0 %1160  ;;  %1254 = vrot.lane.b32.xlu1 %v2856_v4, %s2806_s28  ;;  %v399_v4 = vmul.f32 %v3307_v48, %v338_v6  ;;  %v459_v6 = vadd.f32 %v3326_v62, %v398_v38 }
  0x9c   : > { %v3408_v31 = vpop.permute.xlu1 %1130  ;;  %v1373_v38 = vsel %vm1256_vm9, %v3057_v46, %v1161_v59  ;;  %v341_v46 = vunpack.c.l.bf16 %v287_v17  ;;  %v3457_v59 = vsel %vm981_vm8, %v1006_v37, %v1007_v13  ;;  %v401_v37 = vmul.f32 %v3307_v48, %v340_v10 }
  0x9d   : > { %v460_v24 = vadd.f32 %v3326_v62, %v399_v4  ;;  %v1291_v4 = vsel %vm1289_vm10, %v1258_v1, %v3350_v41  ;;  %vm513_vm14 = vcmp.gt.f32.partialorder %v459_v6, 0.0  ;;  %v567_v58 = vmul.f32 0.01, %v459_v6 }
  0x9e   : > { %v1420_v41 = vsel %vm1289_vm10, %v1373_v38, %v3377_v25  ;;  %v873_v1 = vshll.u32 %v3446_v42, 16  ;;  %v1324_v43 = vsel %vm1322_vm12, %v1291_v4, %v3395_v55 }
  0x9f   : > { %1172 = vrot.lane.b32.xlu0 %v3406_v49, %s2805_s24  ;;  %v1163_v50 = vpop.permute.xlu0 %1162  ;;  %1158 = vrot.lane.b32.xlu1 %v3264_v33, %s2806_s28  ;;  %v339_v33 = vunpack.c.l.bf16 %v285_v51  ;;  %v568_v40 = vmul.f32 0.01, %v460_v24  ;;  %vm514_vm15 = vcmp.gt.f32.partialorder %v460_v24, 0.0  ;;  %v621_v25 = vsel %vm513_vm14, %v459_v6, %v567_v58 }
  0xa0   : > { %v3422_v63 = vpop.permute.xlu1 %1098  ;;  %v1376_v16 = vsel %vm1256_vm9, %v3009_v3, %v1163_v50  ;;  %v402_v50 = vmul.f32 %v3307_v48, %v341_v46  ;;  %v875_v10 = vrot.slane %v873_v1, 1  ;;  %v1009_v58 = vrot.slane %v3424_v15, 1 }
  0xa1   : > { %v400_v32 = vmul.f32 %v3307_v48, %v339_v33  ;;  %v696_v33 = vsel %vm648_vm0, %v620_v12, 0.0  ;;  %v622_v17 = vsel %vm514_vm15, %v460_v24, %v568_v40  ;;  %v1422_v6 = vsel %vm1289_vm10, %v1376_v16, %v3382_v18 }
  0xa2   : > { %v871_v12 = vor.u32 %v870_v2, %v866_v60  ;;  %v698_v48 = vsel %vm659_vm1, %v622_v17, 0.0  ;;  %v462_v24 = vadd.f32 %v3326_v62, %v401_v37  ;;  %v463_v18 = vadd.f32 %v3326_v62, %v402_v50 }
  0xa3   : > { %1204 = vrot.lane.b32.xlu0 %v3379_v28, %s2804_s23  ;;  %v3434_v26 = vpop.permute.xlu0 %1164  ;;  %1076 = vrot.lane.b32.xlu1 %v3291_v21, %s2805_s24  ;;  %v461_v3 = vadd.f32 %v3326_v62, %v400_v32  ;;  %v3485_v32 = vpack.c.bf16 %v621_v25, %v696_v33 }
  0xa4   : > { %v3499_v46 = vsel %vm756_vm11, %v871_v12, %v875_v10  ;;  %v570_v60 = vmul.f32 0.01, %v462_v24  ;;  %vm516_vm3 = vcmp.gt.f32.partialorder %v462_v24, 0.0  ;;  %vm517_vm4 = vcmp.gt.f32.partialorder %v463_v18, 0.0 }
  0xa5   : > { %v569_v44 = vmul.f32 0.01, %v461_v3  ;;  %vm515_vm2 = vcmp.gt.f32.partialorder %v461_v3, 0.0  ;;  %v878_v2 = vshrl.u32 %v3485_v32, 16 }
  0xa6   : > { %v3451_v19 = vpop.permute.xlu1 %1184  ;;  %v624_v25 = vsel %vm516_vm3, %v462_v24, %v570_v60  ;;  %v1379_v24 = vsel %vm1256_vm9, %v3045_v36, %v3434_v26 }
  0xa7   : > { %1236 = vrot.lane.b32.xlu0 %v3444_v23, %s2806_s28  ;;  %v1225_v34 = vpop.permute.xlu0 %1224  ;;  %1108 = vrot.lane.b32.xlu1 %v3315_v30, %s2804_s23  ;;  %v623_v16 = vsel %vm515_vm2, %v461_v3, %v569_v44  ;;  %v1409_v60 = vsel %vm1256_vm9, %v3197_v56, %v3451_v19 }
  0xa8   : > { %v1452_v51 = vsel %vm1322_vm12, %v1420_v41, %v1225_v34  ;;  %v1010_v34 = vrot.slane %v3446_v42, 1  ;;  %v741_v41 = vpack.c.bf16 %v698_v48, %v698_v48  ;;  %v699_v33 = vsel %vm648_vm0, %v623_v16, 0.0 }
  0xa9   : > { %1730 = vmatprep.mubr.bf16.mxu0 %v1452_v51  ;;  %v571_v51 = vmul.f32 0.01, %v463_v18  ;;  %v3519_v50 = vpack.c.bf16 %v624_v25, %v699_v33  ;;  %vm2148_vm0 = vcmask 257024  }
  0xaa   : > { %1731 = vmatmul.mubr.bf16.vlgmr.msra.gmra.mrb[0].mxu0 %v1324_v43  ;;  %v1067_v13 = vpop.permute.xlu1 %1066  ;;  %v3510_v42 = vsel %vm981_vm8, %v1009_v58, %v1010_v34  ;;  %v885_v43 = vshll.u32 %v741_v41, 16  ;;  %v1013_v12 = vrot.slane %v741_v41, 1 }
  0xab   : > { %1174 = vrot.lane.b32.xlu0 %v3457_v59, %s2805_s24  ;;  %v1227_v38 = vpop.permute.xlu0 %1226  ;;  %v1260_v55 = vsel %vm1256_vm9, %v2941_v7, %v1067_v13  ;;  %1140 = vrot.lane.b32.xlu1 %v3317_v20, %s2806_s28  ;;  %v625_v13 = vsel %vm517_vm4, %v463_v18, %v571_v51  ;;  %v892_v48 = vshll.u32 %v3519_v50, 16  ;;  %v890_v44 = vshrl.u32 %v3519_v50, 16 }
  0xac   : > { %v1455_v40 = vsel %vm1322_vm12, %v1422_v6, %v1227_v38  ;;  %v1293_v7 = vsel %vm1289_vm10, %v1260_v55, %v3422_v63  ;;  %v880_v63 = vshll.u32 %v3485_v32, 16  ;;  %v887_v3 = vrot.slane %v885_v43, 1 }
  0xad   : > { %1738 = vmatprep.mubr.bf16.mxu0 %v1455_v40  ;;  %v1327_v62 = vsel %vm1322_vm12, %v1293_v7, %v3408_v31  ;;  %v701_v38 = vsel %vm659_vm1, %v625_v13, 0.0  ;;  %v1012_v6 = vrot.slane %v3485_v32, 1  ;;  %v894_v18 = vrot.slane %v892_v48, 1 }
  0xae   : > { %v882_v1 = vrot.slane %v880_v63, 1  ;;  %v743_v40 = vpack.c.bf16 %v701_v38, %v701_v38  ;;  %v1015_v19 = vrot.slane %v3519_v50, 1  ;;  %vm2351_vm1 = vcmask 1040384  }
  0xaf   : > { %1206 = vrot.lane.b32.xlu0 %v3424_v15, %s2804_s23  ;;  %v1069_v4 = vpop.permute.xlu0 %1068  ;;  %1078 = vrot.lane.b32.xlu1 %v3375_v22, %s2805_s24  ;;  %v3535_v11 = vsel %vm981_vm8, %v1012_v6, %v1013_v12  ;;  %v895_v26 = vor.u32 %v894_v18, %v890_v44 }
  0xb0   : > { %v883_v17 = vor.u32 %v882_v1, %v878_v2  ;;  %v897_v58 = vshll.u32 %v743_v40, 16  ;;  %v1262_v36 = vsel %vm1256_vm9, %v2927_v57, %v1069_v4  ;;  %v1016_v4 = vrot.slane %v743_v40, 1 }
  0xb2   : > { %1739 = vmatmul.mubr.bf16.gmra.mrb[4].mxu0 %v1327_v62  ;;  %v3529_v10 = vsel %vm756_vm11, %v883_v17, %v887_v3  ;;  %v899_v62 = vrot.slane %v897_v58, 1  ;;  %v2791_v3 = vld [vmem:[%s4044_s3 + $0x88] sm:$0xff]  }
  0xb3   : > { %1238 = vrot.lane.b32.xlu0 %v3499_v46, %s2806_s28  ;;  %1110 = vrot.lane.b32.xlu1 %v3406_v49, %s2804_s23  ;;  %v1197_v31 = vpop.permute.xlu0 %1196 }
  0xb4   : > { %v1424_v34 = vsel %vm1289_vm10, %v1379_v24, %v1197_v31  ;;  %v3563_v57 = vsel %vm756_vm11, %v895_v26, %v899_v62 }
  0xb6   : > { %v1089_v37 = vpop.permute.xlu1 %1088 }
  0xb7   : > { %1176 = vrot.lane.b32.xlu0 %v3510_v42, %s2805_s24  ;;  %1142 = vrot.lane.b32.xlu1 %v3379_v28, %s2806_s28  ;;  %v1101_v5 = vpop.permute.xlu0 %1100  ;;  %v1282_v25 = vsel %vm1256_vm9, %v3077_v14, %v1089_v37 }
  0xb8   : > { %v1295_v16 = vsel %vm1289_vm10, %v1262_v36, %v1101_v5 }
  0xba   : > { %v1217_v55 = vpop.permute.xlu1 %1216 }
  0xbb   : > { %1208 = vrot.lane.b32.xlu0 %v3485_v32, %s2804_s23  ;;  %1080 = vrot.lane.b32.xlu1 %v3444_v23, %s2805_s24  ;;  %v1444_v2 = vsel %vm1289_vm10, %v1409_v60, %v1217_v55  ;;  %v3578_v55 = vsel %vm981_vm8, %v1015_v19, %v1016_v4  ;;  %vm2357_vm8 = vcmask (!%p2502_p5), 254976  }
  0xbe   : > { %v1121_v7 = vpop.permute.xlu1 %1120 }
  0xbf   : > { %1240 = vrot.lane.b32.xlu0 %v3529_v10, %s2806_s28  ;;  %1112 = vrot.lane.b32.xlu1 %v3457_v59, %s2804_s23  ;;  %v1315_v13 = vsel %vm1289_vm10, %v1282_v25, %v1121_v7 }
  0xc1   : > { %v1229_v41 = vpop.permute.xlu0 %1228 }
  0xc2   : > { %v1458_v63 = vsel %vm1322_vm12, %v1424_v34, %v1229_v41 }
  0xc3   : > { %1178 = vrot.lane.b32.xlu0 %v3535_v11, %s2805_s24  ;;  %1746 = vmatprep.mubr.bf16.mxu0 %v1458_v63 }
  0xc4   : > { %1144 = vrot.lane.b32.xlu1 %v3424_v15, %s2806_s28 }
  0xc5   : > { %v1133_v51 = vpop.permute.xlu0 %1132  ;;  %v1249_v1 = vpop.permute.xlu1 %1248 }
  0xc6   : > { %v1330_v43 = vsel %vm1322_vm12, %v1295_v16, %v1133_v51  ;;  %v1488_v31 = vsel %vm1322_vm12, %v1444_v2, %v1249_v1 }
  0xc7   : > { %1210 = vrot.lane.b32.xlu0 %v3519_v50, %s2804_s23  ;;  %1747 = vmatmul.mubr.bf16.gmra.mrb[8].mxu0 %v1330_v43 }
  0xc8   : > { %1082 = vrot.lane.b32.xlu1 %v3499_v46, %s2805_s24  ;;  %1826 = vmatprep.mubr.bf16.mxu1 %v1488_v31 }
  0xc9   : > { %v1167_v33 = vpop.permute.xlu0 %1166  ;;  %v1153_v17 = vpop.permute.xlu1 %1152 }
  0xca   : > { %v1360_v38 = vsel %vm1322_vm12, %v1315_v13, %v1153_v17 }
  0xcb   : > { %1242 = vrot.lane.b32.xlu0 %v3563_v57, %s2806_s28  ;;  %1827 = vmatmul.mubr.bf16.vlgmr.msra.gmra.mrb[0].mxu1 %v1360_v38 }
  0xcc   : > { %1114 = vrot.lane.b32.xlu1 %v3510_v42, %s2804_s23  ;;  %2708 = vmatpush3.bf16.msra.mxu1 %v3368_v27  ;;  %v1382_v27 = vsel %vm1256_vm9, %v3137_v39, %v1167_v33 }
  0xcd   : > { %v1071_v37 = vpop.permute.xlu0 %1070  ;;  %v1187_v5 = vpop.permute.xlu1 %1186  ;;  %2709 = vmatprep.subr.bf16.mxu1 %v2791_v3 }
  0xce   : > { %v1264_v58 = vsel %vm1256_vm9, %v2919_v52, %v1071_v37  ;;  %v1412_v39 = vsel %vm1256_vm9, %v3153_v9, %v1187_v5 }
  0xcf   : > { %1180 = vrot.lane.b32.xlu0 %v3578_v55, %s2805_s24 }
  0xd0   : > { %1146 = vrot.lane.b32.xlu1 %v3485_v32, %s2806_s28  ;;  %2710 = vmatpush3.bf16.msra.mxu1 %v2791_v3 }
  0xd1   : > { %v1199_v6 = vpop.permute.xlu0 %1198  ;;  %v1091_v12 = vpop.permute.xlu1 %1090 }
  0xd2   : > { %v1426_v24 = vsel %vm1289_vm10, %v1382_v27, %v1199_v6  ;;  %v1284_v52 = vsel %vm1256_vm9, %v3006_v0, %v1091_v12 }
  0xd3   : > { %1212 = vrot.lane.b32.xlu0 %v3077_v14, %s2804_s23 }
  0xd4   : > { %1084 = vrot.lane.b32.xlu1 %v3529_v10, %s2805_s24 }
  0xd5   : > { %v1103_v40 = vpop.permute.xlu0 %1102  ;;  %v1219_v48 = vpop.permute.xlu1 %1218 }
  0xd6   : > { %v1297_v34 = vsel %vm1289_vm10, %v1264_v58, %v1103_v40  ;;  %v1446_v63 = vsel %vm1289_vm10, %v1412_v39, %v1219_v48 }
  0xd7   : > { %1244 = vrot.lane.b32.xlu0 %v3101_v45, %s2806_s28 }
  0xd8   : > { %1116 = vrot.lane.b32.xlu1 %v3535_v11, %s2804_s23 }
  0xd9   : > { %v1231_v7 = vpop.permute.xlu0 %1230  ;;  %v1123_v44 = vpop.permute.xlu1 %1122 }
  0xda   : > { %v1461_v18 = vsel %vm1322_vm12, %v1426_v24, %v1231_v7  ;;  %v1317_v60 = vsel %vm1289_vm10, %v1284_v52, %v1123_v44 }
  0xdb   : > { %1182 = vrot.lane.b32.xlu0 %v3113_v54, %s2805_s24  ;;  %1754 = vmatprep.mubr.bf16.mxu0 %v1461_v18 }
  0xdc   : > { %1148 = vrot.lane.b32.xlu1 %v3519_v50, %s2806_s28 }
  0xdd   : > { %v1135_v41 = vpop.permute.xlu0 %1134  ;;  %v1251_v36 = vpop.permute.xlu1 %1250 }
  0xde   : > { %v1333_v26 = vsel %vm1322_vm12, %v1297_v34, %v1135_v41  ;;  %v1491_v62 = vsel %vm1322_vm12, %v1446_v63, %v1251_v36 }
  0xdf   : > { %1214 = vrot.lane.b32.xlu0 %v3006_v0, %s2804_s23  ;;  %1755 = vmatmul.mubr.bf16.gmra.mrb[12].mxu0 %v1333_v26 }
  0xe0   : > { %1086 = vrot.lane.b32.xlu1 %v3563_v57, %s2805_s24  ;;  %1834 = vmatprep.mubr.bf16.mxu1 %v1491_v62 }
  0xe1   : > { %v1169_v9 = vpop.permute.xlu0 %1168  ;;  %v1155_v16 = vpop.permute.xlu1 %1154 }
  0xe2   : > { %v1363_v51 = vsel %vm1322_vm12, %v1317_v60, %v1155_v16  ;;  %v1385_v4 = vsel %vm1256_vm9, %v3221_v61, %v1169_v9 }
  0xe3   : > { %1246 = vrot.lane.b32.xlu0 %v3197_v56, %s2806_s28  ;;  %1835 = vmatmul.mubr.bf16.gmra.mrb[4].mxu1 %v1363_v51  ;;  %v4070_v51 = vld [vmem:[#allocation7_spill] sm:$0xff] }
  0xe4   : > { %1118 = vrot.lane.b32.xlu1 %v3578_v55, %s2804_s23  ;;  %s2431_s23 = sshll.u32 %s2849_s22, 5 }
  0xe5   : > { %v1073_v2 = vpop.permute.xlu0 %1072  ;;  %v1189_v1 = vpop.permute.xlu1 %1188  ;;  %p246_p4 = scmp.lt.s32.totalorder %s2431_s23, 63 }
  0xe6   : > { %v1266_v17 = vsel %vm1256_vm9, %v3089_v29, %v1073_v2 }
  0xe7   : > { %s4082_s23 = smov (!%p246_p4, %s2431_s23), 63 }
  0xe8   : > { %1150 = vrot.lane.b32.xlu1 %v3077_v14, %s2806_s28  ;;  %v1415_v14 = vsel %vm1256_vm9, %v3235_v53, %v1189_v1  ;;  %s2432_s13 = sshll.u32 %s4082_s23, 2 }
  0xe9   : > { %v1201_v43 = vpop.permute.xlu0 %1200  ;;  %v1093_v0 = vpop.permute.xlu1 %1092  ;;  %s3784_s16 = scalar_lea.vmem %s4046_s5, %s2432_s13 }
  0xea   : > { %v1428_v25 = vsel %vm1289_vm10, %v1385_v4, %v1201_v43  ;;  %v1286_v12 = vsel %vm1256_vm9, %v3103_v47, %v1093_v0 }
  0xed   : > { %v1105_v31 = vpop.permute.xlu0 %1104  ;;  %v1221_v19 = vpop.permute.xlu1 %1220 }
  0xee   : > { %v1299_v3 = vsel %vm1289_vm10, %v1266_v17, %v1105_v31  ;;  %v1448_v37 = vsel %vm1289_vm10, %v1415_v14, %v1221_v19  ;;  %v4071_v31 = vld [vmem:[#allocation3_spill] sm:$0xff]  ;;  %v4072_v17 = vld [vmem:[#allocation4_spill] sm:$0xff]  ;;  %v4073_v14 = vld [vmem:[#allocation10_spill] sm:$0xff] }
  0xf1   : > { %v1233_v33 = vpop.permute.xlu0 %1232  ;;  %v1125_v56 = vpop.permute.xlu1 %1124 }
  0xf2   : > { %v1464_v13 = vsel %vm1322_vm12, %v1428_v25, %v1233_v33  ;;  %v1319_v29 = vsel %vm1289_vm10, %v1286_v12, %v1125_v56 }
  0xf3   : > { %1762 = vmatprep.mubr.bf16.mxu0 %v1464_v13 }
  0xf5   : > { %v1137_v38 = vpop.permute.xlu0 %1136  ;;  %v1253_v5 = vpop.permute.xlu1 %1252 }
  0xf6   : > { %v1336_v61 = vsel %vm1322_vm12, %v1299_v3, %v1137_v38  ;;  %v1494_v6 = vsel %vm1322_vm12, %v1448_v37, %v1253_v5  ;;  %v4074_v37 = vld [vmem:[#allocation6_spill] sm:$0xff] }
  0xf7   : > { %1763 = vmatmul.mubr.bf16.gmra.mrb[16].mxu0 %v1336_v61  ;;  %1842 = vmatprep.mubr.bf16.mxu1 %v1494_v6 }
  0xf9   : > { %v1171_v40 = vpop.permute.xlu0 %1170  ;;  %v1157_v48 = vpop.permute.xlu1 %1156 }
  0xfa   : > { %v1366_v53 = vsel %vm1322_vm12, %v1319_v29, %v1157_v48  ;;  %v1388_v39 = vsel %vm1256_vm9, %v3291_v21, %v1171_v40  ;;  %v4075_v29 = vld [vmem:[#allocation9_spill] sm:$0xff] }
  0xfb   : > { %1843 = vmatmul.mubr.bf16.gmra.mrb[8].mxu1 %v1366_v53 }
  0xfd   : > { %v1075_v27 = vpop.permute.xlu0 %1074  ;;  %v1191_v24 = vpop.permute.xlu1 %1190 }
  0xfe   : > { %v1268_v36 = vsel %vm1256_vm9, %v3150_v8, %v1075_v27  ;;  %v1418_v26 = vsel %vm1256_vm9, %v3300_v35, %v1191_v24 }
 0x101   : > { %v1203_v7 = vpop.permute.xlu0 %1202  ;;  %v1095_v44 = vpop.permute.xlu1 %1094 }
 0x102   : > { %v1430_v34 = vsel %vm1289_vm10, %v1388_v39, %v1203_v7  ;;  %v1288_v2 = vsel %vm1256_vm9, %v4070_v51, %v1095_v44 }
 0x105   : > { %v1107_v18 = vpop.permute.xlu0 %1106  ;;  %v1223_v58 = vpop.permute.xlu1 %1222 }
 0x106   : > { %v1301_v62 = vsel %vm1289_vm10, %v1268_v36, %v1107_v18  ;;  %v1450_v9 = vsel %vm1289_vm10, %v1418_v26, %v1223_v58 }
 0x109   : > { %v1235_v41 = vpop.permute.xlu0 %1234  ;;  %v1127_v47 = vpop.permute.xlu1 %1126 }
 0x10a   : > { %v1467_v63 = vsel %vm1322_vm12, %v1430_v34, %v1235_v41  ;;  %v1321_v8 = vsel %vm1289_vm10, %v1288_v2, %v1127_v47 }
 0x10b   : > { %1770 = vmatprep.mubr.bf16.mxu0 %v1467_v63 }
 0x10d   : > { %v1139_v52 = vpop.permute.xlu0 %1138  ;;  %v1255_v60 = vpop.permute.xlu1 %1254 }
 0x10e   : > { %v1339_v21 = vsel %vm1322_vm12, %v1301_v62, %v1139_v52  ;;  %v1497_v16 = vsel %vm1322_vm12, %v1450_v9, %v1255_v60 }
 0x10f   : > { %1771 = vmatmul.mubr.bf16.gmra.mrb[20].mxu0 %v1339_v21  ;;  %1850 = vmatprep.mubr.bf16.mxu1 %v1497_v16 }
 0x111   : > { %v1173_v1 = vpop.permute.xlu0 %1172  ;;  %v1159_v43 = vpop.permute.xlu1 %1158 }
 0x112   : > { %v1369_v35 = vsel %vm1322_vm12, %v1321_v8, %v1159_v43  ;;  %v1391_v4 = vsel %vm1256_vm9, %v3375_v22, %v1173_v1  ;;  %v4077_v8 = vld [vmem:[#allocation8_spill] sm:$0xff] }
 0x113   : > { %1851 = vmatmul.mubr.bf16.gmra.mrb[12].mxu1 %v1369_v35 }
 0x114   : > { %2711 = vmatprep.mubr.msk.bf16.mxu1 %vm1256_vm9, %v4071_v31 }
 0x115   : > { %v1205_v0 = vpop.permute.xlu0 %1204  ;;  %v1077_v19 = vpop.permute.xlu1 %1076 }
 0x116   : > { %v1432_v25 = vsel %vm1289_vm10, %v1391_v4, %v1205_v0  ;;  %v1270_v3 = vsel %vm1256_vm9, %v4073_v14, %v1077_v19  ;;  %v4078_v19 = vld [vmem:[#allocation11_spill] sm:$0xff] }
 0x119   : > { %v1237_v33 = vpop.permute.xlu0 %1236  ;;  %v1109_v56 = vpop.permute.xlu1 %1108 }
 0x11a   : > { %v1470_v13 = vsel %vm1322_vm12, %v1432_v25, %v1237_v33  ;;  %v1303_v5 = vsel %vm1289_vm10, %v1270_v3, %v1109_v56  ;;  %v4079_v33 = vld [vmem:[#allocation12_spill] sm:$0xff] }
 0x11b   : > { %1778 = vmatprep.mubr.bf16.mxu0 %v1470_v13  ;;  %2712 = vmatmul.mubr.msk.bf16.vlgmr.msra.gmra.mrb[16].mxu1 %vm1256_vm9, %v4072_v17 }
 0x11c   : > { %2715 = vmatprep.mubr.msk.bf16.mxu1 %vm1256_vm9, %v4074_v37 }
 0x11d   : > { %v1175_v38 = vpop.permute.xlu0 %1174  ;;  %v1141_v22 = vpop.permute.xlu1 %1140 }
 0x11e   : > { %v1342_v61 = vsel %vm1322_vm12, %v1303_v5, %v1141_v22  ;;  %v1394_v40 = vsel %vm1256_vm9, %v3444_v23, %v1175_v38  ;;  %v4080_v38 = vld [vmem:[#allocation2_spill] sm:$0xff] }
 0x11f   : > { %1779 = vmatmul.mubr.bf16.gmra.mrb[24].mxu0 %v1342_v61 }
 0x121   : > { %v1207_v6 = vpop.permute.xlu0 %1206  ;;  %v1079_v12 = vpop.permute.xlu1 %1078 }
 0x122   : > { %v1434_v48 = vsel %vm1289_vm10, %v1394_v40, %v1207_v6  ;;  %v1272_v7 = vsel %vm1256_vm9, %v3317_v20, %v1079_v12 }
 0x123   : > { %2716 = vmatmul.mubr.msk.bf16.gmra.mrb[20].mxu1 %vm1256_vm9, %v4075_v29 }
 0x124   : > { %2719 = vmatprep.mubr.msk.bf16.mxu1 %vm1256_vm9, %v3315_v30 }
 0x125   : > { %v1239_v53 = vpop.permute.xlu0 %1238  ;;  %v1111_v27 = vpop.permute.xlu1 %1110 }
 0x126   : > { %v1473_v24 = vsel %vm1322_vm12, %v1434_v48, %v1239_v53  ;;  %v1305_v18 = vsel %vm1289_vm10, %v1272_v7, %v1111_v27 }
 0x127   : > { %1786 = vmatprep.mubr.bf16.mxu0 %v1473_v24 }
 0x129   : > { %v1177_v44 = vpop.permute.xlu0 %1176  ;;  %v1143_v23 = vpop.permute.xlu1 %1142 }
 0x12a   : > { %v1345_v58 = vsel %vm1322_vm12, %v1305_v18, %v1143_v23  ;;  %v1397_v34 = vsel %vm1256_vm9, %v3499_v46, %v1177_v44 }
 0x12b   : > { %2720 = vmatmul.mubr.msk.bf16.gmra.mrb[24].mxu1 %vm1256_vm9, %v3406_v49  ;;  %1787 = vmatmul.mubr.bf16.gmra.mrb[28].mxu0 %v1345_v58 }
 0x12c   : > { %2723 = vmatprep.mubr.msk.bf16.mxu1 %vm1256_vm9, %v3457_v59 }
 0x12d   : > { %v1209_v39 = vpop.permute.xlu0 %1208  ;;  %v1081_v30 = vpop.permute.xlu1 %1080 }
 0x12e   : > { %v1436_v20 = vsel %vm1289_vm10, %v1397_v34, %v1209_v39  ;;  %v1274_v49 = vsel %vm1256_vm9, %v3379_v28, %v1081_v30 }
 0x131   : > { %v1241_v41 = vpop.permute.xlu0 %1240  ;;  %v1113_v47 = vpop.permute.xlu1 %1112 }
 0x132   : > { %v1476_v63 = vsel %vm1322_vm12, %v1436_v20, %v1241_v41  ;;  %v1307_v59 = vsel %vm1289_vm10, %v1274_v49, %v1113_v47 }
 0x133   : > { %1794 = vmatprep.mubr.bf16.mxu0 %v1476_v63  ;;  %2724 = vmatmul.mubr.msk.bf16.gmra.mrb[28].mxu1 %vm1256_vm9, %v3510_v42 }
 0x134   : > { %2727 = vmatprep.mubr.msk.bf16.mxu1 %vm1256_vm9, %v3535_v11 }
 0x135   : > { %v1179_v36 = vpop.permute.xlu0 %1178 }
 0x136   : > { %v1145_v46 = vpop.permute.xlu1 %1144  ;;  %v1400_v9 = vsel %vm1256_vm9, %v3529_v10, %v1179_v36 }
 0x137   : > { %v1348_v26 = vsel %vm1322_vm12, %v1307_v59, %v1145_v46 }
 0x138   : > { %1795 = vmatmul.mubr.bf16.gmra.mrb[32].mxu0 %v1348_v26 }
 0x139   : > { %v1211_v62 = vpop.permute.xlu0 %1210 }
 0x13a   : > { %v1083_v52 = vpop.permute.xlu1 %1082  ;;  %v1438_v28 = vsel %vm1289_vm10, %v1400_v9, %v1211_v62 }
 0x13b   : > { %2728 = vmatmul.mubr.msk.bf16.gmra.mrb[32].mxu1 %vm1256_vm9, %v3578_v55  ;;  %v1276_v21 = vsel %vm1256_vm9, %v3424_v15, %v1083_v52  ;;  %v4076_v55 = vld [vmem:[#allocation5_spill] sm:$0xff] }
 0x13c   : > { %2731 = vmatprep.mubr.msk.bf16.mxu1 %vm1256_vm9, %v3113_v54 }
 0x13d   : > { %v1243_v42 = vpop.permute.xlu0 %1242 }
 0x13e   : > { %v1115_v11 = vpop.permute.xlu1 %1114  ;;  %v1479_v60 = vsel %vm1322_vm12, %v1438_v28, %v1243_v42 }
 0x13f   : > { %1802 = vmatprep.mubr.bf16.mxu0 %v1479_v60  ;;  %v1309_v51 = vsel %vm1289_vm10, %v1276_v21, %v1115_v11 }
 0x141   : > { %v1181_v16 = vpop.permute.xlu0 %1180 }
 0x142   : > { %v1147_v10 = vpop.permute.xlu1 %1146  ;;  %v1403_v43 = vsel %vm1256_vm9, %v3563_v57, %v1181_v16 }
 0x143   : > { %v1351_v2 = vsel %vm1322_vm12, %v1309_v51, %v1147_v10  ;;  %2732 = vmatmul.mubr.msk.bf16.gmra.mrb[36].mxu1 %vm1256_vm9, %v4076_v55 }
 0x144   : > { %1803 = vmatmul.mubr.bf16.gmra.mrb[36].mxu0 %v1351_v2  ;;  %2735 = vmatprep.mubr.msk.bf16.mxu1 %vm1256_vm9, %v4077_v8 }
 0x145   : > { %v1213_v1 = vpop.permute.xlu0 %1212 }
 0x146   : > { %v1085_v54 = vpop.permute.xlu1 %1084  ;;  %v1440_v15 = vsel %vm1289_vm10, %v1403_v43, %v1213_v1 }
 0x147   : > { %v1278_v4 = vsel %vm1256_vm9, %v3485_v32, %v1085_v54 }
 0x149   : > { %v1245_v35 = vpop.permute.xlu0 %1244 }
 0x14a   : > { %v1117_v0 = vpop.permute.xlu1 %1116  ;;  %v1482_v31 = vsel %vm1322_vm12, %v1440_v15, %v1245_v35 }
 0x14b   : > { %1810 = vmatprep.mubr.bf16.mxu0 %v1482_v31  ;;  %2736 = vmatmul.mubr.msk.bf16.gmra.mrb[40].mxu1 %vm1256_vm9, %v4078_v19  ;;  %v1311_v56 = vsel %vm1289_vm10, %v1278_v4, %v1117_v0 }
 0x14c   : > { %2739 = vmatprep.mubr.msk.bf16.mxu1 %vm1256_vm9, %v4079_v33 }
 0x14d   : > { %v1183_v25 = vpop.permute.xlu0 %1182 }
 0x14e   : > { %v1149_v57 = vpop.permute.xlu1 %1148  ;;  %v1406_v3 = vsel %vm1256_vm9, %v3101_v45, %v1183_v25 }
 0x14f   : > { %v1354_v13 = vsel %vm1322_vm12, %v1311_v56, %v1149_v57 }
 0x150   : > { %1811 = vmatmul.mubr.bf16.gmra.mrb[40].mxu0 %v1354_v13 }
 0x151   : > { %v1215_v17 = vpop.permute.xlu0 %1214 }
 0x152   : > { %v1087_v14 = vpop.permute.xlu1 %1086  ;;  %v1442_v32 = vsel %vm1289_vm10, %v1406_v3, %v1215_v17 }
 0x153   : > { %2740 = vmatmul.mubr.msk.bf16.gmra.mrb[44].mxu1 %vm1256_vm9, %v4080_v38  ;;  %v1280_v61 = vsel %vm1256_vm9, %v3519_v50, %v1087_v14 }
 0x155   : > { %v1247_v37 = vpop.permute.xlu0 %1246 }
 0x156   : > { %v1119_v5 = vpop.permute.xlu1 %1118  ;;  %v1485_v22 = vsel %vm1322_vm12, %v1442_v32, %v1247_v37 }
 0x157   : > { %1818 = vmatprep.mubr.bf16.mxu0 %v1485_v22  ;;  %v1313_v6 = vsel %vm1289_vm10, %v1280_v61, %v1119_v5  ;;  %v3775_v61 = vld [vmem:[%s4045_s4] ss:$0 sm:$0xff] }
 0x15a   : > { %v1151_v12 = vpop.permute.xlu1 %1150 }
 0x15b   : > { %v1357_v40 = vsel %vm1322_vm12, %v1313_v6, %v1151_v12 }
 0x15c   : > { %1819 = vmatmul.mubr.bf16.gmra.mrb[44].mxu0 %v1357_v40 }
 0x17d   : > { %v2593_v45 = vpop.f32.mrb[0].mxu0 }
 0x17e   : > { %v2594_v29 = vpop.f32.mrb[1].mxu0 }
 0x17f   : > { %v3735_v48 = vadd.f32 %v2594_v29, %v2593_v45  ;;  %v2596_v53 = vpop.f32.mrb[2].mxu0 }
 0x180   : > { %v2597_v27 = vpop.f32.mrb[3].mxu0 }
 0x181   : > { %v3737_v24 = vadd.f32 %v2597_v27, %v2596_v53  ;;  %v1733_v40 = vadd.f32 %v3735_v48, %v3775_v61 }
 0x185   : > { %v2599_v7 = vpop.f32.mrb[4].mxu0 }
 0x186   : > { %v2600_v44 = vpop.f32.mrb[5].mxu0 }
 0x187   : > { %v2601_v18 = vadd.f32 %v2600_v44, %v2599_v7  ;;  %v2602_v23 = vpop.f32.mrb[6].mxu0  ;;  %v1736_v44 = vadd.f32 %v3737_v24, %v3775_v61 }
 0x188   : > { %v2603_v58 = vpop.f32.mrb[7].mxu0 }
 0x189   : > { %v2604_v50 = vadd.f32 %v2603_v58, %v2602_v23  ;;  %v1741_v6 = vadd.f32 %v2601_v18, %v3775_v61 }
 0x18b   : > { %v1744_v53 = vadd.f32 %v2604_v50, %v3775_v61 }
 0x19a   : > { %v2605_v39 = vpop.f32.mrb[8].mxu0 }
 0x19b   : > { %v2606_v30 = vpop.f32.mrb[9].mxu0 }
 0x19c   : > { %v3739_v34 = vadd.f32 %v2606_v30, %v2605_v39  ;;  %v2608_v20 = vpop.f32.mrb[10].mxu0 }
 0x19d   : > { %v2609_v41 = vpop.f32.mrb[11].mxu0 }
 0x19e   : > { %v3741_v47 = vadd.f32 %v2609_v41, %v2608_v20  ;;  %v2665_v63 = vpop.f32.mrb[0].mxu1 }
 0x19f   : > { %v2666_v49 = vpop.f32.mrb[1].mxu1 }
 0x1a0   : > { %v3743_v36 = vadd.f32 %v2666_v49, %v2665_v63  ;;  %v2668_v59 = vpop.f32.mrb[2].mxu1  ;;  %v1749_v49 = vadd.f32 %v3739_v34, %v3775_v61 }
 0x1a1   : > { %v2669_v46 = vpop.f32.mrb[3].mxu1 }
 0x1a2   : > { %v3745_v26 = vadd.f32 %v2669_v46, %v2668_v59 }
 0x1b2   : > { %v2611_v62 = vpop.f32.mrb[12].mxu0 }
 0x1b3   : > { %v2612_v52 = vpop.f32.mrb[13].mxu0 }
 0x1b4   : > { %v3747_v9 = vadd.f32 %v2612_v52, %v2611_v62  ;;  %v2614_v28 = vpop.f32.mrb[14].mxu0 }
 0x1b5   : > { %v2615_v42 = vpop.f32.mrb[15].mxu0 }
 0x1b6   : > { %v3749_v11 = vadd.f32 %v2615_v42, %v2614_v28  ;;  %v2671_v60 = vpop.f32.mrb[4].mxu1 }
 0x1b7   : > { %v2672_v21 = vpop.f32.mrb[5].mxu1 }
 0x1b8   : > { %v3751_v16 = vadd.f32 %v2672_v21, %v2671_v60  ;;  %v2674_v51 = vpop.f32.mrb[6].mxu1 }
 0x1b9   : > { %v2675_v10 = vpop.f32.mrb[7].mxu1 }
 0x1ba   : > { %v3753_v2 = vadd.f32 %v2675_v10, %v2674_v51  ;;  %v1757_v51 = vadd.f32 %v3747_v9, %v3775_v61  ;;  %v1760_v9 = vadd.f32 %v3749_v11, %v3775_v61 }
 0x1ca   : > { %v2617_v55 = vpop.f32.mrb[16].mxu0 }
 0x1cb   : > { %v2618_v1 = vpop.f32.mrb[17].mxu0 }
 0x1cc   : > { %v3755_v8 = vadd.f32 %v2618_v1, %v2617_v55  ;;  %v2620_v54 = vpop.f32.mrb[18].mxu0 }
 0x1cd   : > { %v2621_v43 = vpop.f32.mrb[19].mxu0 }
 0x1ce   : > { %v3757_v15 = vadd.f32 %v2621_v43, %v2620_v54  ;;  %v2677_v35 = vpop.f32.mrb[8].mxu1 }
 0x1cf   : > { %v2678_v0 = vpop.f32.mrb[9].mxu1 }
 0x1d0   : > { %v3759_v31 = vadd.f32 %v2678_v0, %v2677_v35  ;;  %v2680_v19 = vpop.f32.mrb[10].mxu1 }
 0x1d1   : > { %v2681_v4 = vpop.f32.mrb[11].mxu1 }
 0x1d2   : > { %v3761_v25 = vadd.f32 %v2681_v4, %v2680_v19 }
 0x1e2   : > { %v2623_v33 = vpop.f32.mrb[20].mxu0 }
 0x1e3   : > { %v2624_v56 = vpop.f32.mrb[21].mxu0 }
 0x1e4   : > { %v3764_v57 = vadd.f32 %v2624_v56, %v2623_v33  ;;  %v2626_v13 = vpop.f32.mrb[22].mxu0 }
 0x1e5   : > { %v2627_v17 = vpop.f32.mrb[23].mxu0 }
 0x1e6   : > { %v3766_v14 = vadd.f32 %v2627_v17, %v2626_v13  ;;  %v2683_v3 = vpop.f32.mrb[12].mxu1  ;;  %v1752_v13 = vadd.f32 %v3741_v47, %v3775_v61 }
 0x1e7   : > { %v2684_v38 = vpop.f32.mrb[13].mxu1 }
 0x1e8   : > { %v3768_v32 = vadd.f32 %v2684_v38, %v2683_v3  ;;  %v2686_v37 = vpop.f32.mrb[14].mxu1 }
 0x1e9   : > { %v2687_v5 = vpop.f32.mrb[15].mxu1 }
 0x1ea   : > { %v3770_v22 = vadd.f32 %v2687_v5, %v2686_v37 }
 0x1ee   : > { %v2713_v12 = vpop.f32.mrb[16].mxu1 }
 0x1ef   : > { %v1902_v45 = vadd.f32 %v2713_v12, %v1741_v6  ;;  %v1893_v29 = vpop.f32.mrb[17].mxu1 }
 0x1f0   : > { %v1894_v27 = vadd.f32 %v1893_v29, %v1733_v40  ;;  %v2714_v7 = vpop.f32.mrb[18].mxu1 }
 0x1f1   : > { %v2507_v18 = vpack.c.bf16 %v1902_v45, %v1902_v45  ;;  %v1905_v23 = vadd.f32 %v2714_v7, %v1744_v53  ;;  %v1896_v48 = vpop.f32.mrb[19].mxu1  ;;  %v2252_v20 = vmul.f32 %v1902_v45, %v1902_v45  ;;  %v2184_v34 = vsel %vm1256_vm9, %v1902_v45, 0.0 }
 0x1f2   : > { %v2505_v58 = vpack.c.bf16 %v1894_v27, %v1894_v27  ;;  %v2250_v39 = vmul.f32 %v1894_v27, %v1894_v27  ;;  %v1897_v50 = vadd.f32 %v1896_v48, %v1736_v44  ;;  %v2629_v30 = vpop.f32.mrb[24].mxu0  ;;  %v2181_v24 = vsel %vm1256_vm9, %v1894_v27, 0.0 }
 0x1f3   : > { %2151 = vst.msk [vmem:[%s3784_s16 + $0x8] sm:$0xf] %vm2148_vm0, %v2507_v18  ;;  %v2508_v41 = vpack.c.bf16 %v1905_v23, %v1905_v23  ;;  %v2630_v63 = vpop.f32.mrb[25].mxu0  ;;  %v2253_v28 = vmul.f32 %v1905_v23, %v1905_v23  ;;  %v2285_v4 = vsel %vm1256_vm9, %v2252_v20, 0.0  ;;  %v2186_v17 = vsel %vm1256_vm9, %v1905_v23, 0.0 }
 0x1f4   : > { %2149 = vst.msk [vmem:[%s3784_s16] sm:$0xf] %vm2148_vm0, %v2505_v58  ;;  %v2506_v59 = vpack.c.bf16 %v1897_v50, %v1897_v50  ;;  %v2182_v46 = vsel %vm1256_vm9, %v1897_v50, 0.0  ;;  %v2251_v62 = vmul.f32 %v1897_v50, %v1897_v50  ;;  %v2632_v52 = vpop.f32.mrb[26].mxu0  ;;  %v2631_v60 = vadd.f32 %v2630_v63, %v2629_v30 }
 0x1f5   : > { %2152 = vst.msk [vmem:[%s3784_s16 + $0xc] sm:$0xf] %vm2148_vm0, %v2508_v41  ;;  %v2183_v42 = vadd.f32 %v2182_v46, %v2181_v24  ;;  %v2633_v21 = vpop.f32.mrb[27].mxu0  ;;  %v2282_v10 = vsel %vm1256_vm9, %v2250_v39, 0.0  ;;  %v2287_v3 = vsel %vm1256_vm9, %v2253_v28, 0.0  ;;  %v1765_v7 = vadd.f32 %v3755_v8, %v3775_v61 }
 0x1f6   : > { %2150 = vst.msk [vmem:[%s3784_s16 + $0x4] sm:$0xf] %vm2148_vm0, %v2506_v59  ;;  %v2283_v55 = vsel %vm1256_vm9, %v2251_v62, 0.0  ;;  %v3805_v1 = vadd.f32 %v2633_v21, %v2632_v52  ;;  %v2717_v54 = vpop.f32.mrb[20].mxu1  ;;  %v1768_v44 = vadd.f32 %v3757_v15, %v3775_v61  ;;  %v1773_v58 = vadd.f32 %v3764_v57, %v3775_v61 }
 0x1f7   : > { %v2185_v43 = vadd.f32 %v2184_v34, %v2183_v42  ;;  %v2284_v35 = vadd.f32 %v2283_v55, %v2282_v10  ;;  %v1918_v0 = vadd.f32 %v2717_v54, %v1757_v51  ;;  %v1909_v19 = vpop.f32.mrb[21].mxu1  ;;  %v1776_v63 = vadd.f32 %v3766_v14, %v3775_v61 }
 0x1f8   : > { %v1910_v33 = vadd.f32 %v1909_v19, %v1749_v49  ;;  %v2718_v56 = vpop.f32.mrb[22].mxu1  ;;  %v1781_v46 = vadd.f32 %v2631_v60, %v3775_v61 }
 0x1f9   : > { %v2286_v38 = vadd.f32 %v2285_v4, %v2284_v35  ;;  %v2511_v37 = vpack.c.bf16 %v1918_v0, %v1918_v0  ;;  %v1912_v5 = vpop.f32.mrb[23].mxu1  ;;  %v2187_v12 = vadd.f32 %v2186_v17, %v2185_v43  ;;  %v1921_v29 = vadd.f32 %v2718_v56, %v1760_v9 }
 0x1fa   : > { %v2509_v6 = vpack.c.bf16 %v1910_v33, %v1910_v33  ;;  %v2188_v40 = vsel %vm1256_vm9, %v1910_v33, 0.0  ;;  %v2254_v45 = vmul.f32 %v1910_v33, %v1910_v33  ;;  %v1913_v53 = vadd.f32 %v1912_v5, %v1752_v13 }
 0x1fb   : > { %2155 = vst.msk [vmem:[%s3784_s16 + $0x18] sm:$0xf] %vm2148_vm0, %v2511_v37  ;;  %v2288_v11 = vadd.f32 %v2287_v3, %v2286_v38  ;;  %v2189_v47 = vadd.f32 %v2188_v40, %v2187_v12  ;;  %v2256_v18 = vmul.f32 %v1918_v0, %v1918_v0  ;;  %v2512_v48 = vpack.c.bf16 %v1921_v29, %v1921_v29 }
 0x1fc   : > { %2153 = vst.msk [vmem:[%s3784_s16 + $0x10] sm:$0xf] %vm2148_vm0, %v2509_v6  ;;  %v2289_v27 = vsel %vm1256_vm9, %v2254_v45, 0.0  ;;  %v2510_v39 = vpack.c.bf16 %v1913_v53, %v1913_v53  ;;  %v2190_v50 = vsel %vm1256_vm9, %v1913_v53, 0.0  ;;  %v2255_v30 = vmul.f32 %v1913_v53, %v1913_v53 }
 0x1fd   : > { %v2290_v23 = vadd.f32 %v2289_v27, %v2288_v11  ;;  %v2192_v8 = vsel %vm1256_vm9, %v1918_v0, 0.0  ;;  %2156 = vst.msk [vmem:[%s3784_s16 + $0x1c] sm:$0xf] %vm2148_vm0, %v2512_v48  ;;  %v2191_v15 = vadd.f32 %v2190_v50, %v2189_v47  ;;  %v2257_v57 = vmul.f32 %v1921_v29, %v1921_v29 }
 0x1fe   : > { %v2721_v20 = vpop.f32.mrb[24].mxu1  ;;  %v2635_v41 = vpop.f32.mrb[28].mxu0  ;;  %2154 = vst.msk [vmem:[%s3784_s16 + $0x14] sm:$0xf] %vm2148_vm0, %v2510_v39  ;;  %v2291_v62 = vsel %vm1256_vm9, %v2255_v30, 0.0  ;;  %v2293_v21 = vsel %vm1256_vm9, %v2256_v18, 0.0 }
 0x1ff   : > { %v1934_v49 = vadd.f32 %v2721_v20, %v1773_v58  ;;  %v1925_v24 = vpop.f32.mrb[25].mxu1  ;;  %v2636_v59 = vpop.f32.mrb[29].mxu0  ;;  %v2193_v51 = vadd.f32 %v2192_v8, %v2191_v15  ;;  %v2292_v34 = vadd.f32 %v2291_v62, %v2290_v23  ;;  %v2194_v60 = vsel %vm1256_vm9, %v1921_v29, 0.0 }
 0x200   : > { %v1926_v52 = vadd.f32 %v1925_v24, %v1765_v7  ;;  %v2637_v28 = vadd.f32 %v2636_v59, %v2635_v41  ;;  %v2722_v42 = vpop.f32.mrb[26].mxu1  ;;  %v2638_v14 = vpop.f32.mrb[30].mxu0  ;;  %v2295_v56 = vsel %vm1256_vm9, %v2257_v57, 0.0  ;;  %v1784_v29 = vadd.f32 %v3805_v1, %v3775_v61 }
 0x201   : > { %v2515_v10 = vpack.c.bf16 %v1934_v49, %v1934_v49  ;;  %v1928_v55 = vpop.f32.mrb[27].mxu1  ;;  %v2639_v54 = vpop.f32.mrb[31].mxu0  ;;  %v2294_v19 = vadd.f32 %v2293_v21, %v2292_v34  ;;  %v2195_v4 = vadd.f32 %v2194_v60, %v2193_v51  ;;  %v1937_v33 = vadd.f32 %v2722_v42, %v1776_v63 }
 0x202   : > { %v2513_v43 = vpack.c.bf16 %v1926_v52, %v1926_v52  ;;  %v2196_v35 = vsel %vm1256_vm9, %v1926_v52, 0.0  ;;  %v2258_v0 = vmul.f32 %v1926_v52, %v1926_v52  ;;  %v1929_v9 = vadd.f32 %v1928_v55, %v1768_v44 }
 0x203   : > { %2159 = vst.msk [vmem:[%s3784_s16 + $0x28] sm:$0xf] %vm2148_vm0, %v2515_v10  ;;  %v2260_v13 = vmul.f32 %v1934_v49, %v1934_v49  ;;  %v2640_v3 = vadd.f32 %v2639_v54, %v2638_v14  ;;  %v2197_v38 = vadd.f32 %v2196_v35, %v2195_v4  ;;  %v2296_v37 = vadd.f32 %v2295_v56, %v2294_v19 }
 0x204   : > { %2157 = vst.msk [vmem:[%s3784_s16 + $0x20] sm:$0xf] %vm2148_vm0, %v2513_v43  ;;  %v2297_v17 = vsel %vm1256_vm9, %v2258_v0, 0.0  ;;  %v2516_v5 = vpack.c.bf16 %v1937_v33, %v1937_v33  ;;  %v1789_v6 = vadd.f32 %v2637_v28, %v3775_v61  ;;  %v2514_v12 = vpack.c.bf16 %v1929_v9, %v1929_v9 }
 0x205   : > { %v2198_v40 = vsel %vm1256_vm9, %v1929_v9, 0.0  ;;  %v2259_v45 = vmul.f32 %v1929_v9, %v1929_v9  ;;  %v2200_v53 = vsel %vm1256_vm9, %v1934_v49, 0.0  ;;  %v2298_v47 = vadd.f32 %v2297_v17, %v2296_v37 }
 0x206   : > { %v2725_v11 = vpop.f32.mrb[28].mxu1  ;;  %2160 = vst.msk [vmem:[%s3784_s16 + $0x2c] sm:$0xf] %vm2148_vm0, %v2516_v5  ;;  %v2199_v27 = vadd.f32 %v2198_v40, %v2197_v38  ;;  %v2301_v18 = vsel %vm1256_vm9, %v2260_v13, 0.0  ;;  %v2261_v23 = vmul.f32 %v1937_v33, %v1937_v33  ;;  %2158 = vst.msk [vmem:[%s3784_s16 + $0x24] sm:$0xf] %vm2148_vm0, %v2514_v12  ;;  %v1792_v20 = vadd.f32 %v2640_v3, %v3775_v61 }
 0x207   : > { %v1950_v7 = vadd.f32 %v2725_v11, %v1789_v6  ;;  %v1941_v44 = vpop.f32.mrb[29].mxu1  ;;  %v2299_v48 = vsel %vm1256_vm9, %v2259_v45, 0.0  ;;  %v2202_v63 = vsel %vm1256_vm9, %v1937_v33, 0.0 }
 0x208   : > { %v1942_v58 = vadd.f32 %v1941_v44, %v1781_v46  ;;  %v2726_v39 = vpop.f32.mrb[30].mxu1  ;;  %v2201_v50 = vadd.f32 %v2200_v53, %v2199_v27  ;;  %v2300_v1 = vadd.f32 %v2299_v48, %v2298_v47  ;;  %v2303_v28 = vsel %vm1256_vm9, %v2261_v23, 0.0 }
 0x209   : > { %v2519_v30 = vpack.c.bf16 %v1950_v7, %v1950_v7  ;;  %v1944_v41 = vpop.f32.mrb[31].mxu1  ;;  %v1953_v46 = vadd.f32 %v2726_v39, %v1792_v20  ;;  %v2264_v54 = vmul.f32 %v1950_v7, %v1950_v7  ;;  %v2208_v13 = vsel %vm1256_vm9, %v1950_v7, 0.0 }
 0x20a   : > { %v2517_v8 = vpack.c.bf16 %v1942_v58, %v1942_v58  ;;  %v2204_v15 = vsel %vm1256_vm9, %v1942_v58, 0.0  ;;  %v2262_v49 = vmul.f32 %v1942_v58, %v1942_v58  ;;  %v2302_v59 = vadd.f32 %v2301_v18, %v2300_v1 }
 0x20b   : > { %v2641_v24 = vpop.f32.mrb[32].mxu0  ;;  %2163 = vst.msk [vmem:[%s3784_s16 + $0x38] sm:$0xf] %vm2148_vm0, %v2519_v30  ;;  %v2203_v57 = vadd.f32 %v2202_v63, %v2201_v50  ;;  %v1945_v62 = vadd.f32 %v1944_v41, %v1784_v29  ;;  %v2520_v10 = vpack.c.bf16 %v1953_v46, %v1953_v46  ;;  %v2265_v17 = vmul.f32 %v1953_v46, %v1953_v46 }
 0x20c   : > { %v2642_v52 = vpop.f32.mrb[33].mxu0  ;;  %2161 = vst.msk [vmem:[%s3784_s16 + $0x30] sm:$0xf] %vm2148_vm0, %v2517_v8  ;;  %v2305_v42 = vsel %vm1256_vm9, %v2262_v49, 0.0  ;;  %v2304_v34 = vadd.f32 %v2303_v28, %v2302_v59  ;;  %v2309_v45 = vsel %vm1256_vm9, %v2264_v54, 0.0  ;;  %v2210_v11 = vsel %vm1256_vm9, %v1953_v46, 0.0 }
 0x20d   : > { %v2643_v14 = vadd.f32 %v2642_v52, %v2641_v24  ;;  %v2644_v21 = vpop.f32.mrb[34].mxu0  ;;  %v2205_v51 = vadd.f32 %v2204_v15, %v2203_v57  ;;  %v2518_v60 = vpack.c.bf16 %v1945_v62, %v1945_v62  ;;  %v2206_v43 = vsel %vm1256_vm9, %v1945_v62, 0.0  ;;  %2164 = vst.msk [vmem:[%s3784_s16 + $0x3c] sm:$0xf] %vm2148_vm0, %v2520_v10 }
 0x20e   : > { %v2645_v55 = vpop.f32.mrb[35].mxu0  ;;  %v2263_v35 = vmul.f32 %v1945_v62, %v1945_v62  ;;  %v2729_v0 = vpop.f32.mrb[32].mxu1  ;;  %v2306_v19 = vadd.f32 %v2305_v42, %v2304_v34  ;;  %v2311_v7 = vsel %vm1256_vm9, %v2265_v17, 0.0 }
 0x20f   : > { %v2207_v4 = vadd.f32 %v2206_v43, %v2205_v51  ;;  %v2646_v33 = vadd.f32 %v2645_v55, %v2644_v21  ;;  %v1797_v9 = vadd.f32 %v2643_v14, %v3775_v61  ;;  %v1957_v56 = vpop.f32.mrb[33].mxu1  ;;  %2162 = vst.msk [vmem:[%s3784_s16 + $0x34] sm:$0xf] %vm2148_vm0, %v2518_v60  ;;  %v1837_v51 = vadd.f32 %v3751_v16, %v3775_v61 }
 0x210   : > { %v2307_v3 = vsel %vm1256_vm9, %v2263_v35, 0.0  ;;  %v2730_v38 = vpop.f32.mrb[34].mxu1 }
 0x211   : > { %v2209_v37 = vadd.f32 %v2208_v13, %v2207_v4  ;;  %v2308_v5 = vadd.f32 %v2307_v3, %v2306_v19  ;;  %v1958_v6 = vadd.f32 %v1957_v56, %v1797_v9  ;;  %v1800_v12 = vadd.f32 %v2646_v33, %v3775_v61  ;;  %v1960_v40 = vpop.f32.mrb[35].mxu1 }
 0x212   : > { %v1829_v19 = vadd.f32 %v3743_v36, %v3775_v61  ;;  %v1832_v36 = vadd.f32 %v3745_v26, %v3775_v61 }
 0x213   : > { %v2310_v29 = vadd.f32 %v2309_v45, %v2308_v5  ;;  %v2521_v53 = vpack.c.bf16 %v1958_v6, %v1958_v6  ;;  %v2211_v47 = vadd.f32 %v2210_v11, %v2209_v37  ;;  %v2212_v27 = vsel %vm1256_vm9, %v1958_v6, 0.0 }
 0x214   : > { %v2266_v44 = vmul.f32 %v1958_v6, %v1958_v6  ;;  %v1961_v18 = vadd.f32 %v1960_v40, %v1800_v12 }
 0x215   : > { %2165 = vst.msk [vmem:[%s3784_s16 + $0x40] sm:$0xf] %vm2148_vm0, %v2521_v53  ;;  %v2213_v23 = vadd.f32 %v2212_v27, %v2211_v47  ;;  %v2312_v48 = vadd.f32 %v2311_v7, %v2310_v29  ;;  %v1853_v7 = vadd.f32 %v3768_v32, %v3775_v61 }
 0x216   : > { %v2313_v58 = vsel %vm1256_vm9, %v2266_v44, 0.0  ;;  %v2522_v39 = vpack.c.bf16 %v1961_v18, %v1961_v18  ;;  %v2214_v50 = vsel %vm1256_vm9, %v1961_v18, 0.0  ;;  %v2267_v1 = vmul.f32 %v1961_v18, %v1961_v18  ;;  %v3882_v20 = vpop.f32.mrb[36].mxu1 }
 0x217   : > { %v2647_v30 = vpop.f32.mrb[36].mxu0  ;;  %v2314_v41 = vadd.f32 %v2313_v58, %v2312_v48  ;;  %v2215_v63 = vadd.f32 %v2214_v50, %v2213_v23  ;;  %v3884_v15 = vpop.f32.mrb[37].mxu1  ;;  %v1845_v23 = vadd.f32 %v3759_v31, %v3775_v61 }
 0x218   : > { %v2648_v8 = vpop.f32.mrb[37].mxu0  ;;  %2166 = vst.msk [vmem:[%s3784_s16 + $0x44] sm:$0xf] %vm2148_vm0, %v2522_v39  ;;  %v2315_v49 = vsel %vm1256_vm9, %v2267_v1, 0.0  ;;  %v3889_v57 = vpop.f32.mrb[38].mxu1 }
 0x219   : > { %v2649_v24 = vadd.f32 %v2648_v8, %v2647_v30  ;;  %v2650_v59 = vpop.f32.mrb[38].mxu0  ;;  %v2316_v46 = vadd.f32 %v2315_v49, %v2314_v41  ;;  %v1976_v52 = vpop.f32.mrb[39].mxu1  ;;  %v1856_v41 = vadd.f32 %v3770_v22, %v3775_v61 }
 0x21a   : > { %v2651_v62 = vpop.f32.mrb[39].mxu0 }
 0x21b   : > { %v1805_v28 = vadd.f32 %v2649_v24, %v3775_v61  ;;  %v2652_v42 = vadd.f32 %v2651_v62, %v2650_v59 }
 0x21d   : > { %v1966_v14 = vadd.f32 %v2729_v0, %v1805_v28  ;;  %v1808_v21 = vadd.f32 %v2652_v42, %v3775_v61  ;;  %v1840_v0 = vadd.f32 %v3753_v2, %v3775_v61 }
 0x21e   : > { %v2737_v60 = vpop.f32.mrb[40].mxu1 }
 0x21f   : > { %v2523_v34 = vpack.c.bf16 %v1966_v14, %v1966_v14  ;;  %v2216_v10 = vsel %vm1256_vm9, %v1966_v14, 0.0  ;;  %v2268_v55 = vmul.f32 %v1966_v14, %v1966_v14  ;;  %v1969_v54 = vadd.f32 %v2730_v38, %v1808_v21  ;;  %v1989_v4 = vpop.f32.mrb[41].mxu1 }
 0x220   : > { %v2217_v43 = vadd.f32 %v2216_v10, %v2215_v63  ;;  %v3896_v35 = vadd.f32 %v2737_v60, %v1837_v51  ;;  %v2738_v13 = vpop.f32.mrb[42].mxu1  ;;  %v3913_v5 = vadd.f32 %v1989_v4, %v1829_v19  ;;  %v1848_v63 = vadd.f32 %v3761_v25, %v3775_v61 }
 0x221   : > { %2167 = vst.msk [vmem:[%s3784_s16 + $0x48] sm:$0xf] %vm2148_vm0, %v2523_v34  ;;  %v2317_v16 = vsel %vm1256_vm9, %v2268_v55, 0.0  ;;  %v2524_v33 = vpack.c.bf16 %v1969_v54, %v1969_v54  ;;  %v2218_v9 = vsel %vm1256_vm9, %v1969_v54, 0.0  ;;  %v2269_v56 = vmul.f32 %v1969_v54, %v1969_v54  ;;  %v1992_v37 = vpop.f32.mrb[43].mxu1 }
 0x222   : > { %v2318_v17 = vadd.f32 %v2317_v16, %v2316_v46  ;;  %v2219_v3 = vadd.f32 %v2218_v9, %v2217_v43  ;;  %v2531_v38 = vpack.c.bf16 %v3896_v35, %v3896_v35  ;;  %v3915_v6 = vadd.f32 %v2738_v13, %v1840_v0 }
 0x223   : > { %2168 = vst.msk [vmem:[%s3784_s16 + $0x4c] sm:$0xf] %vm2148_vm0, %v2524_v33  ;;  %v2319_v2 = vsel %vm1256_vm9, %v2269_v56, 0.0  ;;  %v2653_v12 = vpop.f32.mrb[40].mxu0  ;;  %v3919_v45 = vadd.f32 %v1992_v37, %v1832_v36  ;;  %v2529_v26 = vpack.c.bf16 %v3913_v5, %v3913_v5  ;;  %v2274_v37 = vmul.f32 %v3913_v5, %v3913_v5 }
 0x224   : > { %v2320_v40 = vadd.f32 %v2319_v2, %v2318_v17  ;;  %2175 = vst.msk [vmem:[%s3784_s16 + $0x68] sm:$0xf] %vm2148_vm0, %v2531_v38  ;;  %v2654_v11 = vpop.f32.mrb[41].mxu0  ;;  %v2532_v53 = vpack.c.bf16 %v3915_v6, %v3915_v6 }
 0x225   : > { %v2656_v29 = vpop.f32.mrb[42].mxu0  ;;  %v2530_v47 = vpack.c.bf16 %v3919_v45, %v3919_v45  ;;  %2173 = vst.msk [vmem:[%s3784_s16 + $0x60] sm:$0xf] %vm2148_vm0, %v2529_v26  ;;  %v2655_v44 = vadd.f32 %v2654_v11, %v2653_v12 }
 0x226   : > { %v2657_v27 = vpop.f32.mrb[43].mxu0  ;;  %v2741_v18 = vpop.f32.mrb[44].mxu1  ;;  %2176 = vst.msk [vmem:[%s3784_s16 + $0x6c] sm:$0xf] %vm2148_vm0, %v2532_v53 }
 0x227   : > { %2174 = vst.msk [vmem:[%s3784_s16 + $0x64] sm:$0xf] %vm2148_vm0, %v2530_v47  ;;  %v2658_v48 = vadd.f32 %v2657_v27, %v2656_v29  ;;  %v3937_v58 = vadd.f32 %v2741_v18, %v1853_v7  ;;  %v2005_v39 = vpop.f32.mrb[45].mxu1  ;;  %v1813_v50 = vadd.f32 %v2655_v44, %v3775_v61  ;;  %v2228_v29 = vsel %vm1256_vm9, %v3913_v5, 0.0 }
 0x228   : > { %v3940_v1 = vadd.f32 %v2005_v39, %v1845_v23  ;;  %v2742_v32 = vpop.f32.mrb[46].mxu1  ;;  %v2276_v7 = vmul.f32 %v3896_v35, %v3896_v35  ;;  %v2329_v44 = vsel %vm1256_vm9, %v2274_v37, 0.0  ;;  %v2230_v18 = vsel %vm1256_vm9, %v3919_v45, 0.0 }
 0x229   : > { %v1816_v30 = vadd.f32 %v2658_v48, %v3775_v61  ;;  %v2535_v31 = vpack.c.bf16 %v3937_v58, %v3937_v58  ;;  %v2008_v8 = vpop.f32.mrb[47].mxu1  ;;  %v1974_v49 = vadd.f32 %v3884_v15, %v1813_v50  ;;  %v3954_v46 = vadd.f32 %v2742_v32, %v1856_v41 }
 0x22a   : > { %v2533_v24 = vpack.c.bf16 %v3940_v1, %v3940_v1  ;;  %v3956_v62 = vadd.f32 %v2008_v8, %v1848_v63  ;;  %v2232_v5 = vsel %vm1256_vm9, %v3896_v35, 0.0  ;;  %v2277_v39 = vmul.f32 %v3915_v6, %v3915_v6 }
 0x22b   : > { %v1977_v59 = vadd.f32 %v1976_v52, %v1816_v30  ;;  %2179 = vst.msk [vmem:[%s3784_s16 + $0x78] sm:$0xf] %vm2148_vm0, %v2535_v31  ;;  %v2525_v28 = vpack.c.bf16 %v1974_v49, %v1974_v49  ;;  %v2220_v22 = vsel %vm1256_vm9, %v1974_v49, 0.0  ;;  %v2270_v42 = vmul.f32 %v1974_v49, %v1974_v49 }
 0x22c   : > { %2177 = vst.msk [vmem:[%s3784_s16 + $0x70] sm:$0xf] %vm2148_vm0, %v2533_v24  ;;  %v2221_v25 = vadd.f32 %v2220_v22, %v2219_v3  ;;  %v2536_v51 = vpack.c.bf16 %v3954_v46, %v3954_v46  ;;  %v2534_v60 = vpack.c.bf16 %v3956_v62, %v3956_v62  ;;  %v2333_v31 = vsel %vm1256_vm9, %v2276_v7, 0.0 }
 0x22d   : > { %v2526_v15 = vpack.c.bf16 %v1977_v59, %v1977_v59  ;;  %v2222_v14 = vsel %vm1256_vm9, %v1977_v59, 0.0  ;;  %v2271_v52 = vmul.f32 %v1977_v59, %v1977_v59  ;;  %2169 = vst.msk [vmem:[%s3784_s16 + $0x50] sm:$0xf] %vm2148_vm0, %v2525_v28  ;;  %v2321_v21 = vsel %vm1256_vm9, %v2270_v42, 0.0 }
 0x22e   : > { %v2322_v10 = vadd.f32 %v2321_v21, %v2320_v40  ;;  %v2223_v55 = vadd.f32 %v2222_v14, %v2221_v25  ;;  %2180 = vst.msk [vmem:[%s3784_s16 + $0x7c] sm:$0xf] %vm2148_vm0, %v2536_v51  ;;  %2178 = vst.msk [vmem:[%s3784_s16 + $0x74] sm:$0xf] %vm2148_vm0, %v2534_v60  ;;  %v2234_v41 = vsel %vm1256_vm9, %v3915_v6, 0.0  ;;  %v2335_v49 = vsel %vm1256_vm9, %v2277_v39, 0.0 }
 0x22f   : > { %v2659_v34 = vpop.f32.mrb[44].mxu0  ;;  %2170 = vst.msk [vmem:[%s3784_s16 + $0x54] sm:$0xf] %vm2148_vm0, %v2526_v15  ;;  %v2323_v54 = vsel %vm1256_vm9, %v2271_v52, 0.0  ;;  %v2236_v35 = vsel %vm1256_vm9, %v3940_v1, 0.0  ;;  %v2279_v24 = vmul.f32 %v3956_v62, %v3956_v62  ;;  %v2280_v22 = vmul.f32 %v3937_v58, %v3937_v58 }
 0x230   : > { %v2660_v43 = vpop.f32.mrb[45].mxu0  ;;  %v2324_v0 = vadd.f32 %v2323_v54, %v2322_v10  ;;  %v2238_v42 = vsel %vm1256_vm9, %v3956_v62, 0.0  ;;  %v2240_v14 = vsel %vm1256_vm9, %v3937_v58, 0.0  ;;  %v2242_v10 = vsel %vm1256_vm9, %v3954_v46, 0.0 }
 0x231   : > { %v2661_v19 = vadd.f32 %v2660_v43, %v2659_v34  ;;  %v2662_v4 = vpop.f32.mrb[46].mxu0  ;;  %v2339_v52 = vsel %vm1256_vm9, %v2279_v24, 0.0  ;;  %v2341_v34 = vsel %vm1256_vm9, %v2280_v22, 0.0 }
 0x232   : > { %v2663_v16 = vpop.f32.mrb[47].mxu0 }
 0x233   : > { %v1821_v33 = vadd.f32 %v2661_v19, %v3775_v61  ;;  %v2664_v9 = vadd.f32 %v2663_v16, %v2662_v4 }
 0x235   : > { %v1982_v56 = vadd.f32 %v3882_v20, %v1821_v33  ;;  %v1824_v13 = vadd.f32 %v2664_v9, %v3775_v61 }
 0x237   : > { %v2527_v17 = vpack.c.bf16 %v1982_v56, %v1982_v56  ;;  %v2224_v3 = vsel %vm1256_vm9, %v1982_v56, 0.0  ;;  %v2272_v38 = vmul.f32 %v1982_v56, %v1982_v56  ;;  %v1985_v36 = vadd.f32 %v3889_v57, %v1824_v13 }
 0x238   : > { %v2225_v2 = vadd.f32 %v2224_v3, %v2223_v55  ;;  %v2275_v57 = vmul.f32 %v3919_v45, %v3919_v45  ;;  %v2278_v45 = vmul.f32 %v3940_v1, %v3940_v1  ;;  %v2281_v1 = vmul.f32 %v3954_v46, %v3954_v46 }
 0x239   : > { %2171 = vst.msk [vmem:[%s3784_s16 + $0x58] sm:$0xf] %vm2148_vm0, %v2527_v17  ;;  %v2325_v12 = vsel %vm1256_vm9, %v2272_v38, 0.0  ;;  %v2528_v40 = vpack.c.bf16 %v1985_v36, %v1985_v36  ;;  %v2226_v20 = vsel %vm1256_vm9, %v1985_v36, 0.0  ;;  %v2273_v11 = vmul.f32 %v1985_v36, %v1985_v36 }
 0x23a   : > { %v2326_v61 = vadd.f32 %v2325_v12, %v2324_v0  ;;  %v2227_v26 = vadd.f32 %v2226_v20, %v2225_v2  ;;  %v2331_v50 = vsel %vm1256_vm9, %v2275_v57, 0.0  ;;  %v2337_v6 = vsel %vm1256_vm9, %v2278_v45, 0.0 }
 0x23b   : > { %2172 = vst.msk [vmem:[%s3784_s16 + $0x5c] sm:$0xf] %vm2148_vm0, %v2528_v40  ;;  %v2327_v53 = vsel %vm1256_vm9, %v2273_v11, 0.0  ;;  %v2343_v62 = vsel %vm1256_vm9, %v2281_v1, 0.0  ;;  %v2807_v46 = vmov (!%p2502_p5), 0.0  }
 0x23c   : > { %v2229_v47 = vadd.f32 %v2228_v29, %v2227_v26  ;;  %v2328_v27 = vadd.f32 %v2327_v53, %v2326_v61  ;;  %2358 = vst.msk [vmem:[%s4047_s6] sm:$0x3] (!%p2502_p5), %vm2357_vm8, %v2807_v46 }
 0x23e   : > { %v2231_v23 = vadd.f32 %v2230_v18, %v2229_v47  ;;  %v2330_v48 = vadd.f32 %v2329_v44, %v2328_v27 }
 0x240   : > { %v2233_v32 = vadd.f32 %v2232_v5, %v2231_v23  ;;  %v2332_v30 = vadd.f32 %v2331_v50, %v2330_v48 }
 0x242   : > { %v2235_v63 = vadd.f32 %v2234_v41, %v2233_v32  ;;  %v2334_v8 = vadd.f32 %v2333_v31, %v2332_v30 }
 0x244   : > { %v2237_v59 = vadd.f32 %v2236_v35, %v2235_v63  ;;  %v2336_v28 = vadd.f32 %v2335_v49, %v2334_v8 }
 0x246   : > { %v2239_v25 = vadd.f32 %v2238_v42, %v2237_v59  ;;  %v2338_v15 = vadd.f32 %v2337_v6, %v2336_v28 }
 0x248   : > { %v2241_v21 = vadd.f32 %v2240_v14, %v2239_v25  ;;  %v2340_v51 = vadd.f32 %v2339_v52, %v2338_v15 }
 0x24a   : > { %v2243_v55 = vadd.f32 %v2242_v10, %v2241_v21  ;;  %v2342_v54 = vadd.f32 %v2341_v34, %v2340_v51 }
 0x24c   : > { %v2244_v60 = vrot.slane %v2243_v55, 4  ;;  %v2344_v43 = vadd.f32 %v2343_v62, %v2342_v54 }
 0x24e   : > { %v2245_v19 = vadd.f32 %v2244_v60, %v2243_v55  ;;  %v2345_v58 = vrot.slane %v2344_v43, 4 }
 0x250   : > { %v2246_v4 = vrot.slane %v2245_v19, 2  ;;  %v2346_v0 = vadd.f32 %v2345_v58, %v2344_v43 }
 0x252   : > { %v2247_v16 = vadd.f32 %v2246_v4, %v2245_v19  ;;  %v2347_v33 = vrot.slane %v2346_v0, 2 }
 0x254   : > { %v2248_v9 = vrot.slane %v2247_v16, 1  ;;  %v2348_v56 = vadd.f32 %v2347_v33, %v2346_v0  ;;  %2356 = sbr.rel (%p2502_p5) target bundleno = 603 (0x25b), region = 44 }
 0x256   : > { %v2349_v13 = vrot.slane %v2348_v56, 1  ;;  %v2249_v17 = vadd.f32 %v2248_v9, %v2247_v16 }
 0x258   : > { %v2350_v3 = vadd.f32 %v2349_v13, %v2348_v56 }
 0x25a   : > { %v2352_v38 = vsel %vm2351_vm1, %v2249_v17, %v2350_v3 }
 0x25b PF: > { %v2359_v36 = vld [vmem:[%s4047_s6] sm:$0x3]  ;;  %vm2361_vm11 = vcmask 254976  }
 0x25c   : > { %v2360_v37 = vadd.f32 %v2359_v36, %v2352_v38 }
 0x25e   : > { %2362 = vst.msk [vmem:[%s4047_s6] sm:$0x3] %vm2361_vm11, %v2360_v37 }
 0x25f PF: > { %s17_s21 = sadd.s32 1, %s2800_s21  }
 0x260   : > { %p14_p6 = scmp.ge.s32.totalorder %s17_s21, 4  }
 0x262   :  { %16 = sbr.rel (!%p14_p6) target bundleno = 1 (0x1), region = 82 }

// kernel: residual_conv_block_forward.6
= control target key start
LH: loop header
LB: loop body
LE: loop exit
PB: predicated region body
PF: predicated region fallthrough
CT: control target
= control target key end

     0   :  { %vm1254_vm0 = vcmask 1041408   ;;  %vm1157_vm1 = vcmask 31744   ;;  %vm546_vm2 = vcmask 261120   ;;  %s4187_s6 = inlined_call_operand.vmem [shape: bf16[4,64], index: 6, kind: input, shape index: {}]   ;;  %s4188_s3 = inlined_call_operand.vmem [shape: bf16[512,4], index: 3, kind: input, shape index: {}]   ;;  %s4189_s4 = inlined_call_operand.vmem [shape: bf16[32,64], index: 4, kind: input, shape index: {}]   ;;  %s4190_s0 = inlined_call_operand.vmem [shape: bf16[512,32], index: 0, kind: input, shape index: {}]   ;;  %s4191_s1 = inlined_call_operand.vmem [shape: f32[1,32], index: 1, kind: input, shape index: {}]   ;;  %s4192_s2 = inlined_call_operand.vmem [shape: f32[1,32], index: 2, kind: input, shape index: {}]   ;;  %s4193_s5 = inlined_call_operand.vmem [shape: f32[1,64], index: 5, kind: input, shape index: {}]   ;;  %s4194_s8 = inlined_call_operand.vmem [shape: f32[2,128], index: 8, kind: output, shape index: {1}]   ;;  %s4195_s7 = inlined_call_operand.vmem [shape: bf16[512,128], index: 7, kind: output, shape index: {0}]  }
   0x1   :  { %v996_v0 = vld [vmem:[%s4187_s6] sm:$0x3]  ;;  %v3192_v3 = vld [vmem:[%s4188_s3 + $0x8] sm:$0xff]   ;;  %v3193_v4 = vld [vmem:[%s4188_s3 + $0x10] sm:$0xff]  }
   0x2   :  { %3188 = vmatprep.subr.msk.bf16.mxu1 %vm1254_vm0, %v996_v0  ;;  %v1256_v1 = vsel %vm1254_vm0, %v996_v0, 0  ;;  %v3191_v2 = vld [vmem:[%s4188_s3] sm:$0xff]   ;;  %v3194_v5 = vld [vmem:[%s4188_s3 + $0x18] sm:$0xff]   ;;  %v3196_v7 = vld [vmem:[%s4188_s3 + $0x28] sm:$0xff]  }
   0x3   :  { %3123 = vmatpush3.bf16.msra.mxu1 %v1256_v1  ;;  %3124 = vmatprep.mubr.msk.bf16.mxu1 %vm1157_vm1, %v3191_v2  ;;  %v3195_v6 = vld [vmem:[%s4188_s3 + $0x20] sm:$0xff]   ;;  %v3197_v8 = vld [vmem:[%s4188_s3 + $0x30] sm:$0xff]   ;;  %v3198_v9 = vld [vmem:[%s4188_s3 + $0x38] sm:$0xff]  }
   0x4   :  { %v3199_v10 = vld [vmem:[%s4188_s3 + $0x40] sm:$0xff]   ;;  %v3220_v12 = vld [vmem:[%s4189_s4 + $0x8] sm:$0xff]   ;;  %v2926_v24 = vld [vmem:[%s4190_s0 + $0x10] sm:$0xff]  }
   0x5   :  { %v3218_v11 = vld [vmem:[%s4189_s4] sm:$0xff]   ;;  %v2925_v18 = vld [vmem:[%s4190_s0 + $0x8] sm:$0xff]   ;;  %v3201_v25 = vld [vmem:[%s4188_s3 + $0x50] sm:$0xff]   ;;  %v2647_v26 = vunpack.c.l.bf16 %v2926_v24  ;;  %v2648_v27 = vunpack.c.h.bf16 %v2926_v24 }
   0x6   :  { %3125 = vmatmul.mubr.msk.bf16.vlgmr.msra.gmra.mrb[0].mxu1 %vm1157_vm1, %v3192_v3  ;;  %3054 = vmatprep.subr.bf16.mxu0 %v3218_v11  ;;  %v2638_v13 = vld [vmem:[%s4190_s0] sm:$0xff]   ;;  %v3200_v19 = vld [vmem:[%s4188_s3 + $0x48] sm:$0xff]   ;;  %v2643_v22 = vunpack.c.l.bf16 %v2925_v18  ;;  %v2644_v23 = vunpack.c.h.bf16 %v2925_v18  ;;  %v2927_v32 = vld [vmem:[%s4190_s0 + $0x18] sm:$0xff]  }
   0x7   :  { %3128 = vmatprep.mubr.msk.bf16.mxu1 %vm1157_vm1, %v3193_v4  ;;  %v3325_v14 = vld [vmem:[%s4191_s1] ss:$0 sm:$0xff]  ;;  %3055 = vmatpush3.bf16.msra.mxu0 %v3218_v11  ;;  %v2639_v15 = vunpack.c.l.bf16 %v2638_v13  ;;  %v2640_v16 = vunpack.c.h.bf16 %v2638_v13  ;;  %v2651_v35 = vunpack.c.l.bf16 %v2927_v32  ;;  %v2652_v36 = vunpack.c.h.bf16 %v2927_v32  ;;  %v3202_v47 = vld [vmem:[%s4188_s3 + $0x58] sm:$0xff]   ;;  %v2929_v62 = vld [vmem:[%s4190_s0 + $0x28] sm:$0xff]  }
   0x8   :  { %3056 = vmatprep.subr.bf16.mxu0 %v3220_v12  ;;  %v3330_v17 = vld [vmem:[%s4192_s2] ss:$0 sm:$0xff]  ;;  %v166_v30 = vmul.f32 %v2643_v22, %v3325_v14  ;;  %v167_v31 = vmul.f32 %v2644_v23, %v3325_v14  ;;  %v168_v33 = vmul.f32 %v2647_v26, %v3325_v14  ;;  %v169_v34 = vmul.f32 %v2648_v27, %v3325_v14  ;;  %v2930_v63 = vld [vmem:[%s4190_s0 + $0x30] sm:$0xff]  }
   0x9   :  { %v164_v20 = vmul.f32 %v2639_v15, %v3325_v14  ;;  %v165_v21 = vmul.f32 %v2640_v16, %v3325_v14  ;;  %v170_v45 = vmul.f32 %v2651_v35, %v3325_v14  ;;  %v171_v46 = vmul.f32 %v2652_v36, %v3325_v14  ;;  %v2928_v50 = vld [vmem:[%s4190_s0 + $0x20] sm:$0xff]  }
   0xa   :  { %v237_v39 = vadd.f32 %v3330_v17, %v166_v30  ;;  %v238_v40 = vadd.f32 %v3330_v17, %v167_v31  ;;  %v239_v41 = vadd.f32 %v3330_v17, %v168_v33  ;;  %v240_v42 = vadd.f32 %v3330_v17, %v169_v34  ;;  %v3203_v53 = vld [vmem:[%s4188_s3 + $0x60] sm:$0xff]  }
   0xb   :  { %3057 = vmatpush3.bf16.msra.mxu0 %v3220_v12  ;;  %v235_v28 = vadd.f32 %v3330_v17, %v164_v20  ;;  %v236_v29 = vadd.f32 %v3330_v17, %v165_v21  ;;  %v241_v56 = vadd.f32 %v3330_v17, %v170_v45  ;;  %v242_v57 = vadd.f32 %v3330_v17, %v171_v46  ;;  %v2931_v20 = vld [vmem:[%s4190_s0 + $0x38] sm:$0xff]   ;;  %v3204_v21 = vld [vmem:[%s4188_s3 + $0x68] sm:$0xff]   ;;  %v2932_v35 = vld [vmem:[%s4190_s0 + $0x40] sm:$0xff]  }
   0xc   :  { %vm301_vm5 = vcmp.gt.f32.partialorder %v237_v39, 0.0  ;;  %vm302_vm6 = vcmp.gt.f32.partialorder %v238_v40, 0.0  ;;  %v365_v49 = vmul.f32 0.01, %v237_v39  ;;  %v366_v51 = vmul.f32 0.01, %v238_v40 }
   0xd   :  { %vm299_vm3 = vcmp.gt.f32.partialorder %v235_v28, 0.0  ;;  %vm300_vm4 = vcmp.gt.f32.partialorder %v236_v29, 0.0  ;;  %v363_v37 = vmul.f32 0.01, %v235_v28  ;;  %v364_v38 = vmul.f32 0.01, %v236_v29 }
   0xe   :  { %3129 = vmatmul.mubr.msk.bf16.gmra.mrb[4].mxu1 %vm1157_vm1, %v3194_v5  ;;  %vm303_vm7 = vcmp.gt.f32.partialorder %v239_v41, 0.0  ;;  %vm304_vm8 = vcmp.gt.f32.partialorder %v240_v42, 0.0  ;;  %v367_v52 = vmul.f32 0.01, %v239_v41  ;;  %v429_v54 = vsel %vm301_vm5, %v237_v39, %v365_v49  ;;  %v2933_v46 = vld [vmem:[%s4190_s0 + $0x48] sm:$0xff]  }
   0xf   :  { %3132 = vmatprep.mubr.msk.bf16.mxu1 %vm1157_vm1, %v3195_v6  ;;  %v427_v43 = vsel %vm299_vm3, %v235_v28, %v363_v37  ;;  %v428_v44 = vsel %vm300_vm4, %v236_v29, %v364_v38  ;;  %v368_v55 = vmul.f32 0.01, %v240_v42  ;;  %v430_v58 = vsel %vm302_vm6, %v238_v40, %v366_v51 }
  0x10   :  { %v491_v48 = vpack.c.bf16 %v428_v44, %v427_v43  ;;  %v431_v59 = vsel %vm303_vm7, %v239_v41, %v367_v52  ;;  %v2655_v60 = vunpack.c.l.bf16 %v2928_v50  ;;  %v2656_v61 = vunpack.c.h.bf16 %v2928_v50  ;;  %v3206_v52 = vld [vmem:[%s4188_s3 + $0x78] sm:$0xff]  }
  0x11   :  { %v492_v0 = vpack.c.bf16 %v430_v58, %v429_v54  ;;  %v432_v1 = vsel %vm304_vm8, %v240_v42, %v368_v55  ;;  %vm305_vm9 = vcmp.gt.f32.partialorder %v241_v56, 0.0  ;;  %vm306_vm10 = vcmp.gt.f32.partialorder %v242_v57, 0.0 }
  0x12   :  { %3058 = vmatprep.mubr.msk.bf16.mxu0 %vm546_vm2, %v491_v48  ;;  %v493_v2 = vpack.c.bf16 %v432_v1, %v431_v59  ;;  %v369_v3 = vmul.f32 0.01, %v241_v56  ;;  %v370_v4 = vmul.f32 0.01, %v242_v57  ;;  %v172_v5 = vmul.f32 %v2655_v60, %v3325_v14 }
  0x13   :  { %3059 = vmatmul.mubr.msk.bf16.vlgmr.msra.gmra.mrb[0].mxu0 %vm546_vm2, %v492_v0  ;;  %v173_v6 = vmul.f32 %v2656_v61, %v3325_v14  ;;  %v2664_v13 = vunpack.c.h.bf16 %v2930_v63  ;;  %v2667_v32 = vunpack.c.l.bf16 %v2931_v20  ;;  %v2668_v41 = vunpack.c.h.bf16 %v2931_v20  ;;  %v3208_v20 = vld [vmem:[%s4188_s3 + $0x88] sm:$0xff]  }
  0x14   :  { %3062 = vmatprep.mubr.msk.bf16.mxu0 %vm546_vm2, %v493_v2  ;;  %v434_v11 = vsel %vm306_vm10, %v242_v57, %v370_v4  ;;  %v243_v12 = vadd.f32 %v3330_v17, %v172_v5  ;;  %v2671_v44 = vunpack.c.l.bf16 %v2932_v35  ;;  %v2672_v45 = vunpack.c.h.bf16 %v2932_v35  ;;  %v3207_v57 = vld [vmem:[%s4188_s3 + $0x80] sm:$0xff]  }
  0x15   :  { %v244_v16 = vadd.f32 %v3330_v17, %v173_v6  ;;  %v177_v24 = vmul.f32 %v2664_v13, %v3325_v14  ;;  %v178_v43 = vmul.f32 %v2667_v32, %v3325_v14  ;;  %v179_v51 = vmul.f32 %v2668_v41, %v3325_v14  ;;  %v2935_v13 = vld [vmem:[%s4190_s0 + $0x58] sm:$0xff]   ;;  %v2937_v32 = vld [vmem:[%s4190_s0 + $0x68] sm:$0xff]  }
  0x16   :  { %3133 = vmatmul.mubr.msk.bf16.gmra.mrb[8].mxu1 %vm1157_vm1, %v3196_v7  ;;  %v2659_v7 = vunpack.c.l.bf16 %v2929_v62  ;;  %vm307_vm11 = vcmp.gt.f32.partialorder %v243_v12, 0.0  ;;  %v371_v22 = vmul.f32 0.01, %v243_v12  ;;  %v180_v55 = vmul.f32 %v2671_v44, %v3325_v14 }
  0x17   :  { %3136 = vmatprep.mubr.msk.bf16.mxu1 %vm1157_vm1, %v3197_v8  ;;  %v2660_v8 = vunpack.c.h.bf16 %v2929_v62  ;;  %vm308_vm12 = vcmp.gt.f32.partialorder %v244_v16, 0.0  ;;  %v372_v26 = vmul.f32 0.01, %v244_v16  ;;  %v248_v31 = vadd.f32 %v3330_v17, %v177_v24  ;;  %v3209_v24 = vld [vmem:[%s4188_s3 + $0x90] sm:$0xff]  }
  0x18   :  { %v174_v18 = vmul.f32 %v2659_v7, %v3325_v14  ;;  %v435_v29 = vsel %vm307_vm11, %v243_v12, %v371_v22  ;;  %v249_v54 = vadd.f32 %v3330_v17, %v178_v43  ;;  %v250_v58 = vadd.f32 %v3330_v17, %v179_v51 }
  0x19   :  { %v436_v33 = vsel %vm308_vm12, %v244_v16, %v372_v26  ;;  %vm312_vm0 = vcmp.gt.f32.partialorder %v248_v31, 0.0  ;;  %v376_v40 = vmul.f32 0.01, %v248_v31  ;;  %v2675_v59 = vunpack.c.l.bf16 %v2933_v46 }
  0x1a   :  { %v245_v27 = vadd.f32 %v3330_v17, %v174_v18  ;;  %v495_v36 = vpack.c.bf16 %v436_v33, %v435_v29  ;;  %v2676_v60 = vunpack.c.h.bf16 %v2933_v46  ;;  %vm313_vm3 = vcmp.gt.f32.partialorder %v249_v54, 0.0 }
  0x1b   :  { %v440_v50 = vsel %vm312_vm0, %v248_v31, %v376_v40  ;;  %v377_v62 = vmul.f32 0.01, %v249_v54  ;;  %vm314_vm4 = vcmp.gt.f32.partialorder %v250_v58, 0.0  ;;  %v378_v1 = vmul.f32 0.01, %v250_v58  ;;  %v2938_v40 = vld [vmem:[%s4190_s0 + $0x70] sm:$0xff]  }
  0x1c   :  { %vm309_vm13 = vcmp.gt.f32.partialorder %v245_v27, 0.0  ;;  %v373_v34 = vmul.f32 0.01, %v245_v27  ;;  %v182_v2 = vmul.f32 %v2675_v59, %v3325_v14  ;;  %v2683_v26 = vunpack.c.l.bf16 %v2935_v13  ;;  %v2939_v59 = vld [vmem:[%s4190_s0 + $0x78] sm:$0xff]  }
  0x1d   :  { %v441_v4 = vsel %vm313_vm3, %v249_v54, %v377_v62  ;;  %v442_v6 = vsel %vm314_vm4, %v250_v58, %v378_v1  ;;  %v2691_v44 = vunpack.c.l.bf16 %v2937_v32  ;;  %v3211_v54 = vld [vmem:[%s4188_s3 + $0xa0] sm:$0xff]   ;;  %v2696_v58 = vunpack.c.h.bf16 %v2938_v40 }
  0x1e   :  { %3137 = vmatmul.mubr.msk.bf16.gmra.mrb[12].mxu1 %vm1157_vm1, %v3198_v9  ;;  %v2663_v9 = vunpack.c.l.bf16 %v2930_v63  ;;  %v437_v38 = vsel %vm309_vm13, %v245_v27, %v373_v34  ;;  %v251_v63 = vadd.f32 %v3330_v17, %v180_v55  ;;  %v498_v16 = vpack.c.bf16 %v442_v6, %v441_v4  ;;  %v2940_v4 = vld [vmem:[%s4190_s0 + $0x80] sm:$0xff]  }
  0x1f   :  { %3140 = vmatprep.mubr.msk.bf16.mxu1 %vm1157_vm1, %v3199_v10  ;;  %v433_v10 = vsel %vm305_vm9, %v241_v56, %v369_v3  ;;  %v181_v56 = vmul.f32 %v2672_v45, %v3325_v14  ;;  %v183_v3 = vmul.f32 %v2676_v60, %v3325_v14  ;;  %v2684_v27 = vunpack.c.h.bf16 %v2935_v13 }
  0x20   :  { %v494_v15 = vpack.c.bf16 %v434_v11, %v433_v10  ;;  %v176_v23 = vmul.f32 %v2663_v9, %v3325_v14  ;;  %vm315_vm5 = vcmp.gt.f32.partialorder %v251_v63, 0.0  ;;  %v379_v5 = vmul.f32 0.01, %v251_v63 }
  0x21   :  { %v252_v0 = vadd.f32 %v3330_v17, %v181_v56  ;;  %v254_v9 = vadd.f32 %v3330_v17, %v183_v3  ;;  %v186_v34 = vmul.f32 %v2683_v26, %v3325_v14  ;;  %v187_v35 = vmul.f32 %v2684_v27, %v3325_v14 }
  0x22   :  { %v247_v30 = vadd.f32 %v3330_v17, %v176_v23  ;;  %3063 = vmatmul.mubr.msk.bf16.gmra.mrb[4].mxu0 %vm546_vm2, %v494_v15  ;;  %v443_v10 = vsel %vm315_vm5, %v251_v63, %v379_v5  ;;  %v2936_v15 = vld [vmem:[%s4190_s0 + $0x60] sm:$0xff]   ;;  %v190_v56 = vmul.f32 %v2691_v44, %v3325_v14  ;;  %v193_v1 = vmul.f32 %v2696_v58, %v3325_v14 }
  0x23   :  { %3066 = vmatprep.mubr.msk.bf16.mxu0 %vm546_vm2, %v495_v36  ;;  %vm316_vm6 = vcmp.gt.f32.partialorder %v252_v0, 0.0  ;;  %v380_v7 = vmul.f32 0.01, %v252_v0  ;;  %vm318_vm8 = vcmp.gt.f32.partialorder %v254_v9, 0.0  ;;  %v2688_v36 = vunpack.c.h.bf16 %v2936_v15 }
  0x24   :  { %vm311_vm15 = vcmp.gt.f32.partialorder %v247_v30, 0.0  ;;  %v375_v39 = vmul.f32 0.01, %v247_v30  ;;  %v257_v41 = vadd.f32 %v3330_v17, %v186_v34  ;;  %v261_v62 = vadd.f32 %v3330_v17, %v190_v56 }
  0x25   :  { %v444_v18 = vsel %vm316_vm6, %v252_v0, %v380_v7  ;;  %v189_v43 = vmul.f32 %v2688_v36, %v3325_v14  ;;  %v2700_v3 = vunpack.c.h.bf16 %v2939_v59  ;;  %v2703_v13 = vunpack.c.l.bf16 %v2940_v4 }
  0x26   :  { %3141 = vmatmul.mubr.msk.bf16.gmra.mrb[16].mxu1 %vm1157_vm1, %v3200_v19  ;;  %v175_v19 = vmul.f32 %v2660_v8, %v3325_v14  ;;  %v439_v49 = vsel %vm311_vm15, %v247_v30, %v375_v39  ;;  %v253_v8 = vadd.f32 %v3330_v17, %v182_v2  ;;  %vm321_vm11 = vcmp.gt.f32.partialorder %v257_v41, 0.0 }
  0x27   :  { %3144 = vmatprep.mubr.msk.bf16.mxu1 %vm1157_vm1, %v3201_v25  ;;  %v3205_v25 = vld [vmem:[%s4188_s3 + $0x70] sm:$0xff]   ;;  %v2699_v2 = vunpack.c.l.bf16 %v2939_v59  ;;  %vm325_vm15 = vcmp.gt.f32.partialorder %v261_v62, 0.0  ;;  %v196_v26 = vmul.f32 %v2703_v13, %v3325_v14 }
  0x28   :  { %v246_v28 = vadd.f32 %v3330_v17, %v175_v19  ;;  %vm317_vm7 = vcmp.gt.f32.partialorder %v253_v8, 0.0  ;;  %v381_v19 = vmul.f32 0.01, %v253_v8 }
  0x29   :  { %v267_v34 = vadd.f32 %v3330_v17, %v196_v26 }
  0x2a   :  { %vm310_vm14 = vcmp.gt.f32.partialorder %v246_v28, 0.0  ;;  %v374_v37 = vmul.f32 0.01, %v246_v28  ;;  %v445_v29 = vsel %vm317_vm7, %v253_v8, %v381_v19 }
  0x2b   :  { %vm331_vm7 = vcmp.gt.f32.partialorder %v267_v34, 0.0 }
  0x2c   :  { %v438_v42 = vsel %vm310_vm14, %v246_v28, %v374_v37  ;;  %v2687_v28 = vunpack.c.l.bf16 %v2936_v15  ;;  %v2704_v15 = vunpack.c.h.bf16 %v2940_v4 }
  0x2d   :  { %v496_v48 = vpack.c.bf16 %v438_v42, %v437_v38  ;;  %v258_v42 = vadd.f32 %v3330_v17, %v187_v35 }
  0x2e   :  { %3145 = vmatmul.mubr.msk.bf16.gmra.mrb[20].mxu1 %vm1157_vm1, %v3202_v47  ;;  %v2934_v47 = vld [vmem:[%s4190_s0 + $0x50] sm:$0xff]   ;;  %v188_v39 = vmul.f32 %v2687_v28, %v3325_v14  ;;  %v197_v27 = vmul.f32 %v2704_v15, %v3325_v14 }
  0x2f   :  { %3148 = vmatprep.mubr.msk.bf16.mxu1 %vm1157_vm1, %v3203_v53  ;;  %v497_v53 = vpack.c.bf16 %v440_v50, %v439_v49  ;;  %v2679_v61 = vunpack.c.l.bf16 %v2934_v47  ;;  %3067 = vmatmul.mubr.msk.bf16.gmra.mrb[8].mxu0 %vm546_vm2, %v496_v48  ;;  %v2680_v11 = vunpack.c.h.bf16 %v2934_v47  ;;  %v2692_v47 = vunpack.c.h.bf16 %v2937_v32  ;;  %v3210_v49 = vld [vmem:[%s4188_s3 + $0x98] sm:$0xff]  }
  0x30   :  { %v259_v46 = vadd.f32 %v3330_v17, %v188_v39  ;;  %v2695_v48 = vunpack.c.l.bf16 %v2938_v40  ;;  %v386_v55 = vmul.f32 0.01, %v258_v42  ;;  %vm322_vm12 = vcmp.gt.f32.partialorder %v258_v42, 0.0 }
  0x31   :  { %3070 = vmatprep.mubr.msk.bf16.mxu0 %vm546_vm2, %v497_v53  ;;  %v184_v12 = vmul.f32 %v2679_v61, %v3325_v14  ;;  %v185_v22 = vmul.f32 %v2680_v11, %v3325_v14  ;;  %v260_v53 = vadd.f32 %v3330_v17, %v189_v43  ;;  %v194_v11 = vmul.f32 %v2699_v2, %v3325_v14 }
  0x32   :  { %v387_v60 = vmul.f32 0.01, %v259_v46  ;;  %vm323_vm13 = vcmp.gt.f32.partialorder %v259_v46, 0.0  ;;  %v192_v63 = vmul.f32 %v2695_v48, %v3325_v14  ;;  %v450_v6 = vsel %vm322_vm12, %v258_v42, %v386_v55 }
  0x33   :  { %v255_v23 = vadd.f32 %v3330_v17, %v184_v12  ;;  %v256_v30 = vadd.f32 %v3330_v17, %v185_v22  ;;  %v388_v61 = vmul.f32 0.01, %v260_v53  ;;  %vm324_vm14 = vcmp.gt.f32.partialorder %v260_v53, 0.0 }
  0x34   :  { %v451_v7 = vsel %vm323_vm13, %v259_v46, %v387_v60  ;;  %v195_v12 = vmul.f32 %v2700_v3, %v3325_v14  ;;  %v265_v28 = vadd.f32 %v3330_v17, %v194_v11  ;;  %v268_v35 = vadd.f32 %v3330_v17, %v197_v27  ;;  %v3215_v46 = vld [vmem:[%s4188_s3 + $0xc0] sm:$0xff]   ;;  %v3216_v3 = vld [vmem:[%s4188_s3 + $0xc8] sm:$0xff]  }
  0x35   :  { %vm319_vm9 = vcmp.gt.f32.partialorder %v255_v23, 0.0  ;;  %v383_v31 = vmul.f32 0.01, %v255_v23  ;;  %vm320_vm10 = vcmp.gt.f32.partialorder %v256_v30, 0.0  ;;  %v384_v37 = vmul.f32 0.01, %v256_v30 }
  0x36   :  { %3149 = vmatmul.mubr.msk.bf16.gmra.mrb[24].mxu1 %vm1157_vm1, %v3204_v21  ;;  %v382_v21 = vmul.f32 0.01, %v254_v9  ;;  %v452_v8 = vsel %vm324_vm14, %v260_v53, %v388_v61  ;;  %vm329_vm5 = vcmp.gt.f32.partialorder %v265_v28, 0.0  ;;  %v393_v42 = vmul.f32 0.01, %v265_v28  ;;  %v2943_v53 = vld [vmem:[%s4190_s0 + $0x98] sm:$0xff]  }
  0x37   :  { %3152 = vmatprep.mubr.msk.bf16.mxu1 %vm1157_vm1, %v3205_v25  ;;  %v499_v25 = vpack.c.bf16 %v444_v18, %v443_v10  ;;  %v447_v38 = vsel %vm319_vm9, %v255_v23, %v383_v31  ;;  %3071 = vmatmul.mubr.msk.bf16.gmra.mrb[12].mxu0 %vm546_vm2, %v498_v16  ;;  %v448_v45 = vsel %vm320_vm10, %v256_v30, %v384_v37  ;;  %v3212_v16 = vld [vmem:[%s4188_s3 + $0xa8] sm:$0xff]   ;;  %v389_v18 = vmul.f32 0.01, %v261_v62  ;;  %v2942_v30 = vld [vmem:[%s4190_s0 + $0x90] sm:$0xff]  }
  0x38   :  { %v446_v33 = vsel %vm318_vm8, %v254_v9, %v382_v21  ;;  %v501_v51 = vpack.c.bf16 %v448_v45, %v447_v38  ;;  %v263_v9 = vadd.f32 %v3330_v17, %v192_v63  ;;  %v264_v10 = vadd.f32 %v3330_v17, %v193_v1  ;;  %v2941_v23 = vld [vmem:[%s4190_s0 + $0x88] sm:$0xff]  }
  0x39   :  { %3074 = vmatprep.mubr.msk.bf16.mxu0 %vm546_vm2, %v499_v25  ;;  %v500_v50 = vpack.c.bf16 %v446_v33, %v445_v29  ;;  %v503_v22 = vpack.c.bf16 %v452_v8, %v451_v7  ;;  %v266_v29 = vadd.f32 %v3330_v17, %v195_v12  ;;  %v453_v31 = vsel %vm325_vm15, %v261_v62, %v389_v18  ;;  %v3217_v7 = vld [vmem:[%s4188_s3 + $0xd0] sm:$0xff]  }
  0x3a   :  { %v392_v25 = vmul.f32 0.01, %v264_v10  ;;  %vm327_vm3 = vcmp.gt.f32.partialorder %v263_v9, 0.0  ;;  %vm328_vm4 = vcmp.gt.f32.partialorder %v264_v10, 0.0  ;;  %v2707_v33 = vunpack.c.l.bf16 %v2941_v23 }
  0x3b   :  { %v2708_v36 = vunpack.c.h.bf16 %v2941_v23  ;;  %v2711_v39 = vunpack.c.l.bf16 %v2942_v30  ;;  %vm330_vm6 = vcmp.gt.f32.partialorder %v266_v29, 0.0  ;;  %v394_v43 = vmul.f32 0.01, %v266_v29 }
  0x3c   :  { %v456_v38 = vsel %vm328_vm4, %v264_v10, %v392_v25  ;;  %v198_v44 = vmul.f32 %v2707_v33, %v3325_v14  ;;  %v2712_v45 = vunpack.c.h.bf16 %v2942_v30  ;;  %v395_v48 = vmul.f32 0.01, %v267_v34 }
  0x3d   :  { %vm332_vm8 = vcmp.gt.f32.partialorder %v268_v35, 0.0  ;;  %v457_v55 = vsel %vm329_vm5, %v265_v28, %v393_v42  ;;  %v458_v56 = vsel %vm330_vm6, %v266_v29, %v394_v43  ;;  %v2715_v61 = vunpack.c.l.bf16 %v2943_v53 }
  0x3e   :  { %3153 = vmatmul.mubr.msk.bf16.gmra.mrb[28].mxu1 %vm1157_vm1, %v3206_v52  ;;  %v385_v52 = vmul.f32 0.01, %v257_v41  ;;  %v459_v58 = vsel %vm331_vm7, %v267_v34, %v395_v48  ;;  %v506_v4 = vpack.c.bf16 %v458_v56, %v457_v55  ;;  %v3221_v34 = vld [vmem:[%s4188_s3 + $0xe0] sm:$0xff]  }
  0x3f   :  { %3156 = vmatprep.mubr.msk.bf16.mxu1 %vm1157_vm1, %v3207_v57  ;;  %v191_v57 = vmul.f32 %v2692_v47, %v3325_v14  ;;  %3075 = vmatmul.mubr.msk.bf16.gmra.mrb[16].mxu0 %vm546_vm2, %v500_v50  ;;  %v199_v50 = vmul.f32 %v2708_v36, %v3325_v14  ;;  %v202_v10 = vmul.f32 %v2715_v61, %v3325_v14 }
  0x40   :  { %v449_v5 = vsel %vm321_vm11, %v257_v41, %v385_v52  ;;  %3078 = vmatprep.mubr.msk.bf16.mxu0 %vm546_vm2, %v501_v51  ;;  %v3214_v41 = vld [vmem:[%s4188_s3 + $0xb8] sm:$0xff]   ;;  %v200_v51 = vmul.f32 %v2711_v39, %v3325_v14  ;;  %v201_v52 = vmul.f32 %v2712_v45, %v3325_v14  ;;  %v2948_v45 = vld [vmem:[%s4190_s0 + $0xc0] sm:$0xff]  }
  0x41   :  { %v262_v0 = vadd.f32 %v3330_v17, %v191_v57  ;;  %v502_v21 = vpack.c.bf16 %v450_v6, %v449_v5  ;;  %v269_v57 = vadd.f32 %v3330_v17, %v198_v44  ;;  %v270_v60 = vadd.f32 %v3330_v17, %v199_v50  ;;  %v2945_v6 = vld [vmem:[%s4190_s0 + $0xa8] sm:$0xff]  }
  0x42   :  { %v271_v62 = vadd.f32 %v3330_v17, %v200_v51  ;;  %v272_v63 = vadd.f32 %v3330_v17, %v201_v52  ;;  %v2723_v18 = vunpack.c.l.bf16 %v2945_v6  ;;  %v2724_v23 = vunpack.c.h.bf16 %v2945_v6 }
  0x43   :  { %v390_v19 = vmul.f32 0.01, %v262_v0  ;;  %vm326_vm0 = vcmp.gt.f32.partialorder %v262_v0, 0.0  ;;  %vm333_vm9 = vcmp.gt.f32.partialorder %v269_v57, 0.0  ;;  %v397_v5 = vmul.f32 0.01, %v269_v57 }
  0x44   :  { %vm334_vm10 = vcmp.gt.f32.partialorder %v270_v60, 0.0  ;;  %v399_v11 = vmul.f32 0.01, %v271_v62  ;;  %v400_v12 = vmul.f32 0.01, %v272_v63  ;;  %vm335_vm11 = vcmp.gt.f32.partialorder %v271_v62, 0.0 }
  0x45   :  { %v454_v32 = vsel %vm326_vm0, %v262_v0, %v390_v19  ;;  %v2716_v0 = vunpack.c.h.bf16 %v2943_v53  ;;  %vm336_vm12 = vcmp.gt.f32.partialorder %v272_v63, 0.0  ;;  %v2946_v19 = vld [vmem:[%s4190_s0 + $0xb0] sm:$0xff]   ;;  %v206_v29 = vmul.f32 %v2723_v18, %v3325_v14 }
  0x46   :  { %3157 = vmatmul.mubr.msk.bf16.gmra.mrb[32].mxu1 %vm1157_vm1, %v3208_v20  ;;  %v3213_v20 = vld [vmem:[%s4188_s3 + $0xb0] sm:$0xff]   ;;  %v504_v40 = vpack.c.bf16 %v454_v32, %v453_v31  ;;  %v464_v25 = vsel %vm336_vm12, %v272_v63, %v400_v12  ;;  %v2727_v30 = vunpack.c.l.bf16 %v2946_v19  ;;  %v2728_v31 = vunpack.c.h.bf16 %v2946_v19  ;;  %v3219_v32 = vld [vmem:[%s4188_s3 + $0xd8] sm:$0xff]  }
  0x47   :  { %3160 = vmatprep.mubr.msk.bf16.mxu1 %vm1157_vm1, %v3209_v24  ;;  %v391_v24 = vmul.f32 0.01, %v263_v9  ;;  %3079 = vmatmul.mubr.msk.bf16.gmra.mrb[20].mxu0 %vm546_vm2, %v502_v21  ;;  %v203_v13 = vmul.f32 %v2716_v0, %v3325_v14  ;;  %v277_v42 = vadd.f32 %v3330_v17, %v206_v29  ;;  %v2735_v52 = vunpack.c.l.bf16 %v2948_v45  ;;  %v2949_v0 = vld [vmem:[%s4190_s0 + $0xc8] sm:$0xff]  }
  0x48   :  { %3082 = vmatprep.mubr.msk.bf16.mxu0 %vm546_vm2, %v503_v22  ;;  %v273_v22 = vadd.f32 %v3330_v17, %v202_v10  ;;  %v208_v43 = vmul.f32 %v2727_v30, %v3325_v14  ;;  %v209_v44 = vmul.f32 %v2728_v31, %v3325_v14  ;;  %v2736_v53 = vunpack.c.h.bf16 %v2948_v45 }
  0x49   :  { %v455_v37 = vsel %vm327_vm3, %v263_v9, %v391_v24  ;;  %v398_v9 = vmul.f32 0.01, %v270_v60  ;;  %v463_v24 = vsel %vm335_vm11, %v271_v62, %v399_v11  ;;  %v274_v26 = vadd.f32 %v3330_v17, %v203_v13 }
  0x4a   :  { %v505_v47 = vpack.c.bf16 %v456_v38, %v455_v37  ;;  %vm337_vm13 = vcmp.gt.f32.partialorder %v273_v22, 0.0  ;;  %v401_v36 = vmul.f32 0.01, %v273_v22  ;;  %v207_v37 = vmul.f32 %v2724_v23, %v3325_v14  ;;  %v2947_v38 = vld [vmem:[%s4190_s0 + $0xb8] sm:$0xff]  }
  0x4b   :  { %v462_v21 = vsel %vm334_vm10, %v270_v60, %v398_v9  ;;  %vm338_vm14 = vcmp.gt.f32.partialorder %v274_v26, 0.0  ;;  %v402_v39 = vmul.f32 0.01, %v274_v26  ;;  %v405_v55 = vmul.f32 0.01, %v277_v42  ;;  %v3223_v60 = vld [vmem:[%s4188_s3 + $0xf0] sm:$0xff]  }
  0x4c   :  { %v278_v48 = vadd.f32 %v3330_v17, %v207_v37  ;;  %v279_v56 = vadd.f32 %v3330_v17, %v208_v43  ;;  %vm341_vm3 = vcmp.gt.f32.partialorder %v277_v42, 0.0  ;;  %v2739_v9 = vunpack.c.l.bf16 %v2949_v0 }
  0x4d   :  { %v466_v50 = vsel %vm338_vm14, %v274_v26, %v402_v39  ;;  %v2740_v12 = vunpack.c.h.bf16 %v2949_v0 }
  0x4e   :  { %3161 = vmatmul.mubr.msk.bf16.gmra.mrb[36].mxu1 %vm1157_vm1, %v3210_v49  ;;  %v396_v49 = vmul.f32 0.01, %v268_v35  ;;  %v406_v62 = vmul.f32 0.01, %v278_v48  ;;  %vm342_vm4 = vcmp.gt.f32.partialorder %v278_v48, 0.0  ;;  %vm343_vm5 = vcmp.gt.f32.partialorder %v279_v56, 0.0 }
  0x4f   :  { %3164 = vmatprep.mubr.msk.bf16.mxu1 %vm1157_vm1, %v3211_v54  ;;  %v2944_v54 = vld [vmem:[%s4190_s0 + $0xa0] sm:$0xff]   ;;  %3083 = vmatmul.mubr.msk.bf16.gmra.mrb[24].mxu0 %vm546_vm2, %v504_v40  ;;  %v407_v6 = vmul.f32 0.01, %v279_v56  ;;  %v215_v26 = vmul.f32 %v2740_v12, %v3325_v14  ;;  %v2955_v12 = vld [vmem:[%s4190_s0 + $0xf8] sm:$0xff]  }
  0x50   :  { %v460_v59 = vsel %vm332_vm8, %v268_v35, %v396_v49  ;;  %3086 = vmatprep.mubr.msk.bf16.mxu0 %vm546_vm2, %v505_v47  ;;  %v2719_v1 = vunpack.c.l.bf16 %v2944_v54  ;;  %v2720_v2 = vunpack.c.h.bf16 %v2944_v54  ;;  %v509_v35 = vpack.c.bf16 %v464_v25, %v463_v24 }
  0x51   :  { %v507_v8 = vpack.c.bf16 %v460_v59, %v459_v58  ;;  %v465_v47 = vsel %vm337_vm13, %v273_v22, %v401_v36  ;;  %v2732_v49 = vunpack.c.h.bf16 %v2947_v38  ;;  %v3222_v58 = vld [vmem:[%s4188_s3 + $0xe8] sm:$0xff]   ;;  %v470_v10 = vsel %vm342_vm4, %v278_v48, %v406_v62 }
  0x52   :  { %v204_v15 = vmul.f32 %v2719_v1, %v3325_v14  ;;  %v510_v61 = vpack.c.bf16 %v466_v50, %v465_v47  ;;  %v471_v19 = vsel %vm343_vm5, %v279_v56, %v407_v6  ;;  %v214_v24 = vmul.f32 %v2739_v9, %v3325_v14  ;;  %v2953_v56 = vld [vmem:[%s4190_s0 + $0xe8] sm:$0xff]  }
  0x53   :  { %v211_v63 = vmul.f32 %v2732_v49, %v3325_v14  ;;  %v286_v37 = vadd.f32 %v3330_v17, %v215_v26  ;;  %v2755_v0 = vunpack.c.l.bf16 %v2953_v56 }
  0x54   :  { %v275_v27 = vadd.f32 %v3330_v17, %v204_v15 }
  0x55   :  { %v282_v11 = vadd.f32 %v3330_v17, %v211_v63  ;;  %v414_v49 = vmul.f32 0.01, %v286_v37  ;;  %vm350_vm11 = vcmp.gt.f32.partialorder %v286_v37, 0.0 }
  0x56   :  { %3165 = vmatmul.mubr.msk.bf16.gmra.mrb[40].mxu1 %vm1157_vm1, %v3212_v16  ;;  %v205_v16 = vmul.f32 %v2720_v2, %v3325_v14  ;;  %vm339_vm15 = vcmp.gt.f32.partialorder %v275_v27, 0.0  ;;  %v403_v40 = vmul.f32 0.01, %v275_v27  ;;  %v212_v2 = vmul.f32 %v2735_v52, %v3325_v14 }
  0x57   :  { %3168 = vmatprep.mubr.msk.bf16.mxu1 %vm1157_vm1, %v3213_v20  ;;  %3087 = vmatmul.mubr.msk.bf16.gmra.mrb[28].mxu0 %vm546_vm2, %v506_v4  ;;  %v461_v20 = vsel %vm333_vm9, %v269_v57, %v397_v5  ;;  %v280_v57 = vadd.f32 %v3330_v17, %v209_v44  ;;  %v2950_v4 = vld [vmem:[%s4190_s0 + $0xd0] sm:$0xff]   ;;  %v469_v5 = vsel %vm341_vm3, %v277_v42, %v405_v55  ;;  %vm346_vm8 = vcmp.gt.f32.partialorder %v282_v11, 0.0 }
  0x58   :  { %3090 = vmatprep.mubr.msk.bf16.mxu0 %vm546_vm2, %v507_v8  ;;  %v276_v28 = vadd.f32 %v3330_v17, %v205_v16  ;;  %v508_v33 = vpack.c.bf16 %v462_v21, %v461_v20  ;;  %v467_v51 = vsel %vm339_vm15, %v275_v27, %v403_v40  ;;  %v2743_v13 = vunpack.c.l.bf16 %v2950_v4  ;;  %v3224_v21 = vld [vmem:[%s4188_s3 + $0xf8] sm:$0xff]  }
  0x59   :  { %vm344_vm6 = vcmp.gt.f32.partialorder %v280_v57, 0.0  ;;  %v283_v15 = vadd.f32 %v3330_v17, %v212_v2  ;;  %v2744_v18 = vunpack.c.h.bf16 %v2950_v4  ;;  %v512_v22 = vpack.c.bf16 %v470_v10, %v469_v5 }
  0x5a   :  { %vm340_vm0 = vcmp.gt.f32.partialorder %v276_v28, 0.0  ;;  %v410_v25 = vmul.f32 0.01, %v282_v11  ;;  %v216_v27 = vmul.f32 %v2743_v13, %v3325_v14  ;;  %v222_v10 = vmul.f32 %v2755_v0, %v3325_v14 }
  0x5b   :  { %v411_v29 = vmul.f32 0.01, %v283_v15  ;;  %v217_v31 = vmul.f32 %v2744_v18, %v3325_v14  ;;  %vm347_vm9 = vcmp.gt.f32.partialorder %v283_v15, 0.0 }
  0x5c   :  { %v474_v36 = vsel %vm346_vm8, %v282_v11, %v410_v25 }
  0x5d   :  { %v475_v40 = vsel %vm347_vm9, %v283_v15, %v411_v29  ;;  %v288_v42 = vadd.f32 %v3330_v17, %v217_v31 }
  0x5e   :  { %3169 = vmatmul.mubr.msk.bf16.gmra.mrb[44].mxu1 %vm1157_vm1, %v3214_v41  ;;  %v404_v41 = vmul.f32 0.01, %v276_v28 }
  0x5f   :  { %3172 = vmatprep.mubr.msk.bf16.mxu1 %vm1157_vm1, %v3215_v46  ;;  %v2731_v46 = vunpack.c.l.bf16 %v2947_v38  ;;  %3091 = vmatmul.mubr.msk.bf16.gmra.mrb[32].mxu0 %vm546_vm2, %v508_v33  ;;  %v287_v38 = vadd.f32 %v3330_v17, %v216_v27  ;;  %v416_v52 = vmul.f32 0.01, %v288_v42  ;;  %vm352_vm13 = vcmp.gt.f32.partialorder %v288_v42, 0.0 }
  0x60   :  { %3094 = vmatprep.mubr.msk.bf16.mxu0 %vm546_vm2, %v509_v35  ;;  %v468_v54 = vsel %vm340_vm0, %v276_v28, %v404_v41  ;;  %v2952_v35 = vld [vmem:[%s4190_s0 + $0xe0] sm:$0xff]  }
  0x61   :  { %v210_v59 = vmul.f32 %v2731_v46, %v3325_v14  ;;  %v511_v1 = vpack.c.bf16 %v468_v54, %v467_v51  ;;  %v2751_v44 = vunpack.c.l.bf16 %v2952_v35  ;;  %v2752_v45 = vunpack.c.h.bf16 %v2952_v35 }
  0x62   :  { %v415_v50 = vmul.f32 0.01, %v287_v38  ;;  %vm351_vm12 = vcmp.gt.f32.partialorder %v287_v38, 0.0  ;;  %v480_v62 = vsel %vm352_vm13, %v288_v42, %v416_v52 }
  0x63   :  { %v281_v8 = vadd.f32 %v3330_v17, %v210_v59  ;;  %v220_v54 = vmul.f32 %v2751_v44, %v3325_v14  ;;  %v221_v55 = vmul.f32 %v2752_v45, %v3325_v14  ;;  %v478_v59 = vsel %vm350_vm11, %v286_v37, %v414_v49 }
  0x65   :  { %vm345_vm7 = vcmp.gt.f32.partialorder %v281_v8, 0.0  ;;  %v409_v23 = vmul.f32 0.01, %v281_v8  ;;  %v291_v2 = vadd.f32 %v3330_v17, %v220_v54 }
  0x66   :  { %3173 = vmatmul.mubr.msk.bf16.gmra.mrb[48].mxu1 %vm1157_vm1, %v3216_v3  ;;  %v213_v3 = vmul.f32 %v2736_v53, %v3325_v14 }
  0x67   :  { %3176 = vmatprep.mubr.msk.bf16.mxu1 %vm1157_vm1, %v3217_v7  ;;  %v408_v7 = vmul.f32 0.01, %v280_v57  ;;  %3095 = vmatmul.mubr.msk.bf16.gmra.mrb[36].mxu0 %vm546_vm2, %v510_v61  ;;  %v473_v33 = vsel %vm345_vm7, %v281_v8, %v409_v23  ;;  %v419_v13 = vmul.f32 0.01, %v291_v2  ;;  %vm355_vm0 = vcmp.gt.f32.partialorder %v291_v2, 0.0 }
  0x68   :  { %3098 = vmatprep.mubr.msk.bf16.mxu0 %vm546_vm2, %v511_v1  ;;  %v284_v16 = vadd.f32 %v3330_v17, %v213_v3  ;;  %v514_v46 = vpack.c.bf16 %v474_v36, %v473_v33  ;;  %v2756_v1 = vunpack.c.h.bf16 %v2953_v56  ;;  %v292_v3 = vadd.f32 %v3330_v17, %v221_v55 }
  0x69   :  { %v472_v20 = vsel %vm344_vm6, %v280_v57, %v408_v7  ;;  %v2954_v57 = vld [vmem:[%s4190_s0 + $0xf0] sm:$0xff]   ;;  %v483_v25 = vsel %vm355_vm0, %v291_v2, %v419_v13 }
  0x6a   :  { %v513_v28 = vpack.c.bf16 %v472_v20, %v471_v19  ;;  %v412_v30 = vmul.f32 0.01, %v284_v16  ;;  %vm348_vm10 = vcmp.gt.f32.partialorder %v284_v16, 0.0  ;;  %v2759_v4 = vunpack.c.l.bf16 %v2954_v57 }
  0x6b   :  { %v2760_v5 = vunpack.c.h.bf16 %v2954_v57  ;;  %v223_v11 = vmul.f32 %v2756_v1, %v3325_v14  ;;  %v420_v15 = vmul.f32 0.01, %v292_v3  ;;  %vm356_vm3 = vcmp.gt.f32.partialorder %v292_v3, 0.0 }
  0x6c   :  { %v476_v41 = vsel %vm348_vm10, %v284_v16, %v412_v30  ;;  %v224_v16 = vmul.f32 %v2759_v4, %v3325_v14  ;;  %v2763_v20 = vunpack.c.l.bf16 %v2955_v12  ;;  %vm2390_vm10 = vcmask 1040384  }
  0x6d   :  { %v515_v48 = vpack.c.bf16 %v476_v41, %v475_v40  ;;  %v225_v18 = vmul.f32 %v2760_v5, %v3325_v14  ;;  %v294_v23 = vadd.f32 %v3330_v17, %v223_v11  ;;  %v484_v26 = vsel %vm356_vm3, %v292_v3, %v420_v15 }
  0x6e   :  { %3177 = vmatmul.mubr.msk.bf16.gmra.mrb[52].mxu1 %vm1157_vm1, %v3219_v32  ;;  %v2951_v32 = vld [vmem:[%s4190_s0 + $0xd8] sm:$0xff]   ;;  %v295_v27 = vadd.f32 %v3330_v17, %v224_v16  ;;  %v226_v30 = vmul.f32 %v2763_v20, %v3325_v14  ;;  %v519_v31 = vpack.c.bf16 %v484_v26, %v483_v25 }
  0x6f   :  { %3180 = vmatprep.mubr.msk.bf16.mxu1 %vm1157_vm1, %v3221_v34  ;;  %v285_v34 = vadd.f32 %v3330_v17, %v214_v24  ;;  %3099 = vmatmul.mubr.msk.bf16.gmra.mrb[40].mxu0 %vm546_vm2, %v512_v22  ;;  %v2747_v39 = vunpack.c.l.bf16 %v2951_v32  ;;  %v2748_v43 = vunpack.c.h.bf16 %v2951_v32  ;;  %v293_v22 = vadd.f32 %v3330_v17, %v222_v10 }
  0x70   :  { %3102 = vmatprep.mubr.msk.bf16.mxu0 %vm546_vm2, %v513_v28  ;;  %v2764_v24 = vunpack.c.h.bf16 %v2955_v12  ;;  %v296_v28 = vadd.f32 %v3330_v17, %v225_v18  ;;  %v422_v33 = vmul.f32 0.01, %v294_v23  ;;  %vm358_vm5 = vcmp.gt.f32.partialorder %v294_v23, 0.0 }
  0x71   :  { %v413_v47 = vmul.f32 0.01, %v285_v34  ;;  %v218_v51 = vmul.f32 %v2747_v39, %v3325_v14  ;;  %v219_v53 = vmul.f32 %v2748_v43, %v3325_v14  ;;  %v421_v32 = vmul.f32 0.01, %v293_v22 }
  0x72   :  { %vm357_vm4 = vcmp.gt.f32.partialorder %v293_v22, 0.0  ;;  %v423_v36 = vmul.f32 0.01, %v295_v27  ;;  %v424_v37 = vmul.f32 0.01, %v296_v28  ;;  %vm359_vm6 = vcmp.gt.f32.partialorder %v295_v27, 0.0 }
  0x73   :  { %v289_v61 = vadd.f32 %v3330_v17, %v218_v51  ;;  %v290_v63 = vadd.f32 %v3330_v17, %v219_v53  ;;  %vm360_vm7 = vcmp.gt.f32.partialorder %v296_v28, 0.0  ;;  %v485_v17 = vsel %vm357_vm4, %v293_v22, %v421_v32 }
  0x74   :  { %v486_v14 = vsel %vm358_vm5, %v294_v23, %v422_v33  ;;  %v487_v41 = vsel %vm359_vm6, %v295_v27, %v423_v36  ;;  %v488_v42 = vsel %vm360_vm7, %v296_v28, %v424_v37 }
  0x75   :  { %vm353_vm14 = vcmp.gt.f32.partialorder %v289_v61, 0.0  ;;  %v417_v8 = vmul.f32 0.01, %v289_v61  ;;  %vm354_vm15 = vcmp.gt.f32.partialorder %v290_v63, 0.0  ;;  %v418_v9 = vmul.f32 0.01, %v290_v63 }
  0x76   :  { %3181 = vmatmul.mubr.msk.bf16.gmra.mrb[56].mxu1 %vm1157_vm1, %v3222_v58  ;;  %v520_v43 = vpack.c.bf16 %v486_v14, %v485_v17  ;;  %v521_v44 = vpack.c.bf16 %v488_v42, %v487_v41 }
  0x77   :  { %3184 = vmatprep.mubr.msk.bf16.mxu1 %vm1157_vm1, %v3223_v60  ;;  %3103 = vmatmul.mubr.msk.bf16.gmra.mrb[44].mxu0 %vm546_vm2, %v514_v46  ;;  %v479_v60 = vsel %vm351_vm12, %v287_v38, %v415_v50  ;;  %v481_v19 = vsel %vm353_vm14, %v289_v61, %v417_v8  ;;  %v3226_v38 = vld [vmem:[%s4192_s2] ss:$0 sm:$0xff] }
  0x78   :  { %3106 = vmatprep.mubr.msk.bf16.mxu0 %vm546_vm2, %v515_v48  ;;  %v517_v7 = vpack.c.bf16 %v480_v62, %v479_v60  ;;  %v297_v39 = vadd.f32 %v3226_v38, %v226_v30 }
  0x7a   :  { %v425_v45 = vmul.f32 0.01, %v297_v39  ;;  %vm361_vm8 = vcmp.gt.f32.partialorder %v297_v39, 0.0 }
  0x7e   :  { %3185 = vmatmul.mubr.msk.bf16.gmra.mrb[60].mxu1 %vm1157_vm1, %v3224_v21  ;;  %vm349_vm1 = vcmp.gt.f32.partialorder %v285_v34, 0.0  ;;  %v482_v21 = vsel %vm354_vm15, %v290_v63, %v418_v9 }
  0x7f   :  { %v477_v58 = vsel %vm349_vm1, %v285_v34, %v413_v47  ;;  %v518_v29 = vpack.c.bf16 %v482_v21, %v481_v19  ;;  %v3225_v34 = vld [vmem:[%s4191_s1] ss:$0 sm:$0xff]  ;;  %v489_v47 = vsel %vm361_vm8, %v297_v39, %v425_v45  ;;  %s3227_s1 = smov 64  }
  0x80   :  { %v516_v6 = vpack.c.bf16 %v478_v59, %v477_v58  ;;  %v227_v35 = vmul.f32 %v3225_v34, %v2764_v24 }
  0x82   :  { %3107 = vmatmul.mubr.msk.bf16.gmra.mrb[48].mxu0 %vm546_vm2, %v516_v6  ;;  %v298_v40 = vadd.f32 %v3226_v38, %v227_v35 }
  0x83   :  { %3110 = vmatprep.mubr.msk.bf16.mxu0 %vm546_vm2, %v517_v7 }
  0x84   :  { %v426_v46 = vmul.f32 0.01, %v298_v40  ;;  %vm362_vm9 = vcmp.gt.f32.partialorder %v298_v40, 0.0 }
  0x86   :  { %v490_v48 = vsel %vm362_vm9, %v298_v40, %v426_v46 }
  0x87   :  { %v522_v49 = vpack.c.bf16 %v490_v48, %v489_v47 }
  0x8a   :  { %3111 = vmatmul.mubr.msk.bf16.gmra.mrb[52].mxu0 %vm546_vm2, %v518_v29 }
  0x8b   :  { %3114 = vmatprep.mubr.msk.bf16.mxu0 %vm546_vm2, %v519_v31 }
  0x92   :  { %3115 = vmatmul.mubr.msk.bf16.gmra.mrb[56].mxu0 %vm546_vm2, %v520_v43 }
  0x93   :  { %3118 = vmatprep.mubr.msk.bf16.mxu0 %vm546_vm2, %v521_v44 }
  0x9a   :  { %3119 = vmatmul.mubr.msk.bf16.gmra.mrb[60].mxu0 %vm546_vm2, %v522_v49  ;;  %vm1803_vm2 = vcmask 523264  }
  0xd9   :  { %v3126_v50 = vpop.f32.mrb[0].mxu1 }
  0xda   :  { %1615 = vrot.lane.b32.xlu1 %v3126_v50, %s3227_s1  ;;  %v1292_v51 = vpop.f32.mrb[1].mxu1 }
  0xdb   :  { %1611 = vrot.lane.b32.xlu0 %v1292_v51, %s3227_s1  ;;  %v3127_v52 = vpop.f32.mrb[2].mxu1 }
  0xdc   :  { %v1295_v53 = vpop.f32.mrb[3].mxu1 }
  0xde   :  { %1617 = vrot.lane.b32.xlu1 %v3127_v52, %s3227_s1 }
  0xdf   :  { %1613 = vrot.lane.b32.xlu0 %v1295_v53, %s3227_s1 }
  0xe1   :  { %v3130_v54 = vpop.f32.mrb[4].mxu1 }
  0xe2   :  { %v1308_v55 = vpop.f32.mrb[5].mxu1 }
  0xe3   :  { %1619 = vrot.lane.b32.xlu0 %v1308_v55, %s3227_s1  ;;  %v3131_v56 = vpop.f32.mrb[6].mxu1 }
  0xe4   :  { %v1311_v57 = vpop.f32.mrb[7].mxu1 }
  0xe5   :  { %1621 = vrot.lane.b32.xlu1 %v1311_v57, %s3227_s1 }
  0xe6   :  { %v3713_v8 = vpop.f32.mrb[0].mxu0 }
  0xe7   :  { %1623 = vrot.lane.b32.xlu0 %v3130_v54, %s3227_s1  ;;  %v3716_v10 = vpop.f32.mrb[1].mxu0 }
  0xe8   :  { %v3718_v12 = vpop.f32.mrb[2].mxu0 }
  0xe9   :  { %1625 = vrot.lane.b32.xlu1 %v3131_v56, %s3227_s1  ;;  %v3134_v58 = vpop.f32.mrb[8].mxu1  ;;  %v3721_v13 = vpop.f32.mrb[3].mxu0 }
  0xea   :  { %v1324_v59 = vpop.f32.mrb[9].mxu1 }
  0xeb   :  { %1627 = vrot.lane.b32.xlu0 %v1324_v59, %s3227_s1  ;;  %v3135_v60 = vpop.f32.mrb[10].mxu1 }
  0xec   :  { %v1327_v61 = vpop.f32.mrb[11].mxu1 }
  0xed   :  { %1629 = vrot.lane.b32.xlu1 %v1327_v61, %s3227_s1 }
  0xef   :  { %1631 = vrot.lane.b32.xlu0 %v3134_v58, %s3227_s1 }
  0xf1   :  { %1633 = vrot.lane.b32.xlu1 %v3135_v60, %s3227_s1  ;;  %v3138_v62 = vpop.f32.mrb[12].mxu1 }
  0xf2   :  { %v1340_v63 = vpop.f32.mrb[13].mxu1 }
  0xf3   :  { %1635 = vrot.lane.b32.xlu0 %v1340_v63, %s3227_s1  ;;  %v3139_v0 = vpop.f32.mrb[14].mxu1 }
  0xf4   :  { %v1343_v1 = vpop.f32.mrb[15].mxu1 }
  0xf5   :  { %1637 = vrot.lane.b32.xlu1 %v1343_v1, %s3227_s1  ;;  %v3725_v18 = vpop.f32.mrb[4].mxu0 }
  0xf6   :  { %v3728_v20 = vpop.f32.mrb[5].mxu0 }
  0xf7   :  { %1639 = vrot.lane.b32.xlu0 %v3138_v62, %s3227_s1  ;;  %v3730_v22 = vpop.f32.mrb[6].mxu0 }
  0xf8   :  { %v3733_v23 = vpop.f32.mrb[7].mxu0 }
  0xf9   :  { %1641 = vrot.lane.b32.xlu1 %v3139_v0, %s3227_s1  ;;  %v3142_v2 = vpop.f32.mrb[16].mxu1 }
  0xfa   :  { %v1356_v3 = vpop.f32.mrb[17].mxu1 }
  0xfb   :  { %1643 = vrot.lane.b32.xlu0 %v1356_v3, %s3227_s1  ;;  %v3143_v4 = vpop.f32.mrb[18].mxu1 }
  0xfc   :  { %v1359_v5 = vpop.f32.mrb[19].mxu1 }
  0xfd   :  { %1645 = vrot.lane.b32.xlu1 %v1359_v5, %s3227_s1 }
  0xff   :  { %1647 = vrot.lane.b32.xlu0 %v3142_v2, %s3227_s1 }
 0x101   :  { %1649 = vrot.lane.b32.xlu1 %v3143_v4, %s3227_s1  ;;  %v3146_v6 = vpop.f32.mrb[20].mxu1 }
 0x102   :  { %v1372_v7 = vpop.f32.mrb[21].mxu1  ;;  %v3737_v26 = vpop.f32.mrb[8].mxu0 }
 0x103   :  { %1651 = vrot.lane.b32.xlu0 %v1372_v7, %s3227_s1  ;;  %v3147_v9 = vpop.f32.mrb[22].mxu1  ;;  %v3740_v28 = vpop.f32.mrb[9].mxu0 }
 0x104   :  { %v1375_v11 = vpop.f32.mrb[23].mxu1  ;;  %v3742_v30 = vpop.f32.mrb[10].mxu0 }
 0x105   :  { %1653 = vrot.lane.b32.xlu1 %v1375_v11, %s3227_s1  ;;  %v3745_v31 = vpop.f32.mrb[11].mxu0 }
 0x107   :  { %1655 = vrot.lane.b32.xlu0 %v3146_v6, %s3227_s1 }
 0x109   :  { %1657 = vrot.lane.b32.xlu1 %v3147_v9, %s3227_s1  ;;  %v3150_v15 = vpop.f32.mrb[24].mxu1 }
 0x10a   :  { %v1388_v16 = vpop.f32.mrb[25].mxu1  ;;  %v3749_v34 = vpop.f32.mrb[12].mxu0 }
 0x10b   :  { %1659 = vrot.lane.b32.xlu0 %v1388_v16, %s3227_s1  ;;  %v3151_v19 = vpop.f32.mrb[26].mxu1  ;;  %v3752_v36 = vpop.f32.mrb[13].mxu0 }
 0x10c   :  { %v1391_v21 = vpop.f32.mrb[27].mxu1  ;;  %v3754_v17 = vpop.f32.mrb[14].mxu0 }
 0x10d   :  { %1661 = vrot.lane.b32.xlu1 %v1391_v21, %s3227_s1  ;;  %v3757_v14 = vpop.f32.mrb[15].mxu0 }
 0x10f   :  { %1663 = vrot.lane.b32.xlu0 %v3150_v15, %s3227_s1 }
 0x111   :  { %1665 = vrot.lane.b32.xlu1 %v3151_v19, %s3227_s1  ;;  %v3154_v24 = vpop.f32.mrb[28].mxu1 }
 0x112   :  { %v1404_v25 = vpop.f32.mrb[29].mxu1  ;;  %v3761_v40 = vpop.f32.mrb[16].mxu0 }
 0x113   :  { %1667 = vrot.lane.b32.xlu0 %v1404_v25, %s3227_s1  ;;  %v3155_v27 = vpop.f32.mrb[30].mxu1  ;;  %v3764_v42 = vpop.f32.mrb[17].mxu0 }
 0x114   :  { %v1407_v29 = vpop.f32.mrb[31].mxu1  ;;  %v3766_v44 = vpop.f32.mrb[18].mxu0 }
 0x115   :  { %1669 = vrot.lane.b32.xlu1 %v1407_v29, %s3227_s1  ;;  %v3769_v45 = vpop.f32.mrb[19].mxu0 }
 0x117   :  { %1671 = vrot.lane.b32.xlu0 %v3154_v24, %s3227_s1  ;;  %v3824_v24 = vld [vmem:[%s4193_s5] ss:$0 sm:$0xff] }
 0x119   :  { %1673 = vrot.lane.b32.xlu1 %v3155_v27, %s3227_s1  ;;  %v3158_v32 = vpop.f32.mrb[32].mxu1 }
 0x11a   :  { %v1420_v33 = vpop.f32.mrb[33].mxu1  ;;  %v3773_v48 = vpop.f32.mrb[20].mxu0 }
 0x11b   :  { %1675 = vrot.lane.b32.xlu0 %v1420_v33, %s3227_s1  ;;  %v3159_v35 = vpop.f32.mrb[34].mxu1  ;;  %v3776_v50 = vpop.f32.mrb[21].mxu0 }
 0x11c   :  { %v1423_v37 = vpop.f32.mrb[35].mxu1  ;;  %v3778_v52 = vpop.f32.mrb[22].mxu0 }
 0x11d   :  { %1677 = vrot.lane.b32.xlu1 %v1423_v37, %s3227_s1  ;;  %v3781_v53 = vpop.f32.mrb[23].mxu0 }
 0x11f   :  { %1679 = vrot.lane.b32.xlu0 %v3158_v32, %s3227_s1 }
 0x121   :  { %1681 = vrot.lane.b32.xlu1 %v3159_v35, %s3227_s1  ;;  %v3162_v38 = vpop.f32.mrb[36].mxu1  ;;  %v678_v35 = vadd.f32 %v3824_v24, %v3716_v10  ;;  %v681_v10 = vadd.f32 %v3824_v24, %v3721_v13  ;;  %v694_v13 = vadd.f32 %v3824_v24, %v3728_v20 }
 0x122   :  { %v1436_v39 = vpop.f32.mrb[37].mxu1  ;;  %v3785_v56 = vpop.f32.mrb[24].mxu0 }
 0x123   :  { %1683 = vrot.lane.b32.xlu0 %v1436_v39, %s3227_s1  ;;  %v3163_v41 = vpop.f32.mrb[38].mxu1  ;;  %v3788_v58 = vpop.f32.mrb[25].mxu0  ;;  %v686_v39 = vadd.f32 %v3713_v8, %v3824_v24  ;;  %v3228_v8 = vmov 0.0  }
 0x124   :  { %v1439_v43 = vpop.f32.mrb[39].mxu1  ;;  %v3790_v60 = vpop.f32.mrb[26].mxu0  ;;  %2396 = vst [vmem:[%s4194_s8] sm:$0x3] %v3228_v8 }
 0x125   :  { %1685 = vrot.lane.b32.xlu1 %v1439_v43, %s3227_s1  ;;  %v3793_v61 = vpop.f32.mrb[27].mxu0 }
 0x127   :  { %1687 = vrot.lane.b32.xlu0 %v3162_v38, %s3227_s1 }
 0x129   :  { %1689 = vrot.lane.b32.xlu1 %v3163_v41, %s3227_s1  ;;  %v3166_v46 = vpop.f32.mrb[40].mxu1 }
 0x12a   :  { %v1452_v47 = vpop.f32.mrb[41].mxu1  ;;  %v3797_v0 = vpop.f32.mrb[28].mxu0 }
 0x12b   :  { %1691 = vrot.lane.b32.xlu0 %v1452_v47, %s3227_s1  ;;  %v3167_v49 = vpop.f32.mrb[42].mxu1  ;;  %v3800_v2 = vpop.f32.mrb[29].mxu0  ;;  %v689_v47 = vadd.f32 %v3718_v12, %v3824_v24 }
 0x12c   :  { %v1455_v51 = vpop.f32.mrb[43].mxu1  ;;  %v3802_v4 = vpop.f32.mrb[30].mxu0 }
 0x12d   :  { %1693 = vrot.lane.b32.xlu1 %v1455_v51, %s3227_s1  ;;  %v3805_v5 = vpop.f32.mrb[31].mxu0 }
 0x12f   :  { %1695 = vrot.lane.b32.xlu0 %v3166_v46, %s3227_s1 }
 0x131   :  { %1697 = vrot.lane.b32.xlu1 %v3167_v49, %s3227_s1  ;;  %v3170_v54 = vpop.f32.mrb[44].mxu1 }
 0x132   :  { %v1468_v55 = vpop.f32.mrb[45].mxu1  ;;  %v3809_v9 = vpop.f32.mrb[32].mxu0 }
 0x133   :  { %1699 = vrot.lane.b32.xlu0 %v1468_v55, %s3227_s1  ;;  %v3171_v57 = vpop.f32.mrb[46].mxu1  ;;  %v3812_v15 = vpop.f32.mrb[33].mxu0 }
 0x134   :  { %v1471_v59 = vpop.f32.mrb[47].mxu1  ;;  %v3814_v19 = vpop.f32.mrb[34].mxu0 }
 0x135   :  { %1701 = vrot.lane.b32.xlu1 %v1471_v59, %s3227_s1  ;;  %v3817_v21 = vpop.f32.mrb[35].mxu0 }
 0x137   :  { %1703 = vrot.lane.b32.xlu0 %v3170_v54, %s3227_s1 }
 0x139   :  { %1705 = vrot.lane.b32.xlu1 %v3171_v57, %s3227_s1  ;;  %v3174_v62 = vpop.f32.mrb[48].mxu1 }
 0x13a   :  { %v1484_v63 = vpop.f32.mrb[49].mxu1  ;;  %v3826_v29 = vpop.f32.mrb[36].mxu0 }
 0x13b   :  { %1707 = vrot.lane.b32.xlu0 %v1484_v63, %s3227_s1  ;;  %v3175_v1 = vpop.f32.mrb[50].mxu1  ;;  %v3829_v33 = vpop.f32.mrb[37].mxu0 }
 0x13c   :  { %v1487_v3 = vpop.f32.mrb[51].mxu1  ;;  %v3836_v43 = vpop.f32.mrb[38].mxu0 }
 0x13d   :  { %1709 = vrot.lane.b32.xlu1 %v1487_v3, %s3227_s1  ;;  %v3838_v46 = vpop.f32.mrb[39].mxu0 }
 0x13f   :  { %1711 = vrot.lane.b32.xlu0 %v3174_v62, %s3227_s1 }
 0x141   :  { %1713 = vrot.lane.b32.xlu1 %v3175_v1, %s3227_s1  ;;  %v3178_v6 = vpop.f32.mrb[52].mxu1 }
 0x142   :  { %v1500_v7 = vpop.f32.mrb[53].mxu1  ;;  %v3855_v1 = vpop.f32.mrb[40].mxu0 }
 0x143   :  { %1715 = vrot.lane.b32.xlu0 %v1500_v7, %s3227_s1  ;;  %v3179_v11 = vpop.f32.mrb[54].mxu1 }
 0x144   :  { %v1503_v16 = vpop.f32.mrb[55].mxu1 }
 0x145   :  { %1717 = vrot.lane.b32.xlu1 %v1503_v16, %s3227_s1 }
 0x147   :  { %1719 = vrot.lane.b32.xlu0 %v3178_v6, %s3227_s1 }
 0x149   :  { %1721 = vrot.lane.b32.xlu1 %v3179_v11, %s3227_s1  ;;  %v3182_v25 = vpop.f32.mrb[56].mxu1 }
 0x14a   :  { %v1516_v27 = vpop.f32.mrb[57].mxu1 }
 0x14b   :  { %1723 = vrot.lane.b32.xlu0 %v1516_v27, %s3227_s1  ;;  %v3183_v32 = vpop.f32.mrb[58].mxu1  ;;  %v697_v27 = vadd.f32 %v3824_v24, %v3733_v23 }
 0x14c   :  { %v1616_v37 = vpop.permute.xlu1 %1615  ;;  %v1519_v38 = vpop.f32.mrb[59].mxu1 }
 0x14d   :  { %v1612_v41 = vpop.permute.xlu0 %1611  ;;  %1725 = vrot.lane.b32.xlu1 %v1519_v38, %s3227_s1  ;;  %v1806_v54 = vsel %vm1803_vm2, %v686_v39, %v1616_v37 }
 0x14e   :  { %v1804_v49 = vsel %vm1803_vm2, %v678_v35, %v1612_v41  ;;  %v2259_v35 = vmul.f32 %v1806_v54, %v1806_v54 }
 0x14f   :  { %1727 = vrot.lane.b32.xlu0 %v3182_v25, %s3227_s1  ;;  %v2257_v3 = vmul.f32 %v1804_v49, %v1804_v49  ;;  %v3858_v25 = vpop.f32.mrb[41].mxu0 }
 0x150   :  { %v1618_v51 = vpop.permute.xlu1 %1617 }
 0x151   :  { %v1807_v55 = vsel %vm1803_vm2, %v689_v47, %v1618_v51  ;;  %v1614_v57 = vpop.permute.xlu0 %1613  ;;  %1729 = vrot.lane.b32.xlu1 %v3183_v32, %s3227_s1  ;;  %v3186_v12 = vpop.f32.mrb[60].mxu1 }
 0x152   :  { %v2773_v59 = vpack.c.bf16 %v1807_v55, %v1806_v54  ;;  %v1805_v62 = vsel %vm1803_vm2, %v681_v10, %v1614_v57  ;;  %v1532_v63 = vpop.f32.mrb[61].mxu1  ;;  %v3865_v32 = vpop.f32.mrb[42].mxu0  ;;  %v2260_v10 = vmul.f32 %v1807_v55, %v1807_v55  ;;  %v702_v57 = vadd.f32 %v3725_v18, %v3824_v24 }
 0x153   :  { %v2768_v6 = vpack.c.bf16 %v1805_v62, %v1804_v49  ;;  %v2188_v7 = vadd.f32 %v1805_v62, %v1804_v49  ;;  %v2258_v11 = vmul.f32 %v1805_v62, %v1805_v62  ;;  %1731 = vrot.lane.b32.xlu0 %v1532_v63, %s3227_s1  ;;  %v3187_v16 = vpop.f32.mrb[62].mxu1  ;;  %v3871_v41 = vpop.f32.mrb[43].mxu0 }
 0x154   :  { %2956 = vst [vmem:[%s4195_s7 + $0x8] sm:$0xff] %v2773_v59   ;;  %v1535_v20 = vpop.f32.mrb[63].mxu1 }
 0x155   :  { %2769 = vst [vmem:[%s4195_s7] sm:$0xff] %v2768_v6   ;;  %v2189_v37 = vadd.f32 %v2188_v7, %v1806_v54  ;;  %v2321_v38 = vadd.f32 %v2258_v11, %v2257_v3  ;;  %v1620_v39 = vpop.permute.xlu0 %1619  ;;  %1733 = vrot.lane.b32.xlu1 %v1535_v20, %s3227_s1  ;;  %v710_v6 = vadd.f32 %v3824_v24, %v3740_v28 }
 0x156   :  { %v1808_v47 = vsel %vm1803_vm2, %v694_v13, %v1620_v39  ;;  %v705_v13 = vadd.f32 %v3730_v22, %v3824_v24  ;;  %v713_v22 = vadd.f32 %v3824_v24, %v3745_v31 }
 0x157   :  { %v2190_v49 = vadd.f32 %v2189_v37, %v1807_v55  ;;  %v2322_v23 = vadd.f32 %v2321_v38, %v2259_v35  ;;  %v2261_v51 = vmul.f32 %v1808_v47, %v1808_v47  ;;  %v1622_v8 = vpop.permute.xlu1 %1621  ;;  %1735 = vrot.lane.b32.xlu0 %v3186_v12, %s3227_s1  ;;  %v3884_v12 = vpop.f32.mrb[44].mxu0 }
 0x158   :  { %v1809_v54 = vsel %vm1803_vm2, %v697_v27, %v1622_v8  ;;  %v3889_v20 = vpop.f32.mrb[45].mxu0 }
 0x159   :  { %v2323_v59 = vadd.f32 %v2322_v23, %v2260_v10  ;;  %v2191_v62 = vadd.f32 %v2190_v49, %v1808_v47  ;;  %v2778_v63 = vpack.c.bf16 %v1809_v54, %v1808_v47  ;;  %v1624_v3 = vpop.permute.xlu0 %1623  ;;  %1737 = vrot.lane.b32.xlu1 %v3187_v16, %s3227_s1  ;;  %v2262_v11 = vmul.f32 %v1809_v54, %v1809_v54  ;;  %v3894_v35 = vpop.f32.mrb[46].mxu0 }
 0x15a   :  { %v1810_v55 = vsel %vm1803_vm2, %v702_v57, %v1624_v3  ;;  %v3896_v10 = vpop.f32.mrb[47].mxu0 }
 0x15b   :  { %v2324_v7 = vadd.f32 %v2323_v59, %v2261_v51  ;;  %2957 = vst [vmem:[%s4195_s7 + $0x10] sm:$0xff] %v2778_v63   ;;  %v2192_v18 = vadd.f32 %v2191_v62, %v1809_v54  ;;  %v1626_v27 = vpop.permute.xlu1 %1625  ;;  %v2263_v38 = vmul.f32 %v1810_v55, %v1810_v55  ;;  %v718_v54 = vadd.f32 %v3737_v26, %v3824_v24 }
 0x15c   :  { %v1811_v16 = vsel %vm1803_vm2, %v705_v13, %v1626_v27 }
 0x15d   :  { %v2325_v28 = vadd.f32 %v2324_v7, %v2262_v11  ;;  %v2193_v37 = vadd.f32 %v2192_v18, %v1810_v55  ;;  %v2783_v39 = vpack.c.bf16 %v1811_v16, %v1810_v55  ;;  %v1628_v47 = vpop.permute.xlu0 %1627  ;;  %v2264_v8 = vmul.f32 %v1811_v16, %v1811_v16  ;;  %v3910_v18 = vpop.f32.mrb[48].mxu0 }
 0x15e   :  { %v1812_v49 = vsel %vm1803_vm2, %v710_v6, %v1628_v47  ;;  %v721_v55 = vadd.f32 %v3742_v30, %v3824_v24  ;;  %v726_v7 = vadd.f32 %v3824_v24, %v3752_v36  ;;  %v729_v30 = vadd.f32 %v3824_v24, %v3757_v14 }
 0x15f   :  { %v2326_v23 = vadd.f32 %v2325_v28, %v2263_v38  ;;  %2958 = vst [vmem:[%s4195_s7 + $0x18] sm:$0xff] %v2783_v39   ;;  %v2194_v51 = vadd.f32 %v2193_v37, %v1811_v16  ;;  %v2265_v57 = vmul.f32 %v1812_v49, %v1812_v49  ;;  %v1630_v31 = vpop.permute.xlu1 %1629 }
 0x160   :  { %v1813_v59 = vsel %vm1803_vm2, %v713_v22, %v1630_v31  ;;  %v3915_v22 = vpop.f32.mrb[49].mxu0 }
 0x161   :  { %v2327_v62 = vadd.f32 %v2326_v23, %v2264_v8  ;;  %v2195_v63 = vadd.f32 %v2194_v51, %v1812_v49  ;;  %v2788_v3 = vpack.c.bf16 %v1813_v59, %v1812_v49  ;;  %v1632_v13 = vpop.permute.xlu0 %1631  ;;  %v2266_v27 = vmul.f32 %v1813_v59, %v1813_v59  ;;  %v3920_v37 = vpop.f32.mrb[50].mxu0 }
 0x162   :  { %v1814_v6 = vsel %vm1803_vm2, %v718_v54, %v1632_v13  ;;  %v3922_v23 = vpop.f32.mrb[51].mxu0 }
 0x163   :  { %v2328_v11 = vadd.f32 %v2327_v62, %v2265_v57  ;;  %2959 = vst [vmem:[%s4195_s7 + $0x20] sm:$0xff] %v2788_v3   ;;  %v2196_v26 = vadd.f32 %v2195_v63, %v1813_v59  ;;  %v1634_v16 = vpop.permute.xlu1 %1633  ;;  %v2267_v39 = vmul.f32 %v1814_v6, %v1814_v6  ;;  %v734_v59 = vadd.f32 %v3749_v34, %v3824_v24 }
 0x164   :  { %v1815_v28 = vsel %vm1803_vm2, %v721_v55, %v1634_v16 }
 0x165   :  { %v2329_v36 = vadd.f32 %v2328_v11, %v2266_v27  ;;  %v2197_v38 = vadd.f32 %v2196_v26, %v1814_v6  ;;  %v2793_v47 = vpack.c.bf16 %v1815_v28, %v1814_v6  ;;  %v1636_v49 = vpop.permute.xlu0 %1635  ;;  %v2268_v31 = vmul.f32 %v1815_v28, %v1815_v28  ;;  %v3936_v26 = vpop.f32.mrb[52].mxu0 }
 0x166   :  { %v1816_v51 = vsel %vm1803_vm2, %v726_v7, %v1636_v49  ;;  %v737_v6 = vadd.f32 %v3754_v17, %v3824_v24  ;;  %v742_v11 = vadd.f32 %v3824_v24, %v3764_v42  ;;  %v745_v17 = vadd.f32 %v3824_v24, %v3769_v45 }
 0x167   :  { %v2330_v8 = vadd.f32 %v2329_v36, %v2267_v39  ;;  %2960 = vst [vmem:[%s4195_s7 + $0x28] sm:$0xff] %v2793_v47   ;;  %v2198_v57 = vadd.f32 %v2197_v38, %v1815_v28  ;;  %v2269_v54 = vmul.f32 %v1816_v51, %v1816_v51  ;;  %v1638_v14 = vpop.permute.xlu1 %1637 }
 0x168   :  { %v1817_v62 = vsel %vm1803_vm2, %v729_v30, %v1638_v14  ;;  %v3941_v30 = vpop.f32.mrb[53].mxu0 }
 0x169   :  { %v2331_v63 = vadd.f32 %v2330_v8, %v2268_v31  ;;  %v2199_v3 = vadd.f32 %v2198_v57, %v1816_v51  ;;  %v2798_v13 = vpack.c.bf16 %v1817_v62, %v1816_v51  ;;  %v1640_v55 = vpop.permute.xlu0 %1639  ;;  %v2270_v16 = vmul.f32 %v1817_v62, %v1817_v62  ;;  %v3946_v38 = vpop.f32.mrb[54].mxu0 }
 0x16a   :  { %v1818_v7 = vsel %vm1803_vm2, %v734_v59, %v1640_v55  ;;  %v3948_v8 = vpop.f32.mrb[55].mxu0 }
 0x16b   :  { %v2332_v27 = vadd.f32 %v2331_v63, %v2269_v54  ;;  %2961 = vst [vmem:[%s4195_s7 + $0x30] sm:$0xff] %v2798_v13   ;;  %v2200_v34 = vadd.f32 %v2199_v3, %v1817_v62  ;;  %v1642_v28 = vpop.permute.xlu1 %1641  ;;  %v2271_v47 = vmul.f32 %v1818_v7, %v1818_v7  ;;  %v750_v62 = vadd.f32 %v3761_v40, %v3824_v24 }
 0x16c   :  { %v1819_v36 = vsel %vm1803_vm2, %v737_v6, %v1642_v28 }
 0x16d   :  { %v2333_v42 = vadd.f32 %v2332_v27, %v2270_v16  ;;  %v2201_v39 = vadd.f32 %v2200_v34, %v1818_v7  ;;  %v2803_v49 = vpack.c.bf16 %v1819_v36, %v1818_v7  ;;  %v1644_v51 = vpop.permute.xlu0 %1643  ;;  %v2272_v14 = vmul.f32 %v1819_v36, %v1819_v36  ;;  %v3962_v34 = vpop.f32.mrb[56].mxu0 }
 0x16e   :  { %v1820_v57 = vsel %vm1803_vm2, %v742_v11, %v1644_v51  ;;  %v753_v7 = vadd.f32 %v3766_v44, %v3824_v24  ;;  %v758_v27 = vadd.f32 %v3824_v24, %v3776_v50  ;;  %v761_v44 = vadd.f32 %v3824_v24, %v3781_v53 }
 0x16f   :  { %v2334_v31 = vadd.f32 %v2333_v42, %v2271_v47  ;;  %2962 = vst [vmem:[%s4195_s7 + $0x38] sm:$0xff] %v2803_v49   ;;  %v2202_v54 = vadd.f32 %v2201_v39, %v1819_v36  ;;  %v2273_v59 = vmul.f32 %v1820_v57, %v1820_v57  ;;  %v1646_v45 = vpop.permute.xlu1 %1645 }
 0x170   :  { %v1821_v63 = vsel %vm1803_vm2, %v745_v17, %v1646_v45  ;;  %v3967_v17 = vpop.f32.mrb[57].mxu0 }
 0x171   :  { %v2335_v3 = vadd.f32 %v2334_v31, %v2272_v14  ;;  %v2203_v13 = vadd.f32 %v2202_v54, %v1820_v57  ;;  %v2808_v55 = vpack.c.bf16 %v1821_v63, %v1820_v57  ;;  %v1648_v6 = vpop.permute.xlu0 %1647  ;;  %v2274_v28 = vmul.f32 %v1821_v63, %v1821_v63  ;;  %v3972_v39 = vpop.f32.mrb[58].mxu0 }
 0x172   :  { %v1822_v11 = vsel %vm1803_vm2, %v750_v62, %v1648_v6  ;;  %v3974_v31 = vpop.f32.mrb[59].mxu0 }
 0x173   :  { %v2336_v16 = vadd.f32 %v2335_v3, %v2273_v59  ;;  %2963 = vst [vmem:[%s4195_s7 + $0x40] sm:$0xff] %v2808_v55   ;;  %v2204_v40 = vadd.f32 %v2203_v13, %v1821_v63  ;;  %v1650_v36 = vpop.permute.xlu1 %1649  ;;  %v2275_v49 = vmul.f32 %v1822_v11, %v1822_v11  ;;  %v766_v63 = vadd.f32 %v3773_v48, %v3824_v24 }
 0x174   :  { %v1823_v42 = vsel %vm1803_vm2, %v753_v7, %v1650_v36 }
 0x175   :  { %v2337_v50 = vadd.f32 %v2336_v16, %v2274_v28  ;;  %v2205_v47 = vadd.f32 %v2204_v40, %v1822_v11  ;;  %v2813_v51 = vpack.c.bf16 %v1823_v42, %v1822_v11  ;;  %v1652_v57 = vpop.permute.xlu0 %1651  ;;  %v2276_v45 = vmul.f32 %v1823_v42, %v1823_v42  ;;  %v3988_v40 = vpop.f32.mrb[60].mxu0 }
 0x176   :  { %v1824_v54 = vsel %vm1803_vm2, %v758_v27, %v1652_v57  ;;  %v769_v11 = vadd.f32 %v3778_v52, %v3824_v24  ;;  %v774_v16 = vadd.f32 %v3824_v24, %v3788_v58  ;;  %v777_v52 = vadd.f32 %v3824_v24, %v3793_v61 }
 0x177   :  { %v2338_v14 = vadd.f32 %v2337_v50, %v2275_v49  ;;  %2964 = vst [vmem:[%s4195_s7 + $0x48] sm:$0xff] %v2813_v51   ;;  %v2206_v59 = vadd.f32 %v2205_v47, %v1823_v42  ;;  %v2277_v62 = vmul.f32 %v1824_v54, %v1824_v54  ;;  %v1654_v53 = vpop.permute.xlu1 %1653 }
 0x178   :  { %v1825_v3 = vsel %vm1803_vm2, %v761_v44, %v1654_v53  ;;  %v3993_v44 = vpop.f32.mrb[61].mxu0 }
 0x179   :  { %v2339_v13 = vadd.f32 %v2338_v14, %v2276_v45  ;;  %v2207_v55 = vadd.f32 %v2206_v59, %v1824_v54  ;;  %v2818_v6 = vpack.c.bf16 %v1825_v3, %v1824_v54  ;;  %v1656_v7 = vpop.permute.xlu0 %1655  ;;  %v2278_v36 = vmul.f32 %v1825_v3, %v1825_v3  ;;  %v3998_v47 = vpop.f32.mrb[62].mxu0 }
 0x17a   :  { %v1826_v27 = vsel %vm1803_vm2, %v766_v63, %v1656_v7  ;;  %v4000_v14 = vpop.f32.mrb[63].mxu0 }
 0x17b   :  { %v2340_v28 = vadd.f32 %v2339_v13, %v2277_v62  ;;  %2965 = vst [vmem:[%s4195_s7 + $0x50] sm:$0xff] %v2818_v6   ;;  %v2208_v48 = vadd.f32 %v2207_v55, %v1825_v3  ;;  %v1658_v42 = vpop.permute.xlu1 %1657  ;;  %v2279_v51 = vmul.f32 %v1826_v27, %v1826_v27  ;;  %v782_v3 = vadd.f32 %v3785_v56, %v3824_v24 }
 0x17c   :  { %v1827_v50 = vsel %vm1803_vm2, %v769_v11, %v1658_v42 }
 0x17d   :  { %v2341_v58 = vadd.f32 %v2340_v28, %v2278_v36  ;;  %v2209_v49 = vadd.f32 %v2208_v48, %v1826_v27  ;;  %v2823_v57 = vpack.c.bf16 %v1827_v50, %v1826_v27  ;;  %v1660_v54 = vpop.permute.xlu0 %1659  ;;  %v2280_v53 = vmul.f32 %v1827_v50, %v1827_v50 }
 0x17e   :  { %v1828_v59 = vsel %vm1803_vm2, %v774_v16, %v1660_v54  ;;  %v785_v27 = vadd.f32 %v3790_v60, %v3824_v24  ;;  %v790_v28 = vadd.f32 %v3824_v24, %v3800_v2 }
 0x17f   :  { %v2342_v45 = vadd.f32 %v2341_v58, %v2279_v51  ;;  %2966 = vst [vmem:[%s4195_s7 + $0x58] sm:$0xff] %v2823_v57   ;;  %v2210_v62 = vadd.f32 %v2209_v49, %v1827_v50  ;;  %v2281_v63 = vmul.f32 %v1828_v59, %v1828_v59  ;;  %v1662_v61 = vpop.permute.xlu1 %1661 }
 0x180   :  { %v1829_v13 = vsel %vm1803_vm2, %v777_v52, %v1662_v61  ;;  %v793_v52 = vadd.f32 %v3824_v24, %v3805_v5 }
 0x181   :  { %v2343_v55 = vadd.f32 %v2342_v45, %v2280_v53  ;;  %v2211_v6 = vadd.f32 %v2210_v62, %v1828_v59  ;;  %v2828_v7 = vpack.c.bf16 %v1829_v13, %v1828_v59  ;;  %v1664_v11 = vpop.permute.xlu0 %1663  ;;  %v2282_v36 = vmul.f32 %v1829_v13, %v1829_v13 }
 0x182   :  { %v1830_v16 = vsel %vm1803_vm2, %v782_v3, %v1664_v11  ;;  %v806_v11 = vadd.f32 %v3824_v24, %v3812_v15 }
 0x183   :  { %v2344_v48 = vadd.f32 %v2343_v55, %v2281_v63  ;;  %2967 = vst [vmem:[%s4195_s7 + $0x60] sm:$0xff] %v2828_v7   ;;  %v2212_v56 = vadd.f32 %v2211_v6, %v1829_v13  ;;  %v1666_v42 = vpop.permute.xlu1 %1665  ;;  %v2283_v49 = vmul.f32 %v1830_v16, %v1830_v16  ;;  %v798_v63 = vadd.f32 %v3797_v0, %v3824_v24 }
 0x184   :  { %v1831_v50 = vsel %vm1803_vm2, %v785_v27, %v1666_v42  ;;  %v801_v6 = vadd.f32 %v3802_v4, %v3824_v24 }
 0x185   :  { %v2345_v58 = vadd.f32 %v2344_v48, %v2282_v36  ;;  %v2213_v60 = vadd.f32 %v2212_v56, %v1830_v16  ;;  %v2833_v51 = vpack.c.bf16 %v1831_v50, %v1830_v16  ;;  %v1668_v57 = vpop.permute.xlu0 %1667  ;;  %v2284_v45 = vmul.f32 %v1831_v50, %v1831_v50 }
 0x186   :  { %v1832_v2 = vsel %vm1803_vm2, %v790_v28, %v1668_v57  ;;  %v809_v56 = vadd.f32 %v3824_v24, %v3817_v21 }
 0x187   :  { %v2346_v54 = vadd.f32 %v2345_v58, %v2283_v49  ;;  %2968 = vst [vmem:[%s4195_s7 + $0x68] sm:$0xff] %v2833_v51   ;;  %v2214_v59 = vadd.f32 %v2213_v60, %v1831_v50  ;;  %v2285_v62 = vmul.f32 %v1832_v2, %v1832_v2  ;;  %v1670_v53 = vpop.permute.xlu1 %1669 }
 0x188   :  { %v1833_v5 = vsel %vm1803_vm2, %v793_v52, %v1670_v53  ;;  %v817_v53 = vadd.f32 %v3814_v19, %v3824_v24 }
 0x189   :  { %v2347_v61 = vadd.f32 %v2346_v54, %v2284_v45  ;;  %v2215_v3 = vadd.f32 %v2214_v59, %v1832_v2  ;;  %v2838_v13 = vpack.c.bf16 %v1833_v5, %v1832_v2  ;;  %v1672_v55 = vpop.permute.xlu0 %1671  ;;  %v2286_v16 = vmul.f32 %v1833_v5, %v1833_v5 }
 0x18a   :  { %v1834_v7 = vsel %vm1803_vm2, %v798_v63, %v1672_v55  ;;  %v814_v2 = vadd.f32 %v3809_v9, %v3824_v24 }
 0x18b   :  { %v2348_v27 = vadd.f32 %v2347_v61, %v2285_v62  ;;  %2969 = vst [vmem:[%s4195_s7 + $0x70] sm:$0xff] %v2838_v13   ;;  %v2216_v0 = vadd.f32 %v2215_v3, %v1833_v5  ;;  %v1674_v28 = vpop.permute.xlu1 %1673  ;;  %v2287_v42 = vmul.f32 %v1834_v7, %v1834_v7  ;;  %v822_v5 = vadd.f32 %v3824_v24, %v3829_v33 }
 0x18c   :  { %v1835_v48 = vsel %vm1803_vm2, %v801_v6, %v1674_v28  ;;  %v825_v6 = vadd.f32 %v3824_v24, %v3838_v46 }
 0x18d   :  { %v2349_v36 = vadd.f32 %v2348_v27, %v2286_v16  ;;  %v2217_v4 = vadd.f32 %v2216_v0, %v1834_v7  ;;  %v2843_v50 = vpack.c.bf16 %v1835_v48, %v1834_v7  ;;  %v1676_v52 = vpop.permute.xlu0 %1675  ;;  %v2288_v49 = vmul.f32 %v1835_v48, %v1835_v48 }
 0x18e   :  { %v1836_v15 = vsel %vm1803_vm2, %v806_v11, %v1676_v52 }
 0x18f   :  { %v2350_v58 = vadd.f32 %v2349_v36, %v2287_v42  ;;  %2970 = vst [vmem:[%s4195_s7 + $0x78] sm:$0xff] %v2843_v50   ;;  %v2218_v60 = vadd.f32 %v2217_v4, %v1835_v48  ;;  %v2289_v51 = vmul.f32 %v1836_v15, %v1836_v15  ;;  %v1678_v57 = vpop.permute.xlu1 %1677  ;;  %v830_v4 = vadd.f32 %v3826_v29, %v3824_v24 }
 0x190   :  { %v1837_v21 = vsel %vm1803_vm2, %v809_v56, %v1678_v57 }
 0x191   :  { %v2351_v54 = vadd.f32 %v2350_v58, %v2288_v49  ;;  %v2219_v59 = vadd.f32 %v2218_v60, %v1836_v15  ;;  %v2848_v45 = vpack.c.bf16 %v1837_v21, %v1836_v15  ;;  %v1680_v62 = vpop.permute.xlu0 %1679  ;;  %v2290_v3 = vmul.f32 %v1837_v21, %v1837_v21 }
 0x192   :  { %v1838_v63 = vsel %vm1803_vm2, %v814_v2, %v1680_v62  ;;  %v833_v58 = vadd.f32 %v3836_v43, %v3824_v24  ;;  %v838_v49 = vadd.f32 %v3824_v24, %v3858_v25 }
 0x193   :  { %v2352_v61 = vadd.f32 %v2351_v54, %v2289_v51  ;;  %2971 = vst [vmem:[%s4195_s7 + $0x80] sm:$0xff] %v2848_v45   ;;  %v2220_v9 = vadd.f32 %v2219_v59, %v1837_v21  ;;  %v1682_v13 = vpop.permute.xlu1 %1681  ;;  %v2291_v11 = vmul.f32 %v1838_v63, %v1838_v63  ;;  %v841_v54 = vadd.f32 %v3824_v24, %v3871_v41 }
 0x194   :  { %v1839_v55 = vsel %vm1803_vm2, %v817_v53, %v1682_v13  ;;  %v846_v13 = vadd.f32 %v3855_v1, %v3824_v24 }
 0x195   :  { %v2353_v7 = vadd.f32 %v2352_v61, %v2290_v3  ;;  %v2221_v19 = vadd.f32 %v2220_v9, %v1838_v63  ;;  %v2853_v27 = vpack.c.bf16 %v1839_v55, %v1838_v63  ;;  %v1684_v0 = vpop.permute.xlu0 %1683  ;;  %v2292_v48 = vmul.f32 %v1839_v55, %v1839_v55 }
 0x196   :  { %v1840_v33 = vsel %vm1803_vm2, %v822_v5, %v1684_v0  ;;  %v854_v0 = vadd.f32 %v3824_v24, %v3889_v20 }
 0x197   :  { %v2354_v16 = vadd.f32 %v2353_v7, %v2291_v11  ;;  %2972 = vst [vmem:[%s4195_s7 + $0x88] sm:$0xff] %v2853_v27   ;;  %v2222_v28 = vadd.f32 %v2221_v19, %v1839_v55  ;;  %v2293_v56 = vmul.f32 %v1840_v33, %v1840_v33  ;;  %v1686_v36 = vpop.permute.xlu1 %1685  ;;  %v849_v11 = vadd.f32 %v3865_v32, %v3824_v24 }
 0x198   :  { %v1841_v46 = vsel %vm1803_vm2, %v825_v6, %v1686_v36 }
 0x199   :  { %v2355_v42 = vadd.f32 %v2354_v16, %v2292_v48  ;;  %v2223_v50 = vadd.f32 %v2222_v28, %v1840_v33  ;;  %v2858_v52 = vpack.c.bf16 %v1841_v46, %v1840_v33  ;;  %v1688_v15 = vpop.permute.xlu0 %1687  ;;  %v2294_v57 = vmul.f32 %v1841_v46, %v1841_v46 }
 0x19a   :  { %v1842_v60 = vsel %vm1803_vm2, %v830_v4, %v1688_v15 }
 0x19b   :  { %v2356_v51 = vadd.f32 %v2355_v42, %v2293_v56  ;;  %2973 = vst [vmem:[%s4195_s7 + $0x90] sm:$0xff] %v2858_v52   ;;  %v2224_v29 = vadd.f32 %v2223_v50, %v1841_v46  ;;  %v1690_v2 = vpop.permute.xlu1 %1689  ;;  %v2295_v45 = vmul.f32 %v1842_v60, %v1842_v60  ;;  %v857_v56 = vadd.f32 %v3824_v24, %v3896_v10 }
 0x19c   :  { %v1843_v21 = vsel %vm1803_vm2, %v833_v58, %v1690_v2 }
 0x19d   :  { %v2357_v59 = vadd.f32 %v2356_v51, %v2294_v57  ;;  %v2225_v43 = vadd.f32 %v2224_v29, %v1842_v60  ;;  %v2863_v62 = vpack.c.bf16 %v1843_v21, %v1842_v60  ;;  %v1692_v53 = vpop.permute.xlu0 %1691  ;;  %v2296_v61 = vmul.f32 %v1843_v21, %v1843_v21 }
 0x19e   :  { %v1844_v25 = vsel %vm1803_vm2, %v838_v49, %v1692_v53  ;;  %v862_v49 = vadd.f32 %v3884_v12, %v3824_v24 }
 0x19f   :  { %v2358_v63 = vadd.f32 %v2357_v59, %v2295_v45  ;;  %2974 = vst [vmem:[%s4195_s7 + $0x98] sm:$0xff] %v2863_v62   ;;  %v2226_v5 = vadd.f32 %v2225_v43, %v1843_v21  ;;  %v2297_v9 = vmul.f32 %v1844_v25, %v1844_v25  ;;  %v1694_v3 = vpop.permute.xlu1 %1693  ;;  %v865_v21 = vadd.f32 %v3894_v35, %v3824_v24 }
 0x1a0   :  { %v1845_v41 = vsel %vm1803_vm2, %v841_v54, %v1694_v3  ;;  %v870_v59 = vadd.f32 %v3824_v24, %v3915_v22 }
 0x1a1   :  { %v2359_v55 = vadd.f32 %v2358_v63, %v2296_v61  ;;  %v2227_v6 = vadd.f32 %v2226_v5, %v1844_v25  ;;  %v2868_v7 = vpack.c.bf16 %v1845_v41, %v1844_v25  ;;  %v1696_v19 = vpop.permute.xlu0 %1695  ;;  %v2298_v16 = vmul.f32 %v1845_v41, %v1845_v41 }
 0x1a2   :  { %v1846_v27 = vsel %vm1803_vm2, %v846_v13, %v1696_v19  ;;  %v873_v25 = vadd.f32 %v3824_v24, %v3922_v23 }
 0x1a3   :  { %v2360_v33 = vadd.f32 %v2359_v55, %v2297_v9  ;;  %2975 = vst [vmem:[%s4195_s7 + $0xa0] sm:$0xff] %v2868_v7   ;;  %v2228_v1 = vadd.f32 %v2227_v6, %v1845_v41  ;;  %v1698_v28 = vpop.permute.xlu1 %1697  ;;  %v2299_v4 = vmul.f32 %v1846_v27, %v1846_v27  ;;  %v878_v7 = vadd.f32 %v3910_v18, %v3824_v24 }
 0x1a4   :  { %v1847_v48 = vsel %vm1803_vm2, %v849_v11, %v1698_v28 }
 0x1a5   :  { %v2361_v36 = vadd.f32 %v2360_v33, %v2298_v16  ;;  %v2229_v32 = vadd.f32 %v2228_v1, %v1846_v27  ;;  %v2873_v46 = vpack.c.bf16 %v1847_v48, %v1846_v27  ;;  %v1700_v42 = vpop.permute.xlu0 %1699  ;;  %v2300_v15 = vmul.f32 %v1847_v48, %v1847_v48 }
 0x1a6   :  { %v1848_v20 = vsel %vm1803_vm2, %v854_v0, %v1700_v42  ;;  %v881_v33 = vadd.f32 %v3920_v37, %v3824_v24  ;;  %v886_v16 = vadd.f32 %v3824_v24, %v3941_v30 }
 0x1a7   :  { %v2362_v50 = vadd.f32 %v2361_v36, %v2299_v4  ;;  %2976 = vst [vmem:[%s4195_s7 + $0xa8] sm:$0xff] %v2873_v46   ;;  %v2230_v52 = vadd.f32 %v2229_v32, %v1847_v48  ;;  %v2301_v58 = vmul.f32 %v1848_v20, %v1848_v20  ;;  %v1702_v60 = vpop.permute.xlu1 %1701  ;;  %v889_v32 = vadd.f32 %v3824_v24, %v3948_v8 }
 0x1a8   :  { %v1849_v10 = vsel %vm1803_vm2, %v857_v56, %v1702_v60 }
 0x1a9   :  { %v2363_v51 = vadd.f32 %v2362_v50, %v2300_v15  ;;  %v2231_v29 = vadd.f32 %v2230_v52, %v1848_v20  ;;  %v2878_v57 = vpack.c.bf16 %v1849_v10, %v1848_v20  ;;  %v1704_v2 = vpop.permute.xlu0 %1703  ;;  %v2302_v45 = vmul.f32 %v1849_v10, %v1849_v10 }
 0x1aa   :  { %v1850_v54 = vsel %vm1803_vm2, %v862_v49, %v1704_v2  ;;  %v894_v49 = vadd.f32 %v3936_v26, %v3824_v24  ;;  %v897_v2 = vadd.f32 %v3946_v38, %v3824_v24 }
 0x1ab   :  { %v2364_v43 = vadd.f32 %v2363_v51, %v2301_v58  ;;  %2977 = vst [vmem:[%s4195_s7 + $0xb0] sm:$0xff] %v2878_v57   ;;  %v2232_v12 = vadd.f32 %v2231_v29, %v1849_v10  ;;  %v1706_v62 = vpop.permute.xlu1 %1705  ;;  %v2303_v5 = vmul.f32 %v1850_v54, %v1850_v54 }
 0x1ac   :  { %v1851_v53 = vsel %vm1803_vm2, %v865_v21, %v1706_v62  ;;  %v905_v62 = vadd.f32 %v3824_v24, %v3974_v31 }
 0x1ad   :  { %v2365_v63 = vadd.f32 %v2364_v43, %v2302_v45  ;;  %v2233_v35 = vadd.f32 %v2232_v12, %v1850_v54  ;;  %v2883_v61 = vpack.c.bf16 %v1851_v53, %v1850_v54  ;;  %v1708_v9 = vpop.permute.xlu0 %1707  ;;  %v2304_v41 = vmul.f32 %v1851_v53, %v1851_v53 }
 0x1ae   :  { %v1852_v22 = vsel %vm1803_vm2, %v870_v59, %v1708_v9  ;;  %v902_v54 = vadd.f32 %v3824_v24, %v3967_v17 }
 0x1af   :  { %v2366_v3 = vadd.f32 %v2365_v63, %v2303_v5  ;;  %2978 = vst [vmem:[%s4195_s7 + $0xb8] sm:$0xff] %v2883_v61   ;;  %v2234_v13 = vadd.f32 %v2233_v35, %v1851_v53  ;;  %v2305_v55 = vmul.f32 %v1852_v22, %v1852_v22  ;;  %v1710_v6 = vpop.permute.xlu1 %1709 }
 0x1b0   :  { %v1853_v23 = vsel %vm1803_vm2, %v873_v25, %v1710_v6 }
 0x1b1   :  { %v2367_v19 = vadd.f32 %v2366_v3, %v2304_v41  ;;  %v2235_v11 = vadd.f32 %v2234_v13, %v1852_v22  ;;  %v2888_v27 = vpack.c.bf16 %v1853_v23, %v1852_v22  ;;  %v1712_v0 = vpop.permute.xlu0 %1711  ;;  %v2306_v48 = vmul.f32 %v1853_v23, %v1853_v23 }
 0x1b2   :  { %v1854_v1 = vsel %vm1803_vm2, %v878_v7, %v1712_v0  ;;  %v910_v13 = vadd.f32 %v3962_v34, %v3824_v24 }
 0x1b3   :  { %v2368_v28 = vadd.f32 %v2367_v19, %v2305_v55  ;;  %2979 = vst [vmem:[%s4195_s7 + $0xc0] sm:$0xff] %v2888_v27   ;;  %v2236_v18 = vadd.f32 %v2235_v11, %v1853_v23  ;;  %v1714_v56 = vpop.permute.xlu1 %1713  ;;  %v2307_v46 = vmul.f32 %v1854_v1, %v1854_v1  ;;  %v913_v23 = vadd.f32 %v3972_v39, %v3824_v24 }
 0x1b4   :  { %v1855_v36 = vsel %vm1803_vm2, %v881_v33, %v1714_v56  ;;  %v918_v11 = vadd.f32 %v3824_v24, %v3993_v44 }
 0x1b5   :  { %v2369_v4 = vadd.f32 %v2368_v28, %v2306_v48  ;;  %v2237_v37 = vadd.f32 %v2236_v18, %v1854_v1  ;;  %v2893_v42 = vpack.c.bf16 %v1855_v36, %v1854_v1  ;;  %v1716_v20 = vpop.permute.xlu0 %1715  ;;  %v2308_v15 = vmul.f32 %v1855_v36, %v1855_v36 }
 0x1b6   :  { %v1856_v30 = vsel %vm1803_vm2, %v886_v16, %v1716_v20  ;;  %v921_v16 = vadd.f32 %v3824_v24, %v4000_v14 }
 0x1b7   :  { %v2370_v50 = vadd.f32 %v2369_v4, %v2307_v46  ;;  %2980 = vst [vmem:[%s4195_s7 + $0xc8] sm:$0xff] %v2893_v42   ;;  %v2238_v52 = vadd.f32 %v2237_v37, %v1855_v36  ;;  %v2309_v58 = vmul.f32 %v1856_v30, %v1856_v30  ;;  %v1718_v60 = vpop.permute.xlu1 %1717  ;;  %v926_v42 = vadd.f32 %v3988_v40, %v3824_v24 }
 0x1b8   :  { %v1857_v8 = vsel %vm1803_vm2, %v889_v32, %v1718_v60 }
 0x1b9   :  { %v2371_v10 = vadd.f32 %v2370_v50, %v2308_v15  ;;  %v2239_v51 = vadd.f32 %v2238_v52, %v1856_v30  ;;  %v2898_v29 = vpack.c.bf16 %v1857_v8, %v1856_v30  ;;  %v1720_v57 = vpop.permute.xlu0 %1719  ;;  %v2310_v43 = vmul.f32 %v1857_v8, %v1857_v8 }
 0x1ba   :  { %v1858_v21 = vsel %vm1803_vm2, %v894_v49, %v1720_v57  ;;  %v929_v15 = vadd.f32 %v3998_v47, %v3824_v24 }
 0x1bb   :  { %v2372_v59 = vadd.f32 %v2371_v10, %v2309_v58  ;;  %2981 = vst [vmem:[%s4195_s7 + $0xd0] sm:$0xff] %v2898_v29   ;;  %v2240_v26 = vadd.f32 %v2239_v51, %v1857_v8  ;;  %v1722_v12 = vpop.permute.xlu1 %1721  ;;  %v2311_v25 = vmul.f32 %v1858_v21, %v1858_v21 }
 0x1bc   :  { %v1859_v45 = vsel %vm1803_vm2, %v897_v2, %v1722_v12 }
 0x1bd   :  { %v2373_v53 = vadd.f32 %v2372_v59, %v2310_v43  ;;  %v2241_v38 = vadd.f32 %v2240_v26, %v1858_v21  ;;  %v2903_v63 = vpack.c.bf16 %v1859_v45, %v1858_v21  ;;  %v1724_v35 = vpop.permute.xlu0 %1723  ;;  %v2312_v9 = vmul.f32 %v1859_v45, %v1859_v45 }
 0x1be   :  { %v1860_v17 = vsel %vm1803_vm2, %v902_v54, %v1724_v35  ;;  %v2397_v35 = vld [vmem:[%s4194_s8] sm:$0x3] }
 0x1bf   :  { %v2374_v5 = vadd.f32 %v2373_v53, %v2311_v25  ;;  %2982 = vst [vmem:[%s4195_s7 + $0xd8] sm:$0xff] %v2903_v63   ;;  %v2242_v61 = vadd.f32 %v2241_v38, %v1859_v45  ;;  %v2313_v22 = vmul.f32 %v1860_v17, %v1860_v17  ;;  %v1726_v3 = vpop.permute.xlu1 %1725 }
 0x1c0   :  { %v1861_v31 = vsel %vm1803_vm2, %v905_v62, %v1726_v3 }
 0x1c1   :  { %v2375_v41 = vadd.f32 %v2374_v5, %v2312_v9  ;;  %v2243_v55 = vadd.f32 %v2242_v61, %v1860_v17  ;;  %v2908_v6 = vpack.c.bf16 %v1861_v31, %v1860_v17  ;;  %v1728_v7 = vpop.permute.xlu0 %1727  ;;  %v2314_v0 = vmul.f32 %v1861_v31, %v1861_v31 }
 0x1c2   :  { %v1862_v19 = vsel %vm1803_vm2, %v910_v13, %v1728_v7 }
 0x1c3   :  { %v2376_v27 = vadd.f32 %v2375_v41, %v2313_v22  ;;  %2983 = vst [vmem:[%s4195_s7 + $0xe0] sm:$0xff] %v2908_v6   ;;  %v2244_v34 = vadd.f32 %v2243_v55, %v1861_v31  ;;  %v1730_v33 = vpop.permute.xlu1 %1729  ;;  %v2315_v18 = vmul.f32 %v1862_v19, %v1862_v19 }
 0x1c4   :  { %v1863_v1 = vsel %vm1803_vm2, %v913_v23, %v1730_v33 }
 0x1c5   :  { %v2377_v28 = vadd.f32 %v2376_v27, %v2314_v0  ;;  %v2245_v39 = vadd.f32 %v2244_v34, %v1862_v19  ;;  %v2913_v48 = vpack.c.bf16 %v1863_v1, %v1862_v19  ;;  %v1732_v56 = vpop.permute.xlu0 %1731  ;;  %v2316_v4 = vmul.f32 %v1863_v1, %v1863_v1 }
 0x1c6   :  { %v1864_v44 = vsel %vm1803_vm2, %v918_v11, %v1732_v56 }
 0x1c7   :  { %v2378_v36 = vadd.f32 %v2377_v28, %v2315_v18  ;;  %2984 = vst [vmem:[%s4195_s7 + $0xe8] sm:$0xff] %v2913_v48   ;;  %v2246_v32 = vadd.f32 %v2245_v39, %v1863_v1  ;;  %v2317_v37 = vmul.f32 %v1864_v44, %v1864_v44  ;;  %v1734_v46 = vpop.permute.xlu1 %1733 }
 0x1c8   :  { %v1865_v14 = vsel %vm1803_vm2, %v921_v16, %v1734_v46 }
 0x1c9   :  { %v2379_v20 = vadd.f32 %v2378_v36, %v2316_v4  ;;  %v2247_v30 = vadd.f32 %v2246_v32, %v1864_v44  ;;  %v2918_v50 = vpack.c.bf16 %v1865_v14, %v1864_v44  ;;  %v1736_v52 = vpop.permute.xlu0 %1735  ;;  %v2318_v8 = vmul.f32 %v1865_v14, %v1865_v14 }
 0x1ca   :  { %v1866_v58 = vsel %vm1803_vm2, %v926_v42, %v1736_v52 }
 0x1cb   :  { %v2380_v60 = vadd.f32 %v2379_v20, %v2317_v37  ;;  %2985 = vst [vmem:[%s4195_s7 + $0xf0] sm:$0xff] %v2918_v50   ;;  %v2248_v49 = vadd.f32 %v2247_v30, %v1865_v14  ;;  %v1738_v10 = vpop.permute.xlu1 %1737  ;;  %v2319_v57 = vmul.f32 %v1866_v58, %v1866_v58 }
 0x1cc   :  { %v1867_v40 = vsel %vm1803_vm2, %v929_v15, %v1738_v10 }
 0x1cd   :  { %v2381_v51 = vadd.f32 %v2380_v60, %v2318_v8  ;;  %v2249_v29 = vadd.f32 %v2248_v49, %v1866_v58  ;;  %v2923_v2 = vpack.c.bf16 %v1867_v40, %v1866_v58  ;;  %v2320_v47 = vmul.f32 %v1867_v40, %v1867_v40 }
 0x1cf   :  { %v2382_v21 = vadd.f32 %v2381_v51, %v2319_v57  ;;  %2986 = vst [vmem:[%s4195_s7 + $0xf8] sm:$0xff] %v2923_v2   ;;  %v2250_v24 = vadd.f32 %v2249_v29, %v1867_v40 }
 0x1d1   :  { %v2251_v54 = vrot.slane %v2250_v24, 4  ;;  %v2383_v59 = vadd.f32 %v2382_v21, %v2320_v47 }
 0x1d3   :  { %v2252_v26 = vadd.f32 %v2251_v54, %v2250_v24  ;;  %v2384_v43 = vrot.slane %v2383_v59, 4 }
 0x1d5   :  { %v2253_v12 = vrot.slane %v2252_v26, 2  ;;  %v2385_v45 = vadd.f32 %v2384_v43, %v2383_v59 }
 0x1d7   :  { %v2254_v62 = vadd.f32 %v2253_v12, %v2252_v26  ;;  %v2386_v53 = vrot.slane %v2385_v45, 2 }
 0x1d9   :  { %v2255_v38 = vrot.slane %v2254_v62, 1  ;;  %v2387_v25 = vadd.f32 %v2386_v53, %v2385_v45 }
 0x1db   :  { %v2388_v63 = vrot.slane %v2387_v25, 1  ;;  %v2256_v17 = vadd.f32 %v2255_v38, %v2254_v62 }
 0x1dd   :  { %v2389_v5 = vadd.f32 %v2388_v63, %v2387_v25 }
 0x1df   :  { %v2391_v61 = vsel %vm2390_vm10, %v2256_v17, %v2389_v5 }
 0x1e0   :  { %v2398_v9 = vadd.f32 %v2397_v35, %v2391_v61 }
 0x1e2   :  { %2399 = vst [vmem:[%s4194_s8] sm:$0x3] %v2398_v9 }

</bundles_post_ra>
